<compile_context>
chip_gen: v7x
topology: tpu7x:2x2x1
jax: 0.10.0
libtpu: 0.0.40
codegen_flags: <defaults>
</compile_context>

<pallas_src>
import functools

import numpy as np
import jax
import jax.numpy as jnp
from jax.experimental import pallas as pl
from jax.experimental.pallas import tpu as pltpu

LANE = 128      # channel axis is padded to a multiple of the 128-wide lane dim
SUBLANE = 8


def _round_up(x, m):
    return (x + m - 1) // m * m


def _conv_block_kernel(x_ref, w1_ref, w2_ref, s1_ref, b1_ref, s2_ref, b2_ref,
                       o_ref, padx_ref, pady_ref, *, NB, H, W, Cin, Cp):
    """One batch block: conv3x3 -> BN -> ReLU -> conv3x3 -> BN -> ReLU -> avgpool2x2."""
    Ho, Wo = H // 2, W // 2
    M = NB * H * W
    f32 = jnp.float32

    # Zero the padded scratches once: the interior is overwritten every grid step,
    # only the spatial border / padded channel lanes must stay zero.
    @pl.when(pl.program_id(0) == 0)
    def _init():
        padx_ref[...] = jnp.zeros(padx_ref.shape, f32)
        pady_ref[...] = jnp.zeros(pady_ref.shape, f32)

    # Place the raw-channel input into the pre-zeroed, padded scratch.
    # Lanes >= Cin stay zero (and hit zero weight rows anyway).
    padx_ref[:, 1:H + 1, 1:W + 1, :Cin] = x_ref[...]

    def conv3x3(src_ref, w_ref):
        # im2col: nine shifted (M, Cp) taps concatenated along lanes (all pieces are
        # 128-lane multiples -> pure vreg placement), then a single fat MXU matmul
        # (M, 9*Cp) @ (9*Cp, Cp) with f32 accumulation.
        taps = [
            src_ref[:, dy:dy + H, dx:dx + W, :].reshape(M, Cp)
            for dy in range(3) for dx in range(3)
        ]
        patch = jnp.concatenate(taps, axis=-1)                      # (M, 9*Cp)
        return jnp.dot(patch, w_ref[...], preferred_element_type=f32)

    # conv1 + folded BN + ReLU (lane-dense (M, Cp) accumulator)
    acc1 = conv3x3(padx_ref, w1_ref)
    y1 = jnp.maximum(acc1 * s1_ref[...] + b1_ref[...], 0.0)

    # conv2 input: spatially padded copy of y1 (full-lane dense interior store).
    pady_ref[:, 1:H + 1, 1:W + 1, :] = y1.reshape(NB, H, W, Cp)

    # conv2 + folded BN + ReLU
    acc2 = conv3x3(pady_ref, w2_ref)
    y2 = jnp.maximum(acc2 * s2_ref[...] + b2_ref[...], 0.0)

    # 2x2 average pooling on the VPU (no O((HW)^2) pooling matrix).
    # H pairs: free outer-dim regroup + add.
    y2 = y2.reshape(NB, Ho, 2, W, Cp)
    hsum = y2[:, :, 0] + y2[:, :, 1]                                # (NB, Ho, W, Cp)
    # W pairs: per output column; every store is lane-dense (Cp = 128 lanes).
    for wo in range(Wo):
        csum = (hsum[:, :, 2 * wo:2 * wo + 1, :] +
                hsum[:, :, 2 * wo + 1:2 * wo + 2, :])
        o_ref[:, :, wo:wo + 1, :] = (0.25 * csum).astype(o_ref.dtype)


def conv_block_forward(x_nchw, w1_torch, w2_torch, bn1_scale, bn1_shift,
                       bn2_scale, bn2_shift, *, batch_block=4):
    """x_nchw: (N, Cin, H, W) f32.  Returns (N, Cout, H//2, W//2) f32."""
    N, Cin, H, W = x_nchw.shape
    Cout = w1_torch.shape[0]
    Ho, Wo = H // 2, W // 2
    Cp = _round_up(max(Cin, Cout), LANE)          # lane-dense channel padding

    NB = min(N, batch_block)
    assert N % NB == 0, "batch must be divisible by the batch block"
    assert H % 2 == 0 and W % 2 == 0 and W % SUBLANE == 0

    # NCHW -> NHWC (channels on lanes); no spatial/channel pad copies in HBM.
    x_nhwc = jnp.transpose(x_nchw, (0, 2, 3, 1))

    # Pack PyTorch conv weights (Cout, Cin, 3, 3) as (9*Cp, Cp) im2col weights,
    # tap-major, zero-padded on both channel axes.
    def pack_w(w_t, cin):
        w = jnp.transpose(w_t, (2, 3, 1, 0)).reshape(9, cin, Cout)
        wp = jnp.zeros((9, Cp, Cp), jnp.float32).at[:, :cin, :Cout].set(w)
        return wp.reshape(9 * Cp, Cp)

    w1p = pack_w(w1_torch, Cin)
    w2p = pack_w(w2_torch, Cout)

    def pack_bn(scale, shift):
        s = jnp.zeros((1, Cp), jnp.float32).at[0, :Cout].set(scale.reshape(-1))
        b = jnp.zeros((1, Cp), jnp.float32).at[0, :Cout].set(shift.reshape(-1))
        return s, b

    s1, b1 = pack_bn(bn1_scale, bn1_shift)
    s2, b2 = pack_bn(bn2_scale, bn2_shift)

    Wp2 = _round_up(W + 2, SUBLANE)   # padded-scratch W axis rounded to a sublane multiple

    kernel = functools.partial(_conv_block_kernel, NB=NB, H=H, W=W, Cin=Cin, Cp=Cp)

    flops = 2 * N * H * W * 9 * (Cin * Cout + Cout * Cout)
    bytes_accessed = 4 * (x_nhwc.size + w1p.size + w2p.size + 4 * Cp + N * Ho * Wo * Cp)
    cost = pl.CostEstimate(flops=flops, transcendentals=0, bytes_accessed=bytes_accessed)

    out_padded = pl.pallas_call(
        kernel,
        out_shape=jax.ShapeDtypeStruct((N, Ho, Wo, Cp), jnp.float32),
        grid=(N // NB,),
        in_specs=[
            pl.BlockSpec((NB, H, W, Cin), lambda n: (n, 0, 0, 0)),
            pl.BlockSpec((9 * Cp, Cp), lambda n: (0, 0)),
            pl.BlockSpec((9 * Cp, Cp), lambda n: (0, 0)),
            pl.BlockSpec((1, Cp), lambda n: (0, 0)),
            pl.BlockSpec((1, Cp), lambda n: (0, 0)),
            pl.BlockSpec((1, Cp), lambda n: (0, 0)),
            pl.BlockSpec((1, Cp), lambda n: (0, 0)),
        ],
        out_specs=pl.BlockSpec((NB, Ho, Wo, Cp), lambda n: (n, 0, 0, 0)),
        scratch_shapes=[
            pltpu.VMEM((NB, H + 2, Wp2, Cp), jnp.float32),   # padded conv1 input
            pltpu.VMEM((NB, H + 2, Wp2, Cp), jnp.float32),   # padded conv2 input
        ],
        compiler_params=pltpu.CompilerParams(
            dimension_semantics=("parallel",),               # v7x: shard batch over 2 TCs
            vmem_limit_bytes=48 * 1024 * 1024),
        cost_estimate=cost,
    )(x_nhwc, w1p, w2p, s1, b1, s2, b2)

    # Slice off the lane padding, back to PyTorch NCHW.
    return jnp.transpose(out_padded[..., :Cout], (0, 3, 1, 2))


def _xavier_uniform_conv(key, cout, cin, kh, kw):
    fan_in = cin * kh * kw
    fan_out = cout * kh * kw
    bound = float(np.sqrt(6.0 / (fan_in + fan_out)))
    # PyTorch conv weight layout (Cout, Cin, kh, kw)
    return jax.random.uniform(key, (cout, cin, kh, kw), jnp.float32, -bound, bound)


def _reference(x_nchw, w1_t, w2_t, s1, b1, s2, b2):
    """Pure-JAX reference (NHWC conv via lax) for correctness checking."""
    x = jnp.transpose(x_nchw, (0, 2, 3, 1))                       # NHWC
    dn = jax.lax.conv_dimension_numbers(x.shape, (3, 3, 1, 1), ("NHWC", "HWIO", "NHWC"))

    def conv(y, w_torch):
        w = jnp.transpose(w_torch, (2, 3, 1, 0))                  # (kh, kw, Cin, Cout)
        return jax.lax.conv_general_dilated(y, w, (1, 1), ((1, 1), (1, 1)),
                                            dimension_numbers=dn)

    y = jnp.maximum(conv(x, w1_t) * s1 + b1, 0.0)
    y = jnp.maximum(conv(y, w2_t) * s2 + b2, 0.0)
    N, H, W, C = y.shape
    y = y.reshape(N, H // 2, 2, W // 2, 2, C).mean(axis=(2, 4))
    return jnp.transpose(y, (0, 3, 1, 2))                         # back to NCHW


if __name__ == "__main__":
    N, Cin, Cout, H, W = 2, 4, 8, 16, 16
    key = jax.random.PRNGKey(0)
    kx, k1, k2 = jax.random.split(key, 3)

    # PyTorch-style input: NCHW
    x = jax.random.normal(kx, (N, Cin, H, W), jnp.float32)

    # conv weights, xavier_uniform, no bias (PyTorch layout)
    w1_t = _xavier_uniform_conv(k1, Cout, Cin, 3, 3)
    w2_t = _xavier_uniform_conv(k2, Cout, Cout, 3, 3)

    # BatchNorm (eval): gamma=1, beta=0, running_mean=0, running_var=1, eps=1e-5
    eps = 1e-5
    scale1 = jnp.full((Cout,), 1.0 / np.sqrt(1.0 + eps), jnp.float32)
    shift1 = jnp.zeros((Cout,), jnp.float32)
    scale2 = jnp.full((Cout,), 1.0 / np.sqrt(1.0 + eps), jnp.float32)
    shift2 = jnp.zeros((Cout,), jnp.float32)

    out = conv_block_forward(x, w1_t, w2_t, scale1, shift1, scale2, shift2)
    out = jax.block_until_ready(out)

    ref = _reference(x, w1_t, w2_t, scale1, shift1, scale2, shift2)
    assert out.shape == (N, Cout, H // 2, W // 2), out.shape
    np.testing.assert_allclose(np.asarray(out), np.asarray(ref), rtol=1e-3, atol=2e-3)

    print("KERNEL_OK")
</pallas_src>

<mosaic_0001>
module attributes {stable_mosaic.version = 11 : i64} {
  func.func @_conv_block_kernel(%arg0: i32, %arg1: memref<2x16x16x4xf32, #tpu.memory_space<vmem>>, %arg2: memref<1152x128xf32, #tpu.memory_space<vmem>>, %arg3: memref<1152x128xf32, #tpu.memory_space<vmem>>, %arg4: memref<1x128xf32, #tpu.memory_space<vmem>>, %arg5: memref<1x128xf32, #tpu.memory_space<vmem>>, %arg6: memref<1x128xf32, #tpu.memory_space<vmem>>, %arg7: memref<1x128xf32, #tpu.memory_space<vmem>>, %arg8: memref<2x8x8x128xf32, #tpu.memory_space<vmem>>, %arg9: memref<2x18x24x128xf32, #tpu.memory_space<vmem>>, %arg10: memref<2x18x24x128xf32, #tpu.memory_space<vmem>>) attributes {dimension_semantics = [#tpu.dimension_semantics<parallel>], iteration_bounds = array<i64: 1>, scalar_prefetch = 0 : i64, scratch_operands = 2 : i64, tpu.core_type = #tpu.core_type<tc>, window_params = [{transform_indices = @transform_0, window_bounds = array<i64: 2, 16, 16, 4>}, {pipeline_mode = #tpu.pipeline_mode<synchronous>, transform_indices = @transform_1, window_bounds = array<i64: 1152, 128>}, {pipeline_mode = #tpu.pipeline_mode<synchronous>, transform_indices = @transform_2, window_bounds = array<i64: 1152, 128>}, {pipeline_mode = #tpu.pipeline_mode<synchronous>, transform_indices = @transform_3, window_bounds = array<i64: 1, 128>}, {pipeline_mode = #tpu.pipeline_mode<synchronous>, transform_indices = @transform_4, window_bounds = array<i64: 1, 128>}, {pipeline_mode = #tpu.pipeline_mode<synchronous>, transform_indices = @transform_5, window_bounds = array<i64: 1, 128>}, {pipeline_mode = #tpu.pipeline_mode<synchronous>, transform_indices = @transform_6, window_bounds = array<i64: 1, 128>}, {transform_indices = @transform_7, window_bounds = array<i64: 2, 8, 8, 128>}]} {
    %c0_i32 = arith.constant 0 : i32
    %0 = arith.cmpi eq, %arg0, %c0_i32 : i32
    %1 = arith.extui %0 : i1 to i32
    %c0_i32_0 = arith.constant 0 : i32
    %2 = arith.cmpi ne, %1, %c0_i32_0 : i32
    scf.if %2 {
      %cst_132 = arith.constant 0.000000e+00 : f32
      %119 = vector.broadcast %cst_132 : f32 to vector<2x18x24x128xf32>
      %c0_133 = arith.constant 0 : index
      %c0_134 = arith.constant 0 : index
      %c0_135 = arith.constant 0 : index
      %c0_136 = arith.constant 0 : index
      %120 = vector.load %arg9[%c0_133, %c0_134, %c0_135, %c0_136] : memref<2x18x24x128xf32, #tpu.memory_space<vmem>>, vector<2x18x24x128xf32>
      tpu.vector_store %arg9[%c0_133, %c0_134, %c0_135, %c0_136], %119 {strides = array<i32>} : memref<2x18x24x128xf32, #tpu.memory_space<vmem>>, vector<2x18x24x128xf32>,
      %cst_137 = arith.constant 0.000000e+00 : f32
      %121 = vector.broadcast %cst_137 : f32 to vector<2x18x24x128xf32>
      %c0_138 = arith.constant 0 : index
      %c0_139 = arith.constant 0 : index
      %c0_140 = arith.constant 0 : index
      %c0_141 = arith.constant 0 : index
      %122 = vector.load %arg10[%c0_138, %c0_139, %c0_140, %c0_141] : memref<2x18x24x128xf32, #tpu.memory_space<vmem>>, vector<2x18x24x128xf32>
      tpu.vector_store %arg10[%c0_138, %c0_139, %c0_140, %c0_141], %121 {strides = array<i32>} : memref<2x18x24x128xf32, #tpu.memory_space<vmem>>, vector<2x18x24x128xf32>,
    } else {
    }
    %c0 = arith.constant 0 : index
    %c0_1 = arith.constant 0 : index
    %c0_2 = arith.constant 0 : index
    %c0_3 = arith.constant 0 : index
    %3 = vector.load %arg1[%c0, %c0_1, %c0_2, %c0_3] : memref<2x16x16x4xf32, #tpu.memory_space<vmem>>, vector<2x16x16x4xf32>
    %c0_4 = arith.constant 0 : index
    %c1 = arith.constant 1 : index
    %c1_5 = arith.constant 1 : index
    %c0_6 = arith.constant 0 : index
    %4 = vector.load %arg9[%c0_4, %c1, %c1_5, %c0_6] : memref<2x18x24x128xf32, #tpu.memory_space<vmem>>, vector<2x16x16x4xf32>
    tpu.vector_store %arg9[%c0_4, %c1, %c1_5, %c0_6], %3 {strides = array<i32>} : memref<2x18x24x128xf32, #tpu.memory_space<vmem>>, vector<2x16x16x4xf32>,
    %c0_7 = arith.constant 0 : index
    %c0_8 = arith.constant 0 : index
    %c0_9 = arith.constant 0 : index
    %c0_10 = arith.constant 0 : index
    %5 = vector.load %arg9[%c0_7, %c0_8, %c0_9, %c0_10] : memref<2x18x24x128xf32, #tpu.memory_space<vmem>>, vector<2x16x16x128xf32>
    %6 = vector.shape_cast %5 : vector<2x16x16x128xf32> to vector<512x128xf32>
    %c0_11 = arith.constant 0 : index
    %c0_12 = arith.constant 0 : index
    %c1_13 = arith.constant 1 : index
    %c0_14 = arith.constant 0 : index
    %7 = vector.load %arg9[%c0_11, %c0_12, %c1_13, %c0_14] : memref<2x18x24x128xf32, #tpu.memory_space<vmem>>, vector<2x16x16x128xf32>
    %8 = vector.shape_cast %7 : vector<2x16x16x128xf32> to vector<512x128xf32>
    %c0_15 = arith.constant 0 : index
    %c0_16 = arith.constant 0 : index
    %c2 = arith.constant 2 : index
    %c0_17 = arith.constant 0 : index
    %9 = vector.load %arg9[%c0_15, %c0_16, %c2, %c0_17] : memref<2x18x24x128xf32, #tpu.memory_space<vmem>>, vector<2x16x16x128xf32>
    %10 = vector.shape_cast %9 : vector<2x16x16x128xf32> to vector<512x128xf32>
    %c0_18 = arith.constant 0 : index
    %c1_19 = arith.constant 1 : index
    %c0_20 = arith.constant 0 : index
    %c0_21 = arith.constant 0 : index
    %11 = vector.load %arg9[%c0_18, %c1_19, %c0_20, %c0_21] : memref<2x18x24x128xf32, #tpu.memory_space<vmem>>, vector<2x16x16x128xf32>
    %12 = vector.shape_cast %11 : vector<2x16x16x128xf32> to vector<512x128xf32>
    %c0_22 = arith.constant 0 : index
    %c1_23 = arith.constant 1 : index
    %c1_24 = arith.constant 1 : index
    %c0_25 = arith.constant 0 : index
    %13 = vector.load %arg9[%c0_22, %c1_23, %c1_24, %c0_25] : memref<2x18x24x128xf32, #tpu.memory_space<vmem>>, vector<2x16x16x128xf32>
    %14 = vector.shape_cast %13 : vector<2x16x16x128xf32> to vector<512x128xf32>
    %c0_26 = arith.constant 0 : index
    %c1_27 = arith.constant 1 : index
    %c2_28 = arith.constant 2 : index
    %c0_29 = arith.constant 0 : index
    %15 = vector.load %arg9[%c0_26, %c1_27, %c2_28, %c0_29] : memref<2x18x24x128xf32, #tpu.memory_space<vmem>>, vector<2x16x16x128xf32>
    %16 = vector.shape_cast %15 : vector<2x16x16x128xf32> to vector<512x128xf32>
    %c0_30 = arith.constant 0 : index
    %c2_31 = arith.constant 2 : index
    %c0_32 = arith.constant 0 : index
    %c0_33 = arith.constant 0 : index
    %17 = vector.load %arg9[%c0_30, %c2_31, %c0_32, %c0_33] : memref<2x18x24x128xf32, #tpu.memory_space<vmem>>, vector<2x16x16x128xf32>
    %18 = vector.shape_cast %17 : vector<2x16x16x128xf32> to vector<512x128xf32>
    %c0_34 = arith.constant 0 : index
    %c2_35 = arith.constant 2 : index
    %c1_36 = arith.constant 1 : index
    %c0_37 = arith.constant 0 : index
    %19 = vector.load %arg9[%c0_34, %c2_35, %c1_36, %c0_37] : memref<2x18x24x128xf32, #tpu.memory_space<vmem>>, vector<2x16x16x128xf32>
    %20 = vector.shape_cast %19 : vector<2x16x16x128xf32> to vector<512x128xf32>
    %c0_38 = arith.constant 0 : index
    %c2_39 = arith.constant 2 : index
    %c2_40 = arith.constant 2 : index
    %c0_41 = arith.constant 0 : index
    %21 = vector.load %arg9[%c0_38, %c2_39, %c2_40, %c0_41] : memref<2x18x24x128xf32, #tpu.memory_space<vmem>>, vector<2x16x16x128xf32>
    %22 = vector.shape_cast %21 : vector<2x16x16x128xf32> to vector<512x128xf32>
    %23 = tpu.concatenate %6, %8, %10, %12, %14, %16, %18, %20, %22 in 1 : vector<512x128xf32>, vector<512x128xf32>, vector<512x128xf32>, vector<512x128xf32>, vector<512x128xf32>, vector<512x128xf32>, vector<512x128xf32>, vector<512x128xf32>, vector<512x128xf32> -> vector<512x1152xf32>
    %c0_42 = arith.constant 0 : index
    %c0_43 = arith.constant 0 : index
    %24 = vector.load %arg2[%c0_42, %c0_43] : memref<1152x128xf32, #tpu.memory_space<vmem>>, vector<1152x128xf32>
    %cst = arith.constant dense<0.000000e+00> : vector<512x128xf32>
    %25 = tpu.matmul %23, %24, %cst {dimension_numbers = #tpu.dot_dimension_numbers<[1], [0], [0], [1], [0, 0, 1, 1], [], []>} : vector<512x1152xf32>, vector<1152x128xf32>, vector<512x128xf32> -> vector<512x128xf32>
    %c0_44 = arith.constant 0 : index
    %c0_45 = arith.constant 0 : index
    %26 = vector.load %arg4[%c0_44, %c0_45] : memref<1x128xf32, #tpu.memory_space<vmem>>, vector<1x128xf32>
    %27 = vector.broadcast %26 : vector<1x128xf32> to vector<512x128xf32>
    %28 = arith.mulf %25, %27 : vector<512x128xf32>
    %c0_46 = arith.constant 0 : index
    %c0_47 = arith.constant 0 : index
    %29 = vector.load %arg5[%c0_46, %c0_47] : memref<1x128xf32, #tpu.memory_space<vmem>>, vector<1x128xf32>
    %30 = vector.broadcast %29 : vector<1x128xf32> to vector<512x128xf32>
    %31 = arith.addf %28, %30 : vector<512x128xf32>
    %cst_48 = arith.constant 0.000000e+00 : f32
    %32 = vector.broadcast %cst_48 : f32 to vector<512x128xf32>
    %33 = arith.maximumf %31, %32 : vector<512x128xf32>
    %34 = vector.shape_cast %33 : vector<512x128xf32> to vector<2x16x16x128xf32>
    %c0_49 = arith.constant 0 : index
    %c1_50 = arith.constant 1 : index
    %c1_51 = arith.constant 1 : index
    %c0_52 = arith.constant 0 : index
    %35 = vector.load %arg10[%c0_49, %c1_50, %c1_51, %c0_52] : memref<2x18x24x128xf32, #tpu.memory_space<vmem>>, vector<2x16x16x128xf32>
    tpu.vector_store %arg10[%c0_49, %c1_50, %c1_51, %c0_52], %34 {strides = array<i32>} : memref<2x18x24x128xf32, #tpu.memory_space<vmem>>, vector<2x16x16x128xf32>,
    %c0_53 = arith.constant 0 : index
    %c0_54 = arith.constant 0 : index
    %c0_55 = arith.constant 0 : index
    %c0_56 = arith.constant 0 : index
    %36 = vector.load %arg10[%c0_53, %c0_54, %c0_55, %c0_56] : memref<2x18x24x128xf32, #tpu.memory_space<vmem>>, vector<2x16x16x128xf32>
    %37 = vector.shape_cast %36 : vector<2x16x16x128xf32> to vector<512x128xf32>
    %c0_57 = arith.constant 0 : index
    %c0_58 = arith.constant 0 : index
    %c1_59 = arith.constant 1 : index
    %c0_60 = arith.constant 0 : index
    %38 = vector.load %arg10[%c0_57, %c0_58, %c1_59, %c0_60] : memref<2x18x24x128xf32, #tpu.memory_space<vmem>>, vector<2x16x16x128xf32>
    %39 = vector.shape_cast %38 : vector<2x16x16x128xf32> to vector<512x128xf32>
    %c0_61 = arith.constant 0 : index
    %c0_62 = arith.constant 0 : index
    %c2_63 = arith.constant 2 : index
    %c0_64 = arith.constant 0 : index
    %40 = vector.load %arg10[%c0_61, %c0_62, %c2_63, %c0_64] : memref<2x18x24x128xf32, #tpu.memory_space<vmem>>, vector<2x16x16x128xf32>
    %41 = vector.shape_cast %40 : vector<2x16x16x128xf32> to vector<512x128xf32>
    %c0_65 = arith.constant 0 : index
    %c1_66 = arith.constant 1 : index
    %c0_67 = arith.constant 0 : index
    %c0_68 = arith.constant 0 : index
    %42 = vector.load %arg10[%c0_65, %c1_66, %c0_67, %c0_68] : memref<2x18x24x128xf32, #tpu.memory_space<vmem>>, vector<2x16x16x128xf32>
    %43 = vector.shape_cast %42 : vector<2x16x16x128xf32> to vector<512x128xf32>
    %c0_69 = arith.constant 0 : index
    %c1_70 = arith.constant 1 : index
    %c1_71 = arith.constant 1 : index
    %c0_72 = arith.constant 0 : index
    %44 = vector.load %arg10[%c0_69, %c1_70, %c1_71, %c0_72] : memref<2x18x24x128xf32, #tpu.memory_space<vmem>>, vector<2x16x16x128xf32>
    %45 = vector.shape_cast %44 : vector<2x16x16x128xf32> to vector<512x128xf32>
    %c0_73 = arith.constant 0 : index
    %c1_74 = arith.constant 1 : index
    %c2_75 = arith.constant 2 : index
    %c0_76 = arith.constant 0 : index
    %46 = vector.load %arg10[%c0_73, %c1_74, %c2_75, %c0_76] : memref<2x18x24x128xf32, #tpu.memory_space<vmem>>, vector<2x16x16x128xf32>
    %47 = vector.shape_cast %46 : vector<2x16x16x128xf32> to vector<512x128xf32>
    %c0_77 = arith.constant 0 : index
    %c2_78 = arith.constant 2 : index
    %c0_79 = arith.constant 0 : index
    %c0_80 = arith.constant 0 : index
    %48 = vector.load %arg10[%c0_77, %c2_78, %c0_79, %c0_80] : memref<2x18x24x128xf32, #tpu.memory_space<vmem>>, vector<2x16x16x128xf32>
    %49 = vector.shape_cast %48 : vector<2x16x16x128xf32> to vector<512x128xf32>
    %c0_81 = arith.constant 0 : index
    %c2_82 = arith.constant 2 : index
    %c1_83 = arith.constant 1 : index
    %c0_84 = arith.constant 0 : index
    %50 = vector.load %arg10[%c0_81, %c2_82, %c1_83, %c0_84] : memref<2x18x24x128xf32, #tpu.memory_space<vmem>>, vector<2x16x16x128xf32>
    %51 = vector.shape_cast %50 : vector<2x16x16x128xf32> to vector<512x128xf32>
    %c0_85 = arith.constant 0 : index
    %c2_86 = arith.constant 2 : index
    %c2_87 = arith.constant 2 : index
    %c0_88 = arith.constant 0 : index
    %52 = vector.load %arg10[%c0_85, %c2_86, %c2_87, %c0_88] : memref<2x18x24x128xf32, #tpu.memory_space<vmem>>, vector<2x16x16x128xf32>
    %53 = vector.shape_cast %52 : vector<2x16x16x128xf32> to vector<512x128xf32>
    %54 = tpu.concatenate %37, %39, %41, %43, %45, %47, %49, %51, %53 in 1 : vector<512x128xf32>, vector<512x128xf32>, vector<512x128xf32>, vector<512x128xf32>, vector<512x128xf32>, vector<512x128xf32>, vector<512x128xf32>, vector<512x128xf32>, vector<512x128xf32> -> vector<512x1152xf32>
    %c0_89 = arith.constant 0 : index
    %c0_90 = arith.constant 0 : index
    %55 = vector.load %arg3[%c0_89, %c0_90] : memref<1152x128xf32, #tpu.memory_space<vmem>>, vector<1152x128xf32>
    %cst_91 = arith.constant dense<0.000000e+00> : vector<512x128xf32>
    %56 = tpu.matmul %54, %55, %cst_91 {dimension_numbers = #tpu.dot_dimension_numbers<[1], [0], [0], [1], [0, 0, 1, 1], [], []>} : vector<512x1152xf32>, vector<1152x128xf32>, vector<512x128xf32> -> vector<512x128xf32>
    %c0_92 = arith.constant 0 : index
    %c0_93 = arith.constant 0 : index
    %57 = vector.load %arg6[%c0_92, %c0_93] : memref<1x128xf32, #tpu.memory_space<vmem>>, vector<1x128xf32>
    %58 = vector.broadcast %57 : vector<1x128xf32> to vector<512x128xf32>
    %59 = arith.mulf %56, %58 : vector<512x128xf32>
    %c0_94 = arith.constant 0 : index
    %c0_95 = arith.constant 0 : index
    %60 = vector.load %arg7[%c0_94, %c0_95] : memref<1x128xf32, #tpu.memory_space<vmem>>, vector<1x128xf32>
    %61 = vector.broadcast %60 : vector<1x128xf32> to vector<512x128xf32>
    %62 = arith.addf %59, %61 : vector<512x128xf32>
    %cst_96 = arith.constant 0.000000e+00 : f32
    %63 = vector.broadcast %cst_96 : f32 to vector<512x128xf32>
    %64 = arith.maximumf %62, %63 : vector<512x128xf32>
    %65 = vector.shape_cast %64 : vector<512x128xf32> to vector<2x8x2x16x128xf32>
    %66 = vector.extract_strided_slice %65 {offsets = [0, 0, 0, 0, 0], sizes = [2, 8, 1, 16, 128], strides = [1, 1, 1, 1, 1]} : vector<2x8x2x16x128xf32> to vector<2x8x1x16x128xf32>
    %67 = vector.shape_cast %66 : vector<2x8x1x16x128xf32> to vector<2x8x16x128xf32>
    %68 = vector.extract_strided_slice %65 {offsets = [0, 0, 1, 0, 0], sizes = [2, 8, 1, 16, 128], strides = [1, 1, 1, 1, 1]} : vector<2x8x2x16x128xf32> to vector<2x8x1x16x128xf32>
    %69 = vector.shape_cast %68 : vector<2x8x1x16x128xf32> to vector<2x8x16x128xf32>
    %70 = arith.addf %67, %69 : vector<2x8x16x128xf32>
    %71 = vector.extract_strided_slice %70 {offsets = [0, 0, 0, 0], sizes = [2, 8, 1, 128], strides = [1, 1, 1, 1]} : vector<2x8x16x128xf32> to vector<2x8x1x128xf32>
    %72 = vector.extract_strided_slice %70 {offsets = [0, 0, 1, 0], sizes = [2, 8, 1, 128], strides = [1, 1, 1, 1]} : vector<2x8x16x128xf32> to vector<2x8x1x128xf32>
    %73 = arith.addf %71, %72 : vector<2x8x1x128xf32>
    %cst_97 = arith.constant 2.500000e-01 : f32
    %74 = vector.broadcast %cst_97 : f32 to vector<2x8x1x128xf32>
    %75 = arith.mulf %74, %73 : vector<2x8x1x128xf32>
    %c0_98 = arith.constant 0 : index
    %c0_99 = arith.constant 0 : index
    %c0_100 = arith.constant 0 : index
    %c0_101 = arith.constant 0 : index
    %76 = vector.load %arg8[%c0_98, %c0_99, %c0_100, %c0_101] : memref<2x8x8x128xf32, #tpu.memory_space<vmem>>, vector<2x8x1x128xf32>
    tpu.vector_store %arg8[%c0_98, %c0_99, %c0_100, %c0_101], %75 {strides = array<i32>} : memref<2x8x8x128xf32, #tpu.memory_space<vmem>>, vector<2x8x1x128xf32>,
    %77 = vector.extract_strided_slice %70 {offsets = [0, 0, 2, 0], sizes = [2, 8, 1, 128], strides = [1, 1, 1, 1]} : vector<2x8x16x128xf32> to vector<2x8x1x128xf32>
    %78 = vector.extract_strided_slice %70 {offsets = [0, 0, 3, 0], sizes = [2, 8, 1, 128], strides = [1, 1, 1, 1]} : vector<2x8x16x128xf32> to vector<2x8x1x128xf32>
    %79 = arith.addf %77, %78 : vector<2x8x1x128xf32>
    %cst_102 = arith.constant 2.500000e-01 : f32
    %80 = vector.broadcast %cst_102 : f32 to vector<2x8x1x128xf32>
    %81 = arith.mulf %80, %79 : vector<2x8x1x128xf32>
    %c0_103 = arith.constant 0 : index
    %c0_104 = arith.constant 0 : index
    %c1_105 = arith.constant 1 : index
    %c0_106 = arith.constant 0 : index
    %82 = vector.load %arg8[%c0_103, %c0_104, %c1_105, %c0_106] : memref<2x8x8x128xf32, #tpu.memory_space<vmem>>, vector<2x8x1x128xf32>
    tpu.vector_store %arg8[%c0_103, %c0_104, %c1_105, %c0_106], %81 {strides = array<i32>} : memref<2x8x8x128xf32, #tpu.memory_space<vmem>>, vector<2x8x1x128xf32>,
    %83 = vector.extract_strided_slice %70 {offsets = [0, 0, 4, 0], sizes = [2, 8, 1, 128], strides = [1, 1, 1, 1]} : vector<2x8x16x128xf32> to vector<2x8x1x128xf32>
    %84 = vector.extract_strided_slice %70 {offsets = [0, 0, 5, 0], sizes = [2, 8, 1, 128], strides = [1, 1, 1, 1]} : vector<2x8x16x128xf32> to vector<2x8x1x128xf32>
    %85 = arith.addf %83, %84 : vector<2x8x1x128xf32>
    %cst_107 = arith.constant 2.500000e-01 : f32
    %86 = vector.broadcast %cst_107 : f32 to vector<2x8x1x128xf32>
    %87 = arith.mulf %86, %85 : vector<2x8x1x128xf32>
    %c0_108 = arith.constant 0 : index
    %c0_109 = arith.constant 0 : index
    %c2_110 = arith.constant 2 : index
    %c0_111 = arith.constant 0 : index
    %88 = vector.load %arg8[%c0_108, %c0_109, %c2_110, %c0_111] : memref<2x8x8x128xf32, #tpu.memory_space<vmem>>, vector<2x8x1x128xf32>
    tpu.vector_store %arg8[%c0_108, %c0_109, %c2_110, %c0_111], %87 {strides = array<i32>} : memref<2x8x8x128xf32, #tpu.memory_space<vmem>>, vector<2x8x1x128xf32>,
    %89 = vector.extract_strided_slice %70 {offsets = [0, 0, 6, 0], sizes = [2, 8, 1, 128], strides = [1, 1, 1, 1]} : vector<2x8x16x128xf32> to vector<2x8x1x128xf32>
    %90 = vector.extract_strided_slice %70 {offsets = [0, 0, 7, 0], sizes = [2, 8, 1, 128], strides = [1, 1, 1, 1]} : vector<2x8x16x128xf32> to vector<2x8x1x128xf32>
    %91 = arith.addf %89, %90 : vector<2x8x1x128xf32>
    %cst_112 = arith.constant 2.500000e-01 : f32
    %92 = vector.broadcast %cst_112 : f32 to vector<2x8x1x128xf32>
    %93 = arith.mulf %92, %91 : vector<2x8x1x128xf32>
    %c0_113 = arith.constant 0 : index
    %c0_114 = arith.constant 0 : index
    %c3 = arith.constant 3 : index
    %c0_115 = arith.constant 0 : index
    %94 = vector.load %arg8[%c0_113, %c0_114, %c3, %c0_115] : memref<2x8x8x128xf32, #tpu.memory_space<vmem>>, vector<2x8x1x128xf32>
    tpu.vector_store %arg8[%c0_113, %c0_114, %c3, %c0_115], %93 {strides = array<i32>} : memref<2x8x8x128xf32, #tpu.memory_space<vmem>>, vector<2x8x1x128xf32>,
    %95 = vector.extract_strided_slice %70 {offsets = [0, 0, 8, 0], sizes = [2, 8, 1, 128], strides = [1, 1, 1, 1]} : vector<2x8x16x128xf32> to vector<2x8x1x128xf32>
    %96 = vector.extract_strided_slice %70 {offsets = [0, 0, 9, 0], sizes = [2, 8, 1, 128], strides = [1, 1, 1, 1]} : vector<2x8x16x128xf32> to vector<2x8x1x128xf32>
    %97 = arith.addf %95, %96 : vector<2x8x1x128xf32>
    %cst_116 = arith.constant 2.500000e-01 : f32
    %98 = vector.broadcast %cst_116 : f32 to vector<2x8x1x128xf32>
    %99 = arith.mulf %98, %97 : vector<2x8x1x128xf32>
    %c0_117 = arith.constant 0 : index
    %c0_118 = arith.constant 0 : index
    %c4 = arith.constant 4 : index
    %c0_119 = arith.constant 0 : index
    %100 = vector.load %arg8[%c0_117, %c0_118, %c4, %c0_119] : memref<2x8x8x128xf32, #tpu.memory_space<vmem>>, vector<2x8x1x128xf32>
    tpu.vector_store %arg8[%c0_117, %c0_118, %c4, %c0_119], %99 {strides = array<i32>} : memref<2x8x8x128xf32, #tpu.memory_space<vmem>>, vector<2x8x1x128xf32>,
    %101 = vector.extract_strided_slice %70 {offsets = [0, 0, 10, 0], sizes = [2, 8, 1, 128], strides = [1, 1, 1, 1]} : vector<2x8x16x128xf32> to vector<2x8x1x128xf32>
    %102 = vector.extract_strided_slice %70 {offsets = [0, 0, 11, 0], sizes = [2, 8, 1, 128], strides = [1, 1, 1, 1]} : vector<2x8x16x128xf32> to vector<2x8x1x128xf32>
    %103 = arith.addf %101, %102 : vector<2x8x1x128xf32>
    %cst_120 = arith.constant 2.500000e-01 : f32
    %104 = vector.broadcast %cst_120 : f32 to vector<2x8x1x128xf32>
    %105 = arith.mulf %104, %103 : vector<2x8x1x128xf32>
    %c0_121 = arith.constant 0 : index
    %c0_122 = arith.constant 0 : index
    %c5 = arith.constant 5 : index
    %c0_123 = arith.constant 0 : index
    %106 = vector.load %arg8[%c0_121, %c0_122, %c5, %c0_123] : memref<2x8x8x128xf32, #tpu.memory_space<vmem>>, vector<2x8x1x128xf32>
    tpu.vector_store %arg8[%c0_121, %c0_122, %c5, %c0_123], %105 {strides = array<i32>} : memref<2x8x8x128xf32, #tpu.memory_space<vmem>>, vector<2x8x1x128xf32>,
    %107 = vector.extract_strided_slice %70 {offsets = [0, 0, 12, 0], sizes = [2, 8, 1, 128], strides = [1, 1, 1, 1]} : vector<2x8x16x128xf32> to vector<2x8x1x128xf32>
    %108 = vector.extract_strided_slice %70 {offsets = [0, 0, 13, 0], sizes = [2, 8, 1, 128], strides = [1, 1, 1, 1]} : vector<2x8x16x128xf32> to vector<2x8x1x128xf32>
    %109 = arith.addf %107, %108 : vector<2x8x1x128xf32>
    %cst_124 = arith.constant 2.500000e-01 : f32
    %110 = vector.broadcast %cst_124 : f32 to vector<2x8x1x128xf32>
    %111 = arith.mulf %110, %109 : vector<2x8x1x128xf32>
    %c0_125 = arith.constant 0 : index
    %c0_126 = arith.constant 0 : index
    %c6 = arith.constant 6 : index
    %c0_127 = arith.constant 0 : index
    %112 = vector.load %arg8[%c0_125, %c0_126, %c6, %c0_127] : memref<2x8x8x128xf32, #tpu.memory_space<vmem>>, vector<2x8x1x128xf32>
    tpu.vector_store %arg8[%c0_125, %c0_126, %c6, %c0_127], %111 {strides = array<i32>} : memref<2x8x8x128xf32, #tpu.memory_space<vmem>>, vector<2x8x1x128xf32>,
    %113 = vector.extract_strided_slice %70 {offsets = [0, 0, 14, 0], sizes = [2, 8, 1, 128], strides = [1, 1, 1, 1]} : vector<2x8x16x128xf32> to vector<2x8x1x128xf32>
    %114 = vector.extract_strided_slice %70 {offsets = [0, 0, 15, 0], sizes = [2, 8, 1, 128], strides = [1, 1, 1, 1]} : vector<2x8x16x128xf32> to vector<2x8x1x128xf32>
    %115 = arith.addf %113, %114 : vector<2x8x1x128xf32>
    %cst_128 = arith.constant 2.500000e-01 : f32
    %116 = vector.broadcast %cst_128 : f32 to vector<2x8x1x128xf32>
    %117 = arith.mulf %116, %115 : vector<2x8x1x128xf32>
    %c0_129 = arith.constant 0 : index
    %c0_130 = arith.constant 0 : index
    %c7 = arith.constant 7 : index
    %c0_131 = arith.constant 0 : index
    %118 = vector.load %arg8[%c0_129, %c0_130, %c7, %c0_131] : memref<2x8x8x128xf32, #tpu.memory_space<vmem>>, vector<2x8x1x128xf32>
    tpu.vector_store %arg8[%c0_129, %c0_130, %c7, %c0_131], %117 {strides = array<i32>} : memref<2x8x8x128xf32, #tpu.memory_space<vmem>>, vector<2x8x1x128xf32>,
    return
  }
  func.func @transform_0(%arg0: i32) -> (i32, i32, i32, i32) {
    %c0_i32 = arith.constant 0 : i32
    %c0_i32_0 = arith.constant 0 : i32
    %c0_i32_1 = arith.constant 0 : i32
    %c0_i32_2 = arith.constant 0 : i32
    return %arg0, %c0_i32, %c0_i32_0, %c0_i32_1 : i32, i32, i32, i32
  }
  func.func @transform_1(%arg0: i32) -> (i32, i32) {
    %c0_i32 = arith.constant 0 : i32
    %c0_i32_0 = arith.constant 0 : i32
    %c0_i32_1 = arith.constant 0 : i32
    return %c0_i32, %c0_i32_0 : i32, i32
  }
  func.func @transform_2(%arg0: i32) -> (i32, i32) {
    %c0_i32 = arith.constant 0 : i32
    %c0_i32_0 = arith.constant 0 : i32
    %c0_i32_1 = arith.constant 0 : i32
    return %c0_i32, %c0_i32_0 : i32, i32
  }
  func.func @transform_3(%arg0: i32) -> (i32, i32) {
    %c0_i32 = arith.constant 0 : i32
    %c0_i32_0 = arith.constant 0 : i32
    %c0_i32_1 = arith.constant 0 : i32
    return %c0_i32, %c0_i32_0 : i32, i32
  }
  func.func @transform_4(%arg0: i32) -> (i32, i32) {
    %c0_i32 = arith.constant 0 : i32
    %c0_i32_0 = arith.constant 0 : i32
    %c0_i32_1 = arith.constant 0 : i32
    return %c0_i32, %c0_i32_0 : i32, i32
  }
  func.func @transform_5(%arg0: i32) -> (i32, i32) {
    %c0_i32 = arith.constant 0 : i32
    %c0_i32_0 = arith.constant 0 : i32
    %c0_i32_1 = arith.constant 0 : i32
    return %c0_i32, %c0_i32_0 : i32, i32
  }
  func.func @transform_6(%arg0: i32) -> (i32, i32) {
    %c0_i32 = arith.constant 0 : i32
    %c0_i32_0 = arith.constant 0 : i32
    %c0_i32_1 = arith.constant 0 : i32
    return %c0_i32, %c0_i32_0 : i32, i32
  }
  func.func @transform_7(%arg0: i32) -> (i32, i32, i32, i32) {
    %c0_i32 = arith.constant 0 : i32
    %c0_i32_0 = arith.constant 0 : i32
    %c0_i32_1 = arith.constant 0 : i32
    %c0_i32_2 = arith.constant 0 : i32
    return %arg0, %c0_i32, %c0_i32_0, %c0_i32_1 : i32, i32, i32, i32
  }
}

</mosaic_0001>

<bundles_post_ra>
// kernel: tpu_custom_call.1
= control target key start
LH: loop header
LB: loop body
LE: loop exit
PB: predicated region body
PF: predicated region fallthrough
CT: control target
= control target key end

     0   :  { %12 = vsyncpa [#allocation5], 0  ;;  %s10927_s0 = inlined_call_operand.vmem [shape: f32[2,16,16,4], index: 0, kind: input, shape index: {}]   ;;  %s10928_s1 = inlined_call_operand.hbm [shape: f32[1152,128], index: 1, kind: input, shape index: {}]   ;;  %s10929_s2 = inlined_call_operand.hbm [shape: f32[1152,128], index: 2, kind: input, shape index: {}]   ;;  %s10930_s3 = inlined_call_operand.vmem [shape: f32[1,128], index: 3, kind: input, shape index: {}]   ;;  %s10931_s4 = inlined_call_operand.vmem [shape: f32[1,128], index: 4, kind: input, shape index: {}]   ;;  %s10932_s5 = inlined_call_operand.vmem [shape: f32[1,128], index: 5, kind: input, shape index: {}]   ;;  %s10933_s6 = inlined_call_operand.vmem [shape: f32[1,128], index: 6, kind: input, shape index: {}]   ;;  %s10934_s7 = inlined_call_operand.hbm [shape: f32[2,8,8,128], index: 7, kind: output, shape index: {}]  }
   0x1   :  { %13 = vsyncpa [#allocation8], 0 }
   0x2   :  { %14 = vsyncpa [#allocation6], 0  ;;  %s8251_s24 = smov [#allocation4]   ;;  %s8179_s28 = scalar_lea.hbm %s10928_s1, 18432 }
   0x3   :  { %s22_s25 = sshll.u32 %s8251_s24, 4  ;;  %p8180_p0 = scmp.ne.s32.totalorder %s10928_s1, %s8179_s28  ;;  %s23_s25 = int_to_ptr.vmem [resolvable:$true] %s22_s25 }
   0x4   :  { %p8183_p1 = scmp.lt.u32.totalorder %s8179_s28, %s10928_s1 }
   0x6   :  { %p8185_p2 = pnand %p8183_p1, %p8180_p0 }
   0x8   :  { %8188 = shalt.err (!%p8185_p2)
}
   0x9   :  { %s8189_s10 = scalar_lea.vmem %s23_s25, 18432  ;;  %p8194_p4 = scmp.lt.s32.totalorder %s23_s25, %s23_s25 }
   0xa   :  { %p8190_p3 = scmp.ne.s32.totalorder %s23_s25, %s8189_s10  ;;  %p8195_p5 = scmp.lt.s32.totalorder %s8189_s10, %s8189_s10 }
   0xc   :  { %p8196_p6 = por %p8195_p5, %p8194_p4 }
   0xe   :  { %p8197_p7 = pnand %p8196_p6, %p8190_p3 }
  0x10   :  { %8200 = shalt.err (!%p8197_p7)
}
  0x11   :  { %s8252_s11 = smov 128   ;;  %s8253_s12 = smov 8  }
  0x12   :  { %28 = dma.hbm_to_vmem [thread:$0]  %s10928_s1, 18432, %s23_s25, [#allocation5], %s8252_s11, %s8252_s11, %s8253_s12  }
  0x13   :  { %s8254_s15 = smov [#allocation7]   ;;  %s8201_s19 = scalar_lea.hbm %s10929_s2, 18432 }
  0x14   :  { %s34_s16 = sshll.u32 %s8254_s15, 4  ;;  %p8202_p8 = scmp.ne.s32.totalorder %s10929_s2, %s8201_s19  ;;  %s35_s16 = int_to_ptr.vmem [resolvable:$true] %s34_s16 }
  0x15   :  { %p8205_p9 = scmp.lt.u32.totalorder %s8201_s19, %s10929_s2 }
  0x17   :  { %p8207_p10 = pnand %p8205_p9, %p8202_p8 }
  0x19   :  { %8210 = shalt.err (!%p8207_p10)
}
  0x1a   :  { %s8211_s24 = scalar_lea.vmem %s35_s16, 18432  ;;  %p8216_p12 = scmp.lt.s32.totalorder %s35_s16, %s35_s16 }
  0x1b   :  { %p8212_p11 = scmp.ne.s32.totalorder %s35_s16, %s8211_s24  ;;  %p8217_p13 = scmp.lt.s32.totalorder %s8211_s24, %s8211_s24 }
  0x1d   :  { %p8218_p0 = por %p8217_p13, %p8216_p12 }
  0x1f   :  { %p8219_p1 = pnand %p8218_p0, %p8212_p11 }
  0x21   :  { %8222 = shalt.err (!%p8219_p1)
}
  0x22   :  { %40 = dma.hbm_to_vmem [thread:$0]  %s10929_s2, 18432, %s35_s16, [#allocation8], %s8252_s11, %s8252_s11, %s8253_s12  }
  0x23   :  { %8245 = dma.done.wait [#allocation5], 18432  }
  0x24   :  { %8246 = vsyncadd [#allocation5], 4294948864 }
  0x25   :  { %8247 = dma.done.wait [#allocation8], 18432  }
  0x26   :  { %8248 = vsyncadd [#allocation8], 4294948864  ;;  %v10935_v0 = vmov 0.0|0.0   ;;  %v8256_v1 = vmov 0.0   ;;  %v982_v2 = vld [vmem:[#allocation4] sm:$0xff]  ;;  %v983_v3 = vld [vmem:[#allocation4 + $0x8] sm:$0xff] }
  0x27   :  { %6932 = vmatprep.subr.bf16.mxu0 %v10935_v0  ;;  %59 = vst [vmem:[#allocation2] sm:$0xff] %v8256_v1  ;;  %60 = vst [vmem:[#allocation2 + $0x8] sm:$0xff] %v8256_v1  ;;  %v984_v4 = vld [vmem:[#allocation4 + $0x10] sm:$0xff]  ;;  %v6933_v5 = vpack.c.bf16 %v983_v3, %v982_v2  ;;  %v985_v6 = vld [vmem:[#allocation4 + $0x18] sm:$0xff]  ;;  %vm340_vm0 = vcmask 31744  }
  0x28   :  { %61 = vst [vmem:[#allocation2 + $0x10] sm:$0xff] %v8256_v1  ;;  %62 = vst [vmem:[#allocation2 + $0x18] sm:$0xff] %v8256_v1  ;;  %v6936_v7 = vpack.c.bf16 %v985_v6, %v984_v4  ;;  %v986_v8 = vld [vmem:[#allocation4 + $0x20] sm:$0xff]  ;;  %v987_v9 = vld [vmem:[#allocation4 + $0x28] sm:$0xff] }
  0x29   :  { %63 = vst [vmem:[#allocation2 + $0x20] sm:$0xff] %v8256_v1  ;;  %64 = vst [vmem:[#allocation2 + $0x28] sm:$0xff] %v8256_v1  ;;  %6934 = vmatpush1.bf16.msra.mxu0 %v6933_v5  ;;  %v6939_v10 = vpack.c.bf16 %v987_v9, %v986_v8  ;;  %v988_v11 = vld [vmem:[#allocation4 + $0x30] sm:$0xff]  ;;  %v989_v12 = vld [vmem:[#allocation4 + $0x38] sm:$0xff] }
  0x2a   :  { %65 = vst [vmem:[#allocation2 + $0x30] sm:$0xff] %v8256_v1  ;;  %66 = vst [vmem:[#allocation2 + $0x38] sm:$0xff] %v8256_v1  ;;  %6935 = vmatprep.subr.bf16.mxu0 %v10935_v0  ;;  %v6942_v14 = vpack.c.bf16 %v989_v12, %v988_v11  ;;  %v990_v15 = vld [vmem:[#allocation4 + $0x40] sm:$0xff]  ;;  %v991_v16 = vld [vmem:[#allocation4 + $0x48] sm:$0xff] }
  0x2b   :  { %67 = vst [vmem:[#allocation2 + $0x40] sm:$0xff] %v8256_v1  ;;  %68 = vst [vmem:[#allocation2 + $0x48] sm:$0xff] %v8256_v1  ;;  %v275_v17 = vld [vmem:[%s10927_s0] sm:$0xff]  ;;  %v276_v18 = vld [vmem:[%s10927_s0 + $0x8] sm:$0xff]  ;;  %v6945_v24 = vpack.c.bf16 %v991_v16, %v990_v15 }
  0x2c   :  { %69 = vst [vmem:[#allocation2 + $0x50] sm:$0xff] %v8256_v1  ;;  %70 = vst [vmem:[#allocation2 + $0x58] sm:$0xff] %v8256_v1  ;;  %v277_v19 = vld [vmem:[%s10927_s0 + $0x10] sm:$0xff]  ;;  %v278_v20 = vld [vmem:[%s10927_s0 + $0x18] sm:$0xff] }
  0x2d   :  { %71 = vst [vmem:[#allocation2 + $0x60] sm:$0xff] %v8256_v1  ;;  %72 = vst [vmem:[#allocation2 + $0x68] sm:$0xff] %v8256_v1  ;;  %6937 = vmatpush1.bf16.msra.mxu0 %v6936_v7  ;;  %v279_v21 = vld [vmem:[%s10927_s0 + $0x20] sm:$0xff]  ;;  %v280_v22 = vld [vmem:[%s10927_s0 + $0x28] sm:$0xff] }
  0x2e   :  { %73 = vst [vmem:[#allocation2 + $0x70] sm:$0xff] %v8256_v1  ;;  %74 = vst [vmem:[#allocation2 + $0x78] sm:$0xff] %v8256_v1  ;;  %6938 = vmatprep.subr.bf16.mxu0 %v10935_v0  ;;  %v469_v13 = vld [vmem:[#allocation2 + $0x1] sm:$0xff]  ;;  %v281_v23 = vld [vmem:[%s10927_s0 + $0x30] sm:$0xff] }
  0x2f   :  { %75 = vst [vmem:[#allocation2 + $0x80] sm:$0xff] %v8256_v1  ;;  %76 = vst [vmem:[#allocation2 + $0x88] sm:$0xff] %v8256_v1  ;;  %1190 = vmatprep.mubr.f32.mxu0 %v469_v13  ;;  %v992_v25 = vld [vmem:[#allocation4 + $0x50] sm:$0xff]  ;;  %v993_v26 = vld [vmem:[#allocation4 + $0x58] sm:$0xff] }
  0x30   :  { %77 = vst [vmem:[#allocation2 + $0x90] sm:$0xff] %v8256_v1  ;;  %78 = vst [vmem:[#allocation2 + $0x98] sm:$0xff] %v8256_v1  ;;  %v282_v27 = vld [vmem:[%s10927_s0 + $0x38] sm:$0xff]  ;;  %v283_v28 = vld [vmem:[%s10927_s0 + $0x40] sm:$0xff]  ;;  %v6948_v35 = vpack.c.bf16 %v993_v26, %v992_v25 }
  0x31   :  { %79 = vst [vmem:[#allocation2 + $0xa0] sm:$0xff] %v8256_v1  ;;  %80 = vst [vmem:[#allocation2 + $0xa8] sm:$0xff] %v8256_v1  ;;  %6940 = vmatpush1.bf16.msra.mxu0 %v6939_v10  ;;  %v284_v29 = vld [vmem:[%s10927_s0 + $0x48] sm:$0xff]  ;;  %v285_v30 = vld [vmem:[%s10927_s0 + $0x50] sm:$0xff] }
  0x32   :  { %81 = vst [vmem:[#allocation2 + $0xb0] sm:$0xff] %v8256_v1  ;;  %82 = vst [vmem:[#allocation2 + $0xb8] sm:$0xff] %v8256_v1  ;;  %6941 = vmatprep.subr.bf16.mxu0 %v10935_v0  ;;  %v286_v31 = vld [vmem:[%s10927_s0 + $0x58] sm:$0xff]  ;;  %v287_v32 = vld [vmem:[%s10927_s0 + $0x60] sm:$0xff] }
  0x33   :  { %83 = vst [vmem:[#allocation2 + $0xc0] sm:$0xff] %v8256_v1  ;;  %84 = vst [vmem:[#allocation2 + $0xc8] sm:$0xff] %v8256_v1  ;;  %v288_v33 = vld [vmem:[%s10927_s0 + $0x68] sm:$0xff]  ;;  %v289_v34 = vld [vmem:[%s10927_s0 + $0x70] sm:$0xff] }
  0x34   :  { %85 = vst [vmem:[#allocation2 + $0xd0] sm:$0xff] %v8256_v1  ;;  %86 = vst [vmem:[#allocation2 + $0xd8] sm:$0xff] %v8256_v1  ;;  %v290_v36 = vld [vmem:[%s10927_s0 + $0x78] sm:$0xff]  ;;  %v994_v37 = vld [vmem:[#allocation4 + $0x60] sm:$0xff] }
  0x35   :  { %87 = vst [vmem:[#allocation2 + $0xe0] sm:$0xff] %v8256_v1  ;;  %88 = vst [vmem:[#allocation2 + $0xe8] sm:$0xff] %v8256_v1  ;;  %6943 = vmatpush1.bf16.msra.mxu0 %v6942_v14  ;;  %v995_v38 = vld [vmem:[#allocation4 + $0x68] sm:$0xff]  ;;  %v996_v40 = vld [vmem:[#allocation4 + $0x70] sm:$0xff] }
  0x36   :  { %89 = vst [vmem:[#allocation2 + $0xf0] sm:$0xff] %v8256_v1  ;;  %90 = vst [vmem:[#allocation2 + $0xf8] sm:$0xff] %v8256_v1  ;;  %6944 = vmatprep.subr.bf16.mxu0 %v10935_v0  ;;  %v6951_v39 = vpack.c.bf16 %v995_v38, %v994_v37  ;;  %v997_v41 = vld [vmem:[#allocation4 + $0x78] sm:$0xff]  ;;  %v998_v43 = vld [vmem:[#allocation4 + $0x80] sm:$0xff] }
  0x37   :  { %91 = vst [vmem:[#allocation2 + $0x100] sm:$0xff] %v8256_v1  ;;  %92 = vst [vmem:[#allocation2 + $0x108] sm:$0xff] %v8256_v1  ;;  %v6954_v42 = vpack.c.bf16 %v997_v41, %v996_v40  ;;  %v999_v44 = vld [vmem:[#allocation4 + $0x88] sm:$0xff]  ;;  %v291_v45 = vld [vmem:[%s10927_s0 + $0x80] sm:$0xff] }
  0x38   :  { %93 = vst [vmem:[#allocation2 + $0x110] sm:$0xff] %v8256_v1  ;;  %94 = vst [vmem:[#allocation2 + $0x118] sm:$0xff] %v8256_v1  ;;  %v6957_v46 = vpack.c.bf16 %v999_v44, %v998_v43  ;;  %v1000_v47 = vld [vmem:[#allocation4 + $0x90] sm:$0xff]  ;;  %v292_v48 = vld [vmem:[%s10927_s0 + $0x88] sm:$0xff] }
  0x39   :  { %95 = vst [vmem:[#allocation2 + $0x120] sm:$0xff] %v8256_v1  ;;  %96 = vst [vmem:[#allocation2 + $0x128] sm:$0xff] %v8256_v1  ;;  %6946 = vmatpush1.bf16.msra.mxu0 %v6945_v24  ;;  %v293_v49 = vld [vmem:[%s10927_s0 + $0x90] sm:$0xff]  ;;  %v1001_v50 = vld [vmem:[#allocation4 + $0x98] sm:$0xff] }
  0x3a   :  { %97 = vst [vmem:[#allocation2 + $0x130] sm:$0xff] %v8256_v1  ;;  %98 = vst [vmem:[#allocation2 + $0x138] sm:$0xff] %v8256_v1  ;;  %6947 = vmatprep.subr.bf16.mxu0 %v10935_v0  ;;  %v294_v51 = vld [vmem:[%s10927_s0 + $0x98] sm:$0xff]  ;;  %v295_v52 = vld [vmem:[%s10927_s0 + $0xa0] sm:$0xff]  ;;  %v6960_v57 = vpack.c.bf16 %v1001_v50, %v1000_v47 }
  0x3b   :  { %99 = vst [vmem:[#allocation2 + $0x140] sm:$0xff] %v8256_v1  ;;  %100 = vst [vmem:[#allocation2 + $0x148] sm:$0xff] %v8256_v1  ;;  %v296_v53 = vld [vmem:[%s10927_s0 + $0xa8] sm:$0xff]  ;;  %v297_v54 = vld [vmem:[%s10927_s0 + $0xb0] sm:$0xff] }
  0x3c   :  { %101 = vst [vmem:[#allocation2 + $0x150] sm:$0xff] %v8256_v1  ;;  %102 = vst [vmem:[#allocation2 + $0x158] sm:$0xff] %v8256_v1  ;;  %v298_v55 = vld [vmem:[%s10927_s0 + $0xb8] sm:$0xff]  ;;  %v299_v56 = vld [vmem:[%s10927_s0 + $0xc0] sm:$0xff] }
  0x3d   :  { %103 = vst [vmem:[#allocation2 + $0x160] sm:$0xff] %v8256_v1  ;;  %104 = vst [vmem:[#allocation2 + $0x168] sm:$0xff] %v8256_v1  ;;  %6949 = vmatpush1.bf16.msra.mxu0 %v6948_v35  ;;  %v1002_v58 = vld [vmem:[#allocation4 + $0xa0] sm:$0xff]  ;;  %v1003_v59 = vld [vmem:[#allocation4 + $0xa8] sm:$0xff] }
  0x3e   :  { %105 = vst [vmem:[#allocation2 + $0x170] sm:$0xff] %v8256_v1  ;;  %106 = vst [vmem:[#allocation2 + $0x178] sm:$0xff] %v8256_v1  ;;  %6950 = vmatprep.subr.bf16.mxu0 %v10935_v0  ;;  %v300_v60 = vld [vmem:[%s10927_s0 + $0xc8] sm:$0xff]  ;;  %v6963_v61 = vpack.c.bf16 %v1003_v59, %v1002_v58  ;;  %v1004_v62 = vld [vmem:[#allocation4 + $0xb0] sm:$0xff] }
  0x3f   :  { %107 = vst [vmem:[#allocation2 + $0x180] sm:$0xff] %v8256_v1  ;;  %108 = vst [vmem:[#allocation2 + $0x188] sm:$0xff] %v8256_v1  ;;  %v1005_v63 = vld [vmem:[#allocation4 + $0xb8] sm:$0xff]  ;;  %v1006_v3 = vld [vmem:[#allocation4 + $0xc0] sm:$0xff] }
  0x40   :  { %109 = vst [vmem:[#allocation2 + $0x190] sm:$0xff] %v8256_v1  ;;  %110 = vst [vmem:[#allocation2 + $0x198] sm:$0xff] %v8256_v1  ;;  %v6966_v2 = vpack.c.bf16 %v1005_v63, %v1004_v62  ;;  %v1007_v4 = vld [vmem:[#allocation4 + $0xc8] sm:$0xff]  ;;  %v301_v5 = vld [vmem:[%s10927_s0 + $0xd0] sm:$0xff] }
  0x41   :  { %111 = vst [vmem:[#allocation2 + $0x1a0] sm:$0xff] %v8256_v1  ;;  %112 = vst [vmem:[#allocation2 + $0x1a8] sm:$0xff] %v8256_v1  ;;  %6952 = vmatpush1.bf16.msra.mxu0 %v6951_v39  ;;  %v302_v6 = vld [vmem:[%s10927_s0 + $0xd8] sm:$0xff]  ;;  %v6969_v7 = vpack.c.bf16 %v1007_v4, %v1006_v3  ;;  %v1008_v8 = vld [vmem:[#allocation4 + $0xd0] sm:$0xff] }
  0x42   :  { %113 = vst [vmem:[#allocation2 + $0x1b0] sm:$0xff] %v8256_v1  ;;  %114 = vst [vmem:[#allocation2 + $0x1b8] sm:$0xff] %v8256_v1  ;;  %6953 = vmatprep.subr.bf16.mxu0 %v10935_v0  ;;  %v1009_v9 = vld [vmem:[#allocation4 + $0xd8] sm:$0xff]  ;;  %v303_v10 = vld [vmem:[%s10927_s0 + $0xe0] sm:$0xff] }
  0x43   :  { %115 = vst [vmem:[#allocation2 + $0x1c0] sm:$0xff] %v8256_v1  ;;  %116 = vst [vmem:[#allocation2 + $0x1c8] sm:$0xff] %v8256_v1  ;;  %v6972_v11 = vpack.c.bf16 %v1009_v9, %v1008_v8  ;;  %v1010_v12 = vld [vmem:[#allocation4 + $0xe0] sm:$0xff]  ;;  %v1011_v13 = vld [vmem:[#allocation4 + $0xe8] sm:$0xff] }
  0x44   :  { %117 = vst [vmem:[#allocation2 + $0x1d0] sm:$0xff] %v8256_v1  ;;  %118 = vst [vmem:[#allocation2 + $0x1d8] sm:$0xff] %v8256_v1  ;;  %v304_v14 = vld [vmem:[%s10927_s0 + $0xe8] sm:$0xff]  ;;  %v6975_v15 = vpack.c.bf16 %v1011_v13, %v1010_v12  ;;  %v1012_v16 = vld [vmem:[#allocation4 + $0xf0] sm:$0xff] }
  0x45   :  { %119 = vst [vmem:[#allocation2 + $0x1e0] sm:$0xff] %v8256_v1  ;;  %120 = vst [vmem:[#allocation2 + $0x1e8] sm:$0xff] %v8256_v1  ;;  %6955 = vmatpush1.bf16.msra.mxu0 %v6954_v42  ;;  %v1017_v24 = vld [vmem:[#allocation4 + $0x118] sm:$0xff]  ;;  %v307_v25 = vld [vmem:[%s10927_s0 + $0x100] sm:$0xff] }
  0x46   :  { %121 = vst [vmem:[#allocation2 + $0x1f0] sm:$0xff] %v8256_v1  ;;  %122 = vst [vmem:[#allocation2 + $0x1f8] sm:$0xff] %v8256_v1  ;;  %6956 = vmatprep.subr.bf16.mxu0 %v10935_v0  ;;  %v1021_v35 = vld [vmem:[#allocation4 + $0x138] sm:$0xff]  ;;  %v1022_v38 = vld [vmem:[#allocation4 + $0x140] sm:$0xff] }
  0x47   :  { %123 = vst [vmem:[#allocation2 + $0x200] sm:$0xff] %v8256_v1  ;;  %124 = vst [vmem:[#allocation2 + $0x208] sm:$0xff] %v8256_v1  ;;  %v1023_v40 = vld [vmem:[#allocation4 + $0x148] sm:$0xff]  ;;  %v310_v41 = vld [vmem:[%s10927_s0 + $0x118] sm:$0xff] }
  0x48   :  { %125 = vst [vmem:[#allocation2 + $0x210] sm:$0xff] %v8256_v1  ;;  %126 = vst [vmem:[#allocation2 + $0x218] sm:$0xff] %v8256_v1  ;;  %v6993_v44 = vpack.c.bf16 %v1023_v40, %v1022_v38  ;;  %v311_v47 = vld [vmem:[%s10927_s0 + $0x120] sm:$0xff]  ;;  %v1029_v58 = vld [vmem:[#allocation4 + $0x178] sm:$0xff] }
  0x49   :  { %127 = vst [vmem:[#allocation2 + $0x220] sm:$0xff] %v8256_v1  ;;  %128 = vst [vmem:[#allocation2 + $0x228] sm:$0xff] %v8256_v1  ;;  %6958 = vmatpush1.bf16.msra.mxu0 %v6957_v46  ;;  %v1025_v46 = vld [vmem:[#allocation4 + $0x158] sm:$0xff]  ;;  %v313_v59 = vld [vmem:[%s10927_s0 + $0x130] sm:$0xff] }
  0x4a   :  { %129 = vst [vmem:[#allocation2 + $0x230] sm:$0xff] %v8256_v1  ;;  %130 = vst [vmem:[#allocation2 + $0x238] sm:$0xff] %v8256_v1  ;;  %6959 = vmatprep.subr.bf16.mxu0 %v10935_v0  ;;  %v1030_v63 = vld [vmem:[#allocation4 + $0x180] sm:$0xff]  ;;  %v314_v3 = vld [vmem:[%s10927_s0 + $0x138] sm:$0xff] }
  0x4b   :  { %131 = vst [vmem:[#allocation2 + $0x240] sm:$0xff] %v8256_v1  ;;  %132 = vst [vmem:[#allocation2 + $0x248] sm:$0xff] %v8256_v1  ;;  %v1033_v8 = vld [vmem:[#allocation4 + $0x198] sm:$0xff]  ;;  %v315_v9 = vld [vmem:[%s10927_s0 + $0x140] sm:$0xff] }
  0x4c   :  { %133 = vst [vmem:[#allocation2 + $0x250] sm:$0xff] %v8256_v1  ;;  %134 = vst [vmem:[#allocation2 + $0x258] sm:$0xff] %v8256_v1  ;;  %v1034_v13 = vld [vmem:[#allocation4 + $0x1a0] sm:$0xff]  ;;  %v322_v38 = vld [vmem:[%s10927_s0 + $0x178] sm:$0xff] }
  0x4d   :  { %135 = vst [vmem:[#allocation2 + $0x260] sm:$0xff] %v8256_v1  ;;  %136 = vst [vmem:[#allocation2 + $0x268] sm:$0xff] %v8256_v1  ;;  %6961 = vmatpush1.bf16.msra.mxu0 %v6960_v57  ;;  %v1028_v57 = vld [vmem:[#allocation4 + $0x170] sm:$0xff] }
  0x4e   :  { %137 = vst [vmem:[#allocation2 + $0x270] sm:$0xff] %v8256_v1  ;;  %138 = vst [vmem:[#allocation2 + $0x278] sm:$0xff] %v8256_v1  ;;  %6962 = vmatprep.subr.bf16.mxu0 %v10935_v0  ;;  %v7002_v62 = vpack.c.bf16 %v1029_v58, %v1028_v57 }
  0x4f   :  { %139 = vst [vmem:[#allocation2 + $0x280] sm:$0xff] %v8256_v1  ;;  %140 = vst [vmem:[#allocation2 + $0x288] sm:$0xff] %v8256_v1 }
  0x50   :  { %141 = vst [vmem:[#allocation2 + $0x290] sm:$0xff] %v8256_v1  ;;  %142 = vst [vmem:[#allocation2 + $0x298] sm:$0xff] %v8256_v1 }
  0x51   :  { %143 = vst [vmem:[#allocation2 + $0x2a0] sm:$0xff] %v8256_v1  ;;  %144 = vst [vmem:[#allocation2 + $0x2a8] sm:$0xff] %v8256_v1  ;;  %6964 = vmatpush1.bf16.msra.mxu0 %v6963_v61 }
  0x52   :  { %145 = vst [vmem:[#allocation2 + $0x2b0] sm:$0xff] %v8256_v1  ;;  %146 = vst [vmem:[#allocation2 + $0x2b8] sm:$0xff] %v8256_v1  ;;  %6965 = vmatprep.subr.bf16.mxu0 %v10935_v0 }
  0x53   :  { %147 = vst [vmem:[#allocation2 + $0x2c0] sm:$0xff] %v8256_v1  ;;  %148 = vst [vmem:[#allocation2 + $0x2c8] sm:$0xff] %v8256_v1 }
  0x54   :  { %149 = vst [vmem:[#allocation2 + $0x2d0] sm:$0xff] %v8256_v1  ;;  %150 = vst [vmem:[#allocation2 + $0x2d8] sm:$0xff] %v8256_v1 }
  0x55   :  { %151 = vst [vmem:[#allocation2 + $0x2e0] sm:$0xff] %v8256_v1  ;;  %152 = vst [vmem:[#allocation2 + $0x2e8] sm:$0xff] %v8256_v1  ;;  %6967 = vmatpush1.bf16.msra.mxu0 %v6966_v2  ;;  %v1031_v2 = vld [vmem:[#allocation4 + $0x188] sm:$0xff] }
  0x56   :  { %153 = vst [vmem:[#allocation2 + $0x2f0] sm:$0xff] %v8256_v1  ;;  %154 = vst [vmem:[#allocation2 + $0x2f8] sm:$0xff] %v8256_v1  ;;  %6968 = vmatprep.subr.bf16.mxu0 %v10935_v0 }
  0x57   :  { %155 = vst [vmem:[#allocation2 + $0x300] sm:$0xff] %v8256_v1  ;;  %156 = vst [vmem:[#allocation2 + $0x308] sm:$0xff] %v8256_v1 }
  0x58   :  { %157 = vst [vmem:[#allocation2 + $0x310] sm:$0xff] %v8256_v1  ;;  %158 = vst [vmem:[#allocation2 + $0x318] sm:$0xff] %v8256_v1 }
  0x59   :  { %159 = vst [vmem:[#allocation2 + $0x320] sm:$0xff] %v8256_v1  ;;  %160 = vst [vmem:[#allocation2 + $0x328] sm:$0xff] %v8256_v1  ;;  %6970 = vmatpush1.bf16.msra.mxu0 %v6969_v7  ;;  %v1032_v7 = vld [vmem:[#allocation4 + $0x190] sm:$0xff] }
  0x5a   :  { %161 = vst [vmem:[#allocation2 + $0x330] sm:$0xff] %v8256_v1  ;;  %162 = vst [vmem:[#allocation2 + $0x338] sm:$0xff] %v8256_v1  ;;  %6971 = vmatprep.subr.bf16.mxu0 %v10935_v0  ;;  %v7008_v12 = vpack.c.bf16 %v1033_v8, %v1032_v7  ;;  %v329_v8 = vld [vmem:[%s10927_s0 + $0x1b0] sm:$0xff] }
  0x5b   :  { %163 = vst [vmem:[#allocation2 + $0x340] sm:$0xff] %v8256_v1  ;;  %164 = vst [vmem:[#allocation2 + $0x348] sm:$0xff] %v8256_v1 }
  0x5c   :  { %165 = vst [vmem:[#allocation2 + $0x350] sm:$0xff] %v8256_v1  ;;  %166 = vst [vmem:[#allocation2 + $0x358] sm:$0xff] %v8256_v1 }
  0x5d   :  { %167 = vst [vmem:[#allocation3] sm:$0xff] %v8256_v1  ;;  %168 = vst [vmem:[#allocation3 + $0x8] sm:$0xff] %v8256_v1  ;;  %6973 = vmatpush1.bf16.msra.mxu0 %v6972_v11 }
  0x5e   :  { %169 = vst [vmem:[#allocation3 + $0x10] sm:$0xff] %v8256_v1  ;;  %170 = vst [vmem:[#allocation3 + $0x18] sm:$0xff] %v8256_v1  ;;  %6974 = vmatprep.subr.bf16.mxu0 %v10935_v0 }
  0x5f   :  { %171 = vst [vmem:[#allocation3 + $0x20] sm:$0xff] %v8256_v1  ;;  %172 = vst [vmem:[#allocation3 + $0x28] sm:$0xff] %v8256_v1 }
  0x60   :  { %173 = vst [vmem:[#allocation3 + $0x30] sm:$0xff] %v8256_v1  ;;  %174 = vst [vmem:[#allocation3 + $0x38] sm:$0xff] %v8256_v1 }
  0x61   :  { %175 = vst [vmem:[#allocation3 + $0x40] sm:$0xff] %v8256_v1  ;;  %176 = vst [vmem:[#allocation3 + $0x48] sm:$0xff] %v8256_v1  ;;  %6976 = vmatpush1.bf16.msra.mxu0 %v6975_v15  ;;  %v316_v15 = vld [vmem:[%s10927_s0 + $0x148] sm:$0xff] }
  0x62   :  { %177 = vst [vmem:[#allocation3 + $0x50] sm:$0xff] %v8256_v1  ;;  %178 = vst [vmem:[#allocation3 + $0x58] sm:$0xff] %v8256_v1  ;;  %6977 = vmatprep.subr.bf16.mxu0 %v10935_v0 }
  0x63   :  { %179 = vst [vmem:[#allocation3 + $0x60] sm:$0xff] %v8256_v1  ;;  %180 = vst [vmem:[#allocation3 + $0x68] sm:$0xff] %v8256_v1 }
  0x64   :  { %181 = vst [vmem:[#allocation3 + $0x70] sm:$0xff] %v8256_v1  ;;  %182 = vst [vmem:[#allocation3 + $0x78] sm:$0xff] %v8256_v1 }
  0x65   :  { %183 = vst [vmem:[#allocation3 + $0x80] sm:$0xff] %v8256_v1  ;;  %184 = vst [vmem:[#allocation3 + $0x88] sm:$0xff] %v8256_v1 }
  0x66   :  { %185 = vst [vmem:[#allocation3 + $0x90] sm:$0xff] %v8256_v1  ;;  %186 = vst [vmem:[#allocation3 + $0x98] sm:$0xff] %v8256_v1 }
  0x67   :  { %187 = vst [vmem:[#allocation3 + $0xa0] sm:$0xff] %v8256_v1  ;;  %188 = vst [vmem:[#allocation3 + $0xa8] sm:$0xff] %v8256_v1 }
  0x68   :  { %189 = vst [vmem:[#allocation3 + $0xb0] sm:$0xff] %v8256_v1  ;;  %190 = vst [vmem:[#allocation3 + $0xb8] sm:$0xff] %v8256_v1 }
  0x69   :  { %191 = vst [vmem:[#allocation3 + $0xc0] sm:$0xff] %v8256_v1  ;;  %192 = vst [vmem:[#allocation3 + $0xc8] sm:$0xff] %v8256_v1 }
  0x6a   :  { %193 = vst [vmem:[#allocation3 + $0xd0] sm:$0xff] %v8256_v1  ;;  %194 = vst [vmem:[#allocation3 + $0xd8] sm:$0xff] %v8256_v1 }
  0x6b   :  { %195 = vst [vmem:[#allocation3 + $0xe0] sm:$0xff] %v8256_v1  ;;  %196 = vst [vmem:[#allocation3 + $0xe8] sm:$0xff] %v8256_v1 }
  0x6c   :  { %197 = vst [vmem:[#allocation3 + $0xf0] sm:$0xff] %v8256_v1  ;;  %198 = vst [vmem:[#allocation3 + $0xf8] sm:$0xff] %v8256_v1 }
  0x6d   :  { %199 = vst [vmem:[#allocation3 + $0x100] sm:$0xff] %v8256_v1  ;;  %200 = vst [vmem:[#allocation3 + $0x108] sm:$0xff] %v8256_v1 }
  0x6e   :  { %201 = vst [vmem:[#allocation3 + $0x110] sm:$0xff] %v8256_v1  ;;  %202 = vst [vmem:[#allocation3 + $0x118] sm:$0xff] %v8256_v1 }
  0x6f   :  { %203 = vst [vmem:[#allocation3 + $0x120] sm:$0xff] %v8256_v1  ;;  %204 = vst [vmem:[#allocation3 + $0x128] sm:$0xff] %v8256_v1 }
  0x70   :  { %205 = vst [vmem:[#allocation3 + $0x130] sm:$0xff] %v8256_v1  ;;  %206 = vst [vmem:[#allocation3 + $0x138] sm:$0xff] %v8256_v1 }
  0x71   :  { %207 = vst [vmem:[#allocation3 + $0x140] sm:$0xff] %v8256_v1  ;;  %208 = vst [vmem:[#allocation3 + $0x148] sm:$0xff] %v8256_v1 }
  0x72   :  { %209 = vst [vmem:[#allocation3 + $0x150] sm:$0xff] %v8256_v1  ;;  %210 = vst [vmem:[#allocation3 + $0x158] sm:$0xff] %v8256_v1 }
  0x73   :  { %211 = vst [vmem:[#allocation3 + $0x160] sm:$0xff] %v8256_v1  ;;  %212 = vst [vmem:[#allocation3 + $0x168] sm:$0xff] %v8256_v1 }
  0x74   :  { %213 = vst [vmem:[#allocation3 + $0x170] sm:$0xff] %v8256_v1  ;;  %214 = vst [vmem:[#allocation3 + $0x178] sm:$0xff] %v8256_v1 }
  0x75   :  { %215 = vst [vmem:[#allocation3 + $0x180] sm:$0xff] %v8256_v1  ;;  %216 = vst [vmem:[#allocation3 + $0x188] sm:$0xff] %v8256_v1 }
  0x76   :  { %217 = vst [vmem:[#allocation3 + $0x190] sm:$0xff] %v8256_v1  ;;  %218 = vst [vmem:[#allocation3 + $0x198] sm:$0xff] %v8256_v1 }
  0x77   :  { %219 = vst [vmem:[#allocation3 + $0x1a0] sm:$0xff] %v8256_v1  ;;  %220 = vst [vmem:[#allocation3 + $0x1a8] sm:$0xff] %v8256_v1 }
  0x78   :  { %221 = vst [vmem:[#allocation3 + $0x1b0] sm:$0xff] %v8256_v1  ;;  %222 = vst [vmem:[#allocation3 + $0x1b8] sm:$0xff] %v8256_v1 }
  0x79   :  { %223 = vst [vmem:[#allocation3 + $0x1c0] sm:$0xff] %v8256_v1  ;;  %224 = vst [vmem:[#allocation3 + $0x1c8] sm:$0xff] %v8256_v1 }
  0x7a   :  { %225 = vst [vmem:[#allocation3 + $0x1d0] sm:$0xff] %v8256_v1  ;;  %226 = vst [vmem:[#allocation3 + $0x1d8] sm:$0xff] %v8256_v1 }
  0x7b   :  { %227 = vst [vmem:[#allocation3 + $0x1e0] sm:$0xff] %v8256_v1  ;;  %228 = vst [vmem:[#allocation3 + $0x1e8] sm:$0xff] %v8256_v1 }
  0x7c   :  { %229 = vst [vmem:[#allocation3 + $0x1f0] sm:$0xff] %v8256_v1  ;;  %230 = vst [vmem:[#allocation3 + $0x1f8] sm:$0xff] %v8256_v1 }
  0x7d   :  { %231 = vst [vmem:[#allocation3 + $0x200] sm:$0xff] %v8256_v1  ;;  %232 = vst [vmem:[#allocation3 + $0x208] sm:$0xff] %v8256_v1 }
  0x7e   :  { %233 = vst [vmem:[#allocation3 + $0x210] sm:$0xff] %v8256_v1  ;;  %234 = vst [vmem:[#allocation3 + $0x218] sm:$0xff] %v8256_v1 }
  0x7f   :  { %235 = vst [vmem:[#allocation3 + $0x220] sm:$0xff] %v8256_v1  ;;  %236 = vst [vmem:[#allocation3 + $0x228] sm:$0xff] %v8256_v1 }
  0x80   :  { %237 = vst [vmem:[#allocation3 + $0x230] sm:$0xff] %v8256_v1  ;;  %238 = vst [vmem:[#allocation3 + $0x238] sm:$0xff] %v8256_v1 }
  0x81   :  { %239 = vst [vmem:[#allocation3 + $0x240] sm:$0xff] %v8256_v1  ;;  %240 = vst [vmem:[#allocation3 + $0x248] sm:$0xff] %v8256_v1 }
  0x82   :  { %241 = vst [vmem:[#allocation3 + $0x250] sm:$0xff] %v8256_v1  ;;  %242 = vst [vmem:[#allocation3 + $0x258] sm:$0xff] %v8256_v1 }
  0x83   :  { %243 = vst [vmem:[#allocation3 + $0x260] sm:$0xff] %v8256_v1  ;;  %244 = vst [vmem:[#allocation3 + $0x268] sm:$0xff] %v8256_v1 }
  0x84   :  { %245 = vst [vmem:[#allocation3 + $0x270] sm:$0xff] %v8256_v1  ;;  %246 = vst [vmem:[#allocation3 + $0x278] sm:$0xff] %v8256_v1 }
  0x85   :  { %247 = vst [vmem:[#allocation3 + $0x280] sm:$0xff] %v8256_v1  ;;  %248 = vst [vmem:[#allocation3 + $0x288] sm:$0xff] %v8256_v1 }
  0x86   :  { %249 = vst [vmem:[#allocation3 + $0x290] sm:$0xff] %v8256_v1  ;;  %250 = vst [vmem:[#allocation3 + $0x298] sm:$0xff] %v8256_v1 }
  0x87   :  { %251 = vst [vmem:[#allocation3 + $0x2a0] sm:$0xff] %v8256_v1  ;;  %252 = vst [vmem:[#allocation3 + $0x2a8] sm:$0xff] %v8256_v1 }
  0x88   :  { %253 = vst [vmem:[#allocation3 + $0x2b0] sm:$0xff] %v8256_v1  ;;  %254 = vst [vmem:[#allocation3 + $0x2b8] sm:$0xff] %v8256_v1 }
  0x89   :  { %255 = vst [vmem:[#allocation3 + $0x2c0] sm:$0xff] %v8256_v1  ;;  %256 = vst [vmem:[#allocation3 + $0x2c8] sm:$0xff] %v8256_v1 }
  0x8a   :  { %257 = vst [vmem:[#allocation3 + $0x2d0] sm:$0xff] %v8256_v1  ;;  %258 = vst [vmem:[#allocation3 + $0x2d8] sm:$0xff] %v8256_v1 }
  0x8b   :  { %259 = vst [vmem:[#allocation3 + $0x2e0] sm:$0xff] %v8256_v1  ;;  %260 = vst [vmem:[#allocation3 + $0x2e8] sm:$0xff] %v8256_v1 }
  0x8c   :  { %261 = vst [vmem:[#allocation3 + $0x2f0] sm:$0xff] %v8256_v1  ;;  %262 = vst [vmem:[#allocation3 + $0x2f8] sm:$0xff] %v8256_v1 }
  0x8d   :  { %263 = vst [vmem:[#allocation3 + $0x300] sm:$0xff] %v8256_v1  ;;  %264 = vst [vmem:[#allocation3 + $0x308] sm:$0xff] %v8256_v1 }
  0x8e   :  { %265 = vst [vmem:[#allocation3 + $0x310] sm:$0xff] %v8256_v1  ;;  %266 = vst [vmem:[#allocation3 + $0x318] sm:$0xff] %v8256_v1 }
  0x8f   :  { %267 = vst [vmem:[#allocation3 + $0x320] sm:$0xff] %v8256_v1  ;;  %268 = vst [vmem:[#allocation3 + $0x328] sm:$0xff] %v8256_v1 }
  0x90   :  { %269 = vst [vmem:[#allocation3 + $0x330] sm:$0xff] %v8256_v1  ;;  %270 = vst [vmem:[#allocation3 + $0x338] sm:$0xff] %v8256_v1 }
  0x91   :  { %271 = vst [vmem:[#allocation3 + $0x340] sm:$0xff] %v8256_v1  ;;  %272 = vst [vmem:[#allocation3 + $0x348] sm:$0xff] %v8256_v1 }
  0x92   :  { %273 = vst [vmem:[#allocation3 + $0x350] sm:$0xff] %v8256_v1  ;;  %274 = vst [vmem:[#allocation3 + $0x358] sm:$0xff] %v8256_v1 }
  0x93   :  { %341 = vst.msk [vmem:[#allocation2 + $0x19] sm:$0xff] %vm340_vm0, %v275_v17  ;;  %342 = vst.msk [vmem:[#allocation2 + $0x21] sm:$0xff] %vm340_vm0, %v276_v18  ;;  %v1013_v17 = vld [vmem:[#allocation4 + $0xf8] sm:$0xff] }
  0x94   :  { %343 = vst.msk [vmem:[#allocation2 + $0x31] sm:$0xff] %vm340_vm0, %v277_v19  ;;  %344 = vst.msk [vmem:[#allocation2 + $0x39] sm:$0xff] %vm340_vm0, %v278_v20  ;;  %v6978_v18 = vpack.c.bf16 %v1013_v17, %v1012_v16  ;;  %v1014_v19 = vld [vmem:[#allocation4 + $0x100] sm:$0xff]  ;;  %v1015_v20 = vld [vmem:[#allocation4 + $0x108] sm:$0xff] }
  0x95   :  { %345 = vst.msk [vmem:[#allocation2 + $0x49] sm:$0xff] %vm340_vm0, %v279_v21  ;;  %346 = vst.msk [vmem:[#allocation2 + $0x51] sm:$0xff] %vm340_vm0, %v280_v22  ;;  %v6981_v21 = vpack.c.bf16 %v1015_v20, %v1014_v19  ;;  %v470_v22 = vld [vmem:[#allocation2 + $0x9] sm:$0xff] }
  0x96   :  { %347 = vst.msk [vmem:[#allocation2 + $0x61] sm:$0xff] %vm340_vm0, %v281_v23  ;;  %348 = vst.msk [vmem:[#allocation2 + $0x69] sm:$0xff] %vm340_vm0, %v282_v27  ;;  %6979 = vmatpush1.bf16.msra.mxu0 %v6978_v18  ;;  %v1016_v23 = vld [vmem:[#allocation4 + $0x110] sm:$0xff]  ;;  %v1018_v27 = vld [vmem:[#allocation4 + $0x120] sm:$0xff] }
  0x97   :  { %349 = vst.msk [vmem:[#allocation2 + $0x79] sm:$0xff] %vm340_vm0, %v283_v28  ;;  %350 = vst.msk [vmem:[#allocation2 + $0x81] sm:$0xff] %vm340_vm0, %v284_v29  ;;  %6980 = vmatprep.subr.bf16.mxu0 %v10935_v0  ;;  %v6984_v26 = vpack.c.bf16 %v1017_v24, %v1016_v23  ;;  %v1019_v29 = vld [vmem:[#allocation4 + $0x128] sm:$0xff]  ;;  %v317_v19 = vld [vmem:[%s10927_s0 + $0x150] sm:$0xff] }
  0x98   :  { %351 = vst.msk [vmem:[#allocation2 + $0x91] sm:$0xff] %vm340_vm0, %v285_v30  ;;  %352 = vst.msk [vmem:[#allocation2 + $0x99] sm:$0xff] %vm340_vm0, %v286_v31  ;;  %v308_v30 = vld [vmem:[%s10927_s0 + $0x108] sm:$0xff] }
  0x99   :  { %353 = vst.msk [vmem:[#allocation2 + $0xa9] sm:$0xff] %vm340_vm0, %v287_v32  ;;  %354 = vst.msk [vmem:[#allocation2 + $0xb1] sm:$0xff] %vm340_vm0, %v288_v33  ;;  %1191 = vmatmul.mubr.f32.vlgmr.msra.gmra.mrb[0].mxu0 %v8256_v1  ;;  %v6987_v32 = vpack.c.bf16 %v1019_v29, %v1018_v27  ;;  %v1020_v33 = vld [vmem:[#allocation4 + $0x130] sm:$0xff]  ;;  %v1037_v27 = vld [vmem:[#allocation4 + $0x1b8] sm:$0xff] }
  0x9a   :  { %355 = vst.msk [vmem:[#allocation2 + $0xc1] sm:$0xff] %vm340_vm0, %v289_v34  ;;  %356 = vst.msk [vmem:[#allocation2 + $0xc9] sm:$0xff] %vm340_vm0, %v290_v36  ;;  %6982 = vmatpush1.bf16.msra.mxu0 %v6981_v21  ;;  %1195 = vmatprep.mubr.f32.mxu0 %v470_v22  ;;  %v471_v28 = vld [vmem:[#allocation2 + $0x19] sm:$0xff]  ;;  %v472_v34 = vld [vmem:[#allocation2 + $0x21] sm:$0xff]  ;;  %v6990_v37 = vpack.c.bf16 %v1021_v35, %v1020_v33 }
  0x9b   :  { %357 = vst.msk [vmem:[#allocation2 + $0xd9] sm:$0xff] %vm340_vm0, %v291_v45  ;;  %358 = vst.msk [vmem:[#allocation2 + $0xe1] sm:$0xff] %vm340_vm0, %v292_v48  ;;  %6983 = vmatprep.subr.bf16.mxu0 %v10935_v0  ;;  %v8692_v31 = vld [vmem:[#allocation2 + $0x18] sm:$0xff]  ;;  %v309_v36 = vld [vmem:[%s10927_s0 + $0x110] sm:$0xff] }
  0x9c   :  { %359 = vst.msk [vmem:[#allocation2 + $0xf1] sm:$0xff] %vm340_vm0, %v293_v49  ;;  %360 = vst.msk [vmem:[#allocation2 + $0xf9] sm:$0xff] %vm340_vm0, %v294_v51  ;;  %v473_v39 = vld [vmem:[#allocation2 + $0x31] sm:$0xff]  ;;  %v474_v43 = vld [vmem:[#allocation2 + $0x39] sm:$0xff] }
  0x9d   :  { %361 = vst.msk [vmem:[#allocation2 + $0x109] sm:$0xff] %vm340_vm0, %v295_v52  ;;  %362 = vst.msk [vmem:[#allocation2 + $0x111] sm:$0xff] %vm340_vm0, %v296_v53  ;;  %1196 = vmatmul.mubr.f32.gmra.mrb[2].mxu0 %v8256_v1  ;;  %v8700_v1 = vld [vmem:[#allocation2 + $0x20] sm:$0xff]  ;;  %v8708_v42 = vld [vmem:[#allocation2 + $0x30] sm:$0xff] }
  0x9e   :  { %363 = vst.msk [vmem:[#allocation2 + $0x121] sm:$0xff] %vm340_vm0, %v297_v54  ;;  %364 = vst.msk [vmem:[#allocation2 + $0x129] sm:$0xff] %vm340_vm0, %v298_v55  ;;  %1200 = vmatprep.mubr.f32.mxu0 %v471_v28  ;;  %6985 = vmatpush1.bf16.msra.mxu0 %v6984_v26  ;;  %v1024_v45 = vld [vmem:[#allocation4 + $0x150] sm:$0xff]  ;;  %v8716_v48 = vld [vmem:[#allocation2 + $0x38] sm:$0xff] }
  0x9f   :  { %365 = vst.msk [vmem:[#allocation2 + $0x139] sm:$0xff] %vm340_vm0, %v299_v56  ;;  %366 = vst.msk [vmem:[#allocation2 + $0x141] sm:$0xff] %vm340_vm0, %v300_v60  ;;  %6986 = vmatprep.subr.bf16.mxu0 %v10935_v0  ;;  %v475_v49 = vld [vmem:[#allocation2 + $0x49] sm:$0xff]  ;;  %v6996_v50 = vpack.c.bf16 %v1025_v46, %v1024_v45  ;;  %v1026_v51 = vld [vmem:[#allocation4 + $0x160] sm:$0xff] }
  0xa0   :  { %367 = vst.msk [vmem:[#allocation2 + $0x151] sm:$0xff] %vm340_vm0, %v301_v5  ;;  %368 = vst.msk [vmem:[#allocation2 + $0x159] sm:$0xff] %vm340_vm0, %v302_v6  ;;  %v1027_v52 = vld [vmem:[#allocation4 + $0x168] sm:$0xff]  ;;  %v476_v55 = vld [vmem:[#allocation2 + $0x51] sm:$0xff]  ;;  %v7005_v6 = vpack.c.bf16 %v1031_v2, %v1030_v63 }
  0xa1   :  { %369 = vst.msk [vmem:[#allocation2 + $0x169] sm:$0xff] %vm340_vm0, %v303_v10  ;;  %370 = vst.msk [vmem:[#allocation2 + $0x171] sm:$0xff] %vm340_vm0, %v304_v14  ;;  %1201 = vmatmul.mubr.f32.gmra.mrb[4].mxu0 %v8692_v31  ;;  %v312_v53 = vld [vmem:[%s10927_s0 + $0x128] sm:$0xff]  ;;  %v6999_v56 = vpack.c.bf16 %v1027_v52, %v1026_v51  ;;  %v8732_v60 = vld [vmem:[#allocation2 + $0x50] sm:$0xff] }
  0xa2   :  { %373 = vst.msk [vmem:[#allocation2 + $0x1c9] sm:$0xff] %vm340_vm0, %v307_v25  ;;  %374 = vst.msk [vmem:[#allocation2 + $0x1d1] sm:$0xff] %vm340_vm0, %v308_v30  ;;  %1205 = vmatprep.mubr.f32.mxu0 %v472_v34  ;;  %6988 = vmatpush1.bf16.msra.mxu0 %v6987_v32  ;;  %v8724_v54 = vld [vmem:[#allocation2 + $0x48] sm:$0xff]  ;;  %v8740_v4 = vld [vmem:[#allocation2 + $0x60] sm:$0xff] }
  0xa3   :  { %375 = vst.msk [vmem:[#allocation2 + $0x1e1] sm:$0xff] %vm340_vm0, %v309_v36  ;;  %6989 = vmatprep.subr.bf16.mxu0 %v10935_v0  ;;  %376 = vst.msk [vmem:[#allocation2 + $0x1e9] sm:$0xff] %vm340_vm0, %v310_v41  ;;  %v477_v61 = vld [vmem:[#allocation2 + $0x61] sm:$0xff]  ;;  %v478_v5 = vld [vmem:[#allocation2 + $0x69] sm:$0xff] }
  0xa4   :  { %377 = vst.msk [vmem:[#allocation2 + $0x1f9] sm:$0xff] %vm340_vm0, %v311_v47  ;;  %378 = vst.msk [vmem:[#allocation2 + $0x201] sm:$0xff] %vm340_vm0, %v312_v53  ;;  %v8748_v10 = vld [vmem:[#allocation2 + $0x68] sm:$0xff]  ;;  %v479_v11 = vld [vmem:[#allocation2 + $0x79] sm:$0xff] }
  0xa5   :  { %1206 = vmatmul.mubr.f32.gmra.mrb[6].mxu0 %v8700_v1  ;;  %379 = vst.msk [vmem:[#allocation2 + $0x211] sm:$0xff] %vm340_vm0, %v313_v59  ;;  %380 = vst.msk [vmem:[#allocation2 + $0x219] sm:$0xff] %vm340_vm0, %v314_v3  ;;  %v1035_v14 = vld [vmem:[#allocation4 + $0x1a8] sm:$0xff]  ;;  %v8756_v16 = vld [vmem:[#allocation2 + $0x78] sm:$0xff] }
  0xa6   :  { %1210 = vmatprep.mubr.f32.mxu0 %v473_v39  ;;  %6991 = vmatpush1.bf16.msra.mxu0 %v6990_v37  ;;  %381 = vst.msk [vmem:[#allocation2 + $0x229] sm:$0xff] %vm340_vm0, %v315_v9  ;;  %382 = vst.msk [vmem:[#allocation2 + $0x231] sm:$0xff] %vm340_vm0, %v316_v15  ;;  %v7011_v17 = vpack.c.bf16 %v1035_v14, %v1034_v13  ;;  %v480_v18 = vld [vmem:[#allocation2 + $0x81] sm:$0xff]  ;;  %v481_v21 = vld [vmem:[#allocation2 + $0x91] sm:$0xff] }
  0xa7   :  { %6992 = vmatprep.subr.bf16.mxu0 %v10935_v0  ;;  %383 = vst.msk [vmem:[#allocation2 + $0x241] sm:$0xff] %vm340_vm0, %v317_v19  ;;  %v8764_v20 = vld [vmem:[#allocation2 + $0x80] sm:$0xff]  ;;  %v318_v22 = vld [vmem:[%s10927_s0 + $0x158] sm:$0xff]  ;;  %v8772_v23 = vld [vmem:[#allocation2 + $0x90] sm:$0xff] }
  0xa8   :  { %384 = vst.msk [vmem:[#allocation2 + $0x249] sm:$0xff] %vm340_vm0, %v318_v22  ;;  %v482_v24 = vld [vmem:[#allocation2 + $0x99] sm:$0xff]  ;;  %v1036_v26 = vld [vmem:[#allocation4 + $0x1b0] sm:$0xff]  ;;  %v320_v32 = vld [vmem:[%s10927_s0 + $0x168] sm:$0xff] }
  0xa9   :  { %1211 = vmatmul.mubr.f32.gmra.mrb[8].mxu0 %v8708_v42  ;;  %v319_v25 = vld [vmem:[%s10927_s0 + $0x160] sm:$0xff]  ;;  %v8779_v28 = vld [vmem:[#allocation2 + $0x98] sm:$0xff]  ;;  %v7014_v29 = vpack.c.bf16 %v1037_v27, %v1036_v26  ;;  %v483_v30 = vld [vmem:[#allocation2 + $0xa9] sm:$0xff]  ;;  %386 = vst.msk [vmem:[#allocation2 + $0x261] sm:$0xff] %vm340_vm0, %v320_v32 }
  0xaa   :  { %1215 = vmatprep.mubr.f32.mxu0 %v474_v43  ;;  %6994 = vmatpush1.bf16.msra.mxu0 %v6993_v44  ;;  %385 = vst.msk [vmem:[#allocation2 + $0x259] sm:$0xff] %vm340_vm0, %v319_v25  ;;  %v8787_v33 = vld [vmem:[#allocation2 + $0xa8] sm:$0xff]  ;;  %v484_v34 = vld [vmem:[#allocation2 + $0xb1] sm:$0xff]  ;;  %388 = vst.msk [vmem:[#allocation2 + $0x279] sm:$0xff] %vm340_vm0, %v322_v38 }
  0xab   :  { %6995 = vmatprep.subr.bf16.mxu0 %v10935_v0  ;;  %v321_v35 = vld [vmem:[%s10927_s0 + $0x170] sm:$0xff]  ;;  %v485_v37 = vld [vmem:[#allocation2 + $0xc1] sm:$0xff]  ;;  %v487_v47 = vld [vmem:[#allocation2 + $0xd9] sm:$0xff]  ;;  %395 = vst.msk [vmem:[#allocation2 + $0x2d1] sm:$0xff] %vm340_vm0, %v329_v8 }
  0xac   :  { %387 = vst.msk [vmem:[#allocation2 + $0x271] sm:$0xff] %vm340_vm0, %v321_v35  ;;  %v8794_v36 = vld [vmem:[#allocation2 + $0xb0] sm:$0xff]  ;;  %v8801_v39 = vld [vmem:[#allocation2 + $0xc0] sm:$0xff]  ;;  %v1039_v44 = vld [vmem:[#allocation4 + $0x1c8] sm:$0xff] }
  0xad   :  { %1216 = vmatmul.mubr.f32.gmra.mrb[10].mxu0 %v8716_v48  ;;  %v486_v40 = vld [vmem:[#allocation2 + $0xc9] sm:$0xff]  ;;  %v323_v41 = vld [vmem:[%s10927_s0 + $0x180] sm:$0xff]  ;;  %v8837_v63 = vld [vmem:[#allocation2 + $0xf8] sm:$0xff] }
  0xae   :  { %1220 = vmatprep.mubr.f32.mxu0 %v475_v49  ;;  %6997 = vmatpush1.bf16.msra.mxu0 %v6996_v50  ;;  %389 = vst.msk [vmem:[#allocation2 + $0x289] sm:$0xff] %vm340_vm0, %v323_v41  ;;  %v1038_v43 = vld [vmem:[#allocation4 + $0x1c0] sm:$0xff]  ;;  %v8808_v45 = vld [vmem:[#allocation2 + $0xc8] sm:$0xff]  ;;  %v8816_v50 = vld [vmem:[#allocation2 + $0xd8] sm:$0xff] }
  0xaf   :  { %6998 = vmatprep.subr.bf16.mxu0 %v10935_v0  ;;  %v7017_v46 = vpack.c.bf16 %v1039_v44, %v1038_v43  ;;  %v324_v49 = vld [vmem:[%s10927_s0 + $0x188] sm:$0xff]  ;;  %v325_v52 = vld [vmem:[%s10927_s0 + $0x190] sm:$0xff]  ;;  %v8823_v53 = vld [vmem:[#allocation2 + $0xe0] sm:$0xff] }
  0xb0   :  { %390 = vst.msk [vmem:[#allocation2 + $0x291] sm:$0xff] %vm340_vm0, %v324_v49  ;;  %v488_v51 = vld [vmem:[#allocation2 + $0xe1] sm:$0xff]  ;;  %391 = vst.msk [vmem:[#allocation2 + $0x2a1] sm:$0xff] %vm340_vm0, %v325_v52  ;;  %v8830_v57 = vld [vmem:[#allocation2 + $0xf0] sm:$0xff] }
  0xb1   :  { %1221 = vmatmul.mubr.f32.gmra.mrb[12].mxu0 %v8724_v54  ;;  %v490_v58 = vld [vmem:[#allocation2 + $0xf9] sm:$0xff]  ;;  %v491_v3 = vld [vmem:[#allocation2 + $0x109] sm:$0xff]  ;;  %v492_v7 = vld [vmem:[#allocation2 + $0x111] sm:$0xff] }
  0xb2   :  { %1225 = vmatprep.mubr.f32.mxu0 %v476_v55  ;;  %7000 = vmatpush1.bf16.msra.mxu0 %v6999_v56  ;;  %v489_v55 = vld [vmem:[#allocation2 + $0xf1] sm:$0xff]  ;;  %v327_v59 = vld [vmem:[%s10927_s0 + $0x1a0] sm:$0xff]  ;;  %v494_v14 = vld [vmem:[#allocation2 + $0x129] sm:$0xff] }
  0xb3   :  { %7001 = vmatprep.subr.bf16.mxu0 %v10935_v0  ;;  %v326_v56 = vld [vmem:[%s10927_s0 + $0x198] sm:$0xff]  ;;  %393 = vst.msk [vmem:[#allocation2 + $0x2b9] sm:$0xff] %vm340_vm0, %v327_v59  ;;  %v8852_v9 = vld [vmem:[#allocation2 + $0x110] sm:$0xff]  ;;  %v8859_v13 = vld [vmem:[#allocation2 + $0x120] sm:$0xff] }
  0xb4   :  { %392 = vst.msk [vmem:[#allocation2 + $0x2a9] sm:$0xff] %vm340_vm0, %v326_v56  ;;  %v331_v15 = vld [vmem:[%s10927_s0 + $0x1c0] sm:$0xff]  ;;  %v8866_v19 = vld [vmem:[#allocation2 + $0x128] sm:$0xff]  ;;  %v8874_v25 = vld [vmem:[#allocation2 + $0x138] sm:$0xff] }
  0xb5   :  { %1226 = vmatmul.mubr.f32.gmra.mrb[14].mxu0 %v8732_v60  ;;  %397 = vst.msk [vmem:[#allocation2 + $0x2e9] sm:$0xff] %vm340_vm0, %v331_v15  ;;  %v495_v22 = vld [vmem:[#allocation2 + $0x139] sm:$0xff]  ;;  %v496_v26 = vld [vmem:[#allocation2 + $0x141] sm:$0xff]  ;;  %v333_v27 = vld [vmem:[%s10927_s0 + $0x1d0] sm:$0xff] }
  0xb6   :  { %1230 = vmatprep.mubr.f32.mxu0 %v477_v61  ;;  %7003 = vmatpush1.bf16.msra.mxu0 %v7002_v62  ;;  %v1040_v61 = vld [vmem:[#allocation4 + $0x1d0] sm:$0xff]  ;;  %v1041_v62 = vld [vmem:[#allocation4 + $0x1d8] sm:$0xff]  ;;  %399 = vst.msk [vmem:[#allocation2 + $0x301] sm:$0xff] %vm340_vm0, %v333_v27  ;;  %v8171_v56 = vld [vmem:[#allocation2] sm:$0xff] }
  0xb7   :  { %7004 = vmatprep.subr.bf16.mxu0 %v10935_v0  ;;  %v7020_v2 = vpack.c.bf16 %v1041_v62, %v1040_v61  ;;  %v334_v32 = vld [vmem:[%s10927_s0 + $0x1d8] sm:$0xff]  ;;  %v1044_v38 = vld [vmem:[#allocation4 + $0x1f0] sm:$0xff]  ;;  %v8909_v59 = vld [vmem:[#allocation2 + $0x1c8] sm:$0xff] }
  0xb8   :  { %400 = vst.msk [vmem:[#allocation2 + $0x309] sm:$0xff] %vm340_vm0, %v334_v32  ;;  %v498_v35 = vld [vmem:[#allocation2 + $0x159] sm:$0xff]  ;;  %v499_v44 = vld [vmem:[#allocation2 + $0x169] sm:$0xff]  ;;  %v500_v49 = vld [vmem:[#allocation2 + $0x171] sm:$0xff] }
  0xb9   :  { %1231 = vmatmul.mubr.f32.gmra.mrb[16].mxu0 %v8740_v4  ;;  %v8895_v41 = vld [vmem:[#allocation2 + $0x158] sm:$0xff]  ;;  %v8912_v62 = vld [vmem:[#allocation2 + $0x1d0] sm:$0xff]  ;;  %v8939_v32 = vld [vmem:[#allocation2 + $0x240] sm:$0xff] }
  0xba   :  { %1235 = vmatprep.mubr.f32.mxu0 %v478_v5  ;;  %7006 = vmatpush1.bf16.msra.mxu0 %v7005_v6  ;;  %v328_v5 = vld [vmem:[%s10927_s0 + $0x1a8] sm:$0xff]  ;;  %v501_v52 = vld [vmem:[#allocation2 + $0x1b1] sm:$0xff]  ;;  %v507_v8 = vld [vmem:[#allocation2 + $0x1f9] sm:$0xff] }
  0xbb   :  { %7007 = vmatprep.subr.bf16.mxu0 %v10935_v0  ;;  %394 = vst.msk [vmem:[#allocation2 + $0x2c1] sm:$0xff] %vm340_vm0, %v328_v5  ;;  %v8845_v6 = vld [vmem:[#allocation2 + $0x108] sm:$0xff]  ;;  %v504_v61 = vld [vmem:[#allocation2 + $0x1d1] sm:$0xff] }
  0xbc   :  { %v506_v5 = vld [vmem:[#allocation2 + $0x1e9] sm:$0xff]  ;;  %v509_v15 = vld [vmem:[#allocation2 + $0x211] sm:$0xff] }
  0xbd   :  { %1236 = vmatmul.mubr.f32.gmra.mrb[18].mxu0 %v8748_v10  ;;  %v8936_v27 = vld [vmem:[#allocation2 + $0x230] sm:$0xff] }
  0xbe   :  { %1240 = vmatprep.mubr.f32.mxu0 %v479_v11  ;;  %7009 = vmatpush1.bf16.msra.mxu0 %v7008_v12  ;;  %v493_v11 = vld [vmem:[#allocation2 + $0x121] sm:$0xff]  ;;  %v330_v12 = vld [vmem:[%s10927_s0 + $0x1b8] sm:$0xff] }
  0xbf   :  { %7010 = vmatprep.subr.bf16.mxu0 %v10935_v0  ;;  %396 = vst.msk [vmem:[#allocation2 + $0x2d9] sm:$0xff] %vm340_vm0, %v330_v12  ;;  %v508_v12 = vld [vmem:[#allocation2 + $0x201] sm:$0xff] }
  0xc1   :  { %1241 = vmatmul.mubr.f32.gmra.mrb[20].mxu0 %v8756_v16 }
  0xc2   :  { %1245 = vmatprep.mubr.f32.mxu0 %v480_v18  ;;  %7012 = vmatpush1.bf16.msra.mxu0 %v7011_v17  ;;  %v1042_v17 = vld [vmem:[#allocation4 + $0x1e0] sm:$0xff]  ;;  %v1043_v18 = vld [vmem:[#allocation4 + $0x1e8] sm:$0xff] }
  0xc3   :  { %7013 = vmatprep.subr.bf16.mxu0 %v10935_v0 }
  0xc5   :  { %1246 = vmatmul.mubr.f32.gmra.mrb[22].mxu0 %v8764_v20 }
  0xc6   :  { %1250 = vmatprep.mubr.f32.mxu0 %v481_v21  ;;  %7015 = vmatpush1.bf16.msra.mxu0 %v7014_v29  ;;  %v7023_v21 = vpack.c.bf16 %v1043_v18, %v1042_v17  ;;  %v8881_v29 = vld [vmem:[#allocation2 + $0x140] sm:$0xff]  ;;  %v8927_v17 = vld [vmem:[#allocation2 + $0x210] sm:$0xff] }
  0xc7   :  { %7016 = vmatprep.subr.bf16.mxu0 %v10935_v0  ;;  %v510_v18 = vld [vmem:[#allocation2 + $0x219] sm:$0xff] }
  0xc9   :  { %1251 = vmatmul.mubr.f32.gmra.mrb[24].mxu0 %v8772_v23 }
  0xca   :  { %1255 = vmatprep.mubr.f32.mxu0 %v482_v24  ;;  %7018 = vmatpush1.bf16.msra.mxu0 %v7017_v46  ;;  %v332_v24 = vld [vmem:[%s10927_s0 + $0x1c8] sm:$0xff] }
  0xcb   :  { %7019 = vmatprep.subr.bf16.mxu0 %v10935_v0  ;;  %398 = vst.msk [vmem:[#allocation2 + $0x2f1] sm:$0xff] %vm340_vm0, %v332_v24  ;;  %v336_v46 = vld [vmem:[%s10927_s0 + $0x1e8] sm:$0xff] }
  0xcc   :  { %402 = vst.msk [vmem:[#allocation2 + $0x321] sm:$0xff] %vm340_vm0, %v336_v46  ;;  %v8933_v24 = vld [vmem:[#allocation2 + $0x228] sm:$0xff]  ;;  %v517_v46 = vld [vmem:[#allocation2 + $0x271] sm:$0xff] }
  0xcd   :  { %1256 = vmatmul.mubr.f32.gmra.mrb[26].mxu0 %v8779_v28 }
  0xce   :  { %1260 = vmatprep.mubr.f32.mxu0 %v483_v30  ;;  %7021 = vmatpush1.bf16.msra.mxu0 %v7020_v2  ;;  %v497_v30 = vld [vmem:[#allocation2 + $0x151] sm:$0xff]  ;;  %v505_v2 = vld [vmem:[#allocation2 + $0x1e1] sm:$0xff] }
  0xcf   :  { %7022 = vmatprep.subr.bf16.mxu0 %v10935_v0 }
  0xd1   :  { %1261 = vmatmul.mubr.f32.gmra.mrb[28].mxu0 %v8787_v33 }
  0xd2   :  { %1265 = vmatprep.mubr.f32.mxu0 %v484_v34  ;;  %7024 = vmatpush1.bf16.msra.mxu0 %v7023_v21  ;;  %v8888_v34 = vld [vmem:[#allocation2 + $0x150] sm:$0xff]  ;;  %v8930_v21 = vld [vmem:[#allocation2 + $0x218] sm:$0xff] }
  0xd3   :  { %7025 = vmatprep.subr.bf16.mxu0 %v10935_v0 }
  0xd5   :  { %1266 = vmatmul.mubr.f32.gmra.mrb[30].mxu0 %v8794_v36 }
  0xd6   :  { %1270 = vmatprep.mubr.f32.mxu0 %v485_v37  ;;  %v335_v37 = vld [vmem:[%s10927_s0 + $0x1e0] sm:$0xff] }
  0xd7   :  { %401 = vst.msk [vmem:[#allocation2 + $0x319] sm:$0xff] %vm340_vm0, %v335_v37  ;;  %v8942_v37 = vld [vmem:[#allocation2 + $0x248] sm:$0xff] }
  0xd9   :  { %1271 = vmatmul.mubr.f32.gmra.mrb[32].mxu0 %v8801_v39 }
  0xda   :  { %1275 = vmatprep.mubr.f32.mxu0 %v486_v40  ;;  %v1045_v40 = vld [vmem:[#allocation4 + $0x1f8] sm:$0xff] }
  0xdb   :  { %v7026_v43 = vpack.c.bf16 %v1045_v40, %v1044_v38  ;;  %v515_v38 = vld [vmem:[#allocation2 + $0x259] sm:$0xff] }
  0xdc   :  { %v8945_v40 = vld [vmem:[#allocation2 + $0x258] sm:$0xff] }
  0xdd   :  { %1276 = vmatmul.mubr.f32.gmra.mrb[34].mxu0 %v8808_v45 }
  0xde   :  { %1280 = vmatprep.mubr.f32.mxu0 %v487_v47  ;;  %7027 = vmatpush1.bf16.msra.mxu0 %v7026_v43  ;;  %v8903_v47 = vld [vmem:[#allocation2 + $0x168] sm:$0xff] }
  0xdf   :  { %7028 = vmatprep.subr.bf16.mxu0 %v10935_v0  ;;  %v516_v43 = vld [vmem:[#allocation2 + $0x261] sm:$0xff] }
  0xe0   :  { %v532_v0 = vld [vmem:[#allocation2 + $0x321] sm:$0xff] }
  0xe1   :  { %1281 = vmatmul.mubr.f32.gmra.mrb[36].mxu0 %v8816_v50 }
  0xe2   :  { %1285 = vmatprep.mubr.f32.mxu0 %v488_v51  ;;  %v8906_v51 = vld [vmem:[#allocation2 + $0x170] sm:$0xff] }
  0xe5   :  { %1286 = vmatmul.mubr.f32.gmra.mrb[38].mxu0 %v8823_v53 }
  0xe6   :  { %1290 = vmatprep.mubr.f32.mxu0 %v489_v55  ;;  %v502_v55 = vld [vmem:[#allocation2 + $0x1b9] sm:$0xff] }
  0xe9   :  { %1291 = vmatmul.mubr.f32.gmra.mrb[40].mxu0 %v8830_v57 }
  0xea   :  { %1295 = vmatprep.mubr.f32.mxu0 %v490_v58  ;;  %v503_v58 = vld [vmem:[#allocation2 + $0x1c9] sm:$0xff] }
  0xed   :  { %1296 = vmatmul.mubr.f32.gmra.mrb[42].mxu0 %v8837_v63 }
  0xee   :  { %1300 = vmatprep.mubr.f32.mxu0 %v491_v3  ;;  %v8915_v3 = vld [vmem:[#allocation2 + $0x1e0] sm:$0xff] }
  0xf1   :  { %1301 = vmatmul.mubr.f32.gmra.mrb[44].mxu0 %v8845_v6 }
  0xf2   :  { %1305 = vmatprep.mubr.f32.mxu0 %v492_v7  ;;  %v8918_v7 = vld [vmem:[#allocation2 + $0x1e8] sm:$0xff] }
  0xf5   :  { %1306 = vmatmul.mubr.f32.gmra.mrb[46].mxu0 %v8852_v9 }
  0xf6   :  { %1310 = vmatprep.mubr.f32.mxu0 %v493_v11  ;;  %v8921_v11 = vld [vmem:[#allocation2 + $0x1f8] sm:$0xff] }
  0xf9   :  { %1311 = vmatmul.mubr.f32.gmra.mrb[48].mxu0 %v8859_v13 }
  0xfa   :  { %1315 = vmatprep.mubr.f32.mxu0 %v494_v14  ;;  %v8924_v14 = vld [vmem:[#allocation2 + $0x200] sm:$0xff] }
  0xfd   :  { %1316 = vmatmul.mubr.f32.gmra.mrb[50].mxu0 %v8866_v19 }
  0xfe   :  { %1320 = vmatprep.mubr.f32.mxu0 %v495_v22  ;;  %v511_v22 = vld [vmem:[#allocation2 + $0x229] sm:$0xff] }
 0x101   :  { %1321 = vmatmul.mubr.f32.gmra.mrb[52].mxu0 %v8874_v25 }
 0x102   :  { %1325 = vmatprep.mubr.f32.mxu0 %v496_v26  ;;  %v512_v26 = vld [vmem:[#allocation2 + $0x231] sm:$0xff] }
 0x105   :  { %1326 = vmatmul.mubr.f32.gmra.mrb[54].mxu0 %v8881_v29 }
 0x106   :  { %1330 = vmatprep.mubr.f32.mxu0 %v497_v30  ;;  %v513_v30 = vld [vmem:[#allocation2 + $0x241] sm:$0xff] }
 0x109   :  { %1331 = vmatmul.mubr.f32.gmra.mrb[56].mxu0 %v8888_v34 }
 0x10a   :  { %1335 = vmatprep.mubr.f32.mxu0 %v498_v35  ;;  %v514_v35 = vld [vmem:[#allocation2 + $0x249] sm:$0xff] }
 0x10d   :  { %1336 = vmatmul.mubr.f32.gmra.mrb[58].mxu0 %v8895_v41 }
 0x10e   :  { %1340 = vmatprep.mubr.f32.mxu0 %v499_v44  ;;  %v8948_v44 = vld [vmem:[#allocation2 + $0x260] sm:$0xff] }
 0x111   :  { %1341 = vmatmul.mubr.f32.gmra.mrb[60].mxu0 %v8903_v47 }
 0x112   :  { %1345 = vmatprep.mubr.f32.mxu0 %v500_v49  ;;  %v8951_v49 = vld [vmem:[#allocation2 + $0x270] sm:$0xff] }
 0x115   :  { %1346 = vmatmul.mubr.f32.gmra.mrb[62].mxu0 %v8906_v51 }
 0x116   :  { %1350 = vmatprep.mubr.f32.mxu0 %v501_v52  ;;  %v518_v52 = vld [vmem:[#allocation2 + $0x279] sm:$0xff] }
 0x119   :  { %1351 = vmatmul.mubr.f32.gmra.mrb[64].mxu0 %v8171_v56 }
 0x11a   :  { %1355 = vmatprep.mubr.f32.mxu0 %v502_v55  ;;  %v8954_v55 = vld [vmem:[#allocation2 + $0x278] sm:$0xff] }
 0x11d   :  { %1356 = vmatmul.mubr.f32.gmra.mrb[66].mxu0 %v8171_v56  ;;  %v519_v56 = vld [vmem:[#allocation2 + $0x289] sm:$0xff] }
 0x11e   :  { %1360 = vmatprep.mubr.f32.mxu0 %v503_v58  ;;  %v8957_v58 = vld [vmem:[#allocation2 + $0x288] sm:$0xff] }
 0x121   :  { %1361 = vmatmul.mubr.f32.gmra.mrb[68].mxu0 %v8909_v59 }
 0x122   :  { %1365 = vmatprep.mubr.f32.mxu0 %v504_v61  ;;  %v520_v61 = vld [vmem:[#allocation2 + $0x291] sm:$0xff] }
 0x125   :  { %1366 = vmatmul.mubr.f32.gmra.mrb[70].mxu0 %v8912_v62 }
 0x126   :  { %1370 = vmatprep.mubr.f32.mxu0 %v505_v2  ;;  %v8960_v2 = vld [vmem:[#allocation2 + $0x290] sm:$0xff] }
 0x129   :  { %1371 = vmatmul.mubr.f32.gmra.mrb[72].mxu0 %v8915_v3 }
 0x12a   :  { %1375 = vmatprep.mubr.f32.mxu0 %v506_v5  ;;  %v521_v5 = vld [vmem:[#allocation2 + $0x2a1] sm:$0xff] }
 0x12d   :  { %1376 = vmatmul.mubr.f32.gmra.mrb[74].mxu0 %v8918_v7 }
 0x12e   :  { %1380 = vmatprep.mubr.f32.mxu0 %v507_v8  ;;  %v8963_v8 = vld [vmem:[#allocation2 + $0x2a0] sm:$0xff] }
 0x131   :  { %1381 = vmatmul.mubr.f32.gmra.mrb[76].mxu0 %v8921_v11 }
 0x132   :  { %1385 = vmatprep.mubr.f32.mxu0 %v508_v12  ;;  %v522_v12 = vld [vmem:[#allocation2 + $0x2a9] sm:$0xff] }
 0x135   :  { %1386 = vmatmul.mubr.f32.gmra.mrb[78].mxu0 %v8924_v14 }
 0x136   :  { %1390 = vmatprep.mubr.f32.mxu0 %v509_v15  ;;  %v8966_v15 = vld [vmem:[#allocation2 + $0x2a8] sm:$0xff] }
 0x139   :  { %1391 = vmatmul.mubr.f32.gmra.mrb[80].mxu0 %v8927_v17 }
 0x13a   :  { %1395 = vmatprep.mubr.f32.mxu0 %v510_v18  ;;  %v523_v18 = vld [vmem:[#allocation2 + $0x2b9] sm:$0xff] }
 0x13d   :  { %1396 = vmatmul.mubr.f32.gmra.mrb[82].mxu0 %v8930_v21 }
 0x13e   :  { %1400 = vmatprep.mubr.f32.mxu0 %v511_v22  ;;  %v8969_v22 = vld [vmem:[#allocation2 + $0x2b8] sm:$0xff] }
 0x141   :  { %1401 = vmatmul.mubr.f32.gmra.mrb[84].mxu0 %v8933_v24 }
 0x142   :  { %1405 = vmatprep.mubr.f32.mxu0 %v512_v26  ;;  %v524_v26 = vld [vmem:[#allocation2 + $0x2c1] sm:$0xff] }
 0x145   :  { %1406 = vmatmul.mubr.f32.gmra.mrb[86].mxu0 %v8936_v27 }
 0x146   :  { %1410 = vmatprep.mubr.f32.mxu0 %v513_v30  ;;  %v8972_v30 = vld [vmem:[#allocation2 + $0x2c0] sm:$0xff] }
 0x149   :  { %1411 = vmatmul.mubr.f32.gmra.mrb[88].mxu0 %v8939_v32 }
 0x14a   :  { %1415 = vmatprep.mubr.f32.mxu0 %v514_v35  ;;  %v525_v35 = vld [vmem:[#allocation2 + $0x2d1] sm:$0xff] }
 0x14d   :  { %1416 = vmatmul.mubr.f32.gmra.mrb[90].mxu0 %v8942_v37 }
 0x14e   :  { %1420 = vmatprep.mubr.f32.mxu0 %v515_v38  ;;  %v8975_v38 = vld [vmem:[#allocation2 + $0x2d0] sm:$0xff] }
 0x14f   :  { %10990 = vst [vmem:[#allocation13_spill] sm:$0xff] %v8975_v38 }
 0x151   :  { %1421 = vmatmul.mubr.f32.gmra.mrb[92].mxu0 %v8945_v40 }
 0x152   :  { %1425 = vmatprep.mubr.f32.mxu0 %v516_v43  ;;  %v526_v43 = vld [vmem:[#allocation2 + $0x2d9] sm:$0xff] }
 0x155   :  { %1426 = vmatmul.mubr.f32.gmra.mrb[94].mxu0 %v8948_v44 }
 0x156   :  { %1430 = vmatprep.mubr.f32.mxu0 %v517_v46  ;;  %v8978_v46 = vld [vmem:[#allocation2 + $0x2d8] sm:$0xff] }
 0x157   :  { %10991 = vst [vmem:[#allocation14_spill] sm:$0xff] %v8978_v46 }
 0x159   :  { %1431 = vmatmul.mubr.f32.gmra.mrb[96].mxu0 %v8951_v49 }
 0x15a   :  { %1435 = vmatprep.mubr.f32.mxu0 %v518_v52  ;;  %v527_v52 = vld [vmem:[#allocation2 + $0x2e9] sm:$0xff] }
 0x15d   :  { %1436 = vmatmul.mubr.f32.gmra.mrb[98].mxu0 %v8954_v55 }
 0x15e   :  { %1440 = vmatprep.mubr.f32.mxu0 %v519_v56  ;;  %v8981_v56 = vld [vmem:[#allocation2 + $0x2e8] sm:$0xff] }
 0x15f   :  { %10992 = vst [vmem:[#allocation15_spill] sm:$0xff] %v8981_v56 }
 0x161   :  { %1441 = vmatmul.mubr.f32.gmra.mrb[100].mxu0 %v8957_v58 }
 0x162   :  { %1445 = vmatprep.mubr.f32.mxu0 %v520_v61  ;;  %v528_v61 = vld [vmem:[#allocation2 + $0x2f1] sm:$0xff] }
 0x165   :  { %1446 = vmatmul.mubr.f32.gmra.mrb[102].mxu0 %v8960_v2 }
 0x166   :  { %1450 = vmatprep.mubr.f32.mxu0 %v521_v5  ;;  %v8984_v5 = vld [vmem:[#allocation2 + $0x2f0] sm:$0xff] }
 0x167   :  { %10993 = vst [vmem:[#allocation16_spill] sm:$0xff] %v8984_v5 }
 0x169   :  { %1451 = vmatmul.mubr.f32.gmra.mrb[104].mxu0 %v8963_v8 }
 0x16a   :  { %1455 = vmatprep.mubr.f32.mxu0 %v522_v12  ;;  %v529_v12 = vld [vmem:[#allocation2 + $0x301] sm:$0xff] }
 0x16d   :  { %1456 = vmatmul.mubr.f32.gmra.mrb[106].mxu0 %v8966_v15 }
 0x16e   :  { %1460 = vmatprep.mubr.f32.mxu0 %v523_v18  ;;  %v8987_v18 = vld [vmem:[#allocation2 + $0x300] sm:$0xff] }
 0x16f   :  { %10994 = vst [vmem:[#allocation17_spill] sm:$0xff] %v8987_v18 }
 0x171   :  { %1461 = vmatmul.mubr.f32.gmra.mrb[108].mxu0 %v8969_v22 }
 0x172   :  { %1465 = vmatprep.mubr.f32.mxu0 %v524_v26  ;;  %v530_v26 = vld [vmem:[#allocation2 + $0x309] sm:$0xff] }
 0x175   :  { %1466 = vmatmul.mubr.f32.gmra.mrb[110].mxu0 %v8972_v30 }
 0x176   :  { %1470 = vmatprep.mubr.f32.mxu0 %v525_v35  ;;  %v305_v35 = vld [vmem:[%s10927_s0 + $0xf0] sm:$0xff] }
 0x177   :  { %371 = vst.msk [vmem:[#allocation2 + $0x181] sm:$0xff] %vm340_vm0, %v305_v35  ;;  %v9004_v35 = vld [vmem:[#allocation2 + $0x320] sm:$0xff] }
 0x178   :  { %10997 = vst [vmem:[#allocation20_spill] sm:$0xff] %v9004_v35 }
 0x179   :  { %1471 = vmatmul.mubr.f32.gmra.mrb[112].mxu0 %v8975_v38  ;;  %v1051_v38 = vld [vmem:[#allocation4 + $0x228] sm:$0xff] }
 0x17a   :  { %1475 = vmatprep.mubr.f32.mxu0 %v526_v43  ;;  %v8994_v43 = vld [vmem:[#allocation2 + $0x308] sm:$0xff] }
 0x17b   :  { %10995 = vst [vmem:[#allocation18_spill] sm:$0xff] %v8994_v43 }
 0x17d   :  { %1476 = vmatmul.mubr.f32.gmra.mrb[114].mxu0 %v8978_v46  ;;  %v1049_v46 = vld [vmem:[#allocation4 + $0x218] sm:$0xff] }
 0x17e   :  { %1480 = vmatprep.mubr.f32.mxu0 %v527_v52  ;;  %v531_v52 = vld [vmem:[#allocation2 + $0x319] sm:$0xff] }
 0x181   :  { %1481 = vmatmul.mubr.f32.gmra.mrb[116].mxu0 %v8981_v56 }
 0x182   :  { %1485 = vmatprep.mubr.f32.mxu0 %v528_v61  ;;  %v306_v61 = vld [vmem:[%s10927_s0 + $0xf8] sm:$0xff] }
 0x183   :  { %372 = vst.msk [vmem:[#allocation2 + $0x189] sm:$0xff] %vm340_vm0, %v306_v61  ;;  %v1048_v61 = vld [vmem:[#allocation4 + $0x210] sm:$0xff] }
 0x185   :  { %1486 = vmatmul.mubr.f32.gmra.mrb[118].mxu0 %v8984_v5  ;;  %v533_v5 = vld [vmem:[#allocation2 + $0x2] sm:$0xff] }
 0x186   :  { %1490 = vmatprep.mubr.f32.mxu0 %v529_v12  ;;  %v9001_v12 = vld [vmem:[#allocation2 + $0x318] sm:$0xff] }
 0x187   :  { %10996 = vst [vmem:[#allocation19_spill] sm:$0xff] %v9001_v12 }
 0x189   :  { %1491 = vmatmul.mubr.f32.gmra.mrb[120].mxu0 %v8987_v18  ;;  %v1047_v18 = vld [vmem:[#allocation4 + $0x208] sm:$0xff] }
 0x18a   :  { %1495 = vmatprep.mubr.f32.mxu0 %v530_v26  ;;  %v1046_v26 = vld [vmem:[#allocation4 + $0x200] sm:$0xff] }
 0x18b   :  { %v7029_v56 = vpack.c.bf16 %v1047_v18, %v1046_v26  ;;  %v1052_v18 = vld [vmem:[#allocation4 + $0x230] sm:$0xff] }
 0x18c   :  { %v1056_v26 = vld [vmem:[#allocation4 + $0x250] sm:$0xff] }
 0x18d   :  { %1496 = vmatmul.mubr.f32.gmra.mrb[122].mxu0 %v8994_v43  ;;  %v7032_v43 = vpack.c.bf16 %v1049_v46, %v1048_v61  ;;  %v9026_v61 = vld [vmem:[#allocation2 + $0x3a] sm:$0xff] }
 0x18e   :  { %1500 = vmatprep.mubr.f32.mxu0 %v531_v52  ;;  %v534_v52 = vld [vmem:[#allocation2 + $0xa] sm:$0xff] }
 0x191   :  { %1501 = vmatmul.mubr.f32.gmra.mrb[124].mxu0 %v9001_v12  ;;  %v10998_v12 = vmov 0.0|0.0  }
 0x192   :  { %1505 = vmatprep.mubr.f32.mxu0 %v532_v0  ;;  %v1050_v0 = vld [vmem:[#allocation4 + $0x220] sm:$0xff] }
 0x195   :  { %1506 = vmatmul.mubr.f32.gmra.mrb[126].mxu0 %v9004_v35  ;;  %v9011_v35 = vld [vmem:[#allocation2 + $0x1a] sm:$0xff] }
 0x196   :  { %1575 = vmatprep.mubr.f32.mxu0 %v8692_v31  ;;  %v7035_v31 = vpack.c.bf16 %v1051_v38, %v1050_v0  ;;  %v9021_v38 = vld [vmem:[#allocation2 + $0x32] sm:$0xff]  ;;  %v1058_v0 = vld [vmem:[#allocation4 + $0x260] sm:$0xff] }
 0x199   :  { %1576 = vmatmul.mubr.f32.vlgmr.msra.gmra.mrb[0].mxu0 %v533_v5  ;;  %v1053_v5 = vld [vmem:[#allocation4 + $0x238] sm:$0xff] }
 0x19a   :  { %7030 = vmatpush1.bf16.msra.mxu0 %v7029_v56  ;;  %1580 = vmatprep.mubr.f32.mxu0 %v8700_v1  ;;  %v9016_v1 = vld [vmem:[#allocation2 + $0x22] sm:$0xff]  ;;  %v7038_v46 = vpack.c.bf16 %v1053_v5, %v1052_v18  ;;  %v1060_v5 = vld [vmem:[#allocation4 + $0x270] sm:$0xff] }
 0x19b   :  { %7031 = vmatprep.subr.bf16.mxu0 %v10998_v12  ;;  %v1054_v56 = vld [vmem:[#allocation4 + $0x240] sm:$0xff] }
 0x19d   :  { %1581 = vmatmul.mubr.f32.gmra.mrb[2].mxu0 %v534_v52 }
 0x19e   :  { %1585 = vmatprep.mubr.f32.mxu0 %v8708_v42  ;;  %7033 = vmatpush1.bf16.msra.mxu0 %v7032_v43  ;;  %v1055_v42 = vld [vmem:[#allocation4 + $0x248] sm:$0xff] }
 0x19f   :  { %7034 = vmatprep.subr.bf16.mxu0 %v10998_v12  ;;  %v7041_v43 = vpack.c.bf16 %v1055_v42, %v1054_v56  ;;  %v1062_v42 = vld [vmem:[#allocation4 + $0x280] sm:$0xff] }
 0x1a1   :  { %1586 = vmatmul.mubr.f32.gmra.mrb[4].mxu0 %v9011_v35 }
 0x1a2   :  { %1590 = vmatprep.mubr.f32.mxu0 %v8716_v48  ;;  %7036 = vmatpush1.bf16.msra.mxu0 %v7035_v31  ;;  %v1057_v48 = vld [vmem:[#allocation4 + $0x258] sm:$0xff]  ;;  %v9031_v31 = vld [vmem:[#allocation2 + $0x4a] sm:$0xff] }
 0x1a3   :  { %7037 = vmatprep.subr.bf16.mxu0 %v10998_v12  ;;  %v7044_v52 = vpack.c.bf16 %v1057_v48, %v1056_v26  ;;  %v1064_v48 = vld [vmem:[#allocation4 + $0x290] sm:$0xff] }
 0x1a5   :  { %1591 = vmatmul.mubr.f32.gmra.mrb[6].mxu0 %v9016_v1 }
 0x1a6   :  { %1595 = vmatprep.mubr.f32.mxu0 %v8724_v54  ;;  %7039 = vmatpush1.bf16.msra.mxu0 %v7038_v46  ;;  %v1059_v54 = vld [vmem:[#allocation4 + $0x268] sm:$0xff]  ;;  %v9036_v46 = vld [vmem:[#allocation2 + $0x52] sm:$0xff] }
 0x1a7   :  { %7040 = vmatprep.subr.bf16.mxu0 %v10998_v12  ;;  %v7047_v18 = vpack.c.bf16 %v1059_v54, %v1058_v0  ;;  %v1066_v54 = vld [vmem:[#allocation4 + $0x2a0] sm:$0xff] }
 0x1a9   :  { %1596 = vmatmul.mubr.f32.gmra.mrb[8].mxu0 %v9021_v38 }
 0x1aa   :  { %1600 = vmatprep.mubr.f32.mxu0 %v8732_v60  ;;  %7042 = vmatpush1.bf16.msra.mxu0 %v7041_v43  ;;  %v1061_v60 = vld [vmem:[#allocation4 + $0x278] sm:$0xff]  ;;  %v9041_v43 = vld [vmem:[#allocation2 + $0x62] sm:$0xff] }
 0x1ab   :  { %7043 = vmatprep.subr.bf16.mxu0 %v10998_v12  ;;  %v7050_v56 = vpack.c.bf16 %v1061_v60, %v1060_v5  ;;  %v1068_v60 = vld [vmem:[#allocation4 + $0x2b0] sm:$0xff] }
 0x1ad   :  { %1601 = vmatmul.mubr.f32.gmra.mrb[10].mxu0 %v9026_v61 }
 0x1ae   :  { %1605 = vmatprep.mubr.f32.mxu0 %v8740_v4  ;;  %7045 = vmatpush1.bf16.msra.mxu0 %v7044_v52  ;;  %v1063_v4 = vld [vmem:[#allocation4 + $0x288] sm:$0xff] }
 0x1af   :  { %7046 = vmatprep.subr.bf16.mxu0 %v10998_v12  ;;  %v7053_v26 = vpack.c.bf16 %v1063_v4, %v1062_v42  ;;  %v9046_v52 = vld [vmem:[#allocation2 + $0x6a] sm:$0xff]  ;;  %v9065_v42 = vld [vmem:[#allocation2 + $0x9a] sm:$0xff] }
 0x1b0   :  { %v9070_v4 = vld [vmem:[#allocation2 + $0xaa] sm:$0xff] }
 0x1b1   :  { %1606 = vmatmul.mubr.f32.gmra.mrb[12].mxu0 %v9031_v31 }
 0x1b2   :  { %1610 = vmatprep.mubr.f32.mxu0 %v8748_v10  ;;  %7048 = vmatpush1.bf16.msra.mxu0 %v7047_v18  ;;  %v1065_v10 = vld [vmem:[#allocation4 + $0x298] sm:$0xff] }
 0x1b3   :  { %7049 = vmatprep.subr.bf16.mxu0 %v10998_v12  ;;  %v7056_v0 = vpack.c.bf16 %v1065_v10, %v1064_v48  ;;  %v9051_v18 = vld [vmem:[#allocation2 + $0x7a] sm:$0xff]  ;;  %v1071_v48 = vld [vmem:[#allocation4 + $0x2c8] sm:$0xff] }
 0x1b5   :  { %1611 = vmatmul.mubr.f32.gmra.mrb[14].mxu0 %v9036_v46 }
 0x1b6   :  { %1615 = vmatprep.mubr.f32.mxu0 %v8756_v16  ;;  %7051 = vmatpush1.bf16.msra.mxu0 %v7050_v56  ;;  %v1067_v16 = vld [vmem:[#allocation4 + $0x2a8] sm:$0xff]  ;;  %v1069_v56 = vld [vmem:[#allocation4 + $0x2b8] sm:$0xff] }
 0x1b7   :  { %7052 = vmatprep.subr.bf16.mxu0 %v10998_v12  ;;  %v7059_v5 = vpack.c.bf16 %v1067_v16, %v1066_v54  ;;  %v1073_v54 = vld [vmem:[#allocation4 + $0x2d8] sm:$0xff] }
 0x1b9   :  { %1616 = vmatmul.mubr.f32.gmra.mrb[16].mxu0 %v9041_v43 }
 0x1ba   :  { %1620 = vmatprep.mubr.f32.mxu0 %v8764_v20  ;;  %7054 = vmatpush1.bf16.msra.mxu0 %v7053_v26  ;;  %v9056_v20 = vld [vmem:[#allocation2 + $0x82] sm:$0xff] }
 0x1bb   :  { %7055 = vmatprep.subr.bf16.mxu0 %v10998_v12  ;;  %v1070_v26 = vld [vmem:[#allocation4 + $0x2c0] sm:$0xff] }
 0x1bc   :  { %v7065_v10 = vpack.c.bf16 %v1071_v48, %v1070_v26  ;;  %v1077_v26 = vld [vmem:[#allocation4 + $0x2f8] sm:$0xff] }
 0x1bd   :  { %1621 = vmatmul.mubr.f32.gmra.mrb[18].mxu0 %v9046_v52 }
 0x1be   :  { %1625 = vmatprep.mubr.f32.mxu0 %v8772_v23  ;;  %7057 = vmatpush1.bf16.msra.mxu0 %v7056_v0  ;;  %v9061_v23 = vld [vmem:[#allocation2 + $0x92] sm:$0xff] }
 0x1bf   :  { %7058 = vmatprep.subr.bf16.mxu0 %v10998_v12  ;;  %v1072_v0 = vld [vmem:[#allocation4 + $0x2d0] sm:$0xff] }
 0x1c0   :  { %v7068_v16 = vpack.c.bf16 %v1073_v54, %v1072_v0  ;;  %v9145_v0 = vld [vmem:[#allocation2 + $0x16a] sm:$0xff] }
 0x1c1   :  { %1626 = vmatmul.mubr.f32.gmra.mrb[20].mxu0 %v9051_v18  ;;  %v628_v54 = vld [vmem:[#allocation2 + $0x188] sm:$0xff] }
 0x1c2   :  { %1630 = vmatprep.mubr.f32.mxu0 %v8779_v28  ;;  %7060 = vmatpush1.bf16.msra.mxu0 %v7059_v5  ;;  %v7062_v28 = vpack.c.bf16 %v1069_v56, %v1068_v60  ;;  %v1074_v5 = vld [vmem:[#allocation4 + $0x2e0] sm:$0xff]  ;;  %v1075_v60 = vld [vmem:[#allocation4 + $0x2e8] sm:$0xff] }
 0x1c3   :  { %7061 = vmatprep.subr.bf16.mxu0 %v10998_v12  ;;  %v7071_v56 = vpack.c.bf16 %v1075_v60, %v1074_v5  ;;  %v566_v5 = vld [vmem:[#allocation2 + $0x1ba] sm:$0xff]  ;;  %v9154_v60 = vld [vmem:[#allocation2 + $0x1ca] sm:$0xff] }
 0x1c5   :  { %1631 = vmatmul.mubr.f32.gmra.mrb[22].mxu0 %v9056_v20 }
 0x1c6   :  { %1635 = vmatprep.mubr.f32.mxu0 %v8787_v33  ;;  %7063 = vmatpush1.bf16.msra.mxu0 %v7062_v28  ;;  %v9074_v33 = vld [vmem:[#allocation2 + $0xb2] sm:$0xff] }
 0x1c7   :  { %7064 = vmatprep.subr.bf16.mxu0 %v10998_v12  ;;  %v337_v28 = vld [vmem:[%s10927_s0 + $0x1f0] sm:$0xff] }
 0x1c8   :  { %403 = vst.msk [vmem:[#allocation2 + $0x331] sm:$0xff] %vm340_vm0, %v337_v28  ;;  %v9234_v28 = vld [vmem:[#allocation2 + $0x2ba] sm:$0xff] }
 0x1c9   :  { %1636 = vmatmul.mubr.f32.gmra.mrb[24].mxu0 %v9061_v23 }
 0x1ca   :  { %1640 = vmatprep.mubr.f32.mxu0 %v8794_v36  ;;  %v9078_v36 = vld [vmem:[#allocation2 + $0xc2] sm:$0xff]  ;;  %7066 = vmatpush1.bf16.msra.mxu0 %v7065_v10 }
 0x1cb   :  { %7067 = vmatprep.subr.bf16.mxu0 %v10998_v12  ;;  %v627_v10 = vld [vmem:[#allocation2 + $0x180] sm:$0xff] }
 0x1cd   :  { %1641 = vmatmul.mubr.f32.gmra.mrb[26].mxu0 %v9065_v42 }
 0x1ce   :  { %1645 = vmatprep.mubr.f32.mxu0 %v8801_v39  ;;  %v9082_v39 = vld [vmem:[#allocation2 + $0xca] sm:$0xff]  ;;  %7069 = vmatpush1.bf16.msra.mxu0 %v7068_v16  ;;  %v565_v16 = vld [vmem:[#allocation2 + $0x1b2] sm:$0xff] }
 0x1cf   :  { %7070 = vmatprep.subr.bf16.mxu0 %v10998_v12 }
 0x1d1   :  { %1646 = vmatmul.mubr.f32.gmra.mrb[28].mxu0 %v9070_v4 }
 0x1d2   :  { %1650 = vmatprep.mubr.f32.mxu0 %v8808_v45  ;;  %v9087_v45 = vld [vmem:[#allocation2 + $0xda] sm:$0xff]  ;;  %7072 = vmatpush1.bf16.msra.mxu0 %v7071_v56  ;;  %v9158_v56 = vld [vmem:[#allocation2 + $0x1d2] sm:$0xff] }
 0x1d3   :  { %7073 = vmatprep.subr.bf16.mxu0 %v10998_v12 }
 0x1d5   :  { %1651 = vmatmul.mubr.f32.gmra.mrb[30].mxu0 %v9074_v33 }
 0x1d6   :  { %1655 = vmatprep.mubr.f32.mxu0 %v8816_v50  ;;  %v9091_v50 = vld [vmem:[#allocation2 + $0xe2] sm:$0xff] }
 0x1d9   :  { %1656 = vmatmul.mubr.f32.gmra.mrb[32].mxu0 %v9078_v36 }
 0x1da   :  { %1660 = vmatprep.mubr.f32.mxu0 %v8823_v53  ;;  %v9095_v53 = vld [vmem:[#allocation2 + $0xf2] sm:$0xff] }
 0x1dd   :  { %1661 = vmatmul.mubr.f32.gmra.mrb[34].mxu0 %v9082_v39 }
 0x1de   :  { %1665 = vmatprep.mubr.f32.mxu0 %v8830_v57  ;;  %v9099_v57 = vld [vmem:[#allocation2 + $0xfa] sm:$0xff] }
 0x1e1   :  { %1666 = vmatmul.mubr.f32.gmra.mrb[36].mxu0 %v9087_v45 }
 0x1e2   :  { %1670 = vmatprep.mubr.f32.mxu0 %v8837_v63  ;;  %v9104_v63 = vld [vmem:[#allocation2 + $0x10a] sm:$0xff] }
 0x1e5   :  { %1671 = vmatmul.mubr.f32.gmra.mrb[38].mxu0 %v9091_v50 }
 0x1e6   :  { %1675 = vmatprep.mubr.f32.mxu0 %v8845_v6  ;;  %v9108_v6 = vld [vmem:[#allocation2 + $0x112] sm:$0xff] }
 0x1e9   :  { %1676 = vmatmul.mubr.f32.gmra.mrb[40].mxu0 %v9095_v53 }
 0x1ea   :  { %1680 = vmatprep.mubr.f32.mxu0 %v8852_v9  ;;  %v9112_v9 = vld [vmem:[#allocation2 + $0x122] sm:$0xff] }
 0x1ed   :  { %1681 = vmatmul.mubr.f32.gmra.mrb[42].mxu0 %v9099_v57 }
 0x1ee   :  { %1685 = vmatprep.mubr.f32.mxu0 %v8859_v13  ;;  %v9116_v13 = vld [vmem:[#allocation2 + $0x12a] sm:$0xff] }
 0x1f1   :  { %1686 = vmatmul.mubr.f32.gmra.mrb[44].mxu0 %v9104_v63 }
 0x1f2   :  { %1690 = vmatprep.mubr.f32.mxu0 %v8866_v19  ;;  %v9121_v19 = vld [vmem:[#allocation2 + $0x13a] sm:$0xff] }
 0x1f5   :  { %1691 = vmatmul.mubr.f32.gmra.mrb[46].mxu0 %v9108_v6 }
 0x1f6   :  { %1695 = vmatprep.mubr.f32.mxu0 %v8874_v25  ;;  %v9125_v25 = vld [vmem:[#allocation2 + $0x142] sm:$0xff] }
 0x1f9   :  { %1696 = vmatmul.mubr.f32.gmra.mrb[48].mxu0 %v9112_v9 }
 0x1fa   :  { %1700 = vmatprep.mubr.f32.mxu0 %v8881_v29  ;;  %v9129_v29 = vld [vmem:[#allocation2 + $0x152] sm:$0xff] }
 0x1fd   :  { %1701 = vmatmul.mubr.f32.gmra.mrb[50].mxu0 %v9116_v13 }
 0x1fe   :  { %1705 = vmatprep.mubr.f32.mxu0 %v8888_v34  ;;  %v1076_v34 = vld [vmem:[#allocation4 + $0x2f0] sm:$0xff] }
 0x1ff   :  { %v7074_v48 = vpack.c.bf16 %v1077_v26, %v1076_v34  ;;  %v9238_v34 = vld [vmem:[#allocation2 + $0x2c2] sm:$0xff]  ;;  %v9242_v26 = vld [vmem:[#allocation2 + $0x2d2] sm:$0xff] }
 0x201   :  { %1706 = vmatmul.mubr.f32.gmra.mrb[52].mxu0 %v9121_v19 }
 0x202   :  { %1710 = vmatprep.mubr.f32.mxu0 %v8895_v41  ;;  %v9137_v41 = vld [vmem:[#allocation2 + $0x15a] sm:$0xff]  ;;  %7075 = vmatpush1.bf16.msra.mxu0 %v7074_v48 }
 0x203   :  { %7076 = vmatprep.subr.bf16.mxu0 %v10998_v12  ;;  %v9246_v48 = vld [vmem:[#allocation2 + $0x2da] sm:$0xff] }
 0x205   :  { %1711 = vmatmul.mubr.f32.gmra.mrb[54].mxu0 %v9125_v25 }
 0x206   :  { %1715 = vmatprep.mubr.f32.mxu0 %v8903_v47  ;;  %v338_v47 = vld [vmem:[%s10927_s0 + $0x1f8] sm:$0xff] }
 0x207   :  { %404 = vst.msk [vmem:[#allocation2 + $0x339] sm:$0xff] %vm340_vm0, %v338_v47  ;;  %v9250_v47 = vld [vmem:[#allocation2 + $0x2ea] sm:$0xff] }
 0x209   :  { %1716 = vmatmul.mubr.f32.gmra.mrb[56].mxu0 %v9129_v29 }
 0x20a   :  { %1720 = vmatprep.mubr.f32.mxu0 %v8906_v51  ;;  %v9148_v51 = vld [vmem:[#allocation2 + $0x172] sm:$0xff] }
 0x20d   :  { %1721 = vmatmul.mubr.f32.gmra.mrb[58].mxu0 %v9137_v41 }
 0x20e   :  { %1725 = vmatprep.mubr.f32.mxu0 %v627_v10  ;;  %v11005_v10 = vld [vmem:[#allocation17_spill] sm:$0xff] }
 0x211   :  { %1726 = vmatmul.mubr.f32.gmra.mrb[60].mxu0 %v9145_v0 }
 0x212   :  { %1730 = vmatprep.mubr.f32.mxu0 %v628_v54  ;;  %v11007_v54 = vld [vmem:[#allocation18_spill] sm:$0xff] }
 0x215   :  { %1731 = vmatmul.mubr.f32.gmra.mrb[62].mxu0 %v9148_v51 }
 0x216   :  { %1735 = vmatprep.mubr.f32.mxu0 %v8909_v59  ;;  %v9162_v59 = vld [vmem:[#allocation2 + $0x1e2] sm:$0xff] }
 0x219   :  { %1736 = vmatmul.mubr.f32.gmra.mrb[64].mxu0 %v565_v16  ;;  %v9254_v16 = vld [vmem:[#allocation2 + $0x2f2] sm:$0xff] }
 0x21a   :  { %1740 = vmatprep.mubr.f32.mxu0 %v8912_v62  ;;  %v9166_v62 = vld [vmem:[#allocation2 + $0x1ea] sm:$0xff] }
 0x21d   :  { %1741 = vmatmul.mubr.f32.gmra.mrb[66].mxu0 %v566_v5  ;;  %v11009_v5 = vld [vmem:[#allocation19_spill] sm:$0xff] }
 0x21e   :  { %1745 = vmatprep.mubr.f32.mxu0 %v8915_v3  ;;  %v9170_v3 = vld [vmem:[#allocation2 + $0x1fa] sm:$0xff] }
 0x221   :  { %1746 = vmatmul.mubr.f32.gmra.mrb[68].mxu0 %v9154_v60 }
 0x222   :  { %1750 = vmatprep.mubr.f32.mxu0 %v8918_v7  ;;  %v9174_v7 = vld [vmem:[#allocation2 + $0x202] sm:$0xff] }
 0x225   :  { %1751 = vmatmul.mubr.f32.gmra.mrb[70].mxu0 %v9158_v56 }
 0x226   :  { %1755 = vmatprep.mubr.f32.mxu0 %v8921_v11  ;;  %v9178_v11 = vld [vmem:[#allocation2 + $0x212] sm:$0xff] }
 0x229   :  { %1756 = vmatmul.mubr.f32.gmra.mrb[72].mxu0 %v9162_v59 }
 0x22a   :  { %1760 = vmatprep.mubr.f32.mxu0 %v8924_v14  ;;  %v9182_v14 = vld [vmem:[#allocation2 + $0x21a] sm:$0xff] }
 0x22d   :  { %1761 = vmatmul.mubr.f32.gmra.mrb[74].mxu0 %v9166_v62 }
 0x22e   :  { %1765 = vmatprep.mubr.f32.mxu0 %v8927_v17  ;;  %v9186_v17 = vld [vmem:[#allocation2 + $0x22a] sm:$0xff] }
 0x231   :  { %1766 = vmatmul.mubr.f32.gmra.mrb[76].mxu0 %v9170_v3 }
 0x232   :  { %1770 = vmatprep.mubr.f32.mxu0 %v8930_v21  ;;  %v9190_v21 = vld [vmem:[#allocation2 + $0x232] sm:$0xff] }
 0x235   :  { %1771 = vmatmul.mubr.f32.gmra.mrb[78].mxu0 %v9174_v7 }
 0x236   :  { %1775 = vmatprep.mubr.f32.mxu0 %v8933_v24  ;;  %v9194_v24 = vld [vmem:[#allocation2 + $0x242] sm:$0xff] }
 0x239   :  { %1776 = vmatmul.mubr.f32.gmra.mrb[80].mxu0 %v9178_v11 }
 0x23a   :  { %1780 = vmatprep.mubr.f32.mxu0 %v8936_v27  ;;  %v9198_v27 = vld [vmem:[#allocation2 + $0x24a] sm:$0xff] }
 0x23d   :  { %1781 = vmatmul.mubr.f32.gmra.mrb[82].mxu0 %v9182_v14 }
 0x23e   :  { %1785 = vmatprep.mubr.f32.mxu0 %v8939_v32  ;;  %v9202_v32 = vld [vmem:[#allocation2 + $0x25a] sm:$0xff] }
 0x241   :  { %1786 = vmatmul.mubr.f32.gmra.mrb[84].mxu0 %v9186_v17 }
 0x242   :  { %1790 = vmatprep.mubr.f32.mxu0 %v8942_v37  ;;  %v9206_v37 = vld [vmem:[#allocation2 + $0x262] sm:$0xff] }
 0x245   :  { %1791 = vmatmul.mubr.f32.gmra.mrb[86].mxu0 %v9190_v21 }
 0x246   :  { %1795 = vmatprep.mubr.f32.mxu0 %v8945_v40  ;;  %v9210_v40 = vld [vmem:[#allocation2 + $0x272] sm:$0xff] }
 0x249   :  { %1796 = vmatmul.mubr.f32.gmra.mrb[88].mxu0 %v9194_v24 }
 0x24a   :  { %1800 = vmatprep.mubr.f32.mxu0 %v8948_v44  ;;  %v9214_v44 = vld [vmem:[#allocation2 + $0x27a] sm:$0xff] }
 0x24d   :  { %1801 = vmatmul.mubr.f32.gmra.mrb[90].mxu0 %v9198_v27 }
 0x24e   :  { %1805 = vmatprep.mubr.f32.mxu0 %v8951_v49  ;;  %v9218_v49 = vld [vmem:[#allocation2 + $0x28a] sm:$0xff] }
 0x251   :  { %1806 = vmatmul.mubr.f32.gmra.mrb[92].mxu0 %v9202_v32 }
 0x252   :  { %1810 = vmatprep.mubr.f32.mxu0 %v8954_v55  ;;  %v9222_v55 = vld [vmem:[#allocation2 + $0x292] sm:$0xff] }
 0x255   :  { %1811 = vmatmul.mubr.f32.gmra.mrb[94].mxu0 %v9206_v37 }
 0x256   :  { %1815 = vmatprep.mubr.f32.mxu0 %v8957_v58  ;;  %v9226_v58 = vld [vmem:[#allocation2 + $0x2a2] sm:$0xff] }
 0x259   :  { %1816 = vmatmul.mubr.f32.gmra.mrb[96].mxu0 %v9210_v40 }
 0x25a   :  { %1820 = vmatprep.mubr.f32.mxu0 %v8960_v2  ;;  %v9230_v2 = vld [vmem:[#allocation2 + $0x2aa] sm:$0xff] }
 0x25d   :  { %1821 = vmatmul.mubr.f32.gmra.mrb[98].mxu0 %v9214_v44 }
 0x25e   :  { %1825 = vmatprep.mubr.f32.mxu0 %v8963_v8  ;;  %v10999_v8 = vld [vmem:[#allocation13_spill] sm:$0xff] }
 0x25f   :  { %11002 = vst [vmem:[#allocation13_spill] sm:$0xff] %v9242_v26 }
 0x261   :  { %1826 = vmatmul.mubr.f32.gmra.mrb[100].mxu0 %v9218_v49 }
 0x262   :  { %1830 = vmatprep.mubr.f32.mxu0 %v8966_v15  ;;  %v11000_v15 = vld [vmem:[#allocation14_spill] sm:$0xff] }
 0x263   :  { %11004 = vst [vmem:[#allocation14_spill] sm:$0xff] %v9246_v48 }
 0x265   :  { %1831 = vmatmul.mubr.f32.gmra.mrb[102].mxu0 %v9222_v55 }
 0x266   :  { %1835 = vmatprep.mubr.f32.mxu0 %v8969_v22  ;;  %v11001_v22 = vld [vmem:[#allocation15_spill] sm:$0xff] }
 0x267   :  { %11006 = vst [vmem:[#allocation15_spill] sm:$0xff] %v9250_v47 }
 0x269   :  { %1836 = vmatmul.mubr.f32.gmra.mrb[104].mxu0 %v9226_v58 }
 0x26a   :  { %1840 = vmatprep.mubr.f32.mxu0 %v8972_v30  ;;  %v11003_v30 = vld [vmem:[#allocation16_spill] sm:$0xff] }
 0x26b   :  { %11008 = vst [vmem:[#allocation16_spill] sm:$0xff] %v9254_v16 }
 0x26d   :  { %1841 = vmatmul.mubr.f32.gmra.mrb[106].mxu0 %v9230_v2 }
 0x26e   :  { %1845 = vmatprep.mubr.f32.mxu0 %v10999_v8  ;;  %v9258_v8 = vld [vmem:[#allocation2 + $0x302] sm:$0xff] }
 0x26f   :  { %11010 = vst [vmem:[#allocation17_spill] sm:$0xff] %v9258_v8 }
 0x271   :  { %1846 = vmatmul.mubr.f32.gmra.mrb[108].mxu0 %v9234_v28 }
 0x272   :  { %1850 = vmatprep.mubr.f32.mxu0 %v11000_v15  ;;  %v11011_v15 = vld [vmem:[#allocation20_spill] sm:$0xff] }
 0x275   :  { %1851 = vmatmul.mubr.f32.gmra.mrb[110].mxu0 %v9238_v34 }
 0x276   :  { %1855 = vmatprep.mubr.f32.mxu0 %v11001_v22  ;;  %v9262_v22 = vld [vmem:[#allocation2 + $0x30a] sm:$0xff] }
 0x277   :  { %11012 = vst [vmem:[#allocation18_spill] sm:$0xff] %v9262_v22 }
 0x279   :  { %1856 = vmatmul.mubr.f32.gmra.mrb[112].mxu0 %v9242_v26  ;;  %v1081_v26 = vld [vmem:[#allocation4 + $0x318] sm:$0xff] }
 0x27a   :  { %1860 = vmatprep.mubr.f32.mxu0 %v11003_v30  ;;  %v659_v30 = vld [vmem:[#allocation2 + $0x330] sm:$0xff] }
 0x27d   :  { %1861 = vmatmul.mubr.f32.gmra.mrb[114].mxu0 %v9246_v48  ;;  %v1080_v48 = vld [vmem:[#allocation4 + $0x310] sm:$0xff] }
 0x27e   :  { %1865 = vmatprep.mubr.f32.mxu0 %v11005_v10  ;;  %v9265_v10 = vld [vmem:[#allocation2 + $0x31a] sm:$0xff] }
 0x27f   :  { %11013 = vst [vmem:[#allocation19_spill] sm:$0xff] %v9265_v10 }
 0x281   :  { %1866 = vmatmul.mubr.f32.gmra.mrb[116].mxu0 %v9250_v47  ;;  %v1079_v47 = vld [vmem:[#allocation4 + $0x308] sm:$0xff] }
 0x282   :  { %1870 = vmatprep.mubr.f32.mxu0 %v11007_v54  ;;  %v660_v54 = vld [vmem:[#allocation2 + $0x338] sm:$0xff] }
 0x285   :  { %1871 = vmatmul.mubr.f32.gmra.mrb[118].mxu0 %v9254_v16  ;;  %v9268_v16 = vld [vmem:[#allocation2 + $0x322] sm:$0xff] }
 0x286   :  { %1875 = vmatprep.mubr.f32.mxu0 %v11009_v5  ;;  %11014 = vst [vmem:[#allocation20_spill] sm:$0xff] %v9268_v16  ;;  %v1078_v5 = vld [vmem:[#allocation4 + $0x300] sm:$0xff] }
 0x289   :  { %1876 = vmatmul.mubr.f32.gmra.mrb[120].mxu0 %v9258_v8  ;;  %v7077_v8 = vpack.c.bf16 %v1079_v47, %v1078_v5  ;;  %v1084_v47 = vld [vmem:[#allocation4 + $0x330] sm:$0xff]  ;;  %v1085_v5 = vld [vmem:[#allocation4 + $0x338] sm:$0xff] }
 0x28a   :  { %1880 = vmatprep.mubr.f32.mxu0 %v11011_v15  ;;  %v661_v15 = vld [vmem:[#allocation2 + $0x19] sm:$0xff] }
 0x28d   :  { %1881 = vmatmul.mubr.f32.gmra.mrb[122].mxu0 %v9262_v22  ;;  %v7080_v22 = vpack.c.bf16 %v1081_v26, %v1080_v48  ;;  %v7086_v26 = vpack.c.bf16 %v1085_v5, %v1084_v47  ;;  %v1086_v48 = vld [vmem:[#allocation4 + $0x340] sm:$0xff]  ;;  %v1092_v5 = vld [vmem:[#allocation4 + $0x370] sm:$0xff] }
 0x28e   :  { %1885 = vmatprep.mubr.f32.mxu0 %v659_v30  ;;  %v662_v30 = vld [vmem:[#allocation2 + $0x21] sm:$0xff] }
 0x291   :  { %1886 = vmatmul.mubr.f32.gmra.mrb[124].mxu0 %v9265_v10  ;;  %v1083_v10 = vld [vmem:[#allocation4 + $0x328] sm:$0xff] }
 0x292   :  { %1890 = vmatprep.mubr.f32.mxu0 %v660_v54  ;;  %v1082_v54 = vld [vmem:[#allocation4 + $0x320] sm:$0xff] }
 0x295   :  { %1891 = vmatmul.mubr.f32.gmra.mrb[126].mxu0 %v9268_v16  ;;  %v9275_v16 = vld [vmem:[#allocation2 + $0x31] sm:$0xff] }
 0x296   :  { %1960 = vmatprep.mubr.f32.mxu0 %v9011_v35  ;;  %v7083_v35 = vpack.c.bf16 %v1083_v10, %v1082_v54  ;;  %v1088_v10 = vld [vmem:[#allocation4 + $0x350] sm:$0xff]  ;;  %v1090_v54 = vld [vmem:[#allocation4 + $0x360] sm:$0xff] }
 0x299   :  { %1961 = vmatmul.mubr.f32.vlgmr.msra.gmra.mrb[0].mxu0 %v661_v15  ;;  %v9290_v15 = vld [vmem:[#allocation2 + $0x51] sm:$0xff] }
 0x29a   :  { %7078 = vmatpush1.bf16.msra.mxu0 %v7077_v8  ;;  %1965 = vmatprep.mubr.f32.mxu0 %v9016_v1  ;;  %v9280_v1 = vld [vmem:[#allocation2 + $0x39] sm:$0xff]  ;;  %v9285_v8 = vld [vmem:[#allocation2 + $0x49] sm:$0xff] }
 0x29b   :  { %7079 = vmatprep.subr.bf16.mxu0 %v10998_v12 }
 0x29d   :  { %1966 = vmatmul.mubr.f32.gmra.mrb[2].mxu0 %v662_v30 }
 0x29e   :  { %1970 = vmatprep.mubr.f32.mxu0 %v9021_v38  ;;  %7081 = vmatpush1.bf16.msra.mxu0 %v7080_v22  ;;  %v1087_v38 = vld [vmem:[#allocation4 + $0x348] sm:$0xff] }
 0x29f   :  { %7082 = vmatprep.subr.bf16.mxu0 %v10998_v12  ;;  %v7089_v22 = vpack.c.bf16 %v1087_v38, %v1086_v48  ;;  %v1094_v38 = vld [vmem:[#allocation4 + $0x380] sm:$0xff] }
 0x2a1   :  { %1971 = vmatmul.mubr.f32.gmra.mrb[4].mxu0 %v9275_v16 }
 0x2a2   :  { %1975 = vmatprep.mubr.f32.mxu0 %v9026_v61  ;;  %7084 = vmatpush1.bf16.msra.mxu0 %v7083_v35  ;;  %v1089_v61 = vld [vmem:[#allocation4 + $0x358] sm:$0xff]  ;;  %v9295_v35 = vld [vmem:[#allocation2 + $0x61] sm:$0xff] }
 0x2a3   :  { %7085 = vmatprep.subr.bf16.mxu0 %v10998_v12  ;;  %v7092_v30 = vpack.c.bf16 %v1089_v61, %v1088_v10  ;;  %v1096_v61 = vld [vmem:[#allocation4 + $0x390] sm:$0xff] }
 0x2a5   :  { %1976 = vmatmul.mubr.f32.gmra.mrb[6].mxu0 %v9280_v1 }
 0x2a6   :  { %1980 = vmatprep.mubr.f32.mxu0 %v9031_v31  ;;  %7087 = vmatpush1.bf16.msra.mxu0 %v7086_v26  ;;  %v1091_v31 = vld [vmem:[#allocation4 + $0x368] sm:$0xff] }
 0x2a7   :  { %7088 = vmatprep.subr.bf16.mxu0 %v10998_v12  ;;  %v7095_v47 = vpack.c.bf16 %v1091_v31, %v1090_v54  ;;  %v9300_v26 = vld [vmem:[#allocation2 + $0x69] sm:$0xff]  ;;  %v1098_v31 = vld [vmem:[#allocation4 + $0x3a0] sm:$0xff] }
 0x2a9   :  { %1981 = vmatmul.mubr.f32.gmra.mrb[8].mxu0 %v9285_v8 }
 0x2aa   :  { %1985 = vmatprep.mubr.f32.mxu0 %v9036_v46  ;;  %7090 = vmatpush1.bf16.msra.mxu0 %v7089_v22  ;;  %v1093_v46 = vld [vmem:[#allocation4 + $0x378] sm:$0xff] }
 0x2ab   :  { %7091 = vmatprep.subr.bf16.mxu0 %v10998_v12  ;;  %v7098_v48 = vpack.c.bf16 %v1093_v46, %v1092_v5  ;;  %v9305_v22 = vld [vmem:[#allocation2 + $0x79] sm:$0xff]  ;;  %v1100_v46 = vld [vmem:[#allocation4 + $0x3b0] sm:$0xff] }
 0x2ad   :  { %1986 = vmatmul.mubr.f32.gmra.mrb[10].mxu0 %v9290_v15 }
 0x2ae   :  { %1990 = vmatprep.mubr.f32.mxu0 %v9041_v43  ;;  %7093 = vmatpush1.bf16.msra.mxu0 %v7092_v30  ;;  %v1095_v43 = vld [vmem:[#allocation4 + $0x388] sm:$0xff] }
 0x2af   :  { %7094 = vmatprep.subr.bf16.mxu0 %v10998_v12  ;;  %v7101_v10 = vpack.c.bf16 %v1095_v43, %v1094_v38  ;;  %v9310_v30 = vld [vmem:[#allocation2 + $0x81] sm:$0xff]  ;;  %v9329_v38 = vld [vmem:[#allocation2 + $0xb1] sm:$0xff] }
 0x2b0   :  { %v9334_v43 = vld [vmem:[#allocation2 + $0xc1] sm:$0xff] }
 0x2b1   :  { %1991 = vmatmul.mubr.f32.gmra.mrb[12].mxu0 %v9295_v35 }
 0x2b2   :  { %1995 = vmatprep.mubr.f32.mxu0 %v9046_v52  ;;  %7096 = vmatpush1.bf16.msra.mxu0 %v7095_v47  ;;  %v1097_v52 = vld [vmem:[#allocation4 + $0x398] sm:$0xff] }
 0x2b3   :  { %7097 = vmatprep.subr.bf16.mxu0 %v10998_v12  ;;  %v7104_v54 = vpack.c.bf16 %v1097_v52, %v1096_v61  ;;  %v9315_v47 = vld [vmem:[#allocation2 + $0x91] sm:$0xff]  ;;  %v1103_v61 = vld [vmem:[#allocation4 + $0x3c8] sm:$0xff] }
 0x2b5   :  { %1996 = vmatmul.mubr.f32.gmra.mrb[14].mxu0 %v9300_v26 }
 0x2b6   :  { %2000 = vmatprep.mubr.f32.mxu0 %v9051_v18  ;;  %7099 = vmatpush1.bf16.msra.mxu0 %v7098_v48  ;;  %v1099_v18 = vld [vmem:[#allocation4 + $0x3a8] sm:$0xff]  ;;  %v1101_v48 = vld [vmem:[#allocation4 + $0x3b8] sm:$0xff] }
 0x2b7   :  { %7100 = vmatprep.subr.bf16.mxu0 %v10998_v12  ;;  %v7107_v5 = vpack.c.bf16 %v1099_v18, %v1098_v31  ;;  %v1105_v31 = vld [vmem:[#allocation4 + $0x3d8] sm:$0xff] }
 0x2b9   :  { %2001 = vmatmul.mubr.f32.gmra.mrb[16].mxu0 %v9305_v22 }
 0x2ba   :  { %2005 = vmatprep.mubr.f32.mxu0 %v9056_v20  ;;  %7102 = vmatpush1.bf16.msra.mxu0 %v7101_v10  ;;  %v9320_v20 = vld [vmem:[#allocation2 + $0x99] sm:$0xff] }
 0x2bb   :  { %7103 = vmatprep.subr.bf16.mxu0 %v10998_v12  ;;  %v1102_v10 = vld [vmem:[#allocation4 + $0x3c0] sm:$0xff] }
 0x2bc   :  { %v7113_v52 = vpack.c.bf16 %v1103_v61, %v1102_v10  ;;  %v1106_v10 = vld [vmem:[#allocation4 + $0x3e0] sm:$0xff]  ;;  %v1107_v61 = vld [vmem:[#allocation4 + $0x3e8] sm:$0xff] }
 0x2bd   :  { %2006 = vmatmul.mubr.f32.gmra.mrb[18].mxu0 %v9310_v30 }
 0x2be   :  { %2010 = vmatprep.mubr.f32.mxu0 %v9061_v23  ;;  %7105 = vmatpush1.bf16.msra.mxu0 %v7104_v54  ;;  %v9325_v23 = vld [vmem:[#allocation2 + $0xa9] sm:$0xff] }
 0x2bf   :  { %7106 = vmatprep.subr.bf16.mxu0 %v10998_v12  ;;  %v1104_v54 = vld [vmem:[#allocation4 + $0x3d0] sm:$0xff] }
 0x2c0   :  { %v7116_v18 = vpack.c.bf16 %v1105_v31, %v1104_v54  ;;  %v7119_v54 = vpack.c.bf16 %v1107_v61, %v1106_v10  ;;  %v1115_v31 = vld [vmem:[#allocation4 + $0x428] sm:$0xff] }
 0x2c1   :  { %2011 = vmatmul.mubr.f32.gmra.mrb[20].mxu0 %v9315_v47  ;;  %v1119_v10 = vld [vmem:[#allocation4 + $0x448] sm:$0xff] }
 0x2c2   :  { %2015 = vmatprep.mubr.f32.mxu0 %v9065_v42  ;;  %7108 = vmatpush1.bf16.msra.mxu0 %v7107_v5  ;;  %v7110_v42 = vpack.c.bf16 %v1101_v48, %v1100_v46  ;;  %v1110_v5 = vld [vmem:[#allocation4 + $0x400] sm:$0xff]  ;;  %v9393_v61 = vld [vmem:[#allocation2 + $0x169] sm:$0xff] }
 0x2c3   :  { %7109 = vmatprep.subr.bf16.mxu0 %v10998_v12  ;;  %v9376_v48 = vld [vmem:[#allocation2 + $0x139] sm:$0xff] }
 0x2c5   :  { %2016 = vmatmul.mubr.f32.gmra.mrb[22].mxu0 %v9320_v20 }
 0x2c6   :  { %2020 = vmatprep.mubr.f32.mxu0 %v9070_v4  ;;  %7111 = vmatpush1.bf16.msra.mxu0 %v7110_v42  ;;  %v9338_v4 = vld [vmem:[#allocation2 + $0xc9] sm:$0xff]  ;;  %v1113_v42 = vld [vmem:[#allocation4 + $0x418] sm:$0xff] }
 0x2c7   :  { %7112 = vmatprep.subr.bf16.mxu0 %v10998_v12 }
 0x2c9   :  { %2021 = vmatmul.mubr.f32.gmra.mrb[24].mxu0 %v9325_v23 }
 0x2ca   :  { %2025 = vmatprep.mubr.f32.mxu0 %v9074_v33  ;;  %v9342_v33 = vld [vmem:[#allocation2 + $0xd9] sm:$0xff]  ;;  %7114 = vmatpush1.bf16.msra.mxu0 %v7113_v52  ;;  %v9380_v52 = vld [vmem:[#allocation2 + $0x141] sm:$0xff] }
 0x2cb   :  { %7115 = vmatprep.subr.bf16.mxu0 %v10998_v12 }
 0x2cd   :  { %2026 = vmatmul.mubr.f32.gmra.mrb[26].mxu0 %v9329_v38 }
 0x2ce   :  { %2030 = vmatprep.mubr.f32.mxu0 %v9078_v36  ;;  %v9346_v36 = vld [vmem:[#allocation2 + $0xe1] sm:$0xff]  ;;  %7117 = vmatpush1.bf16.msra.mxu0 %v7116_v18 }
 0x2cf   :  { %7118 = vmatprep.subr.bf16.mxu0 %v10998_v12 }
 0x2d1   :  { %2031 = vmatmul.mubr.f32.gmra.mrb[28].mxu0 %v9334_v43 }
 0x2d2   :  { %2035 = vmatprep.mubr.f32.mxu0 %v9082_v39  ;;  %v9351_v39 = vld [vmem:[#allocation2 + $0xf1] sm:$0xff]  ;;  %7120 = vmatpush1.bf16.msra.mxu0 %v7119_v54 }
 0x2d3   :  { %7121 = vmatprep.subr.bf16.mxu0 %v10998_v12  ;;  %v1121_v54 = vld [vmem:[#allocation4 + $0x458] sm:$0xff] }
 0x2d5   :  { %2036 = vmatmul.mubr.f32.gmra.mrb[30].mxu0 %v9338_v4 }
 0x2d6   :  { %2040 = vmatprep.mubr.f32.mxu0 %v9087_v45  ;;  %v9355_v45 = vld [vmem:[#allocation2 + $0xf9] sm:$0xff] }
 0x2d9   :  { %2041 = vmatmul.mubr.f32.gmra.mrb[32].mxu0 %v9342_v33 }
 0x2da   :  { %2045 = vmatprep.mubr.f32.mxu0 %v9091_v50  ;;  %v9359_v50 = vld [vmem:[#allocation2 + $0x109] sm:$0xff] }
 0x2dd   :  { %2046 = vmatmul.mubr.f32.gmra.mrb[34].mxu0 %v9346_v36 }
 0x2de   :  { %2050 = vmatprep.mubr.f32.mxu0 %v9095_v53  ;;  %v9363_v53 = vld [vmem:[#allocation2 + $0x111] sm:$0xff] }
 0x2e1   :  { %2051 = vmatmul.mubr.f32.gmra.mrb[36].mxu0 %v9351_v39 }
 0x2e2   :  { %2055 = vmatprep.mubr.f32.mxu0 %v9099_v57  ;;  %v9368_v57 = vld [vmem:[#allocation2 + $0x121] sm:$0xff] }
 0x2e5   :  { %2056 = vmatmul.mubr.f32.gmra.mrb[38].mxu0 %v9355_v45 }
 0x2e6   :  { %2060 = vmatprep.mubr.f32.mxu0 %v9104_v63  ;;  %v9372_v63 = vld [vmem:[#allocation2 + $0x129] sm:$0xff] }
 0x2e9   :  { %2061 = vmatmul.mubr.f32.gmra.mrb[40].mxu0 %v9359_v50 }
 0x2ea   :  { %2065 = vmatprep.mubr.f32.mxu0 %v9108_v6  ;;  %v1111_v6 = vld [vmem:[#allocation4 + $0x408] sm:$0xff] }
 0x2eb   :  { %v7124_v46 = vpack.c.bf16 %v1111_v6, %v1110_v5  ;;  %v9385_v5 = vld [vmem:[#allocation2 + $0x151] sm:$0xff] }
 0x2ec   :  { %v1117_v6 = vld [vmem:[#allocation4 + $0x438] sm:$0xff] }
 0x2ed   :  { %2066 = vmatmul.mubr.f32.gmra.mrb[42].mxu0 %v9363_v53  ;;  %7125 = vmatprep.subr.bf16.mxu1 %v7124_v46 }
 0x2ee   :  { %2070 = vmatprep.mubr.f32.mxu0 %v9112_v9  ;;  %7127 = vmatpush3.bf16.msra.mxu1 %v7124_v46  ;;  %v1112_v9 = vld [vmem:[#allocation4 + $0x410] sm:$0xff] }
 0x2f1   :  { %2071 = vmatmul.mubr.f32.gmra.mrb[44].mxu0 %v9368_v57 }
 0x2f2   :  { %2075 = vmatprep.mubr.f32.mxu0 %v9116_v13  ;;  %v7128_v13 = vpack.c.bf16 %v1113_v42, %v1112_v9  ;;  %v9389_v9 = vld [vmem:[#allocation2 + $0x159] sm:$0xff] }
 0x2f3   :  { %v1118_v42 = vld [vmem:[#allocation4 + $0x440] sm:$0xff] }
 0x2f4   :  { %7129 = vmatprep.subr.bf16.mxu1 %v7128_v13 }
 0x2f5   :  { %2076 = vmatmul.mubr.f32.gmra.mrb[46].mxu0 %v9372_v63  ;;  %7131 = vmatpush3.bf16.msra.mxu1 %v7128_v13  ;;  %v1120_v13 = vld [vmem:[#allocation4 + $0x450] sm:$0xff] }
 0x2f6   :  { %2080 = vmatprep.mubr.f32.mxu0 %v9121_v19  ;;  %v1114_v19 = vld [vmem:[#allocation4 + $0x420] sm:$0xff] }
 0x2f7   :  { %v7132_v18 = vpack.c.bf16 %v1115_v31, %v1114_v19  ;;  %v1109_v19 = vld [vmem:[#allocation4 + $0x3f8] sm:$0xff]  ;;  %v7144_v31 = vpack.c.bf16 %v1121_v54, %v1120_v13 }
 0x2f8   :  { %v1125_v13 = vld [vmem:[#allocation4 + $0x478] sm:$0xff] }
 0x2f9   :  { %2081 = vmatmul.mubr.f32.gmra.mrb[48].mxu0 %v9376_v48  ;;  %7133 = vmatprep.subr.bf16.mxu1 %v7132_v18 }
 0x2fa   :  { %2085 = vmatprep.mubr.f32.mxu0 %v9125_v25  ;;  %7135 = vmatpush3.bf16.msra.mxu1 %v7132_v18  ;;  %v1116_v25 = vld [vmem:[#allocation4 + $0x430] sm:$0xff] }
 0x2fb   :  { %v7136_v46 = vpack.c.bf16 %v1117_v6, %v1116_v25  ;;  %v9397_v18 = vld [vmem:[#allocation2 + $0x171] sm:$0xff]  ;;  %v9399_v6 = vld [vmem:[#allocation2 + $0x182] sm:$0xff] }
 0x2fd   :  { %2086 = vmatmul.mubr.f32.gmra.mrb[50].mxu0 %v9380_v52  ;;  %7137 = vmatprep.subr.bf16.mxu1 %v7136_v46 }
 0x2fe   :  { %2090 = vmatprep.mubr.f32.mxu0 %v9129_v29  ;;  %7139 = vmatpush3.bf16.msra.mxu1 %v7136_v46  ;;  %v7140_v29 = vpack.c.bf16 %v1119_v10, %v1118_v42  ;;  %v1123_v46 = vld [vmem:[#allocation4 + $0x468] sm:$0xff] }
 0x2ff   :  { %v9403_v10 = vld [vmem:[#allocation2 + $0x181] sm:$0xff] }
 0x300   :  { %7141 = vmatprep.subr.bf16.mxu1 %v7140_v29 }
 0x301   :  { %2091 = vmatmul.mubr.f32.gmra.mrb[52].mxu0 %v9385_v5 }
 0x302   :  { %2095 = vmatprep.mubr.f32.mxu0 %v9137_v41  ;;  %7143 = vmatpush3.bf16.msra.mxu1 %v7140_v29  ;;  %v1108_v41 = vld [vmem:[#allocation4 + $0x3f0] sm:$0xff] }
 0x303   :  { %v7122_v25 = vpack.c.bf16 %v1109_v19, %v1108_v41  ;;  %7145 = vmatprep.subr.bf16.mxu1 %v7144_v31  ;;  %v9405_v29 = vld [vmem:[#allocation2 + $0x18a] sm:$0xff]  ;;  %v918_v19 = vld [vmem:[#allocation2 + $0x32] sm:$0xff] }
 0x304   :  { %v9409_v41 = vld [vmem:[#allocation2 + $0x189] sm:$0xff]  ;;  %6708 = vmatprep.mubr.f32.mxu1 %v918_v19  ;;  %v9432_v19 = vld [vmem:[#allocation2 + $0x211] sm:$0xff] }
 0x305   :  { %2096 = vmatmul.mubr.f32.gmra.mrb[54].mxu0 %v9389_v9 }
 0x306   :  { %2100 = vmatprep.mubr.f32.mxu0 %v9145_v0  ;;  %7123 = vmatpush1.bf16.msra.mxu0 %v7122_v25  ;;  %v1122_v0 = vld [vmem:[#allocation4 + $0x460] sm:$0xff] }
 0x307   :  { %7147 = vmatpush3.bf16.msra.mxu1 %v7144_v31  ;;  %v7148_v42 = vpack.c.bf16 %v1123_v46, %v1122_v0  ;;  %v693_v31 = vld [vmem:[#allocation2 + $0x1c9] sm:$0xff]  ;;  %v919_v25 = vld [vmem:[#allocation2 + $0x3a] sm:$0xff]  ;;  %v694_v0 = vld [vmem:[#allocation2 + $0x1d1] sm:$0xff] }
 0x308   :  { %v920_v46 = vld [vmem:[#allocation2 + $0x4a] sm:$0xff] }
 0x309   :  { %2101 = vmatmul.mubr.f32.gmra.mrb[56].mxu0 %v9393_v61  ;;  %7149 = vmatprep.subr.bf16.mxu1 %v7148_v42 }
 0x30a   :  { %2105 = vmatprep.mubr.f32.mxu0 %v9148_v51  ;;  %v1124_v51 = vld [vmem:[#allocation4 + $0x470] sm:$0xff] }
 0x30b   :  { %7151 = vmatpush3.bf16.msra.mxu1 %v7148_v42  ;;  %v7152_v54 = vpack.c.bf16 %v1125_v13, %v1124_v51  ;;  %v9416_v42 = vld [vmem:[#allocation2 + $0x1e1] sm:$0xff]  ;;  %v921_v51 = vld [vmem:[#allocation2 + $0x52] sm:$0xff] }
 0x30c   :  { %v922_v13 = vld [vmem:[#allocation2 + $0x62] sm:$0xff] }
 0x30d   :  { %2106 = vmatmul.mubr.f32.gmra.mrb[58].mxu0 %v9397_v18  ;;  %7153 = vmatprep.subr.bf16.mxu1 %v7152_v54 }
 0x30e   :  { %2110 = vmatprep.mubr.f32.mxu0 %v9399_v6 }
 0x30f   :  { %7155 = vmatpush3.bf16.msra.mxu1 %v7152_v54  ;;  %v9428_v54 = vld [vmem:[#allocation2 + $0x201] sm:$0xff] }
 0x310   :  { %7156 = vmatprep.subr.bf16.mxu1 %v10998_v12 }
 0x311   :  { %2111 = vmatmul.mubr.f32.gmra.mrb[60].mxu0 %v9403_v10 }
 0x312   :  { %2115 = vmatprep.mubr.f32.mxu0 %v9405_v29  ;;  %6709 = vmatmul.mubr.f32.vlgmr.msra.gmra.mrb[0].mxu1 %v919_v25  ;;  %v9440_v25 = vld [vmem:[#allocation2 + $0x229] sm:$0xff] }
 0x313   :  { %6711 = vmatprep.mubr.f32.mxu1 %v920_v46  ;;  %v9448_v46 = vld [vmem:[#allocation2 + $0x241] sm:$0xff] }
 0x315   :  { %2116 = vmatmul.mubr.f32.gmra.mrb[62].mxu0 %v9409_v41 }
 0x316   :  { %2120 = vmatprep.mubr.f32.mxu0 %v9154_v60  ;;  %6712 = vmatmul.mubr.f32.gmra.mrb[2].mxu1 %v921_v51  ;;  %v9420_v60 = vld [vmem:[#allocation2 + $0x1e9] sm:$0xff] }
 0x317   :  { %6714 = vmatprep.mubr.f32.mxu1 %v922_v13  ;;  %v9452_v51 = vld [vmem:[#allocation2 + $0x249] sm:$0xff]  ;;  %v9456_v13 = vld [vmem:[#allocation2 + $0x259] sm:$0xff] }
 0x319   :  { %2121 = vmatmul.mubr.f32.gmra.mrb[64].mxu0 %v693_v31  ;;  %v9436_v31 = vld [vmem:[#allocation2 + $0x219] sm:$0xff] }
 0x31a   :  { %2125 = vmatprep.mubr.f32.mxu0 %v9158_v56  ;;  %v9424_v56 = vld [vmem:[#allocation2 + $0x1f9] sm:$0xff] }
 0x31d   :  { %2126 = vmatmul.mubr.f32.gmra.mrb[66].mxu0 %v694_v0  ;;  %v9444_v0 = vld [vmem:[#allocation2 + $0x231] sm:$0xff] }
 0x31e   :  { %2130 = vmatprep.mubr.f32.mxu0 %v9162_v59  ;;  %v923_v59 = vld [vmem:[#allocation2 + $0x6a] sm:$0xff] }
 0x31f   :  { %6715 = vmatmul.mubr.f32.gmra.mrb[4].mxu1 %v923_v59  ;;  %v9460_v59 = vld [vmem:[#allocation2 + $0x261] sm:$0xff] }
 0x321   :  { %2131 = vmatmul.mubr.f32.gmra.mrb[68].mxu0 %v9416_v42 }
 0x322   :  { %2135 = vmatprep.mubr.f32.mxu0 %v9166_v62  ;;  %v924_v62 = vld [vmem:[#allocation2 + $0x7a] sm:$0xff] }
 0x323   :  { %6717 = vmatprep.mubr.f32.mxu1 %v924_v62  ;;  %v9464_v62 = vld [vmem:[#allocation2 + $0x271] sm:$0xff] }
 0x325   :  { %2136 = vmatmul.mubr.f32.gmra.mrb[70].mxu0 %v9420_v60 }
 0x326   :  { %2140 = vmatprep.mubr.f32.mxu0 %v9170_v3  ;;  %v925_v3 = vld [vmem:[#allocation2 + $0x82] sm:$0xff] }
 0x327   :  { %6718 = vmatmul.mubr.f32.gmra.mrb[6].mxu1 %v925_v3  ;;  %v9468_v3 = vld [vmem:[#allocation2 + $0x279] sm:$0xff] }
 0x329   :  { %2141 = vmatmul.mubr.f32.gmra.mrb[72].mxu0 %v9424_v56 }
 0x32a   :  { %2145 = vmatprep.mubr.f32.mxu0 %v9174_v7  ;;  %v926_v7 = vld [vmem:[#allocation2 + $0x92] sm:$0xff] }
 0x32b   :  { %6720 = vmatprep.mubr.f32.mxu1 %v926_v7  ;;  %v9472_v7 = vld [vmem:[#allocation2 + $0x289] sm:$0xff] }
 0x32d   :  { %2146 = vmatmul.mubr.f32.gmra.mrb[74].mxu0 %v9428_v54 }
 0x32e   :  { %2150 = vmatprep.mubr.f32.mxu0 %v9178_v11  ;;  %v927_v11 = vld [vmem:[#allocation2 + $0x9a] sm:$0xff] }
 0x32f   :  { %6721 = vmatmul.mubr.f32.gmra.mrb[8].mxu1 %v927_v11  ;;  %v9476_v11 = vld [vmem:[#allocation2 + $0x291] sm:$0xff] }
 0x331   :  { %2151 = vmatmul.mubr.f32.gmra.mrb[76].mxu0 %v9432_v19 }
 0x332   :  { %2155 = vmatprep.mubr.f32.mxu0 %v9182_v14  ;;  %v928_v14 = vld [vmem:[#allocation2 + $0xaa] sm:$0xff] }
 0x333   :  { %6723 = vmatprep.mubr.f32.mxu1 %v928_v14  ;;  %v9480_v14 = vld [vmem:[#allocation2 + $0x2a1] sm:$0xff] }
 0x335   :  { %2156 = vmatmul.mubr.f32.gmra.mrb[78].mxu0 %v9436_v31 }
 0x336   :  { %2160 = vmatprep.mubr.f32.mxu0 %v9186_v17  ;;  %v929_v17 = vld [vmem:[#allocation2 + $0xb2] sm:$0xff] }
 0x337   :  { %6724 = vmatmul.mubr.f32.gmra.mrb[10].mxu1 %v929_v17  ;;  %v9484_v17 = vld [vmem:[#allocation2 + $0x2a9] sm:$0xff] }
 0x339   :  { %2161 = vmatmul.mubr.f32.gmra.mrb[80].mxu0 %v9440_v25 }
 0x33a   :  { %2165 = vmatprep.mubr.f32.mxu0 %v9190_v21  ;;  %v930_v21 = vld [vmem:[#allocation2 + $0xc2] sm:$0xff] }
 0x33b   :  { %6726 = vmatprep.mubr.f32.mxu1 %v930_v21  ;;  %v9488_v21 = vld [vmem:[#allocation2 + $0x2b9] sm:$0xff] }
 0x33c   :  { %11015 = vst [vmem:[#allocation21_spill] sm:$0xff] %v9488_v21 }
 0x33d   :  { %2166 = vmatmul.mubr.f32.gmra.mrb[82].mxu0 %v9444_v0 }
 0x33e   :  { %2170 = vmatprep.mubr.f32.mxu0 %v9194_v24  ;;  %v931_v24 = vld [vmem:[#allocation2 + $0xca] sm:$0xff] }
 0x33f   :  { %6727 = vmatmul.mubr.f32.gmra.mrb[12].mxu1 %v931_v24  ;;  %v9492_v24 = vld [vmem:[#allocation2 + $0x2c1] sm:$0xff] }
 0x340   :  { %11016 = vst [vmem:[#allocation22_spill] sm:$0xff] %v9492_v24 }
 0x341   :  { %2171 = vmatmul.mubr.f32.gmra.mrb[84].mxu0 %v9448_v46 }
 0x342   :  { %2175 = vmatprep.mubr.f32.mxu0 %v9198_v27  ;;  %v932_v27 = vld [vmem:[#allocation2 + $0xda] sm:$0xff] }
 0x343   :  { %6729 = vmatprep.mubr.f32.mxu1 %v932_v27  ;;  %v11017_v27 = vld [vmem:[#allocation13_spill] sm:$0xff] }
 0x345   :  { %2176 = vmatmul.mubr.f32.gmra.mrb[86].mxu0 %v9452_v51 }
 0x346   :  { %2180 = vmatprep.mubr.f32.mxu0 %v9202_v32  ;;  %v933_v32 = vld [vmem:[#allocation2 + $0xe2] sm:$0xff] }
 0x347   :  { %6730 = vmatmul.mubr.f32.gmra.mrb[14].mxu1 %v933_v32  ;;  %v9496_v32 = vld [vmem:[#allocation2 + $0x2d1] sm:$0xff] }
 0x348   :  { %11018 = vst [vmem:[#allocation13_spill] sm:$0xff] %v9496_v32 }
 0x349   :  { %2181 = vmatmul.mubr.f32.gmra.mrb[88].mxu0 %v9456_v13 }
 0x34a   :  { %2185 = vmatprep.mubr.f32.mxu0 %v9206_v37  ;;  %v934_v37 = vld [vmem:[#allocation2 + $0xf2] sm:$0xff] }
 0x34b   :  { %6732 = vmatprep.mubr.f32.mxu1 %v934_v37  ;;  %v11019_v37 = vld [vmem:[#allocation14_spill] sm:$0xff] }
 0x34d   :  { %2186 = vmatmul.mubr.f32.gmra.mrb[90].mxu0 %v9460_v59 }
 0x34e   :  { %2190 = vmatprep.mubr.f32.mxu0 %v9210_v40  ;;  %v935_v40 = vld [vmem:[#allocation2 + $0xfa] sm:$0xff] }
 0x34f   :  { %6733 = vmatmul.mubr.f32.gmra.mrb[16].mxu1 %v935_v40  ;;  %v9500_v40 = vld [vmem:[#allocation2 + $0x2d9] sm:$0xff] }
 0x350   :  { %11020 = vst [vmem:[#allocation14_spill] sm:$0xff] %v9500_v40 }
 0x351   :  { %2191 = vmatmul.mubr.f32.gmra.mrb[92].mxu0 %v9464_v62 }
 0x352   :  { %2195 = vmatprep.mubr.f32.mxu0 %v9214_v44  ;;  %v936_v44 = vld [vmem:[#allocation2 + $0x10a] sm:$0xff] }
 0x353   :  { %6735 = vmatprep.mubr.f32.mxu1 %v936_v44  ;;  %v3899_v44 = vld [vmem:[#allocation7] sm:$0xff] }
 0x355   :  { %2196 = vmatmul.mubr.f32.gmra.mrb[94].mxu0 %v9468_v3 }
 0x356   :  { %2200 = vmatprep.mubr.f32.mxu0 %v9218_v49  ;;  %v937_v49 = vld [vmem:[#allocation2 + $0x112] sm:$0xff] }
 0x357   :  { %6736 = vmatmul.mubr.f32.gmra.mrb[18].mxu1 %v937_v49  ;;  %v3900_v49 = vld [vmem:[#allocation7 + $0x8] sm:$0xff] }
 0x359   :  { %2201 = vmatmul.mubr.f32.gmra.mrb[96].mxu0 %v9472_v7 }
 0x35a   :  { %2205 = vmatprep.mubr.f32.mxu0 %v9222_v55  ;;  %v938_v55 = vld [vmem:[#allocation2 + $0x122] sm:$0xff] }
 0x35b   :  { %6738 = vmatprep.mubr.f32.mxu1 %v938_v55  ;;  %v11021_v55 = vld [vmem:[#allocation15_spill] sm:$0xff] }
 0x35d   :  { %2206 = vmatmul.mubr.f32.gmra.mrb[98].mxu0 %v9476_v11 }
 0x35e   :  { %2210 = vmatprep.mubr.f32.mxu0 %v9226_v58  ;;  %v939_v58 = vld [vmem:[#allocation2 + $0x12a] sm:$0xff] }
 0x35f   :  { %6739 = vmatmul.mubr.f32.gmra.mrb[20].mxu1 %v939_v58  ;;  %v717_v58 = vld [vmem:[#allocation2 + $0x2e9] sm:$0xff] }
 0x361   :  { %2211 = vmatmul.mubr.f32.gmra.mrb[100].mxu0 %v9480_v14 }
 0x362   :  { %2215 = vmatprep.mubr.f32.mxu0 %v9230_v2  ;;  %v940_v2 = vld [vmem:[#allocation2 + $0x13a] sm:$0xff] }
 0x363   :  { %6741 = vmatprep.mubr.f32.mxu1 %v940_v2  ;;  %v11022_v2 = vld [vmem:[#allocation16_spill] sm:$0xff] }
 0x365   :  { %2216 = vmatmul.mubr.f32.gmra.mrb[102].mxu0 %v9484_v17 }
 0x366   :  { %2220 = vmatprep.mubr.f32.mxu0 %v9234_v28  ;;  %v941_v28 = vld [vmem:[#allocation2 + $0x142] sm:$0xff] }
 0x367   :  { %6742 = vmatmul.mubr.f32.gmra.mrb[22].mxu1 %v941_v28  ;;  %v9506_v28 = vld [vmem:[#allocation2 + $0x2f1] sm:$0xff] }
 0x369   :  { %2221 = vmatmul.mubr.f32.gmra.mrb[104].mxu0 %v9488_v21  ;;  %v11023_v21 = vld [vmem:[#allocation17_spill] sm:$0xff] }
 0x36a   :  { %2225 = vmatprep.mubr.f32.mxu0 %v9238_v34  ;;  %v942_v34 = vld [vmem:[#allocation2 + $0x152] sm:$0xff] }
 0x36b   :  { %6744 = vmatprep.mubr.f32.mxu1 %v942_v34 }
 0x36d   :  { %2226 = vmatmul.mubr.f32.gmra.mrb[106].mxu0 %v9492_v24  ;;  %v943_v24 = vld [vmem:[#allocation2 + $0x15a] sm:$0xff] }
 0x36e   :  { %2230 = vmatprep.mubr.f32.mxu0 %v11017_v27  ;;  %v7157_v27 = vpack.c.bf16 %v3900_v49, %v3899_v44  ;;  %6745 = vmatmul.mubr.f32.gmra.mrb[24].mxu1 %v943_v24  ;;  %v945_v44 = vld [vmem:[#allocation2 + $0x172] sm:$0xff]  ;;  %v11024_v24 = vld [vmem:[#allocation18_spill] sm:$0xff] }
 0x36f   :  { %v720_v49 = vld [vmem:[#allocation2 + $0x309] sm:$0xff] }
 0x370   :  { %7158 = vmatpush1.bf16.msra.mxu1 %v7157_v27  ;;  %v3904_v27 = vld [vmem:[#allocation7 + $0x28] sm:$0xff] }
 0x371   :  { %2231 = vmatmul.mubr.f32.gmra.mrb[108].mxu0 %v9496_v32  ;;  %7159 = vmatprep.subr.bf16.mxu1 %v10998_v12  ;;  %v3902_v32 = vld [vmem:[#allocation7 + $0x18] sm:$0xff] }
 0x372   :  { %2235 = vmatprep.mubr.f32.mxu0 %v11019_v37  ;;  %v944_v37 = vld [vmem:[#allocation2 + $0x16a] sm:$0xff] }
 0x373   :  { %6747 = vmatprep.mubr.f32.mxu1 %v944_v37  ;;  %v9517_v37 = vld [vmem:[#allocation2 + $0x332] sm:$0xff] }
 0x374   :  { %6748 = vmatmul.mubr.f32.gmra.mrb[26].mxu1 %v945_v44  ;;  %v723_v44 = vld [vmem:[#allocation2 + $0x331] sm:$0xff] }
 0x375   :  { %2236 = vmatmul.mubr.f32.gmra.mrb[110].mxu0 %v9500_v40  ;;  %v3901_v40 = vld [vmem:[#allocation7 + $0x10] sm:$0xff]  ;;  %6750 = vmatprep.mubr.f32.mxu1 %v9399_v6  ;;  %v11026_v6 = vld [vmem:[#allocation20_spill] sm:$0xff] }
 0x376   :  { %2240 = vmatprep.mubr.f32.mxu0 %v11021_v55  ;;  %v719_v55 = vld [vmem:[#allocation2 + $0x301] sm:$0xff]  ;;  %v7160_v34 = vpack.c.bf16 %v3902_v32, %v3901_v40 }
 0x377   :  { %v722_v40 = vld [vmem:[#allocation2 + $0x321] sm:$0xff] }
 0x378   :  { %7161 = vmatpush1.bf16.msra.mxu1 %v7160_v34  ;;  %v3905_v34 = vld [vmem:[#allocation7 + $0x30] sm:$0xff] }
 0x379   :  { %2241 = vmatmul.mubr.f32.gmra.mrb[112].mxu0 %v717_v58  ;;  %7162 = vmatprep.subr.bf16.mxu1 %v10998_v12  ;;  %v3903_v58 = vld [vmem:[#allocation7 + $0x20] sm:$0xff] }
 0x37a   :  { %2245 = vmatprep.mubr.f32.mxu0 %v11022_v2  ;;  %6751 = vmatmul.mubr.f32.gmra.mrb[28].mxu1 %v9405_v29  ;;  %v721_v2 = vld [vmem:[#allocation2 + $0x319] sm:$0xff]  ;;  %v7163_v32 = vpack.c.bf16 %v3904_v27, %v3903_v58 }
 0x37b   :  { %v3906_v29 = vld [vmem:[#allocation7 + $0x38] sm:$0xff] }
 0x37c   :  { %7164 = vmatpush1.bf16.msra.mxu1 %v7163_v32  ;;  %v9520_v58 = vld [vmem:[#allocation2 + $0x33a] sm:$0xff]  ;;  %v3908_v32 = vld [vmem:[#allocation7 + $0x48] sm:$0xff] }
 0x37d   :  { %2246 = vmatmul.mubr.f32.gmra.mrb[114].mxu0 %v9506_v28  ;;  %7165 = vmatprep.subr.bf16.mxu1 %v10998_v12  ;;  %v724_v27 = vld [vmem:[#allocation2 + $0x339] sm:$0xff] }
 0x37e   :  { %2250 = vmatprep.mubr.f32.mxu0 %v11023_v21  ;;  %v11025_v21 = vld [vmem:[#allocation19_spill] sm:$0xff] }
 0x381   :  { %2251 = vmatmul.mubr.f32.gmra.mrb[116].mxu0 %v719_v55  ;;  %v948_v55 = vld [vmem:[#allocation2 + $0x19a] sm:$0xff] }
 0x382   :  { %2255 = vmatprep.mubr.f32.mxu0 %v11024_v24  ;;  %6753 = vmatprep.mubr.f32.mxu1 %v948_v55  ;;  %v7166_v24 = vpack.c.bf16 %v3906_v29, %v3905_v34  ;;  %v951_v55 = vld [vmem:[#allocation2 + $0x1ea] sm:$0xff]  ;;  %v791_v34 = vld [vmem:[#allocation2 + $0x38] sm:$0xff] }
 0x383   :  { %v952_v29 = vld [vmem:[#allocation2 + $0x1fa] sm:$0xff] }
 0x384   :  { %7167 = vmatpush1.bf16.msra.mxu1 %v7166_v24  ;;  %v3910_v24 = vld [vmem:[#allocation7 + $0x58] sm:$0xff] }
 0x385   :  { %2256 = vmatmul.mubr.f32.gmra.mrb[118].mxu0 %v720_v49  ;;  %v949_v49 = vld [vmem:[#allocation2 + $0x1a2] sm:$0xff]  ;;  %7168 = vmatprep.subr.bf16.mxu1 %v10998_v12 }
 0x386   :  { %2260 = vmatprep.mubr.f32.mxu0 %v11025_v21  ;;  %6754 = vmatmul.mubr.f32.gmra.mrb[30].mxu1 %v949_v49  ;;  %v950_v21 = vld [vmem:[#allocation2 + $0x1e2] sm:$0xff] }
 0x387   :  { %6756 = vmatprep.mubr.f32.mxu1 %v950_v21  ;;  %v792_v49 = vld [vmem:[#allocation2 + $0x48] sm:$0xff]  ;;  %v793_v21 = vld [vmem:[#allocation2 + $0x50] sm:$0xff] }
 0x389   :  { %2261 = vmatmul.mubr.f32.gmra.mrb[120].mxu0 %v721_v2  ;;  %v3907_v2 = vld [vmem:[#allocation7 + $0x40] sm:$0xff] }
 0x38a   :  { %2265 = vmatprep.mubr.f32.mxu0 %v11026_v6  ;;  %v790_v6 = vld [vmem:[#allocation2 + $0x30] sm:$0xff]  ;;  %6757 = vmatmul.mubr.f32.gmra.mrb[32].mxu1 %v951_v55  ;;  %v795_v55 = vld [vmem:[#allocation2 + $0x68] sm:$0xff] }
 0x38b   :  { %6759 = vmatprep.mubr.f32.mxu1 %v952_v29  ;;  %v3914_v29 = vld [vmem:[#allocation7 + $0x78] sm:$0xff] }
 0x38d   :  { %2266 = vmatmul.mubr.f32.gmra.mrb[122].mxu0 %v722_v40  ;;  %v7169_v40 = vpack.c.bf16 %v3908_v32, %v3907_v2  ;;  %v3911_v2 = vld [vmem:[#allocation7 + $0x60] sm:$0xff]  ;;  %v3912_v32 = vld [vmem:[#allocation7 + $0x68] sm:$0xff] }
 0x38e   :  { %2270 = vmatprep.mubr.f32.mxu0 %v9517_v37 }
 0x38f   :  { %7170 = vmatpush1.bf16.msra.mxu1 %v7169_v40  ;;  %v955_v40 = vld [vmem:[#allocation2 + $0x21a] sm:$0xff] }
 0x390   :  { %7171 = vmatprep.subr.bf16.mxu1 %v10998_v12 }
 0x391   :  { %2271 = vmatmul.mubr.f32.gmra.mrb[124].mxu0 %v723_v44  ;;  %v3909_v44 = vld [vmem:[#allocation7 + $0x50] sm:$0xff] }
 0x392   :  { %2275 = vmatprep.mubr.f32.mxu0 %v9520_v58 }
 0x395   :  { %2276 = vmatmul.mubr.f32.gmra.mrb[126].mxu0 %v724_v27  ;;  %v953_v27 = vld [vmem:[#allocation2 + $0x202] sm:$0xff] }
 0x396   :  { %2345 = vmatprep.mubr.f32.mxu0 %v9275_v16  ;;  %v7172_v16 = vpack.c.bf16 %v3910_v24, %v3909_v44  ;;  %6760 = vmatmul.mubr.f32.gmra.mrb[34].mxu1 %v953_v27  ;;  %v796_v44 = vld [vmem:[#allocation2 + $0x78] sm:$0xff]  ;;  %v3916_v27 = vld [vmem:[#allocation7 + $0x88] sm:$0xff] }
 0x397   :  { %v957_v24 = vld [vmem:[#allocation2 + $0x232] sm:$0xff] }
 0x398   :  { %7173 = vmatpush1.bf16.msra.mxu1 %v7172_v16  ;;  %v3915_v16 = vld [vmem:[#allocation7 + $0x80] sm:$0xff] }
 0x399   :  { %2346 = vmatmul.mubr.f32.vlgmr.msra.gmra.mrb[0].mxu0 %v790_v6  ;;  %7174 = vmatprep.subr.bf16.mxu1 %v10998_v12  ;;  %v794_v6 = vld [vmem:[#allocation2 + $0x60] sm:$0xff] }
 0x39a   :  { %2350 = vmatprep.mubr.f32.mxu0 %v9280_v1  ;;  %v954_v1 = vld [vmem:[#allocation2 + $0x212] sm:$0xff] }
 0x39b   :  { %6762 = vmatprep.mubr.f32.mxu1 %v954_v1  ;;  %v959_v1 = vld [vmem:[#allocation2 + $0x24a] sm:$0xff] }
 0x39c   :  { %6763 = vmatmul.mubr.f32.gmra.mrb[36].mxu1 %v955_v40  ;;  %v961_v40 = vld [vmem:[#allocation2 + $0x262] sm:$0xff] }
 0x39d   :  { %2351 = vmatmul.mubr.f32.gmra.mrb[2].mxu0 %v791_v34  ;;  %v3913_v34 = vld [vmem:[#allocation7 + $0x70] sm:$0xff] }
 0x39e   :  { %2355 = vmatprep.mubr.f32.mxu0 %v9285_v8  ;;  %v7175_v8 = vpack.c.bf16 %v3912_v32, %v3911_v2  ;;  %v799_v2 = vld [vmem:[#allocation2 + $0x98] sm:$0xff]  ;;  %v3917_v32 = vld [vmem:[#allocation7 + $0x90] sm:$0xff] }
 0x3a0   :  { %7176 = vmatpush1.bf16.msra.mxu1 %v7175_v8  ;;  %v800_v8 = vld [vmem:[#allocation2 + $0xa8] sm:$0xff] }
 0x3a1   :  { %2356 = vmatmul.mubr.f32.gmra.mrb[4].mxu0 %v792_v49  ;;  %7177 = vmatprep.subr.bf16.mxu1 %v10998_v12  ;;  %v797_v49 = vld [vmem:[#allocation2 + $0x80] sm:$0xff] }
 0x3a2   :  { %2360 = vmatprep.mubr.f32.mxu0 %v9290_v15  ;;  %v956_v15 = vld [vmem:[#allocation2 + $0x22a] sm:$0xff] }
 0x3a3   :  { %6765 = vmatprep.mubr.f32.mxu1 %v956_v15  ;;  %v3919_v15 = vld [vmem:[#allocation7 + $0xa0] sm:$0xff] }
 0x3a4   :  { %6766 = vmatmul.mubr.f32.gmra.mrb[38].mxu1 %v957_v24  ;;  %v965_v24 = vld [vmem:[#allocation2 + $0x292] sm:$0xff] }
 0x3a5   :  { %2361 = vmatmul.mubr.f32.gmra.mrb[6].mxu0 %v793_v21  ;;  %v798_v21 = vld [vmem:[#allocation2 + $0x90] sm:$0xff] }
 0x3a6   :  { %2365 = vmatprep.mubr.f32.mxu0 %v9295_v35  ;;  %v7178_v35 = vpack.c.bf16 %v3914_v29, %v3913_v34  ;;  %v3920_v34 = vld [vmem:[#allocation7 + $0xa8] sm:$0xff]  ;;  %v802_v29 = vld [vmem:[#allocation2 + $0xc0] sm:$0xff] }
 0x3a8   :  { %7179 = vmatpush1.bf16.msra.mxu1 %v7178_v35  ;;  %v803_v35 = vld [vmem:[#allocation2 + $0xc8] sm:$0xff] }
 0x3a9   :  { %2366 = vmatmul.mubr.f32.gmra.mrb[8].mxu0 %v794_v6  ;;  %7180 = vmatprep.subr.bf16.mxu1 %v10998_v12  ;;  %v3918_v6 = vld [vmem:[#allocation7 + $0x98] sm:$0xff] }
 0x3aa   :  { %2370 = vmatprep.mubr.f32.mxu0 %v9300_v26  ;;  %v958_v26 = vld [vmem:[#allocation2 + $0x242] sm:$0xff] }
 0x3ab   :  { %6768 = vmatprep.mubr.f32.mxu1 %v958_v26  ;;  %v3922_v26 = vld [vmem:[#allocation7 + $0xb8] sm:$0xff] }
 0x3ac   :  { %6769 = vmatmul.mubr.f32.gmra.mrb[40].mxu1 %v959_v1  ;;  %v969_v1 = vld [vmem:[#allocation2 + $0x2c2] sm:$0xff] }
 0x3ad   :  { %2371 = vmatmul.mubr.f32.gmra.mrb[10].mxu0 %v795_v55  ;;  %v801_v55 = vld [vmem:[#allocation2 + $0xb0] sm:$0xff] }
 0x3ae   :  { %2375 = vmatprep.mubr.f32.mxu0 %v9305_v22  ;;  %v7181_v22 = vpack.c.bf16 %v3916_v27, %v3915_v16  ;;  %v966_v27 = vld [vmem:[#allocation2 + $0x2a2] sm:$0xff] }
 0x3b0   :  { %7182 = vmatpush1.bf16.msra.mxu1 %v7181_v22  ;;  %v968_v22 = vld [vmem:[#allocation2 + $0x2ba] sm:$0xff] }
 0x3b1   :  { %2376 = vmatmul.mubr.f32.gmra.mrb[12].mxu0 %v796_v44  ;;  %7183 = vmatprep.subr.bf16.mxu1 %v10998_v12  ;;  %v963_v44 = vld [vmem:[#allocation2 + $0x27a] sm:$0xff] }
 0x3b2   :  { %2380 = vmatprep.mubr.f32.mxu0 %v9310_v30  ;;  %v960_v30 = vld [vmem:[#allocation2 + $0x25a] sm:$0xff] }
 0x3b3   :  { %6771 = vmatprep.mubr.f32.mxu1 %v960_v30  ;;  %v3924_v30 = vld [vmem:[#allocation7 + $0xc8] sm:$0xff] }
 0x3b4   :  { %6772 = vmatmul.mubr.f32.gmra.mrb[42].mxu1 %v961_v40  ;;  %v973_v40 = vld [vmem:[#allocation2 + $0x2f2] sm:$0xff] }
 0x3b5   :  { %2381 = vmatmul.mubr.f32.gmra.mrb[14].mxu0 %v797_v49  ;;  %v3921_v49 = vld [vmem:[#allocation7 + $0xb0] sm:$0xff] }
 0x3b6   :  { %2385 = vmatprep.mubr.f32.mxu0 %v9315_v47  ;;  %v7184_v47 = vpack.c.bf16 %v3918_v6, %v3917_v32  ;;  %v7190_v16 = vpack.c.bf16 %v3922_v26, %v3921_v49  ;;  %v970_v6 = vld [vmem:[#allocation2 + $0x2d2] sm:$0xff]  ;;  %v811_v49 = vld [vmem:[#allocation2 + $0x128] sm:$0xff] }
 0x3b7   :  { %v3929_v26 = vld [vmem:[#allocation7 + $0xf0] sm:$0xff] }
 0x3b8   :  { %7185 = vmatpush1.bf16.msra.mxu1 %v7184_v47  ;;  %v972_v47 = vld [vmem:[#allocation2 + $0x2ea] sm:$0xff] }
 0x3b9   :  { %2386 = vmatmul.mubr.f32.gmra.mrb[16].mxu0 %v798_v21  ;;  %7186 = vmatprep.subr.bf16.mxu1 %v10998_v12  ;;  %v967_v21 = vld [vmem:[#allocation2 + $0x2aa] sm:$0xff] }
 0x3ba   :  { %2390 = vmatprep.mubr.f32.mxu0 %v9320_v20  ;;  %v962_v20 = vld [vmem:[#allocation2 + $0x272] sm:$0xff] }
 0x3bb   :  { %6774 = vmatprep.mubr.f32.mxu1 %v962_v20  ;;  %v3926_v20 = vld [vmem:[#allocation7 + $0xd8] sm:$0xff] }
 0x3bc   :  { %6775 = vmatmul.mubr.f32.gmra.mrb[44].mxu1 %v963_v44  ;;  %v977_v44 = vld [vmem:[#allocation2 + $0x322] sm:$0xff] }
 0x3bd   :  { %2391 = vmatmul.mubr.f32.gmra.mrb[18].mxu0 %v799_v2  ;;  %v3923_v2 = vld [vmem:[#allocation7 + $0xc0] sm:$0xff] }
 0x3be   :  { %2395 = vmatprep.mubr.f32.mxu0 %v9325_v23  ;;  %v7187_v23 = vpack.c.bf16 %v3920_v34, %v3919_v15  ;;  %v7193_v32 = vpack.c.bf16 %v3924_v30, %v3923_v2  ;;  %v974_v34 = vld [vmem:[#allocation2 + $0x302] sm:$0xff] }
 0x3bf   :  { %v4027_v30 = vld [vmem:[#allocation7 + $0x400] sm:$0xff] }
 0x3c0   :  { %7188 = vmatpush1.bf16.msra.mxu1 %v7187_v23  ;;  %v976_v23 = vld [vmem:[#allocation2 + $0x31a] sm:$0xff] }
 0x3c1   :  { %2396 = vmatmul.mubr.f32.gmra.mrb[20].mxu0 %v800_v8  ;;  %7189 = vmatprep.subr.bf16.mxu1 %v10998_v12  ;;  %v971_v8 = vld [vmem:[#allocation2 + $0x2da] sm:$0xff] }
 0x3c2   :  { %2400 = vmatprep.mubr.f32.mxu0 %v9329_v38  ;;  %v964_v38 = vld [vmem:[#allocation2 + $0x28a] sm:$0xff] }
 0x3c3   :  { %6777 = vmatprep.mubr.f32.mxu1 %v964_v38  ;;  %v3928_v38 = vld [vmem:[#allocation7 + $0xe8] sm:$0xff] }
 0x3c4   :  { %6778 = vmatmul.mubr.f32.gmra.mrb[46].mxu1 %v965_v24 }
 0x3c5   :  { %2401 = vmatmul.mubr.f32.gmra.mrb[22].mxu0 %v801_v55  ;;  %6780 = vmatprep.mubr.f32.mxu1 %v966_v27  ;;  %v3925_v55 = vld [vmem:[#allocation7 + $0xd0] sm:$0xff] }
 0x3c6   :  { %2405 = vmatprep.mubr.f32.mxu0 %v9334_v43  ;;  %v804_v43 = vld [vmem:[#allocation2 + $0xd8] sm:$0xff]  ;;  %7191 = vmatpush1.bf16.msra.mxu1 %v7190_v16  ;;  %v7196_v15 = vpack.c.bf16 %v3926_v20, %v3925_v55  ;;  %v980_v16 = vld [vmem:[#allocation2 + $0x34a] sm:$0xff] }
 0x3c7   :  { %7192 = vmatprep.subr.bf16.mxu1 %v10998_v12  ;;  %v3932_v55 = vld [vmem:[#allocation7 + $0x108] sm:$0xff] }
 0x3c8   :  { %6781 = vmatmul.mubr.f32.gmra.mrb[48].mxu1 %v967_v21  ;;  %v981_v21 = vld [vmem:[#allocation2 + $0x352] sm:$0xff]  ;;  %v816_v20 = vld [vmem:[#allocation2 + $0x168] sm:$0xff] }
 0x3c9   :  { %2406 = vmatmul.mubr.f32.gmra.mrb[24].mxu0 %v802_v29  ;;  %6783 = vmatprep.mubr.f32.mxu1 %v968_v22  ;;  %v975_v29 = vld [vmem:[#allocation2 + $0x30a] sm:$0xff]  ;;  %v9568_v22 = vld [vmem:[#allocation2] sm:$0xff] }
 0x3ca   :  { %2410 = vmatprep.mubr.f32.mxu0 %v9338_v4  ;;  %v805_v4 = vld [vmem:[#allocation2 + $0xe0] sm:$0xff]  ;;  %7194 = vmatpush1.bf16.msra.mxu1 %v7193_v32  ;;  %v815_v32 = vld [vmem:[#allocation2 + $0x158] sm:$0xff] }
 0x3cb   :  { %7195 = vmatprep.subr.bf16.mxu1 %v10998_v12 }
 0x3cc   :  { %6784 = vmatmul.mubr.f32.gmra.mrb[50].mxu1 %v969_v1  ;;  %v3387_v1 = vld [vmem:[#allocation3 + $0x9] sm:$0xff] }
 0x3cd   :  { %2411 = vmatmul.mubr.f32.gmra.mrb[26].mxu0 %v803_v35  ;;  %6786 = vmatprep.mubr.f32.mxu1 %v970_v6  ;;  %v3927_v35 = vld [vmem:[#allocation7 + $0xe0] sm:$0xff] }
 0x3ce   :  { %2415 = vmatprep.mubr.f32.mxu0 %v9342_v33  ;;  %v806_v33 = vld [vmem:[#allocation2 + $0xf0] sm:$0xff]  ;;  %7197 = vmatpush1.bf16.msra.mxu1 %v7196_v15  ;;  %v7199_v24 = vpack.c.bf16 %v3928_v38, %v3927_v35  ;;  %v4032_v15 = vld [vmem:[#allocation7 + $0x428] sm:$0xff]  ;;  %v818_v38 = vld [vmem:[#allocation2 + $0x180] sm:$0xff] }
 0x3cf   :  { %7198 = vmatprep.subr.bf16.mxu1 %v10998_v12 }
 0x3d0   :  { %6787 = vmatmul.mubr.f32.gmra.mrb[52].mxu1 %v971_v8  ;;  %v4029_v8 = vld [vmem:[#allocation7 + $0x410] sm:$0xff] }
 0x3d1   :  { %2416 = vmatmul.mubr.f32.gmra.mrb[28].mxu0 %v804_v43  ;;  %6789 = vmatprep.mubr.f32.mxu1 %v972_v47  ;;  %v3930_v43 = vld [vmem:[#allocation7 + $0xf8] sm:$0xff] }
 0x3d2   :  { %2420 = vmatprep.mubr.f32.mxu0 %v9346_v36  ;;  %v807_v36 = vld [vmem:[#allocation2 + $0xf8] sm:$0xff]  ;;  %7200 = vmatpush1.bf16.msra.mxu1 %v7199_v24 }
 0x3d3   :  { %7201 = vmatprep.subr.bf16.mxu1 %v10998_v12 }
 0x3d4   :  { %6790 = vmatmul.mubr.f32.gmra.mrb[54].mxu1 %v973_v40  ;;  %v3931_v40 = vld [vmem:[#allocation7 + $0x100] sm:$0xff] }
 0x3d5   :  { %2421 = vmatmul.mubr.f32.gmra.mrb[30].mxu0 %v805_v4  ;;  %6792 = vmatprep.mubr.f32.mxu1 %v974_v34 }
 0x3d6   :  { %2425 = vmatprep.mubr.f32.mxu0 %v9351_v39  ;;  %v808_v39 = vld [vmem:[#allocation2 + $0x108] sm:$0xff] }
 0x3d8   :  { %6793 = vmatmul.mubr.f32.gmra.mrb[56].mxu1 %v975_v29  ;;  %v817_v29 = vld [vmem:[#allocation2 + $0x170] sm:$0xff] }
 0x3d9   :  { %2426 = vmatmul.mubr.f32.gmra.mrb[32].mxu0 %v806_v33  ;;  %6795 = vmatprep.mubr.f32.mxu1 %v976_v23  ;;  %v4028_v33 = vld [vmem:[#allocation7 + $0x408] sm:$0xff]  ;;  %v4034_v23 = vld [vmem:[#allocation7 + $0x438] sm:$0xff] }
 0x3da   :  { %2430 = vmatprep.mubr.f32.mxu0 %v9355_v45  ;;  %v809_v45 = vld [vmem:[#allocation2 + $0x110] sm:$0xff] }
 0x3dc   :  { %6796 = vmatmul.mubr.f32.gmra.mrb[58].mxu1 %v977_v44 }
 0x3dd   :  { %2431 = vmatmul.mubr.f32.gmra.mrb[34].mxu0 %v807_v36  ;;  %6798 = vmatprep.mubr.f32.mxu1 %v9517_v37  ;;  %v812_v37 = vld [vmem:[#allocation2 + $0x138] sm:$0xff] }
 0x3de   :  { %2435 = vmatprep.mubr.f32.mxu0 %v9359_v50  ;;  %v810_v50 = vld [vmem:[#allocation2 + $0x120] sm:$0xff]  ;;  %v4030_v36 = vld [vmem:[#allocation7 + $0x418] sm:$0xff] }
 0x3df   :  { %v9584_v47 = vpack.c.bf16 %v4030_v36, %v4029_v8  ;;  %v4042_v8 = vld [vmem:[#allocation7 + $0x478] sm:$0xff] }
 0x3e0   :  { %6799 = vmatmul.mubr.f32.gmra.mrb[60].mxu1 %v9520_v58  ;;  %v3386_v58 = vld [vmem:[#allocation3 + $0x1] sm:$0xff] }
 0x3e1   :  { %2436 = vmatmul.mubr.f32.gmra.mrb[36].mxu0 %v808_v39  ;;  %6801 = vmatprep.mubr.f32.mxu1 %v980_v16  ;;  %11028 = vst [vmem:[#allocation16_spill] sm:$0xff] %v9584_v47  ;;  %v4031_v39 = vld [vmem:[#allocation7 + $0x420] sm:$0xff]  ;;  %v4038_v16 = vld [vmem:[#allocation7 + $0x458] sm:$0xff] }
 0x3e2   :  { %2440 = vmatprep.mubr.f32.mxu0 %v9363_v53  ;;  %v9589_v34 = vpack.c.bf16 %v4032_v15, %v4031_v39  ;;  %v3935_v15 = vld [vmem:[#allocation7 + $0x120] sm:$0xff] }
 0x3e4   :  { %6802 = vmatmul.mubr.f32.gmra.mrb[62].mxu1 %v981_v21  ;;  %11029 = vst [vmem:[#allocation17_spill] sm:$0xff] %v9589_v34 }
 0x3e5   :  { %2441 = vmatmul.mubr.f32.gmra.mrb[38].mxu0 %v809_v45  ;;  %v9558_v53 = vpop.f32.mrb[0].mxu1  ;;  %4107 = vmatprep.mubr.f32.mxu1 %v3386_v58  ;;  %v3934_v58 = vld [vmem:[#allocation7 + $0x118] sm:$0xff] }
 0x3e6   :  { %2445 = vmatprep.mubr.f32.mxu0 %v9368_v57  ;;  %v9561_v27 = vpop.f32.mrb[1].mxu1  ;;  %v7202_v57 = vpack.c.bf16 %v3930_v43, %v3929_v26  ;;  %v4037_v43 = vld [vmem:[#allocation7 + $0x450] sm:$0xff] }
 0x3e7   :  { %v9613_v21 = vpack.c.bf16 %v4038_v16, %v4037_v43  ;;  %v3937_v43 = vld [vmem:[#allocation7 + $0x130] sm:$0xff]  ;;  %v828_v16 = vld [vmem:[#allocation2 + $0x228] sm:$0xff] }
 0x3e8   :  { %7203 = vmatpush1.bf16.msra.mxu1 %v7202_v57 }
 0x3e9   :  { %2446 = vmatmul.mubr.f32.gmra.mrb[40].mxu0 %v810_v50  ;;  %7204 = vmatprep.subr.bf16.mxu1 %v10998_v12  ;;  %v9566_v4 = vpop.f32.mrb[2].mxu1  ;;  %v4036_v50 = vld [vmem:[#allocation7 + $0x448] sm:$0xff]  ;;  %11032 = vst [vmem:[#allocation20_spill] sm:$0xff] %v9613_v21 }
 0x3ea   :  { %2450 = vmatprep.mubr.f32.mxu0 %v9372_v63  ;;  %v813_v63 = vld [vmem:[#allocation2 + $0x140] sm:$0xff]  ;;  %v9571_v2 = vpop.f32.mrb[3].mxu1 }
 0x3eb   :  { %4108 = vmatmul.mubr.f32.vlgmr.msra.gmra.mrb[64].mxu1 %v9568_v22 }
 0x3ec   :  { %4112 = vmatprep.mubr.f32.mxu1 %v3387_v1  ;;  %v4040_v1 = vld [vmem:[#allocation7 + $0x468] sm:$0xff] }
 0x3ed   :  { %2451 = vmatmul.mubr.f32.gmra.mrb[42].mxu0 %v811_v49  ;;  %v819_v49 = vld [vmem:[#allocation2 + $0x188] sm:$0xff] }
 0x3ee   :  { %2455 = vmatprep.mubr.f32.mxu0 %v9376_v48  ;;  %v814_v48 = vld [vmem:[#allocation2 + $0x150] sm:$0xff] }
 0x3ef   :  { %4113 = vmatmul.mubr.f32.gmra.mrb[66].mxu1 %v9568_v22 }
 0x3f1   :  { %2456 = vmatmul.mubr.f32.gmra.mrb[44].mxu0 %v812_v37  ;;  %v3933_v37 = vld [vmem:[#allocation7 + $0x110] sm:$0xff] }
 0x3f2   :  { %2460 = vmatprep.mubr.f32.mxu0 %v9380_v52  ;;  %v9575_v52 = vpack.c.bf16 %v4028_v33, %v4027_v30  ;;  %v9580_v6 = vpop.f32.mrb[4].mxu1 }
 0x3f4   :  { %11027 = vst [vmem:[#allocation15_spill] sm:$0xff] %v9575_v52  ;;  %7349 = vmatprep.subr.bf16.mxu0 %v9575_v52 }
 0x3f5   :  { %2461 = vmatmul.mubr.f32.gmra.mrb[46].mxu0 %v813_v63  ;;  %v7208_v63 = vpack.c.bf16 %v3934_v58, %v3933_v37  ;;  %v830_v58 = vld [vmem:[#allocation2 + $0x240] sm:$0xff] }
 0x3f6   :  { %2465 = vmatprep.mubr.f32.mxu0 %v9385_v5  ;;  %7351 = vmatpush3.bf16.msra.mxu0 %v9575_v52  ;;  %v9582_v5 = vpop.f32.mrb[5].mxu1  ;;  %v3993_v52 = vld [vmem:[#allocation7 + $0x2f0] sm:$0xff] }
 0x3f7   :  { %7353 = vmatprep.subr.bf16.mxu0 %v9584_v47 }
 0x3f9   :  { %2466 = vmatmul.mubr.f32.gmra.mrb[48].mxu0 %v814_v48  ;;  %v885_v48 = vld [vmem:[#allocation2 + $0x1a1] sm:$0xff] }
 0x3fa   :  { %2470 = vmatprep.mubr.f32.mxu0 %v9389_v9  ;;  %v7205_v9 = vpack.c.bf16 %v3932_v55, %v3931_v40  ;;  %7355 = vmatpush3.bf16.msra.mxu0 %v9584_v47  ;;  %v9594_v45 = vpop.f32.mrb[6].mxu1  ;;  %v822_v55 = vld [vmem:[#allocation2 + $0x1e0] sm:$0xff] }
 0x3fb   :  { %7357 = vmatprep.subr.bf16.mxu0 %v9589_v34  ;;  %v9596_v44 = vpop.f32.mrb[7].mxu1 }
 0x3fc   :  { %7206 = vmatpush1.bf16.msra.mxu1 %v7205_v9 }
 0x3fd   :  { %2471 = vmatmul.mubr.f32.gmra.mrb[50].mxu0 %v815_v32  ;;  %7207 = vmatprep.subr.bf16.mxu1 %v10998_v12  ;;  %v4041_v32 = vld [vmem:[#allocation7 + $0x470] sm:$0xff] }
 0x3fe   :  { %2475 = vmatprep.mubr.f32.mxu0 %v9393_v61  ;;  %7359 = vmatpush3.bf16.msra.mxu0 %v9589_v34  ;;  %v4033_v61 = vld [vmem:[#allocation7 + $0x430] sm:$0xff]  ;;  %v9626_v40 = vpack.c.bf16 %v4042_v8, %v4041_v32 }
 0x3ff   :  { %v9598_v35 = vpack.c.bf16 %v4034_v23, %v4033_v61  ;;  %v824_v61 = vld [vmem:[#allocation2 + $0x1f8] sm:$0xff] }
 0x400   :  { %7209 = vmatpush1.bf16.msra.mxu1 %v7208_v63  ;;  %11034 = vst [vmem:[#allocation24_spill] sm:$0xff] %v9626_v40 }
 0x401   :  { %2476 = vmatmul.mubr.f32.gmra.mrb[52].mxu0 %v816_v20  ;;  %11030 = vst [vmem:[#allocation18_spill] sm:$0xff] %v9598_v35  ;;  %7361 = vmatprep.subr.bf16.mxu0 %v9598_v35  ;;  %v823_v20 = vld [vmem:[#allocation2 + $0x1e8] sm:$0xff] }
 0x402   :  { %2480 = vmatprep.mubr.f32.mxu0 %v9397_v18  ;;  %7363 = vmatpush3.bf16.msra.mxu0 %v9598_v35  ;;  %v4035_v18 = vld [vmem:[#allocation7 + $0x440] sm:$0xff]  ;;  %v9609_v26 = vpop.f32.mrb[8].mxu1 }
 0x403   :  { %v9604_v24 = vpack.c.bf16 %v4036_v50, %v4035_v18  ;;  %v9611_v57 = vpop.f32.mrb[9].mxu1  ;;  %7210 = vmatprep.subr.bf16.mxu1 %v10998_v12  ;;  %v826_v18 = vld [vmem:[#allocation2 + $0x210] sm:$0xff] }
 0x405   :  { %2481 = vmatmul.mubr.f32.gmra.mrb[54].mxu0 %v817_v29  ;;  %11031 = vst [vmem:[#allocation19_spill] sm:$0xff] %v9604_v24  ;;  %7365 = vmatprep.subr.bf16.mxu0 %v9604_v24  ;;  %v3936_v29 = vld [vmem:[#allocation7 + $0x128] sm:$0xff] }
 0x406   :  { %2485 = vmatprep.mubr.f32.mxu0 %v9403_v10  ;;  %7367 = vmatpush3.bf16.msra.mxu0 %v9604_v24  ;;  %v884_v10 = vld [vmem:[#allocation2 + $0x199] sm:$0xff]  ;;  %v7211_v23 = vpack.c.bf16 %v3936_v29, %v3935_v15  ;;  %v3941_v29 = vld [vmem:[#allocation7 + $0x150] sm:$0xff] }
 0x407   :  { %7369 = vmatprep.subr.bf16.mxu0 %v9613_v21 }
 0x408   :  { %7212 = vmatpush1.bf16.msra.mxu1 %v7211_v23 }
 0x409   :  { %2486 = vmatmul.mubr.f32.gmra.mrb[56].mxu0 %v818_v38  ;;  %7213 = vmatprep.subr.bf16.mxu1 %v10998_v12 }
 0x40a   :  { %2490 = vmatprep.mubr.f32.mxu0 %v9409_v41  ;;  %7371 = vmatpush3.bf16.msra.mxu0 %v9613_v21  ;;  %v4039_v41 = vld [vmem:[#allocation7 + $0x460] sm:$0xff]  ;;  %v9622_v33 = vpop.f32.mrb[10].mxu1 }
 0x40b   :  { %v9617_v30 = vpack.c.bf16 %v4040_v1, %v4039_v41  ;;  %v9624_v36 = vpop.f32.mrb[11].mxu1  ;;  %v3939_v1 = vld [vmem:[#allocation7 + $0x140] sm:$0xff] }
 0x40d   :  { %2491 = vmatmul.mubr.f32.gmra.mrb[58].mxu0 %v819_v49  ;;  %11033 = vst [vmem:[#allocation23_spill] sm:$0xff] %v9617_v30  ;;  %7373 = vmatprep.subr.bf16.mxu0 %v9617_v30 }
 0x40e   :  { %2495 = vmatprep.mubr.f32.mxu0 %v884_v10  ;;  %7375 = vmatpush3.bf16.msra.mxu0 %v9617_v30 }
 0x40f   :  { %7377 = vmatprep.subr.bf16.mxu0 %v9626_v40 }
 0x411   :  { %2496 = vmatmul.mubr.f32.gmra.mrb[60].mxu0 %v9568_v22 }
 0x412   :  { %2500 = vmatprep.mubr.f32.mxu0 %v885_v48  ;;  %7379 = vmatpush3.bf16.msra.mxu0 %v9626_v40  ;;  %v9634_v9 = vpop.f32.mrb[12].mxu1  ;;  %v832_v48 = vld [vmem:[#allocation2 + $0x258] sm:$0xff] }
 0x413   :  { %v9636_v39 = vpop.f32.mrb[13].mxu1 }
 0x415   :  { %2501 = vmatmul.mubr.f32.gmra.mrb[62].mxu0 %v9568_v22 }
 0x416   :  { %2505 = vmatprep.mubr.f32.mxu0 %v9416_v42  ;;  %v825_v42 = vld [vmem:[#allocation2 + $0x200] sm:$0xff] }
 0x419   :  { %2506 = vmatmul.mubr.f32.gmra.mrb[64].mxu0 %v822_v55  ;;  %v834_v55 = vld [vmem:[#allocation2 + $0x270] sm:$0xff] }
 0x41a   :  { %2510 = vmatprep.mubr.f32.mxu0 %v9420_v60  ;;  %v9641_v60 = vpop.f32.mrb[14].mxu1 }
 0x41b   :  { %v9643_v38 = vpop.f32.mrb[15].mxu1 }
 0x41d   :  { %2511 = vmatmul.mubr.f32.gmra.mrb[66].mxu0 %v823_v20 }
 0x41e   :  { %2515 = vmatprep.mubr.f32.mxu0 %v9424_v56  ;;  %v827_v56 = vld [vmem:[#allocation2 + $0x218] sm:$0xff] }
 0x421   :  { %2516 = vmatmul.mubr.f32.gmra.mrb[68].mxu0 %v824_v61  ;;  %v836_v61 = vld [vmem:[#allocation2 + $0x288] sm:$0xff] }
 0x422   :  { %2520 = vmatprep.mubr.f32.mxu0 %v9428_v54  ;;  %v9647_v50 = vpop.f32.mrb[16].mxu1  ;;  %v3938_v54 = vld [vmem:[#allocation7 + $0x138] sm:$0xff] }
 0x423   :  { %v9649_v49 = vpop.f32.mrb[17].mxu1  ;;  %v7214_v10 = vpack.c.bf16 %v3938_v54, %v3937_v43  ;;  %v3943_v54 = vld [vmem:[#allocation7 + $0x160] sm:$0xff] }
 0x425   :  { %2521 = vmatmul.mubr.f32.gmra.mrb[70].mxu0 %v825_v42  ;;  %7215 = vmatpush1.bf16.msra.mxu1 %v7214_v10  ;;  %v840_v10 = vld [vmem:[#allocation2 + $0x2b8] sm:$0xff] }
 0x426   :  { %2525 = vmatprep.mubr.f32.mxu0 %v9432_v19  ;;  %7216 = vmatprep.subr.bf16.mxu1 %v10998_v12  ;;  %v829_v19 = vld [vmem:[#allocation2 + $0x230] sm:$0xff] }
 0x429   :  { %2526 = vmatmul.mubr.f32.gmra.mrb[72].mxu0 %v826_v18  ;;  %v838_v18 = vld [vmem:[#allocation2 + $0x2a0] sm:$0xff] }
 0x42a   :  { %2530 = vmatprep.mubr.f32.mxu0 %v9436_v31  ;;  %v9654_v31 = vpop.f32.mrb[18].mxu1 }
 0x42b   :  { %v9656_v37 = vpop.f32.mrb[19].mxu1 }
 0x42d   :  { %2531 = vmatmul.mubr.f32.gmra.mrb[74].mxu0 %v827_v56 }
 0x42e   :  { %2535 = vmatprep.mubr.f32.mxu0 %v9440_v25  ;;  %v831_v25 = vld [vmem:[#allocation2 + $0x248] sm:$0xff] }
 0x431   :  { %2536 = vmatmul.mubr.f32.gmra.mrb[76].mxu0 %v828_v16  ;;  %v11035_v16 = vld [vmem:[#allocation21_spill] sm:$0xff] }
 0x432   :  { %2540 = vmatprep.mubr.f32.mxu0 %v9444_v0  ;;  %v9660_v63 = vpop.f32.mrb[20].mxu1  ;;  %v3940_v0 = vld [vmem:[#allocation7 + $0x148] sm:$0xff] }
 0x433   :  { %v9662_v41 = vpop.f32.mrb[21].mxu1  ;;  %v7217_v32 = vpack.c.bf16 %v3940_v0, %v3939_v1  ;;  %v11037_v1 = vld [vmem:[#allocation13_spill] sm:$0xff]  ;;  %v842_v0 = vld [vmem:[#allocation2 + $0x2d0] sm:$0xff] }
 0x435   :  { %2541 = vmatmul.mubr.f32.gmra.mrb[78].mxu0 %v829_v19  ;;  %7218 = vmatpush1.bf16.msra.mxu1 %v7217_v32  ;;  %v843_v32 = vld [vmem:[#allocation2 + $0x2d8] sm:$0xff] }
 0x436   :  { %2545 = vmatprep.mubr.f32.mxu0 %v9448_v46  ;;  %7219 = vmatprep.subr.bf16.mxu1 %v10998_v12  ;;  %v833_v46 = vld [vmem:[#allocation2 + $0x260] sm:$0xff] }
 0x439   :  { %2546 = vmatmul.mubr.f32.gmra.mrb[80].mxu0 %v830_v58  ;;  %v841_v58 = vld [vmem:[#allocation2 + $0x2c0] sm:$0xff] }
 0x43a   :  { %2550 = vmatprep.mubr.f32.mxu0 %v9452_v51  ;;  %v9667_v51 = vpop.f32.mrb[22].mxu1 }
 0x43b   :  { %v9669_v8 = vpop.f32.mrb[23].mxu1 }
 0x43d   :  { %2551 = vmatmul.mubr.f32.gmra.mrb[82].mxu0 %v831_v25 }
 0x43e   :  { %2555 = vmatprep.mubr.f32.mxu0 %v9456_v13  ;;  %v835_v13 = vld [vmem:[#allocation2 + $0x278] sm:$0xff] }
 0x441   :  { %2556 = vmatmul.mubr.f32.gmra.mrb[84].mxu0 %v832_v48  ;;  %v9673_v20 = vpop.f32.mrb[24].mxu1  ;;  %v11038_v48 = vld [vmem:[#allocation14_spill] sm:$0xff] }
 0x442   :  { %2560 = vmatprep.mubr.f32.mxu0 %v9460_v59  ;;  %v9675_v15 = vpop.f32.mrb[25].mxu1  ;;  %v3942_v59 = vld [vmem:[#allocation7 + $0x158] sm:$0xff] }
 0x443   :  { %v7220_v23 = vpack.c.bf16 %v3942_v59, %v3941_v29  ;;  %v9706_v59 = vld [vmem:[%s10930_s3] ss:$0 sm:$0xff] }
 0x445   :  { %2561 = vmatmul.mubr.f32.gmra.mrb[86].mxu0 %v833_v46  ;;  %7221 = vmatpush1.bf16.msra.mxu1 %v7220_v23 }
 0x446   :  { %2565 = vmatprep.mubr.f32.mxu0 %v9464_v62  ;;  %7222 = vmatprep.subr.bf16.mxu1 %v10998_v12  ;;  %v837_v62 = vld [vmem:[#allocation2 + $0x290] sm:$0xff] }
 0x449   :  { %2566 = vmatmul.mubr.f32.gmra.mrb[88].mxu0 %v834_v55  ;;  %v908_v55 = vld [vmem:[#allocation2 + $0x2e9] sm:$0xff] }
 0x44a   :  { %2570 = vmatprep.mubr.f32.mxu0 %v9468_v3  ;;  %v9680_v3 = vpop.f32.mrb[26].mxu1 }
 0x44b   :  { %v9682_v42 = vpop.f32.mrb[27].mxu1 }
 0x44d   :  { %2571 = vmatmul.mubr.f32.gmra.mrb[90].mxu0 %v835_v13  ;;  %v9686_v56 = vpop.f32.mrb[28].mxu1 }
 0x44e   :  { %2575 = vmatprep.mubr.f32.mxu0 %v9472_v7  ;;  %v839_v7 = vld [vmem:[#allocation2 + $0x2a8] sm:$0xff]  ;;  %v9688_v43 = vpop.f32.mrb[29].mxu1 }
 0x451   :  { %2576 = vmatmul.mubr.f32.gmra.mrb[92].mxu0 %v836_v61 }
 0x452   :  { %2580 = vmatprep.mubr.f32.mxu0 %v9476_v11  ;;  %v3944_v11 = vld [vmem:[#allocation7 + $0x168] sm:$0xff] }
 0x453   :  { %v7223_v19 = vpack.c.bf16 %v3944_v11, %v3943_v54  ;;  %v844_v54 = vld [vmem:[#allocation2 + $0x2e8] sm:$0xff] }
 0x455   :  { %2581 = vmatmul.mubr.f32.gmra.mrb[94].mxu0 %v837_v62  ;;  %7224 = vmatpush1.bf16.msra.mxu1 %v7223_v19  ;;  %v3945_v62 = vld [vmem:[#allocation7 + $0x170] sm:$0xff] }
 0x456   :  { %2585 = vmatprep.mubr.f32.mxu0 %v9480_v14  ;;  %7225 = vmatprep.subr.bf16.mxu1 %v10998_v12  ;;  %v11036_v14 = vld [vmem:[#allocation22_spill] sm:$0xff] }
 0x459   :  { %2586 = vmatmul.mubr.f32.gmra.mrb[96].mxu0 %v838_v18  ;;  %v3946_v18 = vld [vmem:[#allocation7 + $0x178] sm:$0xff] }
 0x45a   :  { %2590 = vmatprep.mubr.f32.mxu0 %v9484_v17  ;;  %v9693_v17 = vpop.f32.mrb[30].mxu1  ;;  %v7226_v11 = vpack.c.bf16 %v3946_v18, %v3945_v62 }
 0x45b   :  { %v9695_v25 = vpop.f32.mrb[31].mxu1 }
 0x45c   :  { %7227 = vmatpush1.bf16.msra.mxu1 %v7226_v11 }
 0x45d   :  { %2591 = vmatmul.mubr.f32.gmra.mrb[98].mxu0 %v839_v7  ;;  %v9699_v46 = vpop.f32.mrb[32].mxu1  ;;  %v9712_v7 = vld [vmem:[%s10931_s4] ss:$0 sm:$0xff]  ;;  %7228 = vmatprep.subr.bf16.mxu1 %v10998_v12 }
 0x45e   :  { %2595 = vmatprep.mubr.f32.mxu0 %v11035_v16  ;;  %v9701_v13 = vpop.f32.mrb[33].mxu1 }
 0x461   :  { %2596 = vmatmul.mubr.f32.gmra.mrb[100].mxu0 %v840_v10 }
 0x462   :  { %2600 = vmatprep.mubr.f32.mxu0 %v11036_v14 }
 0x465   :  { %2601 = vmatmul.mubr.f32.gmra.mrb[102].mxu0 %v841_v58  ;;  %v845_v58 = vld [vmem:[#allocation2 + $0x2f0] sm:$0xff] }
 0x466   :  { %2605 = vmatprep.mubr.f32.mxu0 %v11037_v1 }
 0x469   :  { %2606 = vmatmul.mubr.f32.gmra.mrb[104].mxu0 %v842_v0  ;;  %v9719_v1 = vpop.f32.mrb[34].mxu1 }
 0x46a   :  { %2610 = vmatprep.mubr.f32.mxu0 %v11038_v48 }
 0x46c   :  { %v2347_v29 = vpop.f32.mrb[0].mxu0 }
 0x46d   :  { %v2733_v61 = vadd.f32 %v9561_v27, %v2347_v29  ;;  %v2349_v23 = vpop.f32.mrb[1].mxu0  ;;  %2611 = vmatmul.mubr.f32.gmra.mrb[106].mxu0 %v843_v32  ;;  %v910_v32 = vld [vmem:[#allocation2 + $0x301] sm:$0xff] }
 0x46e   :  { %2615 = vmatprep.mubr.f32.mxu0 %v908_v55  ;;  %v9722_v55 = vpop.f32.mrb[35].mxu1 }
 0x46f   :  { %v3058_v16 = vmul.f32 %v9706_v59, %v2733_v61 }
 0x470   :  { %v2352_v10 = vpop.f32.mrb[2].mxu0 }
 0x471   :  { %v3129_v19 = vadd.f32 %v9712_v7, %v3058_v16  ;;  %v2738_v27 = vadd.f32 %v9558_v53, %v2352_v10  ;;  %v2354_v14 = vpop.f32.mrb[3].mxu0  ;;  %2616 = vmatmul.mubr.f32.gmra.mrb[108].mxu0 %v844_v54  ;;  %v911_v54 = vld [vmem:[#allocation2 + $0x309] sm:$0xff] }
 0x472   :  { %2620 = vmatprep.mubr.f32.mxu0 %v9506_v28  ;;  %v846_v28 = vld [vmem:[#allocation2 + $0x300] sm:$0xff] }
 0x473   :  { %v3193_v0 = vmax.f32 %v3129_v19, 0.0  ;;  %v3059_v48 = vmul.f32 %v9706_v59, %v2738_v27  ;;  %v847_v27 = vld [vmem:[#allocation2 + $0x308] sm:$0xff] }
 0x474   :  { %v2357_v29 = vpop.f32.mrb[4].mxu0 }
 0x475   :  { %3258 = vst [vmem:[#allocation3 + $0x19] sm:$0xff] %v3193_v0  ;;  %v3130_v61 = vadd.f32 %v9712_v7, %v3059_v48  ;;  %v2743_v53 = vadd.f32 %v9571_v2, %v2357_v29  ;;  %v2359_v23 = vpop.f32.mrb[5].mxu0  ;;  %2621 = vmatmul.mubr.f32.gmra.mrb[110].mxu0 %v845_v58  ;;  %4117 = vmatprep.mubr.f32.mxu1 %v3193_v0  ;;  %v9729_v2 = vpop.f32.mrb[36].mxu1  ;;  %v912_v0 = vld [vmem:[#allocation2 + $0x319] sm:$0xff] }
 0x476   :  { %2625 = vmatprep.mubr.f32.mxu0 %v910_v32  ;;  %v9732_v48 = vpop.f32.mrb[37].mxu1  ;;  %v3947_v23 = vld [vmem:[#allocation7 + $0x180] sm:$0xff] }
 0x477   :  { %v3194_v62 = vmax.f32 %v3130_v61, 0.0  ;;  %v3060_v18 = vmul.f32 %v9706_v59, %v2743_v53 }
 0x478   :  { %v2362_v11 = vpop.f32.mrb[6].mxu0 }
 0x479   :  { %3259 = vst [vmem:[#allocation3 + $0x21] sm:$0xff] %v3194_v62  ;;  %v3131_v16 = vadd.f32 %v9712_v7, %v3060_v18  ;;  %v2748_v10 = vadd.f32 %v9566_v4, %v2362_v11  ;;  %v2364_v19 = vpop.f32.mrb[7].mxu0  ;;  %2626 = vmatmul.mubr.f32.gmra.mrb[112].mxu0 %v846_v28  ;;  %v3948_v28 = vld [vmem:[#allocation7 + $0x188] sm:$0xff]  ;;  %v848_v18 = vld [vmem:[#allocation2 + $0x318] sm:$0xff] }
 0x47a   :  { %2630 = vmatprep.mubr.f32.mxu0 %v911_v54  ;;  %v7229_v54 = vpack.c.bf16 %v3948_v28, %v3947_v23 }
 0x47b   :  { %v3195_v14 = vmax.f32 %v3131_v16, 0.0  ;;  %v3061_v58 = vmul.f32 %v9706_v59, %v2748_v10  ;;  %v913_v10 = vld [vmem:[#allocation2 + $0x321] sm:$0xff] }
 0x47c   :  { %v2367_v32 = vpop.f32.mrb[8].mxu0  ;;  %v3324_v29 = vld [vmem:[#allocation3 + $0x18] sm:$0xff]  ;;  %7230 = vmatpush1.bf16.msra.mxu1 %v7229_v54 }
 0x47d   :  { %3260 = vst [vmem:[#allocation3 + $0x31] sm:$0xff] %v3195_v14  ;;  %v3132_v61 = vadd.f32 %v9712_v7, %v3061_v58  ;;  %v2753_v53 = vadd.f32 %v9582_v5, %v2367_v32  ;;  %v2369_v4 = vpop.f32.mrb[9].mxu0  ;;  %2631 = vmatmul.mubr.f32.gmra.mrb[114].mxu0 %v847_v27  ;;  %4118 = vmatmul.mubr.f32.gmra.mrb[68].mxu1 %v3324_v29 }
 0x47e   :  { %2635 = vmatprep.mubr.f32.mxu0 %v912_v0  ;;  %4122 = vmatprep.mubr.f32.mxu1 %v3194_v62  ;;  %v849_v0 = vld [vmem:[#allocation2 + $0x320] sm:$0xff]  ;;  %v9739_v62 = vpop.f32.mrb[38].mxu1 }
 0x47f   :  { %v3196_v11 = vmax.f32 %v3132_v61, 0.0  ;;  %v3062_v16 = vmul.f32 %v9706_v59, %v2753_v53  ;;  %v914_v61 = vld [vmem:[#allocation2 + $0x331] sm:$0xff]  ;;  %v9742_v53 = vpop.f32.mrb[39].mxu1  ;;  %7231 = vmatprep.subr.bf16.mxu1 %v10998_v12 }
 0x480   :  { %v2372_v19 = vpop.f32.mrb[10].mxu0  ;;  %v3325_v40 = vld [vmem:[#allocation3 + $0x20] sm:$0xff] }
 0x481   :  { %3261 = vst [vmem:[#allocation3 + $0x39] sm:$0xff] %v3196_v11  ;;  %v3133_v58 = vadd.f32 %v9712_v7, %v3062_v16  ;;  %v2758_v5 = vadd.f32 %v9580_v6, %v2372_v19  ;;  %v2374_v27 = vpop.f32.mrb[11].mxu0  ;;  %2636 = vmatmul.mubr.f32.gmra.mrb[116].mxu0 %v848_v18  ;;  %4123 = vmatmul.mubr.f32.gmra.mrb[70].mxu1 %v3325_v40  ;;  %v915_v16 = vld [vmem:[#allocation2 + $0x339] sm:$0xff] }
 0x482   :  { %2640 = vmatprep.mubr.f32.mxu0 %v913_v10  ;;  %4127 = vmatprep.mubr.f32.mxu1 %v3195_v14  ;;  %v850_v14 = vld [vmem:[#allocation2 + $0x330] sm:$0xff] }
 0x483   :  { %v3197_v32 = vmax.f32 %v3133_v58, 0.0  ;;  %v3063_v29 = vmul.f32 %v9706_v59, %v2758_v5 }
 0x484   :  { %v2377_v4 = vpop.f32.mrb[12].mxu0  ;;  %v3326_v23 = vld [vmem:[#allocation3 + $0x30] sm:$0xff] }
 0x485   :  { %3262 = vst [vmem:[#allocation3 + $0x49] sm:$0xff] %v3197_v32  ;;  %v3134_v6 = vadd.f32 %v9712_v7, %v3063_v29  ;;  %v2763_v40 = vadd.f32 %v9596_v44, %v2377_v4  ;;  %v2379_v28 = vpop.f32.mrb[13].mxu0  ;;  %2641 = vmatmul.mubr.f32.gmra.mrb[118].mxu0 %v849_v0  ;;  %4128 = vmatmul.mubr.f32.gmra.mrb[72].mxu1 %v3326_v23  ;;  %v851_v44 = vld [vmem:[#allocation2 + $0x338] sm:$0xff]  ;;  %v9750_v0 = vpop.f32.mrb[40].mxu1 }
 0x486   :  { %2645 = vmatprep.mubr.f32.mxu0 %v914_v61  ;;  %4132 = vmatprep.mubr.f32.mxu1 %v3196_v11  ;;  %v916_v61 = vld [vmem:[#allocation2 + $0x349] sm:$0xff]  ;;  %v9753_v4 = vpop.f32.mrb[41].mxu1 }
 0x487   :  { %v3198_v18 = vmax.f32 %v3134_v6, 0.0  ;;  %v3064_v54 = vmul.f32 %v9706_v59, %v2763_v40 }
 0x488   :  { %v2382_v10 = vpop.f32.mrb[14].mxu0  ;;  %v3327_v19 = vld [vmem:[#allocation3 + $0x38] sm:$0xff] }
 0x489   :  { %3263 = vst [vmem:[#allocation3 + $0x51] sm:$0xff] %v3198_v18  ;;  %v3135_v58 = vadd.f32 %v9712_v7, %v3064_v54  ;;  %v2768_v5 = vadd.f32 %v9594_v45, %v2382_v10  ;;  %v2384_v27 = vpop.f32.mrb[15].mxu0  ;;  %2646 = vmatmul.mubr.f32.gmra.mrb[120].mxu0 %v850_v14  ;;  %4133 = vmatmul.mubr.f32.gmra.mrb[74].mxu1 %v3327_v19  ;;  %v3949_v14 = vld [vmem:[#allocation7 + $0x190] sm:$0xff] }
 0x48a   :  { %2650 = vmatprep.mubr.f32.mxu0 %v915_v16  ;;  %4137 = vmatprep.mubr.f32.mxu1 %v3197_v32  ;;  %v3950_v32 = vld [vmem:[#allocation7 + $0x198] sm:$0xff] }
 0x48b   :  { %v3199_v11 = vmax.f32 %v3135_v58, 0.0  ;;  %v3065_v29 = vmul.f32 %v9706_v59, %v2768_v5  ;;  %v7232_v54 = vpack.c.bf16 %v3950_v32, %v3949_v14  ;;  %v917_v19 = vld [vmem:[#allocation2 + $0x351] sm:$0xff] }
 0x48c   :  { %v2387_v23 = vpop.f32.mrb[16].mxu0  ;;  %v3328_v6 = vld [vmem:[#allocation3 + $0x48] sm:$0xff] }
 0x48d   :  { %3264 = vst [vmem:[#allocation3 + $0x61] sm:$0xff] %v3199_v11  ;;  %v3136_v40 = vadd.f32 %v9712_v7, %v3065_v29  ;;  %v2773_v45 = vadd.f32 %v9611_v57, %v2387_v23  ;;  %v2389_v28 = vpop.f32.mrb[17].mxu0  ;;  %2651 = vmatmul.mubr.f32.gmra.mrb[122].mxu0 %v851_v44  ;;  %4138 = vmatmul.mubr.f32.gmra.mrb[76].mxu1 %v3328_v6 }
 0x48e   :  { %2655 = vmatprep.mubr.f32.mxu0 %v916_v61  ;;  %4142 = vmatprep.mubr.f32.mxu1 %v3198_v18  ;;  %v9761_v18 = vpop.f32.mrb[42].mxu1 }
 0x48f   :  { %v3200_v16 = vmax.f32 %v3136_v40, 0.0  ;;  %v3066_v10 = vmul.f32 %v9706_v59, %v2773_v45  ;;  %7233 = vmatpush1.bf16.msra.mxu1 %v7232_v54  ;;  %v9764_v23 = vpop.f32.mrb[43].mxu1 }
 0x490   :  { %v2392_v58 = vpop.f32.mrb[18].mxu0  ;;  %v3329_v5 = vld [vmem:[#allocation3 + $0x50] sm:$0xff]  ;;  %7234 = vmatprep.subr.bf16.mxu1 %v10998_v12 }
 0x491   :  { %3265 = vst [vmem:[#allocation3 + $0x69] sm:$0xff] %v3200_v16  ;;  %v3137_v27 = vadd.f32 %v9712_v7, %v3066_v10  ;;  %v2778_v57 = vadd.f32 %v9609_v26, %v2392_v58  ;;  %v2394_v29 = vpop.f32.mrb[19].mxu0  ;;  %2656 = vmatmul.mubr.f32.gmra.mrb[124].mxu0 %v9568_v22  ;;  %4143 = vmatmul.mubr.f32.gmra.mrb[78].mxu1 %v3329_v5  ;;  %v3836_v10 = vld [vmem:[#allocation3 + $0x3a] sm:$0xff] }
 0x492   :  { %2660 = vmatprep.mubr.f32.mxu0 %v917_v19  ;;  %4147 = vmatprep.mubr.f32.mxu1 %v3199_v11  ;;  %v3835_v11 = vld [vmem:[#allocation3 + $0x32] sm:$0xff] }
 0x493   :  { %v3201_v44 = vmax.f32 %v3137_v27, 0.0  ;;  %v3067_v61 = vmul.f32 %v9706_v59, %v2778_v57 }
 0x494   :  { %v2397_v6 = vpop.f32.mrb[20].mxu0  ;;  %v3330_v40 = vld [vmem:[#allocation3 + $0x60] sm:$0xff] }
 0x495   :  { %3266 = vst [vmem:[#allocation3 + $0x79] sm:$0xff] %v3201_v44  ;;  %v3138_v26 = vadd.f32 %v9712_v7, %v3067_v61  ;;  %v2783_v45 = vadd.f32 %v9624_v36, %v2397_v6  ;;  %v2399_v28 = vpop.f32.mrb[21].mxu0  ;;  %2661 = vmatmul.mubr.f32.gmra.mrb[126].mxu0 %v9568_v22  ;;  %4148 = vmatmul.mubr.f32.gmra.mrb[80].mxu1 %v3330_v40  ;;  %v3837_v36 = vld [vmem:[#allocation3 + $0x4a] sm:$0xff]  ;;  %v9773_v22 = vpop.f32.mrb[44].mxu1  ;;  %v3838_v6 = vld [vmem:[#allocation3 + $0x52] sm:$0xff] }
 0x496   :  { %6836 = vmatprep.mubr.f32.mxu0 %v3835_v11  ;;  %4152 = vmatprep.mubr.f32.mxu1 %v3200_v16  ;;  %v9776_v29 = vpop.f32.mrb[45].mxu1  ;;  %v3952_v11 = vld [vmem:[#allocation7 + $0x1a8] sm:$0xff] }
 0x497   :  { %v3202_v14 = vmax.f32 %v3138_v26, 0.0  ;;  %v3068_v32 = vmul.f32 %v9706_v59, %v2783_v45 }
 0x498   :  { %v2402_v54 = vpop.f32.mrb[22].mxu0  ;;  %v3331_v19 = vld [vmem:[#allocation3 + $0x68] sm:$0xff] }
 0x499   :  { %3267 = vst [vmem:[#allocation3 + $0x81] sm:$0xff] %v3202_v14  ;;  %v3139_v58 = vadd.f32 %v9712_v7, %v3068_v32  ;;  %v2788_v5 = vadd.f32 %v9622_v33, %v2402_v54  ;;  %v2404_v27 = vpop.f32.mrb[23].mxu0  ;;  %6837 = vmatmul.mubr.f32.vlgmr.msra.gmra.mrb[128].mxu0 %v3836_v10  ;;  %4153 = vmatmul.mubr.f32.gmra.mrb[82].mxu1 %v3331_v19  ;;  %v3839_v28 = vld [vmem:[#allocation3 + $0x62] sm:$0xff] }
 0x49a   :  { %6839 = vmatprep.mubr.f32.mxu0 %v3837_v36  ;;  %4157 = vmatprep.mubr.f32.mxu1 %v3201_v44  ;;  %v3951_v44 = vld [vmem:[#allocation7 + $0x1a0] sm:$0xff] }
 0x49b   :  { %v3203_v16 = vmax.f32 %v3139_v58, 0.0  ;;  %v3069_v57 = vmul.f32 %v9706_v59, %v2788_v5  ;;  %v7235_v32 = vpack.c.bf16 %v3952_v11, %v3951_v44  ;;  %v3840_v58 = vld [vmem:[#allocation3 + $0x6a] sm:$0xff] }
 0x49c   :  { %v2407_v61 = vpop.f32.mrb[24].mxu0  ;;  %v3332_v40 = vld [vmem:[#allocation3 + $0x78] sm:$0xff] }
 0x49d   :  { %3268 = vst [vmem:[#allocation3 + $0x91] sm:$0xff] %v3203_v16  ;;  %v3140_v26 = vadd.f32 %v9712_v7, %v3069_v57  ;;  %v2793_v33 = vadd.f32 %v9636_v39, %v2407_v61  ;;  %v2409_v45 = vpop.f32.mrb[25].mxu0  ;;  %6840 = vmatmul.mubr.f32.gmra.mrb[130].mxu0 %v3838_v6  ;;  %4158 = vmatmul.mubr.f32.gmra.mrb[84].mxu1 %v3332_v40 }
 0x49e   :  { %6842 = vmatprep.mubr.f32.mxu0 %v3839_v28  ;;  %4162 = vmatprep.mubr.f32.mxu1 %v3202_v14  ;;  %v9783_v14 = vpop.f32.mrb[46].mxu1 }
 0x49f   :  { %v3204_v54 = vmax.f32 %v3140_v26, 0.0  ;;  %v3070_v10 = vmul.f32 %v9706_v59, %v2793_v33  ;;  %7236 = vmatpush1.bf16.msra.mxu1 %v7235_v32  ;;  %v9786_v40 = vpop.f32.mrb[47].mxu1 }
 0x4a0   :  { %v2412_v19 = vpop.f32.mrb[26].mxu0  ;;  %v3333_v5 = vld [vmem:[#allocation3 + $0x80] sm:$0xff]  ;;  %7237 = vmatprep.subr.bf16.mxu1 %v10998_v12  ;;  %v9792_v32 = vpop.f32.mrb[48].mxu1 }
 0x4a1   :  { %v3841_v27 = vld [vmem:[#allocation3 + $0x7a] sm:$0xff]  ;;  %3269 = vst [vmem:[#allocation3 + $0x99] sm:$0xff] %v3204_v54  ;;  %v3141_v39 = vadd.f32 %v9712_v7, %v3070_v10  ;;  %v2798_v36 = vadd.f32 %v9634_v9, %v2412_v19  ;;  %v2414_v57 = vpop.f32.mrb[27].mxu0  ;;  %6843 = vmatmul.mubr.f32.gmra.mrb[132].mxu0 %v3840_v58  ;;  %4163 = vmatmul.mubr.f32.gmra.mrb[86].mxu1 %v3333_v5  ;;  %v3842_v33 = vld [vmem:[#allocation3 + $0x82] sm:$0xff] }
 0x4a2   :  { %6845 = vmatprep.mubr.f32.mxu0 %v3841_v27  ;;  %4167 = vmatprep.mubr.f32.mxu1 %v3203_v16  ;;  %v9794_v27 = vpop.f32.mrb[49].mxu1 }
 0x4a3   :  { %v3205_v61 = vmax.f32 %v3141_v39, 0.0  ;;  %v3071_v6 = vmul.f32 %v9706_v59, %v2798_v36 }
 0x4a4   :  { %v2417_v26 = vpop.f32.mrb[28].mxu0  ;;  %v3334_v45 = vld [vmem:[#allocation3 + $0x90] sm:$0xff] }
 0x4a5   :  { %3270 = vst [vmem:[#allocation3 + $0xa9] sm:$0xff] %v3205_v61  ;;  %v3142_v9 = vadd.f32 %v9712_v7, %v3071_v6  ;;  %v2803_v28 = vadd.f32 %v9643_v38, %v2417_v26  ;;  %v2419_v44 = vpop.f32.mrb[29].mxu0  ;;  %6846 = vmatmul.mubr.f32.gmra.mrb[134].mxu0 %v3842_v33  ;;  %4168 = vmatmul.mubr.f32.gmra.mrb[88].mxu1 %v3334_v45  ;;  %v9799_v6 = vpop.f32.mrb[50].mxu1 }
 0x4a6   :  { %4172 = vmatprep.mubr.f32.mxu1 %v3204_v54  ;;  %v9801_v45 = vpop.f32.mrb[51].mxu1  ;;  %v3953_v44 = vld [vmem:[#allocation7 + $0x1b0] sm:$0xff] }
 0x4a7   :  { %v3206_v16 = vmax.f32 %v3142_v9, 0.0  ;;  %v3072_v11 = vmul.f32 %v9706_v59, %v2803_v28 }
 0x4a8   :  { %v2422_v10 = vpop.f32.mrb[30].mxu0  ;;  %v3843_v19 = vld [vmem:[#allocation3 + $0x92] sm:$0xff]  ;;  %v3844_v5 = vld [vmem:[#allocation3 + $0x9a] sm:$0xff] }
 0x4a9   :  { %v3335_v58 = vld [vmem:[#allocation3 + $0x98] sm:$0xff]  ;;  %3271 = vst [vmem:[#allocation3 + $0xb1] sm:$0xff] %v3206_v16  ;;  %v3143_v39 = vadd.f32 %v9712_v7, %v3072_v11  ;;  %v2808_v38 = vadd.f32 %v9641_v60, %v2422_v10  ;;  %v2424_v36 = vpop.f32.mrb[31].mxu0  ;;  %6848 = vmatprep.mubr.f32.mxu0 %v3843_v19 }
 0x4aa   :  { %4173 = vmatmul.mubr.f32.gmra.mrb[90].mxu1 %v3335_v58  ;;  %6849 = vmatmul.mubr.f32.gmra.mrb[136].mxu0 %v3844_v5  ;;  %v3954_v11 = vld [vmem:[#allocation7 + $0x1b8] sm:$0xff]  ;;  %v9806_v58 = vpop.f32.mrb[52].mxu1 }
 0x4ab   :  { %4177 = vmatprep.mubr.f32.mxu1 %v3205_v61  ;;  %v3207_v54 = vmax.f32 %v3143_v39, 0.0  ;;  %v3073_v57 = vmul.f32 %v9706_v59, %v2808_v38  ;;  %v7238_v61 = vpack.c.bf16 %v3954_v11, %v3953_v44  ;;  %v9808_v30 = vpop.f32.mrb[53].mxu1 }
 0x4ac   :  { %v2427_v26 = vpop.f32.mrb[32].mxu0  ;;  %v3336_v33 = vld [vmem:[#allocation3 + $0xa8] sm:$0xff] }
 0x4ad   :  { %3272 = vst [vmem:[#allocation3 + $0xc1] sm:$0xff] %v3207_v54  ;;  %v3144_v9 = vadd.f32 %v9712_v7, %v3073_v57  ;;  %v2813_v28 = vadd.f32 %v9649_v49, %v2427_v26  ;;  %v2429_v60 = vpop.f32.mrb[33].mxu0  ;;  %7239 = vmatpush1.bf16.msra.mxu1 %v7238_v61 }
 0x4ae   :  { %4178 = vmatmul.mubr.f32.gmra.mrb[92].mxu1 %v3336_v33  ;;  %7240 = vmatprep.subr.bf16.mxu1 %v10998_v12 }
 0x4af   :  { %4182 = vmatprep.mubr.f32.mxu1 %v3206_v16  ;;  %v3208_v10 = vmax.f32 %v3144_v9, 0.0  ;;  %v3074_v19 = vmul.f32 %v9706_v59, %v2813_v28  ;;  %v9813_v9 = vpop.f32.mrb[54].mxu1 }
 0x4b0   :  { %v2432_v5 = vpop.f32.mrb[34].mxu0  ;;  %v3845_v39 = vld [vmem:[#allocation3 + $0xaa] sm:$0xff]  ;;  %v3846_v36 = vld [vmem:[#allocation3 + $0xb2] sm:$0xff]  ;;  %v9816_v44 = vpop.f32.mrb[55].mxu1 }
 0x4b1   :  { %v3337_v38 = vld [vmem:[#allocation3 + $0xb0] sm:$0xff]  ;;  %3273 = vst [vmem:[#allocation3 + $0xc9] sm:$0xff] %v3208_v10  ;;  %v3145_v49 = vadd.f32 %v9712_v7, %v3074_v19  ;;  %v2818_v57 = vadd.f32 %v9647_v50, %v2432_v5  ;;  %v2434_v26 = vpop.f32.mrb[35].mxu0  ;;  %6851 = vmatprep.mubr.f32.mxu0 %v3845_v39  ;;  %v9821_v5 = vpop.f32.mrb[56].mxu1 }
 0x4b2   :  { %4183 = vmatmul.mubr.f32.gmra.mrb[94].mxu1 %v3337_v38  ;;  %6852 = vmatmul.mubr.f32.gmra.mrb[138].mxu0 %v3846_v36 }
 0x4b3   :  { %4187 = vmatprep.mubr.f32.mxu1 %v3207_v54  ;;  %v3209_v16 = vmax.f32 %v3145_v49, 0.0  ;;  %v3075_v33 = vmul.f32 %v9706_v59, %v2818_v57  ;;  %v9823_v57 = vpop.f32.mrb[57].mxu1 }
 0x4b4   :  { %v2437_v28 = vpop.f32.mrb[36].mxu0  ;;  %v3338_v60 = vld [vmem:[#allocation3 + $0xc0] sm:$0xff] }
 0x4b5   :  { %3274 = vst [vmem:[#allocation3 + $0xd9] sm:$0xff] %v3209_v16  ;;  %v3146_v11 = vadd.f32 %v9712_v7, %v3075_v33  ;;  %v2823_v50 = vadd.f32 %v9656_v37, %v2437_v28  ;;  %v2439_v61 = vpop.f32.mrb[37].mxu0 }
 0x4b6   :  { %4188 = vmatmul.mubr.f32.gmra.mrb[96].mxu1 %v3338_v60  ;;  %v9828_v60 = vpop.f32.mrb[58].mxu1 }
 0x4b7   :  { %4192 = vmatprep.mubr.f32.mxu1 %v3208_v10  ;;  %v3210_v54 = vmax.f32 %v3146_v11, 0.0  ;;  %v3076_v19 = vmul.f32 %v9706_v59, %v2823_v50  ;;  %v9830_v61 = vpop.f32.mrb[59].mxu1 }
 0x4b8   :  { %v2442_v39 = vpop.f32.mrb[38].mxu0  ;;  %v3847_v38 = vld [vmem:[#allocation3 + $0xc2] sm:$0xff]  ;;  %v3848_v49 = vld [vmem:[#allocation3 + $0xca] sm:$0xff] }
 0x4b9   :  { %v3339_v36 = vld [vmem:[#allocation3 + $0xc8] sm:$0xff]  ;;  %3275 = vst [vmem:[#allocation3 + $0xe1] sm:$0xff] %v3210_v54  ;;  %v3147_v26 = vadd.f32 %v9712_v7, %v3076_v19  ;;  %v2828_v33 = vadd.f32 %v9654_v31, %v2442_v39  ;;  %v2444_v37 = vpop.f32.mrb[39].mxu0  ;;  %6854 = vmatprep.mubr.f32.mxu0 %v3847_v38  ;;  %v3955_v39 = vld [vmem:[#allocation7 + $0x1c0] sm:$0xff] }
 0x4ba   :  { %4193 = vmatmul.mubr.f32.gmra.mrb[98].mxu1 %v3339_v36  ;;  %6855 = vmatmul.mubr.f32.gmra.mrb[140].mxu0 %v3848_v49  ;;  %v3956_v38 = vld [vmem:[#allocation7 + $0x1c8] sm:$0xff] }
 0x4bb   :  { %4197 = vmatprep.mubr.f32.mxu1 %v3209_v16  ;;  %v3211_v10 = vmax.f32 %v3147_v26, 0.0  ;;  %v3077_v28 = vmul.f32 %v9706_v59, %v2828_v33  ;;  %v7241_v16 = vpack.c.bf16 %v3956_v38, %v3955_v39  ;;  %v9835_v26 = vpop.f32.mrb[60].mxu1 }
 0x4bc   :  { %v2447_v11 = vpop.f32.mrb[40].mxu0  ;;  %v3340_v50 = vld [vmem:[#allocation3 + $0xd8] sm:$0xff]  ;;  %v9837_v34 = vpop.f32.mrb[61].mxu1 }
 0x4bd   :  { %3276 = vst [vmem:[#allocation3 + $0xf1] sm:$0xff] %v3211_v10  ;;  %v3148_v21 = vadd.f32 %v9712_v7, %v3077_v28  ;;  %v2833_v19 = vadd.f32 %v9662_v41, %v2447_v11  ;;  %v2449_v31 = vpop.f32.mrb[41].mxu0  ;;  %7242 = vmatpush1.bf16.msra.mxu1 %v7241_v16 }
 0x4be   :  { %4198 = vmatmul.mubr.f32.gmra.mrb[100].mxu1 %v3340_v50  ;;  %v9842_v50 = vpop.f32.mrb[62].mxu1  ;;  %7243 = vmatprep.subr.bf16.mxu1 %v10998_v12 }
 0x4bf   :  { %4202 = vmatprep.mubr.f32.mxu1 %v3210_v54  ;;  %v3212_v36 = vmax.f32 %v3148_v21, 0.0  ;;  %v3078_v49 = vmul.f32 %v9706_v59, %v2833_v19  ;;  %v9845_v39 = vpop.f32.mrb[63].mxu1 }
 0x4c0   :  { %v2452_v33 = vpop.f32.mrb[42].mxu0  ;;  %v3849_v37 = vld [vmem:[#allocation3 + $0xda] sm:$0xff]  ;;  %v3850_v35 = vld [vmem:[#allocation3 + $0xe2] sm:$0xff] }
 0x4c1   :  { %v3341_v24 = vld [vmem:[#allocation3 + $0xe0] sm:$0xff]  ;;  %3277 = vst [vmem:[#allocation3 + $0xf9] sm:$0xff] %v3212_v36  ;;  %v3149_v41 = vadd.f32 %v9712_v7, %v3078_v49  ;;  %v2838_v28 = vadd.f32 %v9660_v63, %v2452_v33  ;;  %v2454_v11 = vpop.f32.mrb[43].mxu0  ;;  %6857 = vmatprep.mubr.f32.mxu0 %v3849_v37 }
 0x4c2   :  { %4203 = vmatmul.mubr.f32.gmra.mrb[102].mxu1 %v3341_v24  ;;  %6858 = vmatmul.mubr.f32.gmra.mrb[142].mxu0 %v3850_v35 }
 0x4c3   :  { %4207 = vmatprep.mubr.f32.mxu1 %v3211_v10  ;;  %v3213_v21 = vmax.f32 %v3149_v41, 0.0  ;;  %v3079_v54 = vmul.f32 %v9706_v59, %v2838_v28 }
 0x4c4   :  { %v2457_v19 = vpop.f32.mrb[44].mxu0  ;;  %v3342_v31 = vld [vmem:[#allocation3 + $0xf0] sm:$0xff] }
 0x4c5   :  { %3278 = vst [vmem:[#allocation3 + $0x109] sm:$0xff] %v3213_v21  ;;  %v3150_v38 = vadd.f32 %v9712_v7, %v3079_v54  ;;  %v2843_v63 = vadd.f32 %v9669_v8, %v2457_v19  ;;  %v2459_v16 = vpop.f32.mrb[45].mxu0 }
 0x4c6   :  { %4208 = vmatmul.mubr.f32.gmra.mrb[104].mxu1 %v3342_v31  ;;  %v3957_v16 = vld [vmem:[#allocation7 + $0x1d0] sm:$0xff] }
 0x4c7   :  { %4212 = vmatprep.mubr.f32.mxu1 %v3212_v36  ;;  %v3214_v35 = vmax.f32 %v3150_v38, 0.0  ;;  %v3080_v24 = vmul.f32 %v9706_v59, %v2843_v63 }
 0x4c8   :  { %v2462_v10 = vpop.f32.mrb[46].mxu0  ;;  %v3851_v49 = vld [vmem:[#allocation3 + $0xf2] sm:$0xff]  ;;  %v3852_v37 = vld [vmem:[#allocation3 + $0xfa] sm:$0xff] }
 0x4c9   :  { %v3343_v33 = vld [vmem:[#allocation3 + $0xf8] sm:$0xff]  ;;  %3279 = vst [vmem:[#allocation3 + $0x111] sm:$0xff] %v3214_v35  ;;  %v3151_v41 = vadd.f32 %v9712_v7, %v3080_v24  ;;  %v2848_v28 = vadd.f32 %v9667_v51, %v2462_v10  ;;  %v2464_v11 = vpop.f32.mrb[47].mxu0  ;;  %6860 = vmatprep.mubr.f32.mxu0 %v3851_v49 }
 0x4ca   :  { %4213 = vmatmul.mubr.f32.gmra.mrb[106].mxu1 %v3343_v33  ;;  %6861 = vmatmul.mubr.f32.gmra.mrb[144].mxu0 %v3852_v37  ;;  %v3958_v24 = vld [vmem:[#allocation7 + $0x1d8] sm:$0xff] }
 0x4cb   :  { %4217 = vmatprep.mubr.f32.mxu1 %v3213_v21  ;;  %v3215_v8 = vmax.f32 %v3151_v41, 0.0  ;;  %v3081_v36 = vmul.f32 %v9706_v59, %v2848_v28  ;;  %v7244_v51 = vpack.c.bf16 %v3958_v24, %v3957_v16 }
 0x4cc   :  { %v2467_v54 = vpop.f32.mrb[48].mxu0  ;;  %v3344_v19 = vld [vmem:[#allocation3 + $0x108] sm:$0xff] }
 0x4cd   :  { %3280 = vst [vmem:[#allocation3 + $0x121] sm:$0xff] %v3215_v8  ;;  %v3152_v31 = vadd.f32 %v9712_v7, %v3081_v36  ;;  %v2853_v38 = vadd.f32 %v9675_v15, %v2467_v54  ;;  %v2469_v63 = vpop.f32.mrb[49].mxu0  ;;  %7245 = vmatpush1.bf16.msra.mxu1 %v7244_v51 }
 0x4ce   :  { %4218 = vmatmul.mubr.f32.gmra.mrb[108].mxu1 %v3344_v19  ;;  %7246 = vmatprep.subr.bf16.mxu1 %v10998_v12 }
 0x4cf   :  { %4222 = vmatprep.mubr.f32.mxu1 %v3214_v35  ;;  %v3216_v10 = vmax.f32 %v3152_v31, 0.0  ;;  %v3082_v49 = vmul.f32 %v9706_v59, %v2853_v38 }
 0x4d0   :  { %v2472_v21 = vpop.f32.mrb[50].mxu0  ;;  %v3853_v33 = vld [vmem:[#allocation3 + $0x10a] sm:$0xff]  ;;  %v3854_v41 = vld [vmem:[#allocation3 + $0x112] sm:$0xff] }
 0x4d1   :  { %v3345_v37 = vld [vmem:[#allocation3 + $0x110] sm:$0xff]  ;;  %3281 = vst [vmem:[#allocation3 + $0x129] sm:$0xff] %v3216_v10  ;;  %v3153_v28 = vadd.f32 %v9712_v7, %v3082_v49  ;;  %v2858_v11 = vadd.f32 %v9673_v20, %v2472_v21  ;;  %v2474_v15 = vpop.f32.mrb[51].mxu0  ;;  %6863 = vmatprep.mubr.f32.mxu0 %v3853_v33 }
 0x4d2   :  { %4223 = vmatmul.mubr.f32.gmra.mrb[110].mxu1 %v3345_v37  ;;  %6864 = vmatmul.mubr.f32.gmra.mrb[146].mxu0 %v3854_v41 }
 0x4d3   :  { %4227 = vmatprep.mubr.f32.mxu1 %v3215_v8  ;;  %v3217_v35 = vmax.f32 %v3153_v28, 0.0  ;;  %v3083_v36 = vmul.f32 %v9706_v59, %v2858_v11 }
 0x4d4   :  { %v2477_v54 = vpop.f32.mrb[52].mxu0  ;;  %v3346_v19 = vld [vmem:[#allocation3 + $0x120] sm:$0xff] }
 0x4d5   :  { %3282 = vst [vmem:[#allocation3 + $0x139] sm:$0xff] %v3217_v35  ;;  %v3154_v31 = vadd.f32 %v9712_v7, %v3083_v36  ;;  %v2863_v38 = vadd.f32 %v9682_v42, %v2477_v54  ;;  %v2479_v63 = vpop.f32.mrb[53].mxu0  ;;  %v3959_v54 = vld [vmem:[#allocation7 + $0x1e0] sm:$0xff] }
 0x4d6   :  { %4228 = vmatmul.mubr.f32.gmra.mrb[112].mxu1 %v3346_v19  ;;  %v3960_v19 = vld [vmem:[#allocation7 + $0x1e8] sm:$0xff] }
 0x4d7   :  { %4232 = vmatprep.mubr.f32.mxu1 %v3216_v10  ;;  %v3218_v20 = vmax.f32 %v3154_v31, 0.0  ;;  %v3084_v16 = vmul.f32 %v9706_v59, %v2863_v38 }
 0x4d8   :  { %v2482_v24 = vpop.f32.mrb[54].mxu0  ;;  %v3855_v8 = vld [vmem:[#allocation3 + $0x122] sm:$0xff]  ;;  %v3856_v49 = vld [vmem:[#allocation3 + $0x12a] sm:$0xff] }
 0x4d9   :  { %v3347_v51 = vld [vmem:[#allocation3 + $0x128] sm:$0xff]  ;;  %3283 = vst [vmem:[#allocation3 + $0x141] sm:$0xff] %v3218_v20  ;;  %v3155_v21 = vadd.f32 %v9712_v7, %v3084_v16  ;;  %v2868_v33 = vadd.f32 %v9680_v3, %v2482_v24  ;;  %v2484_v37 = vpop.f32.mrb[55].mxu0  ;;  %6866 = vmatprep.mubr.f32.mxu0 %v3855_v8  ;;  %v7247_v3 = vpack.c.bf16 %v3960_v19, %v3959_v54 }
 0x4da   :  { %4233 = vmatmul.mubr.f32.gmra.mrb[114].mxu1 %v3347_v51  ;;  %6867 = vmatmul.mubr.f32.gmra.mrb[148].mxu0 %v3856_v49 }
 0x4db   :  { %4237 = vmatprep.mubr.f32.mxu1 %v3217_v35  ;;  %v3219_v42 = vmax.f32 %v3155_v21, 0.0  ;;  %v3085_v10 = vmul.f32 %v9706_v59, %v2868_v33  ;;  %7248 = vmatpush1.bf16.msra.mxu1 %v7247_v3 }
 0x4dc   :  { %v2487_v41 = vpop.f32.mrb[56].mxu0  ;;  %v3348_v28 = vld [vmem:[#allocation3 + $0x138] sm:$0xff]  ;;  %7249 = vmatprep.subr.bf16.mxu1 %v10998_v12 }
 0x4dd   :  { %3284 = vst [vmem:[#allocation3 + $0x151] sm:$0xff] %v3219_v42  ;;  %v3156_v11 = vadd.f32 %v9712_v7, %v3085_v10  ;;  %v2873_v15 = vadd.f32 %v9688_v43, %v2487_v41  ;;  %v2489_v36 = vpop.f32.mrb[57].mxu0 }
 0x4de   :  { %4238 = vmatmul.mubr.f32.gmra.mrb[116].mxu1 %v3348_v28 }
 0x4df   :  { %4242 = vmatprep.mubr.f32.mxu1 %v3218_v20  ;;  %v3220_v31 = vmax.f32 %v3156_v11, 0.0  ;;  %v3086_v38 = vmul.f32 %v9706_v59, %v2873_v15 }
 0x4e0   :  { %v2492_v35 = vpop.f32.mrb[58].mxu0  ;;  %v3857_v63 = vld [vmem:[#allocation3 + $0x13a] sm:$0xff]  ;;  %v3858_v24 = vld [vmem:[#allocation3 + $0x142] sm:$0xff] }
 0x4e1   :  { %v3349_v16 = vld [vmem:[#allocation3 + $0x140] sm:$0xff]  ;;  %3285 = vst [vmem:[#allocation3 + $0x159] sm:$0xff] %v3220_v31  ;;  %v3157_v8 = vadd.f32 %v9712_v7, %v3086_v38  ;;  %v2878_v51 = vadd.f32 %v9686_v56, %v2492_v35  ;;  %v2494_v43 = vpop.f32.mrb[59].mxu0  ;;  %6869 = vmatprep.mubr.f32.mxu0 %v3857_v63 }
 0x4e2   :  { %4243 = vmatmul.mubr.f32.gmra.mrb[118].mxu1 %v3349_v16  ;;  %6870 = vmatmul.mubr.f32.gmra.mrb[150].mxu0 %v3858_v24 }
 0x4e3   :  { %4247 = vmatprep.mubr.f32.mxu1 %v3219_v42  ;;  %v3221_v20 = vmax.f32 %v3157_v8, 0.0  ;;  %v3087_v49 = vmul.f32 %v9706_v59, %v2878_v51  ;;  %v3961_v8 = vld [vmem:[#allocation7 + $0x1f0] sm:$0xff]  ;;  %v3962_v51 = vld [vmem:[#allocation7 + $0x1f8] sm:$0xff] }
 0x4e4   :  { %v2497_v21 = vpop.f32.mrb[60].mxu0  ;;  %v3350_v33 = vld [vmem:[#allocation3 + $0x150] sm:$0xff] }
 0x4e5   :  { %3286 = vst [vmem:[#allocation3 + $0x169] sm:$0xff] %v3221_v20  ;;  %v3158_v37 = vadd.f32 %v9712_v7, %v3087_v49  ;;  %v2883_v10 = vadd.f32 %v9695_v25, %v2497_v21  ;;  %v2499_v41 = vpop.f32.mrb[61].mxu0 }
 0x4e6   :  { %4248 = vmatmul.mubr.f32.gmra.mrb[120].mxu1 %v3350_v33 }
 0x4e7   :  { %4252 = vmatprep.mubr.f32.mxu1 %v3220_v31  ;;  %v3222_v56 = vmax.f32 %v3158_v37, 0.0  ;;  %v3088_v28 = vmul.f32 %v9706_v59, %v2883_v10 }
 0x4e8   :  { %v2502_v11 = vpop.f32.mrb[62].mxu0  ;;  %v3859_v42 = vld [vmem:[#allocation3 + $0x152] sm:$0xff]  ;;  %v3860_v36 = vld [vmem:[#allocation3 + $0x15a] sm:$0xff] }
 0x4e9   :  { %v3351_v15 = vld [vmem:[#allocation3 + $0x158] sm:$0xff]  ;;  %3287 = vst [vmem:[#allocation3 + $0x171] sm:$0xff] %v3222_v56  ;;  %v3159_v54 = vadd.f32 %v9712_v7, %v3088_v28  ;;  %v2888_v19 = vadd.f32 %v9693_v17, %v2502_v11  ;;  %v2504_v3 = vpop.f32.mrb[63].mxu0  ;;  %6872 = vmatprep.mubr.f32.mxu0 %v3859_v42  ;;  %v7250_v17 = vpack.c.bf16 %v3962_v51, %v3961_v8  ;;  %v9894_v51 = vld [vmem:[%s10930_s3] ss:$0 sm:$0xff] }
 0x4ea   :  { %4253 = vmatmul.mubr.f32.gmra.mrb[122].mxu1 %v3351_v15  ;;  %6873 = vmatmul.mubr.f32.gmra.mrb[152].mxu0 %v3860_v36  ;;  %v3419_v42 = vld [vmem:[#allocation3 + $0x1b9] sm:$0xff] }
 0x4eb   :  { %4257 = vmatprep.mubr.f32.mxu1 %v3221_v20  ;;  %v3223_v25 = vmax.f32 %v3159_v54, 0.0  ;;  %v3089_v31 = vmul.f32 %v9706_v59, %v2888_v19  ;;  %v3418_v20 = vld [vmem:[#allocation3 + $0x1b1] sm:$0xff]  ;;  %7251 = vmatpush1.bf16.msra.mxu1 %v7250_v17  ;;  %v8173_v3 = vld [vmem:[#allocation2] sm:$0xff] }
 0x4ec   :  { %v2507_v38 = vpop.f32.mrb[64].mxu0  ;;  %v3352_v35 = vld [vmem:[#allocation3 + $0x168] sm:$0xff]  ;;  %7252 = vmatprep.subr.bf16.mxu1 %v10998_v12 }
 0x4ed   :  { %3288 = vst [vmem:[#allocation3 + $0x181] sm:$0xff] %v3223_v25  ;;  %v3160_v63 = vadd.f32 %v9712_v7, %v3089_v31  ;;  %v2893_v16 = vadd.f32 %v9701_v13, %v2507_v38  ;;  %v2509_v24 = vpop.f32.mrb[65].mxu0  ;;  %v3866_v17 = vld [vmem:[#allocation3 + $0x1a2] sm:$0xff] }
 0x4ee   :  { %4258 = vmatmul.mubr.f32.gmra.mrb[124].mxu1 %v3352_v35 }
 0x4ef   :  { %4262 = vmatprep.mubr.f32.mxu1 %v3222_v56  ;;  %v3224_v43 = vmax.f32 %v3160_v63, 0.0  ;;  %v3090_v49 = vmul.f32 %v9706_v59, %v2893_v16  ;;  %v3865_v63 = vld [vmem:[#allocation3 + $0x19a] sm:$0xff] }
 0x4f0   :  { %v2512_v21 = vpop.f32.mrb[66].mxu0  ;;  %v3861_v33 = vld [vmem:[#allocation3 + $0x16a] sm:$0xff]  ;;  %v3862_v10 = vld [vmem:[#allocation3 + $0x172] sm:$0xff] }
 0x4f1   :  { %v3353_v37 = vld [vmem:[#allocation3 + $0x170] sm:$0xff]  ;;  %3289 = vst [vmem:[#allocation3 + $0x189] sm:$0xff] %v3224_v43  ;;  %v3161_v41 = vadd.f32 %v9712_v7, %v3090_v49  ;;  %v2898_v13 = vadd.f32 %v9699_v46, %v2512_v21  ;;  %v2514_v28 = vpop.f32.mrb[67].mxu0  ;;  %6875 = vmatprep.mubr.f32.mxu0 %v3861_v33 }
 0x4f2   :  { %4263 = vmatmul.mubr.f32.gmra.mrb[126].mxu1 %v3353_v37  ;;  %6876 = vmatmul.mubr.f32.gmra.mrb[154].mxu0 %v3862_v10  ;;  %v3543_v47 = vld [vmem:[#allocation3 + $0x170] sm:$0xff] }
 0x4f3   :  { %4267 = vmatprep.mubr.f32.mxu1 %v3418_v20  ;;  %v3225_v56 = vmax.f32 %v3161_v41, 0.0  ;;  %v3091_v11 = vmul.f32 %v9706_v59, %v2898_v13 }
 0x4f4   :  { %v2517_v15 = vpop.f32.mrb[68].mxu0 }
 0x4f5   :  { %3290 = vst [vmem:[#allocation3 + $0x1c9] sm:$0xff] %v3225_v56  ;;  %v3162_v36 = vadd.f32 %v9712_v7, %v3091_v11  ;;  %v2903_v54 = vadd.f32 %v9722_v55, %v2517_v15  ;;  %v2519_v19 = vpop.f32.mrb[69].mxu0 }
 0x4f6   :  { %4268 = vmatmul.mubr.f32.gmra.mrb[128].mxu1 %v8173_v3 }
 0x4f7   :  { %4272 = vmatprep.mubr.f32.mxu1 %v3419_v42  ;;  %v3226_v46 = vmax.f32 %v3162_v36, 0.0  ;;  %v3092_v25 = vmul.f32 %v9706_v59, %v2903_v54 }
 0x4f8   :  { %v2522_v31 = vpop.f32.mrb[70].mxu0  ;;  %v3863_v38 = vld [vmem:[#allocation3 + $0x182] sm:$0xff]  ;;  %v3864_v35 = vld [vmem:[#allocation3 + $0x18a] sm:$0xff] }
 0x4f9   :  { %3291 = vst [vmem:[#allocation3 + $0x1d1] sm:$0xff] %v3226_v46  ;;  %v3163_v16 = vadd.f32 %v9712_v7, %v3092_v25  ;;  %v2908_v24 = vadd.f32 %v9719_v1, %v2522_v31  ;;  %v2524_v8 = vpop.f32.mrb[71].mxu0  ;;  %6878 = vmatprep.mubr.f32.mxu0 %v3863_v38  ;;  %v9900_v7 = vld [vmem:[%s10931_s4] ss:$0 sm:$0xff] }
 0x4fa   :  { %4273 = vmatmul.mubr.f32.gmra.mrb[130].mxu1 %v8173_v3  ;;  %6879 = vmatmul.mubr.f32.gmra.mrb[156].mxu0 %v3864_v35 }
 0x4fb   :  { %4277 = vmatprep.mubr.f32.mxu1 %v3225_v56  ;;  %v3227_v55 = vmax.f32 %v3163_v16, 0.0  ;;  %v3093_v59 = vmul.f32 %v9894_v51, %v2908_v24  ;;  %6881 = vmatprep.mubr.f32.mxu0 %v3865_v63 }
 0x4fc   :  { %v2527_v43 = vpop.f32.mrb[72].mxu0  ;;  %v3356_v49 = vld [vmem:[#allocation3 + $0x1c8] sm:$0xff] }
 0x4fd   :  { %3292 = vst [vmem:[#allocation3 + $0x1e1] sm:$0xff] %v3227_v55  ;;  %v3164_v1 = vadd.f32 %v9900_v7, %v3093_v59  ;;  %v2913_v20 = vadd.f32 %v9732_v48, %v2527_v43  ;;  %v2529_v21 = vpop.f32.mrb[73].mxu0 }
 0x4fe   :  { %4278 = vmatmul.mubr.f32.gmra.mrb[132].mxu1 %v3356_v49  ;;  %6882 = vmatmul.mubr.f32.gmra.mrb[158].mxu0 %v3866_v17 }
 0x4ff   :  { %4282 = vmatprep.mubr.f32.mxu1 %v3226_v46  ;;  %v3228_v33 = vmax.f32 %v3164_v1, 0.0  ;;  %v3094_v37 = vmul.f32 %v9894_v51, %v2913_v20 }
 0x500   :  { %v2532_v10 = vpop.f32.mrb[74].mxu0  ;;  %v3357_v41 = vld [vmem:[#allocation3 + $0x1d0] sm:$0xff] }
 0x501   :  { %3293 = vst [vmem:[#allocation3 + $0x1e9] sm:$0xff] %v3228_v33  ;;  %v3165_v13 = vadd.f32 %v9900_v7, %v3094_v37  ;;  %v2918_v28 = vadd.f32 %v9729_v2, %v2532_v10  ;;  %v2534_v56 = vpop.f32.mrb[75].mxu0 }
 0x502   :  { %4283 = vmatmul.mubr.f32.gmra.mrb[134].mxu1 %v3357_v41 }
 0x503   :  { %4287 = vmatprep.mubr.f32.mxu1 %v3227_v55  ;;  %v3229_v11 = vmax.f32 %v3165_v13, 0.0  ;;  %v3095_v48 = vmul.f32 %v9894_v51, %v2918_v28 }
 0x504   :  { %v2537_v42 = vpop.f32.mrb[76].mxu0  ;;  %v3358_v15 = vld [vmem:[#allocation3 + $0x1e0] sm:$0xff] }
 0x505   :  { %3294 = vst [vmem:[#allocation3 + $0x1f9] sm:$0xff] %v3229_v11  ;;  %v3166_v36 = vadd.f32 %v9900_v7, %v3095_v48  ;;  %v2923_v54 = vadd.f32 %v9742_v53, %v2537_v42  ;;  %v2539_v19 = vpop.f32.mrb[77].mxu0 }
 0x506   :  { %4288 = vmatmul.mubr.f32.gmra.mrb[136].mxu1 %v3358_v15 }
 0x507   :  { %4292 = vmatprep.mubr.f32.mxu1 %v3228_v33  ;;  %v3230_v3 = vmax.f32 %v3166_v36, 0.0  ;;  %v3096_v46 = vmul.f32 %v9894_v51, %v2923_v54 }
 0x508   :  { %v2542_v2 = vpop.f32.mrb[78].mxu0  ;;  %v3867_v25 = vld [vmem:[#allocation3 + $0x1e2] sm:$0xff]  ;;  %v3868_v38 = vld [vmem:[#allocation3 + $0x1ea] sm:$0xff] }
 0x509   :  { %v3359_v31 = vld [vmem:[#allocation3 + $0x1e8] sm:$0xff]  ;;  %3295 = vst [vmem:[#allocation3 + $0x201] sm:$0xff] %v3230_v3  ;;  %v3167_v35 = vadd.f32 %v9900_v7, %v3096_v46  ;;  %v2928_v63 = vadd.f32 %v9739_v62, %v2542_v2  ;;  %v2544_v16 = vpop.f32.mrb[79].mxu0  ;;  %6884 = vmatprep.mubr.f32.mxu0 %v3867_v25 }
 0x50a   :  { %4293 = vmatmul.mubr.f32.gmra.mrb[138].mxu1 %v3359_v31  ;;  %6885 = vmatmul.mubr.f32.gmra.mrb[160].mxu0 %v3868_v38 }
 0x50b   :  { %4297 = vmatprep.mubr.f32.mxu1 %v3229_v11  ;;  %v3231_v53 = vmax.f32 %v3167_v35, 0.0  ;;  %v3097_v24 = vmul.f32 %v9894_v51, %v2928_v63 }
 0x50c   :  { %v2547_v8 = vpop.f32.mrb[80].mxu0  ;;  %v3360_v55 = vld [vmem:[#allocation3 + $0x1f8] sm:$0xff] }
 0x50d   :  { %3296 = vst [vmem:[#allocation3 + $0x211] sm:$0xff] %v3231_v53  ;;  %v3168_v59 = vadd.f32 %v9900_v7, %v3097_v24  ;;  %v2933_v17 = vadd.f32 %v9753_v4, %v2547_v8  ;;  %v2549_v43 = vpop.f32.mrb[81].mxu0 }
 0x50e   :  { %4298 = vmatmul.mubr.f32.gmra.mrb[140].mxu1 %v3360_v55 }
 0x50f   :  { %4302 = vmatprep.mubr.f32.mxu1 %v3230_v3  ;;  %v3232_v49 = vmax.f32 %v3168_v59, 0.0  ;;  %v3098_v62 = vmul.f32 %v9894_v51, %v2933_v17 }
 0x510   :  { %v2552_v1 = vpop.f32.mrb[82].mxu0  ;;  %v3869_v20 = vld [vmem:[#allocation3 + $0x1fa] sm:$0xff]  ;;  %v3870_v33 = vld [vmem:[#allocation3 + $0x202] sm:$0xff] }
 0x511   :  { %v3361_v21 = vld [vmem:[#allocation3 + $0x200] sm:$0xff]  ;;  %3297 = vst [vmem:[#allocation3 + $0x219] sm:$0xff] %v3232_v49  ;;  %v3169_v37 = vadd.f32 %v9900_v7, %v3098_v62  ;;  %v2938_v10 = vadd.f32 %v9750_v0, %v2552_v1  ;;  %v2554_v41 = vpop.f32.mrb[83].mxu0  ;;  %6887 = vmatprep.mubr.f32.mxu0 %v3869_v20 }
 0x512   :  { %4303 = vmatmul.mubr.f32.gmra.mrb[142].mxu1 %v3361_v21  ;;  %6888 = vmatmul.mubr.f32.gmra.mrb[162].mxu0 %v3870_v33 }
 0x513   :  { %4307 = vmatprep.mubr.f32.mxu1 %v3231_v53  ;;  %v3233_v4 = vmax.f32 %v3169_v37, 0.0  ;;  %v3099_v13 = vmul.f32 %v9894_v51, %v2938_v10 }
 0x514   :  { %v2557_v28 = vpop.f32.mrb[84].mxu0  ;;  %v3362_v56 = vld [vmem:[#allocation3 + $0x210] sm:$0xff] }
 0x515   :  { %3298 = vst [vmem:[#allocation3 + $0x229] sm:$0xff] %v3233_v4  ;;  %v3170_v11 = vadd.f32 %v9900_v7, %v3099_v13  ;;  %v2943_v48 = vadd.f32 %v9764_v23, %v2557_v28  ;;  %v2559_v42 = vpop.f32.mrb[85].mxu0 }
 0x516   :  { %4308 = vmatmul.mubr.f32.gmra.mrb[144].mxu1 %v3362_v56 }
 0x517   :  { %4312 = vmatprep.mubr.f32.mxu1 %v3232_v49  ;;  %v3234_v15 = vmax.f32 %v3170_v11, 0.0  ;;  %v3100_v0 = vmul.f32 %v9894_v51, %v2943_v48 }
 0x518   :  { %v2562_v36 = vpop.f32.mrb[86].mxu0  ;;  %v3871_v54 = vld [vmem:[#allocation3 + $0x212] sm:$0xff]  ;;  %v3872_v3 = vld [vmem:[#allocation3 + $0x21a] sm:$0xff] }
 0x519   :  { %v3363_v19 = vld [vmem:[#allocation3 + $0x218] sm:$0xff]  ;;  %3299 = vst [vmem:[#allocation3 + $0x231] sm:$0xff] %v3234_v15  ;;  %v3171_v46 = vadd.f32 %v9900_v7, %v3100_v0  ;;  %v2948_v2 = vadd.f32 %v9761_v18, %v2562_v36  ;;  %v2564_v25 = vpop.f32.mrb[87].mxu0  ;;  %6890 = vmatprep.mubr.f32.mxu0 %v3871_v54 }
 0x51a   :  { %4313 = vmatmul.mubr.f32.gmra.mrb[146].mxu1 %v3363_v19  ;;  %6891 = vmatmul.mubr.f32.gmra.mrb[164].mxu0 %v3872_v3 }
 0x51b   :  { %4317 = vmatprep.mubr.f32.mxu1 %v3233_v4  ;;  %v3235_v23 = vmax.f32 %v3171_v46, 0.0  ;;  %v3101_v31 = vmul.f32 %v9894_v51, %v2948_v2 }
 0x51c   :  { %v2567_v38 = vpop.f32.mrb[88].mxu0  ;;  %v3364_v35 = vld [vmem:[#allocation3 + $0x228] sm:$0xff] }
 0x51d   :  { %3300 = vst [vmem:[#allocation3 + $0x241] sm:$0xff] %v3235_v23  ;;  %v3172_v63 = vadd.f32 %v9900_v7, %v3101_v31  ;;  %v2953_v16 = vadd.f32 %v9776_v29, %v2567_v38  ;;  %v2569_v53 = vpop.f32.mrb[89].mxu0 }
 0x51e   :  { %4318 = vmatmul.mubr.f32.gmra.mrb[148].mxu1 %v3364_v35 }
 0x51f   :  { %4322 = vmatprep.mubr.f32.mxu1 %v3234_v15  ;;  %v3236_v24 = vmax.f32 %v3172_v63, 0.0  ;;  %v3102_v18 = vmul.f32 %v9894_v51, %v2953_v16 }
 0x520   :  { %v2572_v8 = vpop.f32.mrb[90].mxu0  ;;  %v3873_v55 = vld [vmem:[#allocation3 + $0x22a] sm:$0xff]  ;;  %v3874_v17 = vld [vmem:[#allocation3 + $0x232] sm:$0xff] }
 0x521   :  { %v3365_v59 = vld [vmem:[#allocation3 + $0x230] sm:$0xff]  ;;  %3301 = vst [vmem:[#allocation3 + $0x249] sm:$0xff] %v3236_v24  ;;  %v3173_v43 = vadd.f32 %v9900_v7, %v3102_v18  ;;  %v2958_v49 = vadd.f32 %v9773_v22, %v2572_v8  ;;  %v2574_v62 = vpop.f32.mrb[91].mxu0  ;;  %6893 = vmatprep.mubr.f32.mxu0 %v3873_v55 }
 0x522   :  { %4323 = vmatmul.mubr.f32.gmra.mrb[150].mxu1 %v3365_v59  ;;  %6894 = vmatmul.mubr.f32.gmra.mrb[166].mxu0 %v3874_v17 }
 0x523   :  { %4327 = vmatprep.mubr.f32.mxu1 %v3235_v23  ;;  %v3237_v29 = vmax.f32 %v3173_v43, 0.0  ;;  %v3103_v1 = vmul.f32 %v9894_v51, %v2958_v49 }
 0x524   :  { %v2577_v20 = vpop.f32.mrb[92].mxu0  ;;  %v3366_v21 = vld [vmem:[#allocation3 + $0x240] sm:$0xff] }
 0x525   :  { %3302 = vst [vmem:[#allocation3 + $0x259] sm:$0xff] %v3237_v29  ;;  %v3174_v33 = vadd.f32 %v9900_v7, %v3103_v1  ;;  %v2963_v37 = vadd.f32 %v9786_v40, %v2577_v20  ;;  %v2579_v10 = vpop.f32.mrb[93].mxu0 }
 0x526   :  { %4328 = vmatmul.mubr.f32.gmra.mrb[152].mxu1 %v3366_v21 }
 0x527   :  { %4332 = vmatprep.mubr.f32.mxu1 %v3236_v24  ;;  %v3238_v41 = vmax.f32 %v3174_v33, 0.0  ;;  %v3104_v22 = vmul.f32 %v9894_v51, %v2963_v37 }
 0x528   :  { %v2582_v4 = vpop.f32.mrb[94].mxu0  ;;  %v3875_v13 = vld [vmem:[#allocation3 + $0x242] sm:$0xff]  ;;  %v3876_v56 = vld [vmem:[#allocation3 + $0x24a] sm:$0xff] }
 0x529   :  { %v3367_v28 = vld [vmem:[#allocation3 + $0x248] sm:$0xff]  ;;  %3303 = vst [vmem:[#allocation3 + $0x261] sm:$0xff] %v3238_v41  ;;  %v3175_v11 = vadd.f32 %v9900_v7, %v3104_v22  ;;  %v2968_v48 = vadd.f32 %v9783_v14, %v2582_v4  ;;  %v2584_v42 = vpop.f32.mrb[95].mxu0  ;;  %6896 = vmatprep.mubr.f32.mxu0 %v3875_v13 }
 0x52a   :  { %4333 = vmatmul.mubr.f32.gmra.mrb[154].mxu1 %v3367_v28  ;;  %6897 = vmatmul.mubr.f32.gmra.mrb[168].mxu0 %v3876_v56 }
 0x52b   :  { %4337 = vmatprep.mubr.f32.mxu1 %v3237_v29  ;;  %v3239_v40 = vmax.f32 %v3175_v11, 0.0  ;;  %v3105_v15 = vmul.f32 %v9894_v51, %v2968_v48 }
 0x52c   :  { %v2587_v0 = vpop.f32.mrb[96].mxu0  ;;  %v3368_v36 = vld [vmem:[#allocation3 + $0x258] sm:$0xff] }
 0x52d   :  { %3304 = vst [vmem:[#allocation3 + $0x271] sm:$0xff] %v3239_v40  ;;  %v3176_v54 = vadd.f32 %v9900_v7, %v3105_v15  ;;  %v2973_v19 = vadd.f32 %v9794_v27, %v2587_v0  ;;  %v2589_v3 = vpop.f32.mrb[97].mxu0 }
 0x52e   :  { %4338 = vmatmul.mubr.f32.gmra.mrb[156].mxu1 %v3368_v36 }
 0x52f   :  { %4342 = vmatprep.mubr.f32.mxu1 %v3238_v41  ;;  %v3240_v46 = vmax.f32 %v3176_v54, 0.0  ;;  %v3106_v14 = vmul.f32 %v9894_v51, %v2973_v19 }
 0x530   :  { %v2592_v2 = vpop.f32.mrb[98].mxu0  ;;  %v3877_v25 = vld [vmem:[#allocation3 + $0x25a] sm:$0xff]  ;;  %v3878_v31 = vld [vmem:[#allocation3 + $0x262] sm:$0xff] }
 0x531   :  { %v9941_v23 = vld [vmem:[#allocation3 + $0x260] sm:$0xff]  ;;  %3305 = vst [vmem:[#allocation3 + $0x279] sm:$0xff] %v3240_v46  ;;  %v3177_v38 = vadd.f32 %v9900_v7, %v3106_v14  ;;  %v2978_v35 = vadd.f32 %v9792_v32, %v2592_v2  ;;  %v2594_v63 = vpop.f32.mrb[99].mxu0  ;;  %6899 = vmatprep.mubr.f32.mxu0 %v3877_v25 }
 0x532   :  { %4343 = vmatmul.mubr.f32.gmra.mrb[158].mxu1 %v9941_v23  ;;  %6900 = vmatmul.mubr.f32.gmra.mrb[170].mxu0 %v3878_v31 }
 0x533   :  { %4347 = vmatprep.mubr.f32.mxu1 %v3239_v40  ;;  %v3241_v27 = vmax.f32 %v3177_v38, 0.0  ;;  %v3107_v16 = vmul.f32 %v9894_v51, %v2978_v35 }
 0x534   :  { %v2597_v53 = vpop.f32.mrb[100].mxu0  ;;  %v9947_v24 = vld [vmem:[#allocation3 + $0x270] sm:$0xff] }
 0x535   :  { %3306 = vst [vmem:[#allocation3 + $0x289] sm:$0xff] %v3241_v27  ;;  %v3178_v18 = vadd.f32 %v9900_v7, %v3107_v16  ;;  %v2983_v8 = vadd.f32 %v9801_v45, %v2597_v53  ;;  %v2599_v55 = vpop.f32.mrb[101].mxu0 }
 0x536   :  { %4348 = vmatmul.mubr.f32.gmra.mrb[160].mxu1 %v9947_v24 }
 0x537   :  { %4352 = vmatprep.mubr.f32.mxu1 %v3240_v46  ;;  %v3242_v32 = vmax.f32 %v3178_v18, 0.0  ;;  %v3108_v59 = vmul.f32 %v9894_v51, %v2983_v8 }
 0x538   :  { %v2602_v17 = vpop.f32.mrb[102].mxu0  ;;  %v9953_v43 = vld [vmem:[#allocation3 + $0x272] sm:$0xff]  ;;  %v9957_v62 = vld [vmem:[#allocation3 + $0x27a] sm:$0xff] }
 0x539   :  { %v9955_v49 = vld [vmem:[#allocation3 + $0x278] sm:$0xff]  ;;  %3307 = vst [vmem:[#allocation3 + $0x291] sm:$0xff] %v3242_v32  ;;  %v3179_v29 = vadd.f32 %v9900_v7, %v3108_v59  ;;  %v2988_v1 = vadd.f32 %v9799_v6, %v2602_v17  ;;  %v2604_v45 = vpop.f32.mrb[103].mxu0  ;;  %6902 = vmatprep.mubr.f32.mxu0 %v9953_v43 }
 0x53a   :  { %4353 = vmatmul.mubr.f32.gmra.mrb[162].mxu1 %v9955_v49  ;;  %6903 = vmatmul.mubr.f32.gmra.mrb[172].mxu0 %v9957_v62 }
 0x53b   :  { %4357 = vmatprep.mubr.f32.mxu1 %v3241_v27  ;;  %v3243_v20 = vmax.f32 %v3179_v29, 0.0  ;;  %v3109_v21 = vmul.f32 %v9894_v51, %v2988_v1 }
 0x53c   :  { %v2607_v33 = vpop.f32.mrb[104].mxu0  ;;  %v9965_v37 = vld [vmem:[#allocation3 + $0x288] sm:$0xff] }
 0x53d   :  { %3308 = vst [vmem:[#allocation3 + $0x2a1] sm:$0xff] %v3243_v20  ;;  %v3180_v10 = vadd.f32 %v9900_v7, %v3109_v21  ;;  %v2993_v41 = vadd.f32 %v9808_v30, %v2607_v33  ;;  %v2609_v6 = vpop.f32.mrb[105].mxu0 }
 0x53e   :  { %4358 = vmatmul.mubr.f32.gmra.mrb[164].mxu1 %v9965_v37 }
 0x53f   :  { %4362 = vmatprep.mubr.f32.mxu1 %v3242_v32  ;;  %v3244_v22 = vmax.f32 %v3180_v10, 0.0  ;;  %v3110_v4 = vmul.f32 %v9894_v51, %v2993_v41 }
 0x540   :  { %v2612_v13 = vpop.f32.mrb[106].mxu0  ;;  %v9971_v28 = vld [vmem:[#allocation3 + $0x28a] sm:$0xff]  ;;  %v9975_v11 = vld [vmem:[#allocation3 + $0x292] sm:$0xff] }
 0x541   :  { %v9973_v56 = vld [vmem:[#allocation3 + $0x290] sm:$0xff]  ;;  %3309 = vst [vmem:[#allocation3 + $0x2a9] sm:$0xff] %v3244_v22  ;;  %v3181_v48 = vadd.f32 %v9900_v7, %v3110_v4  ;;  %v2998_v42 = vadd.f32 %v9806_v58, %v2612_v13  ;;  %v2614_v30 = vpop.f32.mrb[107].mxu0  ;;  %6905 = vmatprep.mubr.f32.mxu0 %v9971_v28 }
 0x542   :  { %4363 = vmatmul.mubr.f32.gmra.mrb[166].mxu1 %v9973_v56  ;;  %6906 = vmatmul.mubr.f32.gmra.mrb[174].mxu0 %v9975_v11 }
 0x543   :  { %4367 = vmatprep.mubr.f32.mxu1 %v3243_v20  ;;  %v3245_v40 = vmax.f32 %v3181_v48, 0.0  ;;  %v3111_v15 = vmul.f32 %v9894_v51, %v2998_v42 }
 0x544   :  { %v2617_v0 = vpop.f32.mrb[108].mxu0  ;;  %v9983_v36 = vld [vmem:[#allocation3 + $0x2a0] sm:$0xff] }
 0x545   :  { %3310 = vst [vmem:[#allocation3 + $0x2b9] sm:$0xff] %v3245_v40  ;;  %v3182_v54 = vadd.f32 %v9900_v7, %v3111_v15  ;;  %v3003_v19 = vadd.f32 %v9816_v44, %v2617_v0  ;;  %v2619_v58 = vpop.f32.mrb[109].mxu0 }
 0x546   :  { %4368 = vmatmul.mubr.f32.gmra.mrb[168].mxu1 %v9983_v36 }
 0x547   :  { %4372 = vmatprep.mubr.f32.mxu1 %v3244_v22  ;;  %v3246_v3 = vmax.f32 %v3182_v54, 0.0  ;;  %v3112_v46 = vmul.f32 %v9894_v51, %v3003_v19 }
 0x548   :  { %v2622_v14 = vpop.f32.mrb[110].mxu0  ;;  %v9989_v2 = vld [vmem:[#allocation3 + $0x2a2] sm:$0xff]  ;;  %v9993_v31 = vld [vmem:[#allocation3 + $0x2aa] sm:$0xff] }
 0x549   :  { %v9991_v25 = vld [vmem:[#allocation3 + $0x2a8] sm:$0xff]  ;;  %3311 = vst [vmem:[#allocation3 + $0x2c1] sm:$0xff] %v3246_v3  ;;  %v3183_v38 = vadd.f32 %v9900_v7, %v3112_v46  ;;  %v3008_v35 = vadd.f32 %v9813_v9, %v2622_v14  ;;  %v2624_v44 = vpop.f32.mrb[111].mxu0  ;;  %6908 = vmatprep.mubr.f32.mxu0 %v9989_v2 }
 0x54a   :  { %4373 = vmatmul.mubr.f32.gmra.mrb[170].mxu1 %v9991_v25  ;;  %6909 = vmatmul.mubr.f32.gmra.mrb[176].mxu0 %v9993_v31 }
 0x54b   :  { %4377 = vmatprep.mubr.f32.mxu1 %v3245_v40  ;;  %v3247_v63 = vmax.f32 %v3183_v38, 0.0  ;;  %v3113_v27 = vmul.f32 %v9894_v51, %v3008_v35 }
 0x54c   :  { %v2627_v16 = vpop.f32.mrb[112].mxu0  ;;  %v10001_v53 = vld [vmem:[#allocation3 + $0x2b8] sm:$0xff] }
 0x54d   :  { %3312 = vst [vmem:[#allocation3 + $0x2d1] sm:$0xff] %v3247_v63  ;;  %v3184_v18 = vadd.f32 %v9900_v7, %v3113_v27  ;;  %v3013_v8 = vadd.f32 %v9823_v57, %v2627_v16  ;;  %v2629_v9 = vpop.f32.mrb[113].mxu0 }
 0x54e   :  { %4378 = vmatmul.mubr.f32.gmra.mrb[172].mxu1 %v10001_v53 }
 0x54f   :  { %4382 = vmatprep.mubr.f32.mxu1 %v3246_v3  ;;  %v3248_v55 = vmax.f32 %v3184_v18, 0.0  ;;  %v3114_v32 = vmul.f32 %v9894_v51, %v3013_v8 }
 0x550   :  { %v2632_v59 = vpop.f32.mrb[114].mxu0  ;;  %v10007_v17 = vld [vmem:[#allocation3 + $0x2ba] sm:$0xff]  ;;  %v10011_v1 = vld [vmem:[#allocation3 + $0x2c2] sm:$0xff] }
 0x551   :  { %v10009_v29 = vld [vmem:[#allocation3 + $0x2c0] sm:$0xff]  ;;  %3313 = vst [vmem:[#allocation3 + $0x2d9] sm:$0xff] %v3248_v55  ;;  %v3185_v45 = vadd.f32 %v9900_v7, %v3114_v32  ;;  %v3018_v20 = vadd.f32 %v9821_v5, %v2632_v59  ;;  %v2634_v57 = vpop.f32.mrb[115].mxu0  ;;  %6911 = vmatprep.mubr.f32.mxu0 %v10007_v17 }
 0x552   :  { %4383 = vmatmul.mubr.f32.gmra.mrb[174].mxu1 %v10009_v29  ;;  %6912 = vmatmul.mubr.f32.gmra.mrb[178].mxu0 %v10011_v1 }
 0x553   :  { %4387 = vmatprep.mubr.f32.mxu1 %v3247_v63  ;;  %v3249_v21 = vmax.f32 %v3185_v45, 0.0  ;;  %v3115_v33 = vmul.f32 %v9894_v51, %v3018_v20 }
 0x554   :  { %v2637_v10 = vpop.f32.mrb[116].mxu0  ;;  %v10019_v41 = vld [vmem:[#allocation3 + $0x2d0] sm:$0xff] }
 0x555   :  { %3314 = vst [vmem:[#allocation3 + $0x2e9] sm:$0xff] %v3249_v21  ;;  %v3186_v6 = vadd.f32 %v9900_v7, %v3115_v33  ;;  %v3023_v22 = vadd.f32 %v9830_v61, %v2637_v10  ;;  %v2639_v5 = vpop.f32.mrb[117].mxu0 }
 0x556   :  { %4388 = vmatmul.mubr.f32.gmra.mrb[176].mxu1 %v10019_v41 }
 0x557   :  { %4392 = vmatprep.mubr.f32.mxu1 %v3248_v55  ;;  %v3250_v4 = vmax.f32 %v3186_v6, 0.0  ;;  %v3116_v13 = vmul.f32 %v9894_v51, %v3023_v22 }
 0x558   :  { %v2642_v48 = vpop.f32.mrb[118].mxu0  ;;  %v10025_v42 = vld [vmem:[#allocation3 + $0x2d2] sm:$0xff]  ;;  %v10029_v40 = vld [vmem:[#allocation3 + $0x2da] sm:$0xff] }
 0x559   :  { %v10027_v30 = vld [vmem:[#allocation3 + $0x2d8] sm:$0xff]  ;;  %3315 = vst [vmem:[#allocation3 + $0x2f1] sm:$0xff] %v3250_v4  ;;  %v3187_v15 = vadd.f32 %v9900_v7, %v3116_v13  ;;  %v3028_v0 = vadd.f32 %v9828_v60, %v2642_v48  ;;  %v2644_v61 = vpop.f32.mrb[119].mxu0  ;;  %6914 = vmatprep.mubr.f32.mxu0 %v10025_v42 }
 0x55a   :  { %4393 = vmatmul.mubr.f32.gmra.mrb[178].mxu1 %v10027_v30  ;;  %6915 = vmatmul.mubr.f32.gmra.mrb[180].mxu0 %v10029_v40  ;;  %v3963_v61 = vld [vmem:[#allocation7 + $0x200] sm:$0xff] }
 0x55b   :  { %4397 = vmatprep.mubr.f32.mxu1 %v3249_v21  ;;  %v3251_v54 = vmax.f32 %v3187_v15, 0.0  ;;  %v3117_v19 = vmul.f32 %v9894_v51, %v3028_v0 }
 0x55c   :  { %v2647_v58 = vpop.f32.mrb[120].mxu0  ;;  %v10037_v3 = vld [vmem:[#allocation3 + $0x2e8] sm:$0xff] }
 0x55d   :  { %3316 = vst [vmem:[#allocation3 + $0x301] sm:$0xff] %v3251_v54  ;;  %v3188_v46 = vadd.f32 %v9900_v7, %v3117_v19  ;;  %v3033_v14 = vadd.f32 %v9837_v34, %v2647_v58  ;;  %v2649_v60 = vpop.f32.mrb[121].mxu0 }
 0x55e   :  { %4398 = vmatmul.mubr.f32.gmra.mrb[180].mxu1 %v10037_v3  ;;  %v3965_v60 = vld [vmem:[#allocation7 + $0x210] sm:$0xff] }
 0x55f   :  { %4402 = vmatprep.mubr.f32.mxu1 %v3250_v4  ;;  %v3252_v38 = vmax.f32 %v3188_v46, 0.0  ;;  %v3118_v35 = vmul.f32 %v9894_v51, %v3033_v14  ;;  %v3514_v46 = vld [vmem:[#allocation3 + $0x18] sm:$0xff] }
 0x560   :  { %v2652_v44 = vpop.f32.mrb[122].mxu0  ;;  %v10043_v63 = vld [vmem:[#allocation3 + $0x2ea] sm:$0xff]  ;;  %v10047_v16 = vld [vmem:[#allocation3 + $0x2f2] sm:$0xff] }
 0x561   :  { %v10045_v27 = vld [vmem:[#allocation3 + $0x2f0] sm:$0xff]  ;;  %3317 = vst [vmem:[#allocation3 + $0x309] sm:$0xff] %v3252_v38  ;;  %v3189_v18 = vadd.f32 %v9900_v7, %v3118_v35  ;;  %v3038_v8 = vadd.f32 %v9835_v26, %v2652_v44  ;;  %v2654_v34 = vpop.f32.mrb[123].mxu0  ;;  %6917 = vmatprep.mubr.f32.mxu0 %v10043_v63 }
 0x562   :  { %4403 = vmatmul.mubr.f32.gmra.mrb[182].mxu1 %v10045_v27  ;;  %6918 = vmatmul.mubr.f32.gmra.mrb[182].mxu0 %v10047_v16 }
 0x563   :  { %4407 = vmatprep.mubr.f32.mxu1 %v3251_v54  ;;  %v3253_v9 = vmax.f32 %v3189_v18, 0.0  ;;  %v3119_v55 = vmul.f32 %v9894_v51, %v3038_v8  ;;  %v3964_v54 = vld [vmem:[#allocation7 + $0x208] sm:$0xff]  ;;  %v3515_v18 = vld [vmem:[#allocation3 + $0x20] sm:$0xff] }
 0x564   :  { %v2657_v32 = vpop.f32.mrb[124].mxu0  ;;  %v10055_v59 = vld [vmem:[#allocation3 + $0x300] sm:$0xff]  ;;  %v7253_v14 = vpack.c.bf16 %v3964_v54, %v3963_v61  ;;  %v3451_v8 = vld [vmem:[#allocation3 + $0xa] sm:$0xff] }
 0x565   :  { %3318 = vst [vmem:[#allocation3 + $0x319] sm:$0xff] %v3253_v9  ;;  %v3190_v45 = vadd.f32 %v9900_v7, %v3119_v55  ;;  %v3043_v20 = vadd.f32 %v9845_v39, %v2657_v32  ;;  %v2659_v26 = vpop.f32.mrb[125].mxu0  ;;  %v3968_v55 = vld [vmem:[#allocation7 + $0x228] sm:$0xff] }
 0x566   :  { %4408 = vmatmul.mubr.f32.gmra.mrb[184].mxu1 %v10055_v59  ;;  %v3518_v61 = vld [vmem:[#allocation3 + $0x48] sm:$0xff] }
 0x567   :  { %4412 = vmatprep.mubr.f32.mxu1 %v3252_v38  ;;  %v3254_v57 = vmax.f32 %v3190_v45, 0.0  ;;  %v3120_v21 = vmul.f32 %v9894_v51, %v3043_v20  ;;  %v3966_v38 = vld [vmem:[#allocation7 + $0x218] sm:$0xff]  ;;  %v3516_v20 = vld [vmem:[#allocation3 + $0x30] sm:$0xff] }
 0x568   :  { %v2662_v33 = vpop.f32.mrb[126].mxu0  ;;  %v10061_v10 = vld [vmem:[#allocation3 + $0x308] sm:$0xff]  ;;  %v7256_v34 = vpack.c.bf16 %v3966_v38, %v3965_v60  ;;  %v3519_v38 = vld [vmem:[#allocation3 + $0x50] sm:$0xff] }
 0x569   :  { %3319 = vst [vmem:[#allocation3 + $0x321] sm:$0xff] %v3254_v57  ;;  %v3191_v6 = vadd.f32 %v9900_v7, %v3120_v21  ;;  %v3048_v22 = vadd.f32 %v9842_v50, %v2662_v33  ;;  %v2664_v5 = vpop.f32.mrb[127].mxu0  ;;  %v3970_v21 = vld [vmem:[#allocation7 + $0x238] sm:$0xff] }
 0x56a   :  { %4413 = vmatmul.mubr.f32.gmra.mrb[186].mxu1 %v10061_v10  ;;  %v10092_v33 = vld [vmem:[#allocation3 + $0x1a] sm:$0xff] }
 0x56b   :  { %4417 = vmatprep.mubr.f32.mxu1 %v3253_v9  ;;  %v3255_v39 = vmax.f32 %v3191_v6, 0.0  ;;  %v3121_v4 = vmul.f32 %v9894_v51, %v3048_v22  ;;  %v3967_v9 = vld [vmem:[#allocation7 + $0x220] sm:$0xff]  ;;  %v3517_v22 = vld [vmem:[#allocation3 + $0x38] sm:$0xff] }
 0x56c   :  { %v10067_v13 = vpop.f32.mrb[128].mxu0  ;;  %v10069_v48 = vld [vmem:[#allocation3 + $0x318] sm:$0xff]  ;;  %v7259_v26 = vpack.c.bf16 %v3968_v55, %v3967_v9  ;;  %v3976_v9 = vld [vmem:[#allocation7 + $0x268] sm:$0xff] }
 0x56d   :  { %11039 = vst [vmem:[#allocation21_spill] sm:$0xff] %v10067_v13  ;;  %3320 = vst [vmem:[#allocation3 + $0x331] sm:$0xff] %v3255_v39  ;;  %v3192_v15 = vadd.f32 %v9900_v7, %v3121_v4  ;;  %v10072_v0 = vpop.f32.mrb[129].mxu0  ;;  %v3450_v7 = vld [vmem:[#allocation3 + $0x2] sm:$0xff]  ;;  %v10112_v55 = vld [vmem:[#allocation3 + $0x3a] sm:$0xff] }
 0x56e   :  { %11040 = vst [vmem:[#allocation22_spill] sm:$0xff] %v10072_v0  ;;  %4418 = vmatmul.mubr.f32.gmra.mrb[188].mxu1 %v10069_v48  ;;  %v3971_v4 = vld [vmem:[#allocation7 + $0x240] sm:$0xff]  ;;  %v3992_v13 = vld [vmem:[#allocation7 + $0x2e8] sm:$0xff]  ;;  %v3540_v0 = vld [vmem:[#allocation3 + $0x150] sm:$0xff] }
 0x56f   :  { %4422 = vmatprep.mubr.f32.mxu1 %v3254_v57  ;;  %v3256_v50 = vmax.f32 %v3192_v15, 0.0  ;;  %v3969_v57 = vld [vmem:[#allocation7 + $0x230] sm:$0xff]  ;;  %v3972_v15 = vld [vmem:[#allocation7 + $0x248] sm:$0xff] }
 0x570   :  { %v10075_v19 = vpop.f32.mrb[130].mxu0  ;;  %v10077_v58 = vld [vmem:[#allocation3 + $0x320] sm:$0xff]  ;;  %v7262_v39 = vpack.c.bf16 %v3970_v21, %v3969_v57  ;;  %v7265_v54 = vpack.c.bf16 %v3972_v15, %v3971_v4  ;;  %v3977_v57 = vld [vmem:[#allocation7 + $0x270] sm:$0xff]  ;;  %v3978_v21 = vld [vmem:[#allocation7 + $0x278] sm:$0xff] }
 0x571   :  { %11041 = vst [vmem:[#allocation13_spill] sm:$0xff] %v10075_v19  ;;  %3321 = vst [vmem:[#allocation3 + $0x339] sm:$0xff] %v3256_v50  ;;  %v10079_v51 = vpop.f32.mrb[131].mxu0  ;;  %v10100_v50 = vld [vmem:[#allocation3 + $0x22] sm:$0xff] }
 0x572   :  { %11042 = vst [vmem:[#allocation14_spill] sm:$0xff] %v10079_v51  ;;  %4423 = vmatmul.mubr.f32.gmra.mrb[190].mxu1 %v10077_v58  ;;  %v3521_v4 = vld [vmem:[#allocation3 + $0x68] sm:$0xff]  ;;  %v3991_v51 = vld [vmem:[#allocation7 + $0x2e0] sm:$0xff] }
 0x573   :  { %4492 = vmatprep.mubr.f32.mxu1 %v3514_v46  ;;  %v3973_v46 = vld [vmem:[#allocation7 + $0x250] sm:$0xff] }
 0x574   :  { %v10082_v35 = vpop.f32.mrb[132].mxu0 }
 0x575   :  { %11043 = vst [vmem:[#allocation25_spill] sm:$0xff] %v10082_v35  ;;  %v10084_v44 = vpop.f32.mrb[133].mxu0  ;;  %v3990_v35 = vld [vmem:[#allocation7 + $0x2d8] sm:$0xff] }
 0x576   :  { %11044 = vst [vmem:[#allocation26_spill] sm:$0xff] %v10084_v44  ;;  %4493 = vmatmul.mubr.f32.vlgmr.msra.gmra.mrb[64].mxu1 %v3450_v7  ;;  %v3974_v7 = vld [vmem:[#allocation7 + $0x258] sm:$0xff]  ;;  %v3536_v44 = vld [vmem:[#allocation3 + $0x120] sm:$0xff] }
 0x577   :  { %4497 = vmatprep.mubr.f32.mxu1 %v3515_v18  ;;  %7254 = vmatpush1.bf16.msra.mxu1 %v7253_v14  ;;  %v10104_v14 = vld [vmem:[#allocation3 + $0x32] sm:$0xff] }
 0x578   :  { %7255 = vmatprep.subr.bf16.mxu1 %v10998_v12  ;;  %v10087_v32 = vpop.f32.mrb[134].mxu0 }
 0x579   :  { %11045 = vst [vmem:[#allocation27_spill] sm:$0xff] %v10087_v32  ;;  %v10089_v45 = vpop.f32.mrb[135].mxu0  ;;  %v3535_v32 = vld [vmem:[#allocation3 + $0x110] sm:$0xff] }
 0x57a   :  { %11046 = vst [vmem:[#allocation28_spill] sm:$0xff] %v10089_v45  ;;  %4498 = vmatmul.mubr.f32.gmra.mrb[66].mxu1 %v3451_v8  ;;  %v7268_v8 = vpack.c.bf16 %v3974_v7, %v3973_v46  ;;  %v3980_v46 = vld [vmem:[#allocation7 + $0x288] sm:$0xff]  ;;  %v10124_v7 = vld [vmem:[#allocation3 + $0x52] sm:$0xff] }
 0x57b   :  { %4502 = vmatprep.mubr.f32.mxu1 %v3516_v20  ;;  %7257 = vmatpush1.bf16.msra.mxu1 %v7256_v34  ;;  %v3975_v34 = vld [vmem:[#allocation7 + $0x260] sm:$0xff]  ;;  %v3989_v45 = vld [vmem:[#allocation7 + $0x2d0] sm:$0xff] }
 0x57c   :  { %7258 = vmatprep.subr.bf16.mxu1 %v10998_v12  ;;  %v3520_v20 = vld [vmem:[#allocation3 + $0x60] sm:$0xff] }
 0x57d   :  { %v10094_v6 = vpop.f32.mrb[136].mxu0 }
 0x57e   :  { %11047 = vst [vmem:[#allocation29_spill] sm:$0xff] %v10094_v6  ;;  %4503 = vmatmul.mubr.f32.gmra.mrb[68].mxu1 %v10092_v33  ;;  %v10097_v5 = vpop.f32.mrb[137].mxu0  ;;  %v3988_v6 = vld [vmem:[#allocation7 + $0x2c8] sm:$0xff] }
 0x57f   :  { %11048 = vst [vmem:[#allocation30_spill] sm:$0xff] %v10097_v5  ;;  %4507 = vmatprep.mubr.f32.mxu1 %v3517_v22  ;;  %7260 = vmatpush1.bf16.msra.mxu1 %v7259_v26  ;;  %v7271_v26 = vpack.c.bf16 %v3976_v9, %v3975_v34  ;;  %v10116_v22 = vld [vmem:[#allocation3 + $0x4a] sm:$0xff]  ;;  %v3982_v9 = vld [vmem:[#allocation7 + $0x298] sm:$0xff] }
 0x580   :  { %7261 = vmatprep.subr.bf16.mxu1 %v10998_v12  ;;  %v3981_v34 = vld [vmem:[#allocation7 + $0x290] sm:$0xff] }
 0x581   :  { %v3532_v5 = vld [vmem:[#allocation3 + $0xf0] sm:$0xff] }
 0x582   :  { %4508 = vmatmul.mubr.f32.gmra.mrb[70].mxu1 %v10100_v50 }
 0x583   :  { %4512 = vmatprep.mubr.f32.mxu1 %v3518_v61  ;;  %7263 = vmatpush1.bf16.msra.mxu1 %v7262_v39  ;;  %v7274_v61 = vpack.c.bf16 %v3978_v21, %v3977_v57  ;;  %v3523_v57 = vld [vmem:[#allocation3 + $0x80] sm:$0xff] }
 0x584   :  { %7264 = vmatprep.subr.bf16.mxu1 %v10998_v12 }
 0x585   :  { %v10106_v60 = vpop.f32.mrb[138].mxu0 }
 0x586   :  { %11049 = vst [vmem:[#allocation31_spill] sm:$0xff] %v10106_v60  ;;  %4513 = vmatmul.mubr.f32.gmra.mrb[72].mxu1 %v10104_v14  ;;  %v10109_v18 = vpop.f32.mrb[139].mxu0  ;;  %v3531_v60 = vld [vmem:[#allocation3 + $0xe0] sm:$0xff] }
 0x587   :  { %11050 = vst [vmem:[#allocation32_spill] sm:$0xff] %v10109_v18  ;;  %4517 = vmatprep.mubr.f32.mxu1 %v3519_v38  ;;  %7266 = vmatpush1.bf16.msra.mxu1 %v7265_v54  ;;  %v3979_v54 = vld [vmem:[#allocation7 + $0x280] sm:$0xff]  ;;  %v3522_v38 = vld [vmem:[#allocation3 + $0x78] sm:$0xff] }
 0x588   :  { %7267 = vmatprep.subr.bf16.mxu1 %v10998_v12  ;;  %v3987_v18 = vld [vmem:[#allocation7 + $0x2c0] sm:$0xff] }
 0x58a   :  { %4518 = vmatmul.mubr.f32.gmra.mrb[74].mxu1 %v10112_v55 }
 0x58b   :  { %4522 = vmatprep.mubr.f32.mxu1 %v3520_v20  ;;  %7269 = vmatpush1.bf16.msra.mxu1 %v7268_v8  ;;  %v7277_v8 = vpack.c.bf16 %v3980_v46, %v3979_v54  ;;  %v10128_v20 = vld [vmem:[#allocation3 + $0x62] sm:$0xff]  ;;  %v10136_v46 = vld [vmem:[#allocation3 + $0x6a] sm:$0xff] }
 0x58c   :  { %7270 = vmatprep.subr.bf16.mxu1 %v10998_v12  ;;  %v3984_v54 = vld [vmem:[#allocation7 + $0x2a8] sm:$0xff] }
 0x58d   :  { %v10118_v39 = vpop.f32.mrb[140].mxu0 }
 0x58e   :  { %11051 = vst [vmem:[#allocation33_spill] sm:$0xff] %v10118_v39  ;;  %4523 = vmatmul.mubr.f32.gmra.mrb[76].mxu1 %v10116_v22  ;;  %v10121_v15 = vpop.f32.mrb[141].mxu0  ;;  %v10140_v39 = vld [vmem:[#allocation3 + $0x7a] sm:$0xff] }
 0x58f   :  { %11052 = vst [vmem:[#allocation34_spill] sm:$0xff] %v10121_v15  ;;  %4527 = vmatprep.mubr.f32.mxu1 %v3521_v4  ;;  %7272 = vmatpush1.bf16.msra.mxu1 %v7271_v26  ;;  %v7280_v4 = vpack.c.bf16 %v3982_v9, %v3981_v34  ;;  %v10148_v9 = vld [vmem:[#allocation3 + $0x82] sm:$0xff] }
 0x590   :  { %7273 = vmatprep.subr.bf16.mxu1 %v10998_v12  ;;  %v3528_v15 = vld [vmem:[#allocation3 + $0xc0] sm:$0xff] }
 0x592   :  { %4528 = vmatmul.mubr.f32.gmra.mrb[78].mxu1 %v10124_v7 }
 0x593   :  { %4532 = vmatprep.mubr.f32.mxu1 %v3522_v38  ;;  %7275 = vmatpush1.bf16.msra.mxu1 %v7274_v61  ;;  %v3983_v61 = vld [vmem:[#allocation7 + $0x2a0] sm:$0xff]  ;;  %v3524_v38 = vld [vmem:[#allocation3 + $0x90] sm:$0xff] }
 0x594   :  { %7276 = vmatprep.subr.bf16.mxu1 %v10998_v12 }
 0x595   :  { %v10130_v26 = vpop.f32.mrb[142].mxu0 }
 0x596   :  { %11053 = vst [vmem:[#allocation35_spill] sm:$0xff] %v10130_v26  ;;  %4533 = vmatmul.mubr.f32.gmra.mrb[80].mxu1 %v10128_v20  ;;  %v10133_v21 = vpop.f32.mrb[143].mxu0  ;;  %v7283_v26 = vpack.c.bf16 %v3984_v54, %v3983_v61  ;;  %v3527_v54 = vld [vmem:[#allocation3 + $0xb0] sm:$0xff] }
 0x597   :  { %11054 = vst [vmem:[#allocation36_spill] sm:$0xff] %v10133_v21  ;;  %4537 = vmatprep.mubr.f32.mxu1 %v3523_v57  ;;  %7278 = vmatpush1.bf16.msra.mxu1 %v7277_v8  ;;  %v3525_v8 = vld [vmem:[#allocation3 + $0x98] sm:$0xff]  ;;  %v3526_v57 = vld [vmem:[#allocation3 + $0xa8] sm:$0xff] }
 0x598   :  { %7279 = vmatprep.subr.bf16.mxu1 %v10998_v12 }
 0x59a   :  { %4538 = vmatmul.mubr.f32.gmra.mrb[82].mxu1 %v10136_v46 }
 0x59b   :  { %4542 = vmatprep.mubr.f32.mxu1 %v3524_v38  ;;  %7281 = vmatpush1.bf16.msra.mxu1 %v7280_v4  ;;  %v10151_v4 = vld [vmem:[#allocation3 + $0x92] sm:$0xff] }
 0x59c   :  { %7282 = vmatprep.subr.bf16.mxu1 %v10998_v12 }
 0x59d   :  { %v10142_v21 = vpop.f32.mrb[144].mxu0 }
 0x59e   :  { %11055 = vst [vmem:[#allocation37_spill] sm:$0xff] %v10142_v21  ;;  %4543 = vmatmul.mubr.f32.gmra.mrb[84].mxu1 %v10140_v39  ;;  %v10145_v34 = vpop.f32.mrb[145].mxu0 }
 0x59f   :  { %11056 = vst [vmem:[#allocation38_spill] sm:$0xff] %v10145_v34  ;;  %4547 = vmatprep.mubr.f32.mxu1 %v3525_v8  ;;  %7284 = vmatpush1.bf16.msra.mxu1 %v7283_v26  ;;  %v3985_v8 = vld [vmem:[#allocation7 + $0x2b0] sm:$0xff]  ;;  %v3986_v26 = vld [vmem:[#allocation7 + $0x2b8] sm:$0xff] }
 0x5a0   :  { %7285 = vmatprep.subr.bf16.mxu1 %v10998_v12  ;;  %v7286_v21 = vpack.c.bf16 %v3986_v26, %v3985_v8  ;;  %v10158_v34 = vld [vmem:[#allocation3 + $0x9a] sm:$0xff]  ;;  %v10169_v8 = vld [vmem:[#allocation3 + $0xb2] sm:$0xff] }
 0x5a1   :  { %v3530_v26 = vld [vmem:[#allocation3 + $0xd8] sm:$0xff] }
 0x5a2   :  { %4548 = vmatmul.mubr.f32.gmra.mrb[86].mxu1 %v10148_v9 }
 0x5a3   :  { %4552 = vmatprep.mubr.f32.mxu1 %v3526_v57  ;;  %7287 = vmatpush1.bf16.msra.mxu1 %v7286_v21  ;;  %v10162_v57 = vld [vmem:[#allocation3 + $0xaa] sm:$0xff] }
 0x5a4   :  { %7288 = vmatprep.subr.bf16.mxu1 %v10998_v12 }
 0x5a5   :  { %v10153_v61 = vpop.f32.mrb[146].mxu0 }
 0x5a6   :  { %11057 = vst [vmem:[#allocation39_spill] sm:$0xff] %v10153_v61  ;;  %4553 = vmatmul.mubr.f32.gmra.mrb[88].mxu1 %v10151_v4  ;;  %v10156_v38 = vpop.f32.mrb[147].mxu0 }
 0x5a7   :  { %11058 = vst [vmem:[#allocation40_spill] sm:$0xff] %v10156_v38  ;;  %4557 = vmatprep.mubr.f32.mxu1 %v3527_v54  ;;  %v3529_v38 = vld [vmem:[#allocation3 + $0xc8] sm:$0xff] }
 0x5aa   :  { %4558 = vmatmul.mubr.f32.gmra.mrb[90].mxu1 %v10158_v34 }
 0x5ab   :  { %4562 = vmatprep.mubr.f32.mxu1 %v3528_v15  ;;  %v10172_v15 = vld [vmem:[#allocation3 + $0xc2] sm:$0xff] }
 0x5ad   :  { %v10164_v61 = vpop.f32.mrb[148].mxu0 }
 0x5ae   :  { %11059 = vst [vmem:[#allocation41_spill] sm:$0xff] %v10164_v61  ;;  %4563 = vmatmul.mubr.f32.gmra.mrb[92].mxu1 %v10162_v57  ;;  %v10167_v54 = vpop.f32.mrb[149].mxu0 }
 0x5af   :  { %11060 = vst [vmem:[#allocation42_spill] sm:$0xff] %v10167_v54  ;;  %4567 = vmatprep.mubr.f32.mxu1 %v3529_v38  ;;  %v7289_v54 = vpack.c.bf16 %v3988_v6, %v3987_v18  ;;  %v10179_v38 = vld [vmem:[#allocation3 + $0xca] sm:$0xff]  ;;  %v10190_v6 = vld [vmem:[#allocation3 + $0xe2] sm:$0xff] }
 0x5b0   :  { %v3534_v18 = vld [vmem:[#allocation3 + $0x108] sm:$0xff] }
 0x5b1   :  { %7290 = vmatpush1.bf16.msra.mxu1 %v7289_v54 }
 0x5b2   :  { %4568 = vmatmul.mubr.f32.gmra.mrb[94].mxu1 %v10169_v8  ;;  %7291 = vmatprep.subr.bf16.mxu1 %v10998_v12 }
 0x5b3   :  { %4572 = vmatprep.mubr.f32.mxu1 %v3530_v26  ;;  %v10183_v26 = vld [vmem:[#allocation3 + $0xda] sm:$0xff] }
 0x5b5   :  { %v10174_v21 = vpop.f32.mrb[150].mxu0 }
 0x5b6   :  { %11061 = vst [vmem:[#allocation43_spill] sm:$0xff] %v10174_v21  ;;  %4573 = vmatmul.mubr.f32.gmra.mrb[96].mxu1 %v10172_v15  ;;  %v10177_v61 = vpop.f32.mrb[151].mxu0 }
 0x5b7   :  { %11062 = vst [vmem:[#allocation44_spill] sm:$0xff] %v10177_v61  ;;  %4577 = vmatprep.mubr.f32.mxu1 %v3531_v60  ;;  %v3533_v61 = vld [vmem:[#allocation3 + $0xf8] sm:$0xff] }
 0x5ba   :  { %4578 = vmatmul.mubr.f32.gmra.mrb[98].mxu1 %v10179_v38 }
 0x5bb   :  { %4582 = vmatprep.mubr.f32.mxu1 %v3532_v5  ;;  %v10193_v5 = vld [vmem:[#allocation3 + $0xf2] sm:$0xff] }
 0x5bd   :  { %v10185_v21 = vpop.f32.mrb[152].mxu0 }
 0x5be   :  { %11063 = vst [vmem:[#allocation45_spill] sm:$0xff] %v10185_v21  ;;  %4583 = vmatmul.mubr.f32.gmra.mrb[100].mxu1 %v10183_v26  ;;  %v10188_v60 = vpop.f32.mrb[153].mxu0 }
 0x5bf   :  { %11064 = vst [vmem:[#allocation46_spill] sm:$0xff] %v10188_v60  ;;  %4587 = vmatprep.mubr.f32.mxu1 %v3533_v61  ;;  %v7292_v60 = vpack.c.bf16 %v3990_v35, %v3989_v45  ;;  %v10200_v61 = vld [vmem:[#allocation3 + $0xfa] sm:$0xff]  ;;  %v10211_v35 = vld [vmem:[#allocation3 + $0x112] sm:$0xff] }
 0x5c0   :  { %v3538_v45 = vld [vmem:[#allocation3 + $0x138] sm:$0xff] }
 0x5c1   :  { %7293 = vmatpush1.bf16.msra.mxu1 %v7292_v60  ;;  %v10218_v60 = vld [vmem:[#allocation3 + $0x122] sm:$0xff] }
 0x5c2   :  { %4588 = vmatmul.mubr.f32.gmra.mrb[102].mxu1 %v10190_v6  ;;  %7294 = vmatprep.subr.bf16.mxu1 %v10998_v12 }
 0x5c3   :  { %4592 = vmatprep.mubr.f32.mxu1 %v3534_v18  ;;  %v10204_v18 = vld [vmem:[#allocation3 + $0x10a] sm:$0xff] }
 0x5c5   :  { %v10195_v54 = vpop.f32.mrb[154].mxu0 }
 0x5c6   :  { %11065 = vst [vmem:[#allocation47_spill] sm:$0xff] %v10195_v54  ;;  %4593 = vmatmul.mubr.f32.gmra.mrb[104].mxu1 %v10193_v5  ;;  %v10198_v21 = vpop.f32.mrb[155].mxu0 }
 0x5c7   :  { %11066 = vst [vmem:[#allocation48_spill] sm:$0xff] %v10198_v21  ;;  %4597 = vmatprep.mubr.f32.mxu1 %v3535_v32  ;;  %v3537_v21 = vld [vmem:[#allocation3 + $0x128] sm:$0xff] }
 0x5ca   :  { %4598 = vmatmul.mubr.f32.gmra.mrb[106].mxu1 %v10200_v61 }
 0x5cb   :  { %4602 = vmatprep.mubr.f32.mxu1 %v3536_v44 }
 0x5cd   :  { %v10206_v54 = vpop.f32.mrb[156].mxu0 }
 0x5ce   :  { %11067 = vst [vmem:[#allocation49_spill] sm:$0xff] %v10206_v54  ;;  %4603 = vmatmul.mubr.f32.gmra.mrb[108].mxu1 %v10204_v18  ;;  %v10209_v32 = vpop.f32.mrb[157].mxu0  ;;  %v3539_v54 = vld [vmem:[#allocation3 + $0x140] sm:$0xff] }
 0x5cf   :  { %11068 = vst [vmem:[#allocation50_spill] sm:$0xff] %v10209_v32  ;;  %4607 = vmatprep.mubr.f32.mxu1 %v3537_v21  ;;  %v7295_v32 = vpack.c.bf16 %v3992_v13, %v3991_v51  ;;  %v10221_v21 = vld [vmem:[#allocation3 + $0x12a] sm:$0xff]  ;;  %v10232_v13 = vld [vmem:[#allocation3 + $0x142] sm:$0xff] }
 0x5d0   :  { %11074 = vst [vmem:[#allocation56_spill] sm:$0xff] %v10232_v13  ;;  %v3542_v51 = vld [vmem:[#allocation3 + $0x168] sm:$0xff] }
 0x5d1   :  { %v10214_v19 = vpop.f32.mrb[158].mxu0  ;;  %7296 = vmatpush1.bf16.msra.mxu1 %v7295_v32 }
 0x5d2   :  { %4608 = vmatmul.mubr.f32.gmra.mrb[110].mxu1 %v10211_v35  ;;  %11069 = vst [vmem:[#allocation51_spill] sm:$0xff] %v10214_v19  ;;  %v10216_v44 = vpop.f32.mrb[159].mxu0  ;;  %7297 = vmatprep.subr.bf16.mxu1 %v10998_v12 }
 0x5d3   :  { %4612 = vmatprep.mubr.f32.mxu1 %v3538_v45  ;;  %11070 = vst [vmem:[#allocation52_spill] sm:$0xff] %v10216_v44  ;;  %v10225_v45 = vld [vmem:[#allocation3 + $0x13a] sm:$0xff] }
 0x5d4   :  { %11071 = vst [vmem:[#allocation53_spill] sm:$0xff] %v10225_v45  ;;  %v3541_v44 = vld [vmem:[#allocation3 + $0x158] sm:$0xff] }
 0x5d6   :  { %4613 = vmatmul.mubr.f32.gmra.mrb[112].mxu1 %v10218_v60 }
 0x5d7   :  { %4617 = vmatprep.mubr.f32.mxu1 %v3539_v54 }
 0x5da   :  { %4618 = vmatmul.mubr.f32.gmra.mrb[114].mxu1 %v10221_v21 }
 0x5db   :  { %4622 = vmatprep.mubr.f32.mxu1 %v3540_v0  ;;  %v10235_v0 = vld [vmem:[#allocation3 + $0x152] sm:$0xff] }
 0x5dc   :  { %11075 = vst [vmem:[#allocation57_spill] sm:$0xff] %v10235_v0 }
 0x5dd   :  { %v10227_v19 = vpop.f32.mrb[160].mxu0 }
 0x5de   :  { %11072 = vst [vmem:[#allocation54_spill] sm:$0xff] %v10227_v19  ;;  %4623 = vmatmul.mubr.f32.gmra.mrb[116].mxu1 %v10225_v45  ;;  %v10230_v54 = vpop.f32.mrb[161].mxu0  ;;  %v3994_v45 = vld [vmem:[#allocation7 + $0x2f8] sm:$0xff] }
 0x5df   :  { %11073 = vst [vmem:[#allocation55_spill] sm:$0xff] %v10230_v54  ;;  %4627 = vmatprep.mubr.f32.mxu1 %v3541_v44  ;;  %v7298_v54 = vpack.c.bf16 %v3994_v45, %v3993_v52  ;;  %v10242_v44 = vld [vmem:[#allocation3 + $0x15a] sm:$0xff]  ;;  %v10253_v52 = vld [vmem:[#allocation3 + $0x172] sm:$0xff]  ;;  %v3546_v45 = vld [vmem:[#allocation3 + $0x1c8] sm:$0xff] }
 0x5e0   :  { %11078 = vst [vmem:[#allocation60_spill] sm:$0xff] %v10242_v44  ;;  %11082 = vst [vmem:[#allocation64_spill] sm:$0xff] %v10253_v52 }
 0x5e1   :  { %7299 = vmatpush1.bf16.msra.mxu1 %v7298_v54 }
 0x5e2   :  { %4628 = vmatmul.mubr.f32.gmra.mrb[118].mxu1 %v10232_v13  ;;  %v3544_v13 = vld [vmem:[#allocation3 + $0x180] sm:$0xff]  ;;  %7300 = vmatprep.subr.bf16.mxu1 %v10998_v12 }
 0x5e3   :  { %4632 = vmatprep.mubr.f32.mxu1 %v3542_v51  ;;  %v10246_v51 = vld [vmem:[#allocation3 + $0x16a] sm:$0xff] }
 0x5e4   :  { %11079 = vst [vmem:[#allocation61_spill] sm:$0xff] %v10246_v51 }
 0x5e5   :  { %v10237_v32 = vpop.f32.mrb[162].mxu0 }
 0x5e6   :  { %11076 = vst [vmem:[#allocation58_spill] sm:$0xff] %v10237_v32  ;;  %4633 = vmatmul.mubr.f32.gmra.mrb[120].mxu1 %v10235_v0  ;;  %v10240_v19 = vpop.f32.mrb[163].mxu0 }
 0x5e7   :  { %11077 = vst [vmem:[#allocation59_spill] sm:$0xff] %v10240_v19  ;;  %4637 = vmatprep.mubr.f32.mxu1 %v3543_v47  ;;  %v3545_v19 = vld [vmem:[#allocation3 + $0x188] sm:$0xff] }
 0x5ea   :  { %4638 = vmatmul.mubr.f32.gmra.mrb[122].mxu1 %v10242_v44  ;;  %v3547_v44 = vld [vmem:[#allocation3 + $0x1d0] sm:$0xff] }
 0x5eb   :  { %4642 = vmatprep.mubr.f32.mxu1 %v3544_v13  ;;  %v3482_v13 = vld [vmem:[#allocation3 + $0x1b2] sm:$0xff] }
 0x5ed   :  { %v10248_v32 = vpop.f32.mrb[164].mxu0 }
 0x5ee   :  { %11080 = vst [vmem:[#allocation62_spill] sm:$0xff] %v10248_v32  ;;  %4643 = vmatmul.mubr.f32.gmra.mrb[124].mxu1 %v10246_v51  ;;  %v10251_v47 = vpop.f32.mrb[165].mxu0  ;;  %v3483_v32 = vld [vmem:[#allocation3 + $0x1ba] sm:$0xff] }
 0x5ef   :  { %11081 = vst [vmem:[#allocation63_spill] sm:$0xff] %v10251_v47  ;;  %4647 = vmatprep.mubr.f32.mxu1 %v3545_v19  ;;  %v3548_v51 = vld [vmem:[#allocation3 + $0x1e0] sm:$0xff]  ;;  %v10260_v47 = vld [vmem:[#allocation3 + $0x1ca] sm:$0xff] }
 0x5f2   :  { %4648 = vmatmul.mubr.f32.gmra.mrb[126].mxu1 %v10253_v52  ;;  %v3549_v52 = vld [vmem:[#allocation3 + $0x1e8] sm:$0xff] }
 0x5f3   :  { %4652 = vmatprep.mubr.f32.mxu1 %v3546_v45 }
 0x5f5   :  { %v10256_v54 = vpop.f32.mrb[166].mxu0 }
 0x5f6   :  { %11083 = vst [vmem:[#allocation65_spill] sm:$0xff] %v10256_v54  ;;  %4653 = vmatmul.mubr.f32.gmra.mrb[128].mxu1 %v3482_v13  ;;  %v10258_v0 = vpop.f32.mrb[167].mxu0  ;;  %v10267_v54 = vld [vmem:[#allocation3 + $0x1d2] sm:$0xff] }
 0x5f7   :  { %11084 = vst [vmem:[#allocation66_spill] sm:$0xff] %v10258_v0  ;;  %4657 = vmatprep.mubr.f32.mxu1 %v3547_v44  ;;  %11087 = vst [vmem:[#allocation69_spill] sm:$0xff] %v10267_v54  ;;  %v3550_v13 = vld [vmem:[#allocation3 + $0x1f8] sm:$0xff]  ;;  %v10270_v44 = vld [vmem:[#allocation3 + $0x1e2] sm:$0xff] }
 0x5f8   :  { %11088 = vst [vmem:[#allocation70_spill] sm:$0xff] %v10270_v44  ;;  %v10277_v0 = vld [vmem:[#allocation3 + $0x1ea] sm:$0xff] }
 0x5f9   :  { %11091 = vst [vmem:[#allocation73_spill] sm:$0xff] %v10277_v0 }
 0x5fa   :  { %4658 = vmatmul.mubr.f32.gmra.mrb[130].mxu1 %v3483_v32 }
 0x5fb   :  { %4662 = vmatprep.mubr.f32.mxu1 %v3548_v51  ;;  %v3551_v51 = vld [vmem:[#allocation3 + $0x200] sm:$0xff] }
 0x5fd   :  { %v10262_v19 = vpop.f32.mrb[168].mxu0 }
 0x5fe   :  { %11085 = vst [vmem:[#allocation67_spill] sm:$0xff] %v10262_v19  ;;  %4663 = vmatmul.mubr.f32.gmra.mrb[132].mxu1 %v10260_v47  ;;  %v10265_v45 = vpop.f32.mrb[169].mxu0 }
 0x5ff   :  { %11086 = vst [vmem:[#allocation68_spill] sm:$0xff] %v10265_v45  ;;  %4667 = vmatprep.mubr.f32.mxu1 %v3549_v52  ;;  %v3552_v52 = vld [vmem:[#allocation3 + $0x210] sm:$0xff]  ;;  %v10280_v45 = vld [vmem:[#allocation3 + $0x1fa] sm:$0xff] }
 0x600   :  { %11092 = vst [vmem:[#allocation74_spill] sm:$0xff] %v10280_v45 }
 0x602   :  { %4668 = vmatmul.mubr.f32.gmra.mrb[134].mxu1 %v10267_v54 }
 0x603   :  { %4672 = vmatprep.mubr.f32.mxu1 %v3550_v13  ;;  %v3553_v13 = vld [vmem:[#allocation3 + $0x218] sm:$0xff] }
 0x605   :  { %v10272_v32 = vpop.f32.mrb[170].mxu0 }
 0x606   :  { %11089 = vst [vmem:[#allocation71_spill] sm:$0xff] %v10272_v32  ;;  %4673 = vmatmul.mubr.f32.gmra.mrb[136].mxu1 %v10270_v44  ;;  %v10275_v19 = vpop.f32.mrb[171].mxu0  ;;  %v10287_v44 = vld [vmem:[#allocation3 + $0x202] sm:$0xff] }
 0x607   :  { %11090 = vst [vmem:[#allocation72_spill] sm:$0xff] %v10275_v19  ;;  %4677 = vmatprep.mubr.f32.mxu1 %v3551_v51  ;;  %11095 = vst [vmem:[#allocation77_spill] sm:$0xff] %v10287_v44  ;;  %v3554_v51 = vld [vmem:[#allocation3 + $0x228] sm:$0xff]  ;;  %v10290_v19 = vld [vmem:[#allocation3 + $0x212] sm:$0xff] }
 0x608   :  { %11096 = vst [vmem:[#allocation78_spill] sm:$0xff] %v10290_v19 }
 0x60a   :  { %4678 = vmatmul.mubr.f32.gmra.mrb[138].mxu1 %v10277_v0 }
 0x60b   :  { %4682 = vmatprep.mubr.f32.mxu1 %v3552_v52  ;;  %v3555_v52 = vld [vmem:[#allocation3 + $0x230] sm:$0xff] }
 0x60d   :  { %v10282_v54 = vpop.f32.mrb[172].mxu0 }
 0x60e   :  { %11093 = vst [vmem:[#allocation75_spill] sm:$0xff] %v10282_v54  ;;  %4683 = vmatmul.mubr.f32.gmra.mrb[140].mxu1 %v10280_v45  ;;  %v10285_v32 = vpop.f32.mrb[173].mxu0  ;;  %v10297_v45 = vld [vmem:[#allocation3 + $0x21a] sm:$0xff] }
 0x60f   :  { %11094 = vst [vmem:[#allocation76_spill] sm:$0xff] %v10285_v32  ;;  %4687 = vmatprep.mubr.f32.mxu1 %v3553_v13  ;;  %11099 = vst [vmem:[#allocation81_spill] sm:$0xff] %v10297_v45  ;;  %v3556_v13 = vld [vmem:[#allocation3 + $0x240] sm:$0xff]  ;;  %v10300_v32 = vld [vmem:[#allocation3 + $0x22a] sm:$0xff] }
 0x612   :  { %4688 = vmatmul.mubr.f32.gmra.mrb[142].mxu1 %v10287_v44 }
 0x613   :  { %4692 = vmatprep.mubr.f32.mxu1 %v3554_v51  ;;  %v3557_v51 = vld [vmem:[#allocation3 + $0x248] sm:$0xff] }
 0x615   :  { %v10292_v0 = vpop.f32.mrb[174].mxu0 }
 0x616   :  { %11097 = vst [vmem:[#allocation79_spill] sm:$0xff] %v10292_v0  ;;  %4693 = vmatmul.mubr.f32.gmra.mrb[144].mxu1 %v10290_v19  ;;  %v10295_v54 = vpop.f32.mrb[175].mxu0  ;;  %v10307_v19 = vld [vmem:[#allocation3 + $0x232] sm:$0xff] }
 0x617   :  { %11098 = vst [vmem:[#allocation80_spill] sm:$0xff] %v10295_v54  ;;  %4697 = vmatprep.mubr.f32.mxu1 %v3555_v52  ;;  %v3558_v52 = vld [vmem:[#allocation3 + $0x258] sm:$0xff]  ;;  %v10310_v54 = vld [vmem:[#allocation3 + $0x242] sm:$0xff] }
 0x61a   :  { %4698 = vmatmul.mubr.f32.gmra.mrb[146].mxu1 %v10297_v45 }
 0x61b   :  { %4702 = vmatprep.mubr.f32.mxu1 %v3556_v13 }
 0x61d   :  { %v10302_v44 = vpop.f32.mrb[176].mxu0 }
 0x61e   :  { %11100 = vst [vmem:[#allocation82_spill] sm:$0xff] %v10302_v44  ;;  %4703 = vmatmul.mubr.f32.gmra.mrb[148].mxu1 %v10300_v32  ;;  %v10305_v0 = vpop.f32.mrb[177].mxu0  ;;  %v10318_v44 = vld [vmem:[#allocation3 + $0x24a] sm:$0xff] }
 0x61f   :  { %11101 = vst [vmem:[#allocation83_spill] sm:$0xff] %v10305_v0  ;;  %4707 = vmatprep.mubr.f32.mxu1 %v3557_v51  ;;  %v10322_v51 = vld [vmem:[#allocation3 + $0x25a] sm:$0xff] }
 0x622   :  { %4708 = vmatmul.mubr.f32.gmra.mrb[150].mxu1 %v10307_v19 }
 0x623   :  { %4712 = vmatprep.mubr.f32.mxu1 %v3558_v52 }
 0x625   :  { %v10312_v45 = vpop.f32.mrb[178].mxu0 }
 0x626   :  { %11102 = vst [vmem:[#allocation84_spill] sm:$0xff] %v10312_v45  ;;  %4713 = vmatmul.mubr.f32.gmra.mrb[152].mxu1 %v10310_v54  ;;  %v10315_v13 = vpop.f32.mrb[179].mxu0  ;;  %v10330_v45 = vld [vmem:[#allocation3 + $0x262] sm:$0xff] }
 0x627   :  { %11103 = vst [vmem:[#allocation85_spill] sm:$0xff] %v10315_v13  ;;  %4717 = vmatprep.mubr.f32.mxu1 %v9941_v23  ;;  %v10619_v13 = vld [vmem:[#allocation3 + $0x33a] sm:$0xff] }
 0x62a   :  { %4718 = vmatmul.mubr.f32.gmra.mrb[154].mxu1 %v10318_v44 }
 0x62b   :  { %4722 = vmatprep.mubr.f32.mxu1 %v9947_v24 }
 0x62d   :  { %v10324_v0 = vpop.f32.mrb[180].mxu0 }
 0x62e   :  { %11104 = vst [vmem:[#allocation86_spill] sm:$0xff] %v10324_v0  ;;  %4723 = vmatmul.mubr.f32.gmra.mrb[156].mxu1 %v10322_v51  ;;  %v10327_v52 = vpop.f32.mrb[181].mxu0  ;;  %v10591_v0 = vld [vmem:[#allocation3 + $0x2e9] sm:$0xff] }
 0x62f   :  { %11105 = vst [vmem:[#allocation87_spill] sm:$0xff] %v10327_v52  ;;  %4727 = vmatprep.mubr.f32.mxu1 %v9955_v49  ;;  %v10366_v49 = vld [vmem:[#allocation3 + $0x30a] sm:$0xff] }
 0x630   :  { %v10594_v52 = vld [vmem:[#allocation3 + $0x2f1] sm:$0xff] }
 0x632   :  { %4728 = vmatmul.mubr.f32.gmra.mrb[158].mxu1 %v10330_v45 }
 0x633   :  { %4732 = vmatprep.mubr.f32.mxu1 %v9965_v37  ;;  %v10369_v37 = vld [vmem:[#allocation3 + $0x31a] sm:$0xff] }
 0x635   :  { %v10334_v23 = vpop.f32.mrb[182].mxu0 }
 0x636   :  { %11106 = vst [vmem:[#allocation88_spill] sm:$0xff] %v10334_v23  ;;  %4733 = vmatmul.mubr.f32.gmra.mrb[160].mxu1 %v9953_v43  ;;  %v10337_v24 = vpop.f32.mrb[183].mxu0  ;;  %v10362_v43 = vld [vmem:[#allocation3 + $0x302] sm:$0xff]  ;;  %v10585_v23 = vld [vmem:[#allocation3 + $0x2d1] sm:$0xff] }
 0x637   :  { %11107 = vst [vmem:[#allocation89_spill] sm:$0xff] %v10337_v24  ;;  %4737 = vmatprep.mubr.f32.mxu1 %v9973_v56  ;;  %v3995_v56 = vld [vmem:[#allocation7 + $0x300] sm:$0xff] }
 0x638   :  { %v10588_v24 = vld [vmem:[#allocation3 + $0x2d9] sm:$0xff] }
 0x63a   :  { %4738 = vmatmul.mubr.f32.gmra.mrb[162].mxu1 %v9957_v62  ;;  %v3576_v62 = vld [vmem:[#allocation3 + $0x330] sm:$0xff] }
 0x63b   :  { %4742 = vmatprep.mubr.f32.mxu1 %v9983_v36  ;;  %v10372_v36 = vld [vmem:[#allocation3 + $0x322] sm:$0xff] }
 0x63e   :  { %4743 = vmatmul.mubr.f32.gmra.mrb[164].mxu1 %v9971_v28  ;;  %v3577_v28 = vld [vmem:[#allocation3 + $0x338] sm:$0xff] }
 0x63f   :  { %4747 = vmatprep.mubr.f32.mxu1 %v9991_v25  ;;  %v3997_v25 = vld [vmem:[#allocation7 + $0x310] sm:$0xff] }
 0x642   :  { %4748 = vmatmul.mubr.f32.gmra.mrb[166].mxu1 %v9975_v11  ;;  %v3996_v11 = vld [vmem:[#allocation7 + $0x308] sm:$0xff] }
 0x643   :  { %4752 = vmatprep.mubr.f32.mxu1 %v10001_v53  ;;  %v3578_v53 = vld [vmem:[#allocation3 + $0x19] sm:$0xff] }
 0x646   :  { %4753 = vmatmul.mubr.f32.gmra.mrb[168].mxu1 %v9989_v2  ;;  %v7301_v2 = vpack.c.bf16 %v3996_v11, %v3995_v56  ;;  %v4010_v56 = vld [vmem:[#allocation7 + $0x378] sm:$0xff]  ;;  %v10400_v11 = vld [vmem:[#allocation3 + $0x61] sm:$0xff] }
 0x647   :  { %4757 = vmatprep.mubr.f32.mxu1 %v10009_v29  ;;  %v3999_v29 = vld [vmem:[#allocation7 + $0x320] sm:$0xff] }
 0x64a   :  { %4758 = vmatmul.mubr.f32.gmra.mrb[170].mxu1 %v9993_v31  ;;  %v3998_v31 = vld [vmem:[#allocation7 + $0x318] sm:$0xff] }
 0x64b   :  { %4762 = vmatprep.mubr.f32.mxu1 %v10019_v41  ;;  %v3579_v41 = vld [vmem:[#allocation3 + $0x21] sm:$0xff] }
 0x64e   :  { %4763 = vmatmul.mubr.f32.gmra.mrb[172].mxu1 %v10007_v17  ;;  %v7304_v17 = vpack.c.bf16 %v3998_v31, %v3997_v25  ;;  %v4012_v25 = vld [vmem:[#allocation7 + $0x388] sm:$0xff] }
 0x64f   :  { %4767 = vmatprep.mubr.f32.mxu1 %v10027_v30  ;;  %v4001_v30 = vld [vmem:[#allocation7 + $0x330] sm:$0xff] }
 0x650   :  { %v10405_v31 = vld [vmem:[#allocation3 + $0x69] sm:$0xff] }
 0x652   :  { %4768 = vmatmul.mubr.f32.gmra.mrb[174].mxu1 %v10011_v1  ;;  %v4000_v1 = vld [vmem:[#allocation7 + $0x328] sm:$0xff] }
 0x653   :  { %4772 = vmatprep.mubr.f32.mxu1 %v10037_v3  ;;  %v10380_v3 = vld [vmem:[#allocation3 + $0x31] sm:$0xff] }
 0x656   :  { %4773 = vmatmul.mubr.f32.gmra.mrb[176].mxu1 %v10025_v42  ;;  %v7307_v42 = vpack.c.bf16 %v4000_v1, %v3999_v29  ;;  %v10410_v29 = vld [vmem:[#allocation3 + $0x79] sm:$0xff] }
 0x657   :  { %4777 = vmatprep.mubr.f32.mxu1 %v10045_v27  ;;  %v4003_v27 = vld [vmem:[#allocation7 + $0x340] sm:$0xff] }
 0x658   :  { %v4015_v1 = vld [vmem:[#allocation7 + $0x3a0] sm:$0xff] }
 0x65a   :  { %4778 = vmatmul.mubr.f32.gmra.mrb[178].mxu1 %v10029_v40  ;;  %v4002_v40 = vld [vmem:[#allocation7 + $0x338] sm:$0xff] }
 0x65b   :  { %4782 = vmatprep.mubr.f32.mxu1 %v10055_v59  ;;  %v10385_v59 = vld [vmem:[#allocation3 + $0x39] sm:$0xff] }
 0x65e   :  { %4783 = vmatmul.mubr.f32.gmra.mrb[180].mxu1 %v10043_v63  ;;  %v7310_v63 = vpack.c.bf16 %v4002_v40, %v4001_v30  ;;  %v10420_v30 = vld [vmem:[#allocation3 + $0x91] sm:$0xff] }
 0x65f   :  { %4787 = vmatprep.mubr.f32.mxu1 %v10061_v10  ;;  %v4017_v40 = vld [vmem:[#allocation7 + $0x3b0] sm:$0xff] }
 0x662   :  { %4788 = vmatmul.mubr.f32.gmra.mrb[182].mxu1 %v10047_v16  ;;  %v4004_v16 = vld [vmem:[#allocation7 + $0x348] sm:$0xff] }
 0x663   :  { %4792 = vmatprep.mubr.f32.mxu1 %v10069_v48  ;;  %v7313_v10 = vpack.c.bf16 %v4004_v16, %v4003_v27  ;;  %v4005_v48 = vld [vmem:[#allocation7 + $0x350] sm:$0xff] }
 0x664   :  { %v10433_v16 = vld [vmem:[#allocation3 + $0xb1] sm:$0xff] }
 0x666   :  { %4793 = vmatmul.mubr.f32.gmra.mrb[184].mxu1 %v10362_v43 }
 0x667   :  { %4797 = vmatprep.mubr.f32.mxu1 %v10077_v58  ;;  %v4006_v58 = vld [vmem:[#allocation7 + $0x358] sm:$0xff] }
 0x66a   :  { %4798 = vmatmul.mubr.f32.gmra.mrb[186].mxu1 %v10366_v49 }
 0x66b   :  { %4802 = vmatprep.mubr.f32.mxu1 %v3576_v62  ;;  %v10395_v62 = vld [vmem:[#allocation3 + $0x51] sm:$0xff] }
 0x66e   :  { %4803 = vmatmul.mubr.f32.gmra.mrb[188].mxu1 %v10369_v37 }
 0x66f   :  { %4807 = vmatprep.mubr.f32.mxu1 %v3577_v28  ;;  %v4009_v28 = vld [vmem:[#allocation7 + $0x370] sm:$0xff] }
 0x672   :  { %4808 = vmatmul.mubr.f32.gmra.mrb[190].mxu1 %v10372_v36 }
 0x673   :  { %4877 = vmatprep.mubr.f32.mxu1 %v10092_v33  ;;  %v10390_v33 = vld [vmem:[#allocation3 + $0x49] sm:$0xff] }
 0x676   :  { %4878 = vmatmul.mubr.f32.vlgmr.msra.gmra.mrb[64].mxu1 %v3578_v53  ;;  %v4013_v53 = vld [vmem:[#allocation7 + $0x390] sm:$0xff] }
 0x677   :  { %4882 = vmatprep.mubr.f32.mxu1 %v10100_v50  ;;  %7302 = vmatpush1.bf16.msra.mxu1 %v7301_v2  ;;  %v7316_v50 = vpack.c.bf16 %v4006_v58, %v4005_v48  ;;  %v4011_v2 = vld [vmem:[#allocation7 + $0x380] sm:$0xff] }
 0x678   :  { %7303 = vmatprep.subr.bf16.mxu1 %v10998_v12  ;;  %v10450_v58 = vld [vmem:[#allocation3 + $0xe1] sm:$0xff] }
 0x67a   :  { %4883 = vmatmul.mubr.f32.gmra.mrb[66].mxu1 %v3579_v41  ;;  %v4016_v41 = vld [vmem:[#allocation7 + $0x3a8] sm:$0xff] }
 0x67b   :  { %4887 = vmatprep.mubr.f32.mxu1 %v10104_v14  ;;  %7305 = vmatpush1.bf16.msra.mxu1 %v7304_v17  ;;  %v4007_v14 = vld [vmem:[#allocation7 + $0x360] sm:$0xff]  ;;  %v4014_v17 = vld [vmem:[#allocation7 + $0x398] sm:$0xff] }
 0x67c   :  { %7306 = vmatprep.subr.bf16.mxu1 %v10998_v12 }
 0x67e   :  { %4888 = vmatmul.mubr.f32.gmra.mrb[68].mxu1 %v10380_v3 }
 0x67f   :  { %4892 = vmatprep.mubr.f32.mxu1 %v10112_v55  ;;  %7308 = vmatpush1.bf16.msra.mxu1 %v7307_v42  ;;  %v4008_v55 = vld [vmem:[#allocation7 + $0x368] sm:$0xff] }
 0x680   :  { %7309 = vmatprep.subr.bf16.mxu1 %v10998_v12  ;;  %v10415_v42 = vld [vmem:[#allocation3 + $0x81] sm:$0xff] }
 0x682   :  { %4893 = vmatmul.mubr.f32.gmra.mrb[70].mxu1 %v10385_v59 }
 0x683   :  { %4897 = vmatprep.mubr.f32.mxu1 %v10116_v22  ;;  %7311 = vmatpush1.bf16.msra.mxu1 %v7310_v63  ;;  %v7319_v22 = vpack.c.bf16 %v4008_v55, %v4007_v14  ;;  %v4018_v63 = vld [vmem:[#allocation7 + $0x3b8] sm:$0xff] }
 0x684   :  { %7312 = vmatprep.subr.bf16.mxu1 %v10998_v12  ;;  %v7334_v27 = vpack.c.bf16 %v4018_v63, %v4017_v40  ;;  %v10467_v55 = vld [vmem:[#allocation3 + $0x111] sm:$0xff]  ;;  %v3672_v63 = vld [vmem:[#allocation3 + $0x182] sm:$0xff] }
 0x685   :  { %v10501_v40 = vld [vmem:[#allocation3 + $0x171] sm:$0xff] }
 0x686   :  { %4898 = vmatmul.mubr.f32.gmra.mrb[72].mxu1 %v10390_v33 }
 0x687   :  { %4902 = vmatprep.mubr.f32.mxu1 %v10124_v7  ;;  %7314 = vmatpush1.bf16.msra.mxu1 %v7313_v10  ;;  %v7322_v7 = vpack.c.bf16 %v4010_v56, %v4009_v28  ;;  %v4020_v10 = vld [vmem:[#allocation7 + $0x3c8] sm:$0xff]  ;;  %v4023_v28 = vld [vmem:[#allocation7 + $0x3e0] sm:$0xff] }
 0x688   :  { %7315 = vmatprep.subr.bf16.mxu1 %v10998_v12  ;;  %v4024_v56 = vld [vmem:[#allocation7 + $0x3e8] sm:$0xff] }
 0x68a   :  { %4903 = vmatmul.mubr.f32.gmra.mrb[74].mxu1 %v10395_v62 }
 0x68b   :  { %4907 = vmatprep.mubr.f32.mxu1 %v10128_v20  ;;  %7317 = vmatpush1.bf16.msra.mxu1 %v7316_v50  ;;  %v7325_v20 = vpack.c.bf16 %v4012_v25, %v4011_v2  ;;  %v4022_v50 = vld [vmem:[#allocation7 + $0x3d8] sm:$0xff]  ;;  %v10484_v2 = vld [vmem:[#allocation3 + $0x141] sm:$0xff] }
 0x68c   :  { %7318 = vmatprep.subr.bf16.mxu1 %v10998_v12  ;;  %v10489_v25 = vld [vmem:[#allocation3 + $0x151] sm:$0xff] }
 0x68e   :  { %4908 = vmatmul.mubr.f32.gmra.mrb[76].mxu1 %v10400_v11 }
 0x68f   :  { %4912 = vmatprep.mubr.f32.mxu1 %v10136_v46  ;;  %7320 = vmatpush1.bf16.msra.mxu1 %v7319_v22  ;;  %v7328_v46 = vpack.c.bf16 %v4014_v17, %v4013_v53  ;;  %v10480_v22 = vld [vmem:[#allocation3 + $0x139] sm:$0xff] }
 0x690   :  { %7321 = vmatprep.subr.bf16.mxu1 %v10998_v12  ;;  %v10493_v53 = vld [vmem:[#allocation3 + $0x159] sm:$0xff] }
 0x691   :  { %v11112_v17 = vld [vmem:[#allocation61_spill] sm:$0xff] }
 0x692   :  { %4913 = vmatmul.mubr.f32.gmra.mrb[78].mxu1 %v10405_v31 }
 0x693   :  { %4917 = vmatprep.mubr.f32.mxu1 %v10140_v39  ;;  %7323 = vmatpush1.bf16.msra.mxu1 %v7322_v7  ;;  %v7331_v39 = vpack.c.bf16 %v4016_v41, %v4015_v1  ;;  %v7343_v7 = vpack.c.bf16 %v4024_v56, %v4023_v28  ;;  %v11113_v1 = vld [vmem:[#allocation64_spill] sm:$0xff]  ;;  %v4025_v41 = vld [vmem:[#allocation7 + $0x3f0] sm:$0xff]  ;;  %v11117_v28 = vld [vmem:[#allocation73_spill] sm:$0xff] }
 0x694   :  { %7324 = vmatprep.subr.bf16.mxu1 %v10998_v12  ;;  %v10518_v56 = vld [vmem:[#allocation3 + $0x1e9] sm:$0xff] }
 0x696   :  { %4918 = vmatmul.mubr.f32.gmra.mrb[80].mxu1 %v10410_v29 }
 0x697   :  { %4922 = vmatprep.mubr.f32.mxu1 %v10148_v9  ;;  %7326 = vmatpush1.bf16.msra.mxu1 %v7325_v20  ;;  %v10425_v9 = vld [vmem:[#allocation3 + $0x99] sm:$0xff] }
 0x698   :  { %7327 = vmatprep.subr.bf16.mxu1 %v10998_v12  ;;  %v11111_v20 = vld [vmem:[#allocation60_spill] sm:$0xff] }
 0x699   :  { %11125 = vst [vmem:[#allocation60_spill] sm:$0xff] %v10619_v13 }
 0x69a   :  { %4923 = vmatmul.mubr.f32.gmra.mrb[82].mxu1 %v10415_v42 }
 0x69b   :  { %4927 = vmatprep.mubr.f32.mxu1 %v10151_v4  ;;  %7329 = vmatpush1.bf16.msra.mxu1 %v7328_v46  ;;  %v10429_v4 = vld [vmem:[#allocation3 + $0xa9] sm:$0xff] }
 0x69c   :  { %7330 = vmatprep.subr.bf16.mxu1 %v10998_v12  ;;  %v10497_v46 = vld [vmem:[#allocation3 + $0x169] sm:$0xff] }
 0x69e   :  { %4928 = vmatmul.mubr.f32.gmra.mrb[84].mxu1 %v10420_v30 }
 0x69f   :  { %4932 = vmatprep.mubr.f32.mxu1 %v10158_v34  ;;  %7332 = vmatpush1.bf16.msra.mxu1 %v7331_v39  ;;  %v10438_v34 = vld [vmem:[#allocation3 + $0xc1] sm:$0xff] }
 0x6a0   :  { %7333 = vmatprep.subr.bf16.mxu1 %v10998_v12 }
 0x6a2   :  { %4933 = vmatmul.mubr.f32.gmra.mrb[86].mxu1 %v10425_v9 }
 0x6a3   :  { %4937 = vmatprep.mubr.f32.mxu1 %v10162_v57  ;;  %7335 = vmatpush1.bf16.msra.mxu1 %v7334_v27  ;;  %v10442_v57 = vld [vmem:[#allocation3 + $0xc9] sm:$0xff] }
 0x6a4   :  { %7336 = vmatprep.subr.bf16.mxu1 %v10998_v12  ;;  %v11114_v27 = vld [vmem:[#allocation15_spill] sm:$0xff] }
 0x6a6   :  { %4938 = vmatmul.mubr.f32.gmra.mrb[88].mxu1 %v10429_v4 }
 0x6a7   :  { %4942 = vmatprep.mubr.f32.mxu1 %v10169_v8  ;;  %v10446_v8 = vld [vmem:[#allocation3 + $0xd9] sm:$0xff] }
 0x6aa   :  { %4943 = vmatmul.mubr.f32.gmra.mrb[90].mxu1 %v10433_v16 }
 0x6ab   :  { %4947 = vmatprep.mubr.f32.mxu1 %v10172_v15  ;;  %v4019_v15 = vld [vmem:[#allocation7 + $0x3c0] sm:$0xff] }
 0x6ac   :  { %v7337_v48 = vpack.c.bf16 %v4020_v10, %v4019_v15  ;;  %v10505_v15 = vld [vmem:[#allocation3 + $0x181] sm:$0xff]  ;;  %v3673_v10 = vld [vmem:[#allocation3 + $0x18a] sm:$0xff] }
 0x6ae   :  { %4948 = vmatmul.mubr.f32.gmra.mrb[92].mxu1 %v10438_v34 }
 0x6af   :  { %4952 = vmatprep.mubr.f32.mxu1 %v10179_v38  ;;  %7338 = vmatpush1.bf16.msra.mxu1 %v7337_v48  ;;  %v10455_v38 = vld [vmem:[#allocation3 + $0xf1] sm:$0xff]  ;;  %v10508_v48 = vld [vmem:[#allocation3 + $0x189] sm:$0xff] }
 0x6b0   :  { %7339 = vmatprep.subr.bf16.mxu1 %v10998_v12 }
 0x6b2   :  { %4953 = vmatmul.mubr.f32.gmra.mrb[94].mxu1 %v10442_v57 }
 0x6b3   :  { %4957 = vmatprep.mubr.f32.mxu1 %v10183_v26  ;;  %v10459_v26 = vld [vmem:[#allocation3 + $0xf9] sm:$0xff] }
 0x6b6   :  { %4958 = vmatmul.mubr.f32.gmra.mrb[96].mxu1 %v10446_v8 }
 0x6b7   :  { %4962 = vmatprep.mubr.f32.mxu1 %v10190_v6  ;;  %v10463_v6 = vld [vmem:[#allocation3 + $0x109] sm:$0xff] }
 0x6ba   :  { %4963 = vmatmul.mubr.f32.gmra.mrb[98].mxu1 %v10450_v58 }
 0x6bb   :  { %4967 = vmatprep.mubr.f32.mxu1 %v10193_v5  ;;  %v4021_v5 = vld [vmem:[#allocation7 + $0x3d0] sm:$0xff] }
 0x6bc   :  { %v7340_v14 = vpack.c.bf16 %v4022_v50, %v4021_v5  ;;  %v3610_v5 = vld [vmem:[#allocation3 + $0x1c9] sm:$0xff]  ;;  %v11115_v50 = vld [vmem:[#allocation69_spill] sm:$0xff] }
 0x6be   :  { %4968 = vmatmul.mubr.f32.gmra.mrb[100].mxu1 %v10455_v38 }
 0x6bf   :  { %4972 = vmatprep.mubr.f32.mxu1 %v10200_v61  ;;  %7341 = vmatpush1.bf16.msra.mxu1 %v7340_v14  ;;  %v10472_v61 = vld [vmem:[#allocation3 + $0x121] sm:$0xff]  ;;  %v3611_v14 = vld [vmem:[#allocation3 + $0x1d1] sm:$0xff] }
 0x6c0   :  { %7342 = vmatprep.subr.bf16.mxu1 %v10998_v12 }
 0x6c2   :  { %4973 = vmatmul.mubr.f32.gmra.mrb[102].mxu1 %v10459_v26 }
 0x6c3   :  { %4977 = vmatprep.mubr.f32.mxu1 %v10204_v18  ;;  %v10476_v18 = vld [vmem:[#allocation3 + $0x129] sm:$0xff]  ;;  %7344 = vmatpush1.bf16.msra.mxu1 %v7343_v7 }
 0x6c4   :  { %7345 = vmatprep.subr.bf16.mxu1 %v10998_v12  ;;  %v4026_v12 = vld [vmem:[#allocation7 + $0x3f8] sm:$0xff]  ;;  %v11118_v7 = vld [vmem:[#allocation74_spill] sm:$0xff] }
 0x6c5   :  { %v7346_v39 = vpack.c.bf16 %v4026_v12, %v4025_v41  ;;  %v11121_v41 = vld [vmem:[#allocation81_spill] sm:$0xff] }
 0x6c6   :  { %4978 = vmatmul.mubr.f32.gmra.mrb[104].mxu1 %v10463_v6  ;;  %v10534_v12 = vld [vmem:[#allocation3 + $0x219] sm:$0xff] }
 0x6c7   :  { %4982 = vmatprep.mubr.f32.mxu1 %v10211_v35  ;;  %v11108_v35 = vld [vmem:[#allocation53_spill] sm:$0xff]  ;;  %7347 = vmatpush1.bf16.msra.mxu1 %v7346_v39  ;;  %v10538_v39 = vld [vmem:[#allocation3 + $0x229] sm:$0xff] }
 0x6c8   :  { %7380 = vmatprep.subr.bf16.mxu1 %v11114_v27 }
 0x6ca   :  { %4983 = vmatmul.mubr.f32.gmra.mrb[106].mxu1 %v10467_v55 }
 0x6cb   :  { %4987 = vmatprep.mubr.f32.mxu1 %v10218_v60  ;;  %v11109_v60 = vld [vmem:[#allocation56_spill] sm:$0xff] }
 0x6ce   :  { %4988 = vmatmul.mubr.f32.gmra.mrb[108].mxu1 %v10472_v61 }
 0x6cf   :  { %4992 = vmatprep.mubr.f32.mxu1 %v10221_v21  ;;  %v11110_v21 = vld [vmem:[#allocation57_spill] sm:$0xff] }
 0x6d2   :  { %4993 = vmatmul.mubr.f32.gmra.mrb[110].mxu1 %v10476_v18 }
 0x6d3   :  { %4997 = vmatprep.mubr.f32.mxu1 %v11108_v35  ;;  %v11116_v35 = vld [vmem:[#allocation70_spill] sm:$0xff] }
 0x6d6   :  { %4998 = vmatmul.mubr.f32.gmra.mrb[112].mxu1 %v10480_v22 }
 0x6d7   :  { %5002 = vmatprep.mubr.f32.mxu1 %v11109_v60  ;;  %v10514_v60 = vld [vmem:[#allocation3 + $0x1e1] sm:$0xff] }
 0x6da   :  { %5003 = vmatmul.mubr.f32.gmra.mrb[114].mxu1 %v10484_v2 }
 0x6db   :  { %5007 = vmatprep.mubr.f32.mxu1 %v11110_v21  ;;  %v11119_v21 = vld [vmem:[#allocation77_spill] sm:$0xff] }
 0x6de   :  { %5008 = vmatmul.mubr.f32.gmra.mrb[116].mxu1 %v10489_v25 }
 0x6df   :  { %5012 = vmatprep.mubr.f32.mxu1 %v11111_v20  ;;  %v10526_v20 = vld [vmem:[#allocation3 + $0x201] sm:$0xff] }
 0x6e2   :  { %5013 = vmatmul.mubr.f32.gmra.mrb[118].mxu1 %v10493_v53 }
 0x6e3   :  { %5017 = vmatprep.mubr.f32.mxu1 %v11112_v17  ;;  %v11120_v17 = vld [vmem:[#allocation78_spill] sm:$0xff] }
 0x6e6   :  { %5018 = vmatmul.mubr.f32.gmra.mrb[120].mxu1 %v10497_v46 }
 0x6e7   :  { %5022 = vmatprep.mubr.f32.mxu1 %v11113_v1  ;;  %v10530_v1 = vld [vmem:[#allocation3 + $0x211] sm:$0xff] }
 0x6ea   :  { %5023 = vmatmul.mubr.f32.gmra.mrb[122].mxu1 %v10501_v40 }
 0x6eb   :  { %5027 = vmatprep.mubr.f32.mxu1 %v3672_v63  ;;  %v10542_v63 = vld [vmem:[#allocation3 + $0x231] sm:$0xff] }
 0x6ee   :  { %5028 = vmatmul.mubr.f32.gmra.mrb[124].mxu1 %v10505_v15 }
 0x6ef   :  { %5032 = vmatprep.mubr.f32.mxu1 %v3673_v10  ;;  %v10546_v10 = vld [vmem:[#allocation3 + $0x241] sm:$0xff] }
 0x6f2   :  { %5033 = vmatmul.mubr.f32.gmra.mrb[126].mxu1 %v10508_v48 }
 0x6f3   :  { %5037 = vmatprep.mubr.f32.mxu1 %v10260_v47  ;;  %v10522_v47 = vld [vmem:[#allocation3 + $0x1f9] sm:$0xff] }
 0x6f6   :  { %5038 = vmatmul.mubr.f32.gmra.mrb[128].mxu1 %v3610_v5  ;;  %v10550_v5 = vld [vmem:[#allocation3 + $0x249] sm:$0xff] }
 0x6f7   :  { %5042 = vmatprep.mubr.f32.mxu1 %v11115_v50  ;;  %v10561_v50 = vld [vmem:[#allocation3 + $0x271] sm:$0xff] }
 0x6fa   :  { %5043 = vmatmul.mubr.f32.gmra.mrb[130].mxu1 %v3611_v14  ;;  %v10564_v14 = vld [vmem:[#allocation3 + $0x279] sm:$0xff] }
 0x6fb   :  { %5047 = vmatprep.mubr.f32.mxu1 %v11116_v35  ;;  %v10567_v35 = vld [vmem:[#allocation3 + $0x289] sm:$0xff] }
 0x6fe   :  { %5048 = vmatmul.mubr.f32.gmra.mrb[132].mxu1 %v10514_v60 }
 0x6ff   :  { %5052 = vmatprep.mubr.f32.mxu1 %v11117_v28  ;;  %v10570_v28 = vld [vmem:[#allocation3 + $0x291] sm:$0xff] }
 0x702   :  { %5053 = vmatmul.mubr.f32.gmra.mrb[134].mxu1 %v10518_v56 }
 0x703   :  { %5057 = vmatprep.mubr.f32.mxu1 %v11118_v7  ;;  %v3692_v7 = vld [vmem:[#allocation3 + $0x2a2] sm:$0xff] }
 0x706   :  { %5058 = vmatmul.mubr.f32.gmra.mrb[136].mxu1 %v10522_v47 }
 0x707   :  { %5062 = vmatprep.mubr.f32.mxu1 %v11119_v21  ;;  %v10573_v21 = vld [vmem:[#allocation3 + $0x2a1] sm:$0xff] }
 0x70a   :  { %5063 = vmatmul.mubr.f32.gmra.mrb[138].mxu1 %v10526_v20 }
 0x70b   :  { %5067 = vmatprep.mubr.f32.mxu1 %v11120_v17  ;;  %v3693_v17 = vld [vmem:[#allocation3 + $0x2aa] sm:$0xff] }
 0x70e   :  { %5068 = vmatmul.mubr.f32.gmra.mrb[140].mxu1 %v10530_v1 }
 0x70f   :  { %5072 = vmatprep.mubr.f32.mxu1 %v11121_v41  ;;  %v10576_v41 = vld [vmem:[#allocation3 + $0x2a9] sm:$0xff] }
 0x712   :  { %5073 = vmatmul.mubr.f32.gmra.mrb[142].mxu1 %v10534_v12 }
 0x713   :  { %5077 = vmatprep.mubr.f32.mxu1 %v10300_v32  ;;  %v10554_v32 = vld [vmem:[#allocation3 + $0x259] sm:$0xff] }
 0x716   :  { %5078 = vmatmul.mubr.f32.gmra.mrb[144].mxu1 %v10538_v39 }
 0x717   :  { %5082 = vmatprep.mubr.f32.mxu1 %v10307_v19  ;;  %v10558_v19 = vld [vmem:[#allocation3 + $0x261] sm:$0xff] }
 0x71a   :  { %5083 = vmatmul.mubr.f32.gmra.mrb[146].mxu1 %v10542_v63 }
 0x71b   :  { %5087 = vmatprep.mubr.f32.mxu1 %v10310_v54  ;;  %v3688_v54 = vld [vmem:[#allocation3 + $0x272] sm:$0xff] }
 0x71e   :  { %5088 = vmatmul.mubr.f32.gmra.mrb[148].mxu1 %v10546_v10 }
 0x71f   :  { %5092 = vmatprep.mubr.f32.mxu1 %v10318_v44  ;;  %v3689_v44 = vld [vmem:[#allocation3 + $0x27a] sm:$0xff] }
 0x722   :  { %5093 = vmatmul.mubr.f32.gmra.mrb[150].mxu1 %v10550_v5 }
 0x723   :  { %5097 = vmatprep.mubr.f32.mxu1 %v10322_v51  ;;  %v3690_v51 = vld [vmem:[#allocation3 + $0x28a] sm:$0xff] }
 0x726   :  { %5098 = vmatmul.mubr.f32.gmra.mrb[152].mxu1 %v10554_v32 }
 0x727   :  { %5102 = vmatprep.mubr.f32.mxu1 %v10330_v45  ;;  %v3691_v45 = vld [vmem:[#allocation3 + $0x292] sm:$0xff] }
 0x72a   :  { %5103 = vmatmul.mubr.f32.gmra.mrb[154].mxu1 %v10558_v19 }
 0x72b   :  { %5107 = vmatprep.mubr.f32.mxu1 %v3688_v54  ;;  %v3694_v54 = vld [vmem:[#allocation3 + $0x2ba] sm:$0xff] }
 0x72e   :  { %5108 = vmatmul.mubr.f32.gmra.mrb[156].mxu1 %v10561_v50 }
 0x72f   :  { %5112 = vmatprep.mubr.f32.mxu1 %v3689_v44  ;;  %v10579_v44 = vld [vmem:[#allocation3 + $0x2b9] sm:$0xff] }
 0x732   :  { %5113 = vmatmul.mubr.f32.gmra.mrb[158].mxu1 %v10564_v14 }
 0x733   :  { %5117 = vmatprep.mubr.f32.mxu1 %v3690_v51  ;;  %v3695_v51 = vld [vmem:[#allocation3 + $0x2c2] sm:$0xff] }
 0x736   :  { %5118 = vmatmul.mubr.f32.gmra.mrb[160].mxu1 %v10567_v35 }
 0x737   :  { %5122 = vmatprep.mubr.f32.mxu1 %v3691_v45  ;;  %v10582_v45 = vld [vmem:[#allocation3 + $0x2c1] sm:$0xff] }
 0x73a   :  { %5123 = vmatmul.mubr.f32.gmra.mrb[162].mxu1 %v10570_v28 }
 0x73b   :  { %5127 = vmatprep.mubr.f32.mxu1 %v3692_v7  ;;  %v3696_v7 = vld [vmem:[#allocation3 + $0x2d2] sm:$0xff] }
 0x73e   :  { %5128 = vmatmul.mubr.f32.gmra.mrb[164].mxu1 %v10573_v21 }
 0x73f   :  { %5132 = vmatprep.mubr.f32.mxu1 %v3693_v17  ;;  %v3697_v17 = vld [vmem:[#allocation3 + $0x2da] sm:$0xff] }
 0x742   :  { %5133 = vmatmul.mubr.f32.gmra.mrb[166].mxu1 %v10576_v41 }
 0x743   :  { %5137 = vmatprep.mubr.f32.mxu1 %v3694_v54  ;;  %v3698_v54 = vld [vmem:[#allocation3 + $0x2ea] sm:$0xff] }
 0x746   :  { %5138 = vmatmul.mubr.f32.gmra.mrb[168].mxu1 %v10579_v44 }
 0x747   :  { %5142 = vmatprep.mubr.f32.mxu1 %v3695_v51  ;;  %v3699_v51 = vld [vmem:[#allocation3 + $0x2f2] sm:$0xff] }
 0x74a   :  { %5143 = vmatmul.mubr.f32.gmra.mrb[170].mxu1 %v10582_v45 }
 0x74b   :  { %5147 = vmatprep.mubr.f32.mxu1 %v3696_v7  ;;  %v10598_v7 = vld [vmem:[#allocation3 + $0x301] sm:$0xff] }
 0x74e   :  { %5148 = vmatmul.mubr.f32.gmra.mrb[172].mxu1 %v10585_v23 }
 0x74f   :  { %5152 = vmatprep.mubr.f32.mxu1 %v3697_v17  ;;  %v10602_v17 = vld [vmem:[#allocation3 + $0x309] sm:$0xff] }
 0x752   :  { %5153 = vmatmul.mubr.f32.gmra.mrb[174].mxu1 %v10588_v24 }
 0x753   :  { %5157 = vmatprep.mubr.f32.mxu1 %v3698_v54  ;;  %v10606_v54 = vld [vmem:[#allocation3 + $0x319] sm:$0xff] }
 0x756   :  { %5158 = vmatmul.mubr.f32.gmra.mrb[176].mxu1 %v10591_v0 }
 0x757   :  { %5162 = vmatprep.mubr.f32.mxu1 %v3699_v51  ;;  %v10610_v51 = vld [vmem:[#allocation3 + $0x321] sm:$0xff] }
 0x758   :  { %11122 = vst [vmem:[#allocation53_spill] sm:$0xff] %v10610_v51 }
 0x75a   :  { %5163 = vmatmul.mubr.f32.gmra.mrb[178].mxu1 %v10594_v52 }
 0x75b   :  { %5167 = vmatprep.mubr.f32.mxu1 %v10362_v43  ;;  %v10613_v43 = vld [vmem:[#allocation3 + $0x332] sm:$0xff] }
 0x75c   :  { %11123 = vst [vmem:[#allocation56_spill] sm:$0xff] %v10613_v43 }
 0x75e   :  { %5168 = vmatmul.mubr.f32.gmra.mrb[180].mxu1 %v10598_v7 }
 0x75f   :  { %5172 = vmatprep.mubr.f32.mxu1 %v10366_v49  ;;  %v10616_v49 = vld [vmem:[#allocation3 + $0x331] sm:$0xff] }
 0x760   :  { %11124 = vst [vmem:[#allocation57_spill] sm:$0xff] %v10616_v49 }
 0x762   :  { %5173 = vmatmul.mubr.f32.gmra.mrb[182].mxu1 %v10602_v17 }
 0x763   :  { %5177 = vmatprep.mubr.f32.mxu1 %v10369_v37  ;;  %v10622_v37 = vld [vmem:[#allocation3 + $0x339] sm:$0xff] }
 0x766   :  { %5178 = vmatmul.mubr.f32.gmra.mrb[184].mxu1 %v10606_v54 }
 0x767   :  { %5182 = vmatprep.mubr.f32.mxu1 %v10372_v36  ;;  %v3707_v36 = vld [vmem:[#allocation3 + $0x30] sm:$0xff] }
 0x76a   :  { %5183 = vmatmul.mubr.f32.gmra.mrb[186].mxu1 %v10610_v51  ;;  %v3708_v51 = vld [vmem:[#allocation3 + $0x38] sm:$0xff] }
 0x76b   :  { %5187 = vmatprep.mubr.f32.mxu1 %v10613_v43  ;;  %v11126_v43 = vld [vmem:[#allocation16_spill] sm:$0xff] }
 0x76e   :  { %5188 = vmatmul.mubr.f32.gmra.mrb[188].mxu1 %v10616_v49  ;;  %v3709_v49 = vld [vmem:[#allocation3 + $0x48] sm:$0xff] }
 0x76f   :  { %5192 = vmatprep.mubr.f32.mxu1 %v10619_v13  ;;  %v11127_v13 = vld [vmem:[#allocation17_spill] sm:$0xff] }
 0x772   :  { %5193 = vmatmul.mubr.f32.gmra.mrb[190].mxu1 %v10622_v37 }
 0x773   :  { %5262 = vmatprep.mubr.f32.mxu1 %v10380_v3  ;;  %v11128_v3 = vld [vmem:[#allocation18_spill] sm:$0xff] }
 0x776   :  { %5263 = vmatmul.mubr.f32.vlgmr.msra.gmra.mrb[64].mxu1 %v3707_v36  ;;  %v3717_v36 = vld [vmem:[#allocation3 + $0xa8] sm:$0xff] }
 0x777   :  { %5267 = vmatprep.mubr.f32.mxu1 %v10385_v59  ;;  %7388 = vmatpush3.bf16.msra.mxu1 %v11114_v27  ;;  %v3710_v59 = vld [vmem:[#allocation3 + $0x50] sm:$0xff] }
 0x778   :  { %7381 = vmatprep.subr.bf16.mxu1 %v11126_v43  ;;  %v11129_v27 = vld [vmem:[#allocation19_spill] sm:$0xff] }
 0x77a   :  { %5268 = vmatmul.mubr.f32.gmra.mrb[66].mxu1 %v3708_v51  ;;  %v11130_v51 = vld [vmem:[#allocation20_spill] sm:$0xff] }
 0x77b   :  { %5272 = vmatprep.mubr.f32.mxu1 %v10390_v33  ;;  %7389 = vmatpush3.bf16.msra.mxu1 %v11126_v43  ;;  %v3711_v33 = vld [vmem:[#allocation3 + $0x60] sm:$0xff]  ;;  %v11132_v43 = vld [vmem:[#allocation24_spill] sm:$0xff] }
 0x77c   :  { %7382 = vmatprep.subr.bf16.mxu1 %v11127_v13 }
 0x77e   :  { %5273 = vmatmul.mubr.f32.gmra.mrb[68].mxu1 %v3709_v49  ;;  %v3715_v49 = vld [vmem:[#allocation3 + $0x90] sm:$0xff] }
 0x77f   :  { %5277 = vmatprep.mubr.f32.mxu1 %v10395_v62  ;;  %7390 = vmatpush3.bf16.msra.mxu1 %v11127_v13  ;;  %v3712_v62 = vld [vmem:[#allocation3 + $0x68] sm:$0xff]  ;;  %v11131_v13 = vld [vmem:[#allocation23_spill] sm:$0xff] }
 0x780   :  { %7383 = vmatprep.subr.bf16.mxu1 %v11128_v3 }
 0x782   :  { %5278 = vmatmul.mubr.f32.gmra.mrb[70].mxu1 %v3710_v59  ;;  %v3736_v59 = vld [vmem:[#allocation3 + $0x188] sm:$0xff] }
 0x783   :  { %5282 = vmatprep.mubr.f32.mxu1 %v10400_v11  ;;  %7391 = vmatpush3.bf16.msra.mxu1 %v11128_v3  ;;  %v3713_v11 = vld [vmem:[#allocation3 + $0x78] sm:$0xff]  ;;  %v3719_v3 = vld [vmem:[#allocation3 + $0xc0] sm:$0xff] }
 0x784   :  { %7384 = vmatprep.subr.bf16.mxu1 %v11129_v27 }
 0x786   :  { %5283 = vmatmul.mubr.f32.gmra.mrb[72].mxu1 %v3711_v33  ;;  %v3743_v33 = vld [vmem:[#allocation3 + $0x210] sm:$0xff] }
 0x787   :  { %5287 = vmatprep.mubr.f32.mxu1 %v10405_v31  ;;  %7392 = vmatpush3.bf16.msra.mxu1 %v11129_v27  ;;  %v3714_v31 = vld [vmem:[#allocation3 + $0x80] sm:$0xff] }
 0x788   :  { %7385 = vmatprep.subr.bf16.mxu1 %v11130_v51  ;;  %v10670_v27 = vld [vmem:[#allocation2] sm:$0xff] }
 0x78a   :  { %5288 = vmatmul.mubr.f32.gmra.mrb[74].mxu1 %v3712_v62  ;;  %v11133_v62 = vld [vmem:[#allocation22_spill] sm:$0xff] }
 0x78b   :  { %5292 = vmatprep.mubr.f32.mxu1 %v10410_v29  ;;  %7393 = vmatpush3.bf16.msra.mxu1 %v11130_v51  ;;  %v3716_v29 = vld [vmem:[#allocation3 + $0x98] sm:$0xff] }
 0x78c   :  { %7386 = vmatprep.subr.bf16.mxu1 %v11131_v13  ;;  %v3760_v51 = vld [vmem:[#allocation3 + $0x2d8] sm:$0xff] }
 0x78e   :  { %5293 = vmatmul.mubr.f32.gmra.mrb[76].mxu1 %v3713_v11  ;;  %v3761_v11 = vld [vmem:[#allocation3 + $0x2e8] sm:$0xff] }
 0x78f   :  { %5297 = vmatprep.mubr.f32.mxu1 %v10415_v42  ;;  %7394 = vmatpush3.bf16.msra.mxu1 %v11131_v13  ;;  %v3718_v42 = vld [vmem:[#allocation3 + $0xb0] sm:$0xff] }
 0x790   :  { %7387 = vmatprep.subr.bf16.mxu1 %v11132_v43 }
 0x792   :  { %5298 = vmatmul.mubr.f32.gmra.mrb[78].mxu1 %v3714_v31 }
 0x793   :  { %5302 = vmatprep.mubr.f32.mxu1 %v10420_v30  ;;  %7395 = vmatpush3.bf16.msra.mxu1 %v11132_v43  ;;  %v3720_v30 = vld [vmem:[#allocation3 + $0xc8] sm:$0xff] }
 0x796   :  { %5303 = vmatmul.mubr.f32.gmra.mrb[80].mxu1 %v3715_v49  ;;  %v10709_v49 = vld [vmem:[%s10933_s6] ss:$0 sm:$0xff] }
 0x797   :  { %5307 = vmatprep.mubr.f32.mxu1 %v10425_v9  ;;  %v3721_v9 = vld [vmem:[#allocation3 + $0xd8] sm:$0xff] }
 0x79a   :  { %5308 = vmatmul.mubr.f32.gmra.mrb[82].mxu1 %v3716_v29  ;;  %v3762_v29 = vld [vmem:[#allocation3 + $0x2f0] sm:$0xff] }
 0x79b   :  { %5312 = vmatprep.mubr.f32.mxu1 %v10429_v4  ;;  %v3722_v4 = vld [vmem:[#allocation3 + $0xe0] sm:$0xff] }
 0x79e   :  { %5313 = vmatmul.mubr.f32.gmra.mrb[84].mxu1 %v3717_v36  ;;  %v11135_v36 = vld [vmem:[#allocation14_spill] sm:$0xff] }
 0x79f   :  { %5317 = vmatprep.mubr.f32.mxu1 %v10433_v16  ;;  %v3723_v16 = vld [vmem:[#allocation3 + $0xf0] sm:$0xff] }
 0x7a2   :  { %5318 = vmatmul.mubr.f32.gmra.mrb[86].mxu1 %v3718_v42 }
 0x7a3   :  { %5322 = vmatprep.mubr.f32.mxu1 %v10438_v34  ;;  %v3724_v34 = vld [vmem:[#allocation3 + $0xf8] sm:$0xff] }
 0x7a6   :  { %5323 = vmatmul.mubr.f32.gmra.mrb[88].mxu1 %v3719_v3 }
 0x7a7   :  { %5327 = vmatprep.mubr.f32.mxu1 %v10442_v57  ;;  %v3725_v57 = vld [vmem:[#allocation3 + $0x108] sm:$0xff] }
 0x7aa   :  { %5328 = vmatmul.mubr.f32.gmra.mrb[90].mxu1 %v3720_v30 }
 0x7ab   :  { %5332 = vmatprep.mubr.f32.mxu1 %v10446_v8  ;;  %v3726_v8 = vld [vmem:[#allocation3 + $0x110] sm:$0xff] }
 0x7ae   :  { %5333 = vmatmul.mubr.f32.gmra.mrb[92].mxu1 %v3721_v9 }
 0x7af   :  { %5337 = vmatprep.mubr.f32.mxu1 %v10450_v58  ;;  %v3727_v58 = vld [vmem:[#allocation3 + $0x120] sm:$0xff] }
 0x7b2   :  { %5338 = vmatmul.mubr.f32.gmra.mrb[94].mxu1 %v3722_v4 }
 0x7b3   :  { %5342 = vmatprep.mubr.f32.mxu1 %v10455_v38  ;;  %v3728_v38 = vld [vmem:[#allocation3 + $0x128] sm:$0xff] }
 0x7b6   :  { %5343 = vmatmul.mubr.f32.gmra.mrb[96].mxu1 %v3723_v16  ;;  %v3763_v16 = vld [vmem:[#allocation3 + $0x300] sm:$0xff] }
 0x7b7   :  { %5347 = vmatprep.mubr.f32.mxu1 %v10459_v26  ;;  %v3729_v26 = vld [vmem:[#allocation3 + $0x138] sm:$0xff] }
 0x7ba   :  { %5348 = vmatmul.mubr.f32.gmra.mrb[98].mxu1 %v3724_v34 }
 0x7bb   :  { %5352 = vmatprep.mubr.f32.mxu1 %v10463_v6  ;;  %v3730_v6 = vld [vmem:[#allocation3 + $0x140] sm:$0xff] }
 0x7be   :  { %5353 = vmatmul.mubr.f32.gmra.mrb[100].mxu1 %v3725_v57  ;;  %v11136_v57 = vld [vmem:[#allocation13_spill] sm:$0xff] }
 0x7bf   :  { %5357 = vmatprep.mubr.f32.mxu1 %v10467_v55  ;;  %v3731_v55 = vld [vmem:[#allocation3 + $0x150] sm:$0xff] }
 0x7c2   :  { %5358 = vmatmul.mubr.f32.gmra.mrb[102].mxu1 %v3726_v8 }
 0x7c3   :  { %5362 = vmatprep.mubr.f32.mxu1 %v10472_v61  ;;  %v3732_v61 = vld [vmem:[#allocation3 + $0x158] sm:$0xff] }
 0x7c6   :  { %5363 = vmatmul.mubr.f32.gmra.mrb[104].mxu1 %v3727_v58 }
 0x7c7   :  { %5367 = vmatprep.mubr.f32.mxu1 %v10476_v18  ;;  %v3733_v18 = vld [vmem:[#allocation3 + $0x168] sm:$0xff] }
 0x7ca   :  { %5368 = vmatmul.mubr.f32.gmra.mrb[106].mxu1 %v3728_v38 }
 0x7cb   :  { %5372 = vmatprep.mubr.f32.mxu1 %v10480_v22  ;;  %v3734_v22 = vld [vmem:[#allocation3 + $0x170] sm:$0xff] }
 0x7ce   :  { %5373 = vmatmul.mubr.f32.gmra.mrb[108].mxu1 %v3729_v26 }
 0x7cf   :  { %5377 = vmatprep.mubr.f32.mxu1 %v10484_v2  ;;  %v3735_v2 = vld [vmem:[#allocation3 + $0x180] sm:$0xff] }
 0x7d2   :  { %5378 = vmatmul.mubr.f32.gmra.mrb[110].mxu1 %v3730_v6 }
 0x7d3   :  { %5382 = vmatprep.mubr.f32.mxu1 %v10489_v25  ;;  %v3801_v25 = vld [vmem:[#allocation3 + $0x199] sm:$0xff] }
 0x7d6   :  { %5383 = vmatmul.mubr.f32.gmra.mrb[112].mxu1 %v3731_v55 }
 0x7d7   :  { %5387 = vmatprep.mubr.f32.mxu1 %v10493_v53  ;;  %v3802_v53 = vld [vmem:[#allocation3 + $0x1a1] sm:$0xff] }
 0x7da   :  { %5388 = vmatmul.mubr.f32.gmra.mrb[114].mxu1 %v3732_v61  ;;  %v3764_v61 = vld [vmem:[#allocation3 + $0x308] sm:$0xff] }
 0x7db   :  { %5392 = vmatprep.mubr.f32.mxu1 %v10497_v46  ;;  %v3739_v46 = vld [vmem:[#allocation3 + $0x1e0] sm:$0xff] }
 0x7de   :  { %5393 = vmatmul.mubr.f32.gmra.mrb[116].mxu1 %v3733_v18 }
 0x7df   :  { %5397 = vmatprep.mubr.f32.mxu1 %v10501_v40  ;;  %v3740_v40 = vld [vmem:[#allocation3 + $0x1e8] sm:$0xff] }
 0x7e2   :  { %5398 = vmatmul.mubr.f32.gmra.mrb[118].mxu1 %v3734_v22 }
 0x7e3   :  { %5402 = vmatprep.mubr.f32.mxu1 %v10505_v15  ;;  %v3741_v15 = vld [vmem:[#allocation3 + $0x1f8] sm:$0xff] }
 0x7e6   :  { %5403 = vmatmul.mubr.f32.gmra.mrb[120].mxu1 %v3735_v2  ;;  %v11137_v2 = vld [vmem:[#allocation26_spill] sm:$0xff] }
 0x7e7   :  { %5407 = vmatprep.mubr.f32.mxu1 %v10508_v48  ;;  %v3742_v48 = vld [vmem:[#allocation3 + $0x200] sm:$0xff] }
 0x7ea   :  { %5408 = vmatmul.mubr.f32.gmra.mrb[122].mxu1 %v3736_v59 }
 0x7eb   :  { %5412 = vmatprep.mubr.f32.mxu1 %v3801_v25 }
 0x7ee   :  { %5413 = vmatmul.mubr.f32.gmra.mrb[124].mxu1 %v10670_v27 }
 0x7ef   :  { %5417 = vmatprep.mubr.f32.mxu1 %v3802_v53 }
 0x7f2   :  { %5418 = vmatmul.mubr.f32.gmra.mrb[126].mxu1 %v10670_v27 }
 0x7f3   :  { %5422 = vmatprep.mubr.f32.mxu1 %v10514_v60  ;;  %v3744_v60 = vld [vmem:[#allocation3 + $0x218] sm:$0xff] }
 0x7f6   :  { %5423 = vmatmul.mubr.f32.gmra.mrb[128].mxu1 %v3739_v46 }
 0x7f7   :  { %5427 = vmatprep.mubr.f32.mxu1 %v10518_v56  ;;  %v3745_v56 = vld [vmem:[#allocation3 + $0x228] sm:$0xff] }
 0x7fa   :  { %5428 = vmatmul.mubr.f32.gmra.mrb[130].mxu1 %v3740_v40 }
 0x7fb   :  { %5432 = vmatprep.mubr.f32.mxu1 %v10522_v47  ;;  %v3746_v47 = vld [vmem:[#allocation3 + $0x230] sm:$0xff] }
 0x7fe   :  { %5433 = vmatmul.mubr.f32.gmra.mrb[132].mxu1 %v3741_v15  ;;  %v3765_v15 = vld [vmem:[#allocation3 + $0x318] sm:$0xff] }
 0x7ff   :  { %5437 = vmatprep.mubr.f32.mxu1 %v10526_v20  ;;  %v3747_v20 = vld [vmem:[#allocation3 + $0x240] sm:$0xff] }
 0x802   :  { %5438 = vmatmul.mubr.f32.gmra.mrb[134].mxu1 %v3742_v48 }
 0x803   :  { %5442 = vmatprep.mubr.f32.mxu1 %v10530_v1  ;;  %v3748_v1 = vld [vmem:[#allocation3 + $0x248] sm:$0xff] }
 0x806   :  { %5443 = vmatmul.mubr.f32.gmra.mrb[136].mxu1 %v3743_v33 }
 0x807   :  { %5447 = vmatprep.mubr.f32.mxu1 %v10534_v12  ;;  %v3749_v12 = vld [vmem:[#allocation3 + $0x258] sm:$0xff] }
 0x80a   :  { %5448 = vmatmul.mubr.f32.gmra.mrb[138].mxu1 %v3744_v60  ;;  %v11138_v60 = vld [vmem:[#allocation25_spill] sm:$0xff] }
 0x80b   :  { %5452 = vmatprep.mubr.f32.mxu1 %v10538_v39  ;;  %v3750_v39 = vld [vmem:[#allocation3 + $0x260] sm:$0xff] }
 0x80e   :  { %5453 = vmatmul.mubr.f32.gmra.mrb[140].mxu1 %v3745_v56 }
 0x80f   :  { %5457 = vmatprep.mubr.f32.mxu1 %v10542_v63  ;;  %v3751_v63 = vld [vmem:[#allocation3 + $0x270] sm:$0xff] }
 0x812   :  { %5458 = vmatmul.mubr.f32.gmra.mrb[142].mxu1 %v3746_v47 }
 0x813   :  { %5462 = vmatprep.mubr.f32.mxu1 %v10546_v10  ;;  %v3752_v10 = vld [vmem:[#allocation3 + $0x278] sm:$0xff] }
 0x816   :  { %5463 = vmatmul.mubr.f32.gmra.mrb[144].mxu1 %v3747_v20  ;;  %v11139_v20 = vld [vmem:[#allocation53_spill] sm:$0xff] }
 0x817   :  { %5467 = vmatprep.mubr.f32.mxu1 %v10550_v5  ;;  %v3753_v5 = vld [vmem:[#allocation3 + $0x288] sm:$0xff] }
 0x81a   :  { %5468 = vmatmul.mubr.f32.gmra.mrb[146].mxu1 %v3748_v1 }
 0x81b   :  { %5472 = vmatprep.mubr.f32.mxu1 %v10554_v32  ;;  %v3754_v32 = vld [vmem:[#allocation3 + $0x290] sm:$0xff] }
 0x81e   :  { %5473 = vmatmul.mubr.f32.gmra.mrb[148].mxu1 %v3749_v12 }
 0x81f   :  { %5477 = vmatprep.mubr.f32.mxu1 %v10558_v19  ;;  %v3755_v19 = vld [vmem:[#allocation3 + $0x2a0] sm:$0xff] }
 0x822   :  { %5478 = vmatmul.mubr.f32.gmra.mrb[150].mxu1 %v3750_v39 }
 0x823   :  { %5482 = vmatprep.mubr.f32.mxu1 %v10561_v50  ;;  %v3756_v50 = vld [vmem:[#allocation3 + $0x2a8] sm:$0xff] }
 0x826   :  { %5483 = vmatmul.mubr.f32.gmra.mrb[152].mxu1 %v3751_v63 }
 0x827   :  { %5487 = vmatprep.mubr.f32.mxu1 %v10564_v14  ;;  %v3757_v14 = vld [vmem:[#allocation3 + $0x2b8] sm:$0xff] }
 0x82a   :  { %5488 = vmatmul.mubr.f32.gmra.mrb[154].mxu1 %v3752_v10  ;;  %v3766_v10 = vld [vmem:[#allocation3 + $0x320] sm:$0xff] }
 0x82b   :  { %5492 = vmatprep.mubr.f32.mxu1 %v10567_v35  ;;  %v3758_v35 = vld [vmem:[#allocation3 + $0x2c0] sm:$0xff] }
 0x82e   :  { %5493 = vmatmul.mubr.f32.gmra.mrb[156].mxu1 %v3753_v5  ;;  %v11140_v5 = vld [vmem:[#allocation28_spill] sm:$0xff] }
 0x82f   :  { %5497 = vmatprep.mubr.f32.mxu1 %v10570_v28  ;;  %v3759_v28 = vld [vmem:[#allocation3 + $0x2d0] sm:$0xff] }
 0x832   :  { %5498 = vmatmul.mubr.f32.gmra.mrb[158].mxu1 %v3754_v32 }
 0x833   :  { %5502 = vmatprep.mubr.f32.mxu1 %v10573_v21 }
 0x836   :  { %5503 = vmatmul.mubr.f32.gmra.mrb[160].mxu1 %v3755_v19 }
 0x837   :  { %5507 = vmatprep.mubr.f32.mxu1 %v10576_v41 }
 0x83a   :  { %5508 = vmatmul.mubr.f32.gmra.mrb[162].mxu1 %v3756_v50  ;;  %v11141_v50 = vld [vmem:[#allocation57_spill] sm:$0xff] }
 0x83b   :  { %5512 = vmatprep.mubr.f32.mxu1 %v10579_v44  ;;  %v10701_v44 = vld [vmem:[%s10932_s5] ss:$0 sm:$0xff] }
 0x83e   :  { %5513 = vmatmul.mubr.f32.gmra.mrb[164].mxu1 %v3757_v14 }
 0x83f   :  { %5517 = vmatprep.mubr.f32.mxu1 %v10582_v45 }
 0x842   :  { %5518 = vmatmul.mubr.f32.gmra.mrb[166].mxu1 %v3758_v35 }
 0x843   :  { %5522 = vmatprep.mubr.f32.mxu1 %v10585_v23  ;;  %v11134_v23 = vld [vmem:[#allocation21_spill] sm:$0xff] }
 0x846   :  { %5523 = vmatmul.mubr.f32.gmra.mrb[168].mxu1 %v3759_v28 }
 0x847   :  { %5527 = vmatprep.mubr.f32.mxu1 %v10588_v24 }
 0x849   :  { %v5264_v21 = vpop.f32.mrb[64].mxu1 }
 0x84a   :  { %v5650_v41 = vadd.f32 %v11133_v62, %v5264_v21  ;;  %v5266_v13 = vpop.f32.mrb[65].mxu1  ;;  %5528 = vmatmul.mubr.f32.gmra.mrb[170].mxu1 %v3760_v51  ;;  %v3767_v62 = vld [vmem:[#allocation3 + $0x330] sm:$0xff] }
 0x84b   :  { %5532 = vmatprep.mubr.f32.mxu1 %v10591_v0  ;;  %v11142_v13 = vld [vmem:[#allocation27_spill] sm:$0xff] }
 0x84c   :  { %v5975_v24 = vmul.f32 %v10701_v44, %v5650_v41 }
 0x84d   :  { %v5269_v45 = vpop.f32.mrb[66].mxu1 }
 0x84e   :  { %v5655_v43 = vadd.f32 %v11134_v23, %v5269_v45  ;;  %v5271_v31 = vpop.f32.mrb[67].mxu1  ;;  %5533 = vmatmul.mubr.f32.gmra.mrb[172].mxu1 %v3761_v11  ;;  %v6046_v30 = vadd.f32 %v10709_v49, %v5975_v24 }
 0x84f   :  { %5537 = vmatprep.mubr.f32.mxu1 %v10594_v52 }
 0x850   :  { %v5976_v9 = vmul.f32 %v10701_v44, %v5655_v43  ;;  %v6110_v38 = vmax.f32 %v6046_v30, 0.0  ;;  %v11143_v30 = vld [vmem:[#allocation30_spill] sm:$0xff] }
 0x851   :  { %v5274_v0 = vpop.f32.mrb[68].mxu1 }
 0x852   :  { %v5660_v42 = vadd.f32 %v11135_v36, %v5274_v0  ;;  %v5276_v3 = vpop.f32.mrb[69].mxu1  ;;  %5538 = vmatmul.mubr.f32.gmra.mrb[174].mxu1 %v3762_v29  ;;  %v6047_v26 = vadd.f32 %v10709_v49, %v5976_v9  ;;  %v3833_v0 = vld [vmem:[#allocation3 + $0x349] sm:$0xff]  ;;  %v3768_v36 = vld [vmem:[#allocation3 + $0x338] sm:$0xff] }
 0x853   :  { %5542 = vmatprep.mubr.f32.mxu1 %v10598_v7 }
 0x854   :  { %v5977_v52 = vmul.f32 %v10701_v44, %v5660_v42  ;;  %v6111_v53 = vmax.f32 %v6047_v26, 0.0 }
 0x855   :  { %v5279_v4 = vpop.f32.mrb[70].mxu1 }
 0x856   :  { %v6048_v34 = vadd.f32 %v10709_v49, %v5977_v52  ;;  %v5665_v8 = vadd.f32 %v11136_v57, %v5279_v4  ;;  %v5281_v58 = vpop.f32.mrb[71].mxu1  ;;  %5543 = vmatmul.mubr.f32.gmra.mrb[176].mxu1 %v3763_v16 }
 0x857   :  { %5547 = vmatprep.mubr.f32.mxu1 %v10602_v17 }
 0x858   :  { %v6112_v7 = vmax.f32 %v6048_v34, 0.0  ;;  %v5978_v6 = vmul.f32 %v10701_v44, %v5665_v8  ;;  %v3834_v34 = vld [vmem:[#allocation3 + $0x351] sm:$0xff] }
 0x859   :  { %v5284_v55 = vpop.f32.mrb[72].mxu1 }
 0x85a   :  { %v6174_v18 = vadd.f32 %v6112_v7, %v6110_v38  ;;  %v6049_v22 = vadd.f32 %v10709_v49, %v5978_v6  ;;  %v5670_v25 = vadd.f32 %v11137_v2, %v5284_v55  ;;  %v5286_v59 = vpop.f32.mrb[73].mxu1  ;;  %5548 = vmatmul.mubr.f32.gmra.mrb[178].mxu1 %v3764_v61  ;;  %v11144_v38 = vld [vmem:[#allocation29_spill] sm:$0xff]  ;;  %v11145_v2 = vld [vmem:[#allocation32_spill] sm:$0xff] }
 0x85b   :  { %5552 = vmatprep.mubr.f32.mxu1 %v10606_v54 }
 0x85c   :  { %v6222_v46 = vrot.slane %v6174_v18, 1  ;;  %v6113_v17 = vmax.f32 %v6049_v22, 0.0  ;;  %v5979_v39 = vmul.f32 %v10701_v44, %v5670_v25 }
 0x85d   :  { %v5289_v40 = vpop.f32.mrb[74].mxu1 }
 0x85e   :  { %v6254_v48 = vadd.f32 %v6222_v46, %v6174_v18  ;;  %v6175_v33 = vadd.f32 %v6113_v17, %v6111_v53  ;;  %v5675_v56 = vadd.f32 %v11138_v60, %v5289_v40  ;;  %v5291_v47 = vpop.f32.mrb[75].mxu1  ;;  %5553 = vmatmul.mubr.f32.gmra.mrb[180].mxu1 %v3765_v15  ;;  %v6050_v35 = vadd.f32 %v10709_v49, %v5979_v39  ;;  %v3891_v53 = vld [vmem:[#allocation3 + $0x302] sm:$0xff] }
 0x85f   :  { %5557 = vmatprep.mubr.f32.mxu1 %v11139_v20  ;;  %v3893_v20 = vld [vmem:[#allocation3 + $0x31a] sm:$0xff] }
 0x860   :  { %v6270_v1 = vmul.f32 0.25, %v6254_v48  ;;  %v6366_v12 = vrot.slane %v6175_v33, 1  ;;  %v5980_v28 = vmul.f32 %v10701_v44, %v5675_v56  ;;  %v6114_v23 = vmax.f32 %v6050_v35, 0.0  ;;  %v11146_v56 = vld [vmem:[#allocation31_spill] sm:$0xff]  ;;  %v11148_v35 = vld [vmem:[#allocation56_spill] sm:$0xff] }
 0x861   :  { %v5294_v63 = vpop.f32.mrb[76].mxu1 }
 0x862   :  { %6286 = vst [vmem:[#allocation9] sm:$0x1] %v6270_v1  ;;  %6302 = vst [vmem:[#allocation9 - $0x1] sm:$0x4] %v6270_v1  ;;  %v6398_v54 = vadd.f32 %v6366_v12, %v6175_v33  ;;  %v5680_v32 = vadd.f32 %v11140_v5, %v5294_v63  ;;  %v5296_v19 = vpop.f32.mrb[77].mxu1  ;;  %5558 = vmatmul.mubr.f32.gmra.mrb[182].mxu1 %v3766_v10  ;;  %v6051_v43 = vadd.f32 %v10709_v49, %v5980_v28  ;;  %v3892_v33 = vld [vmem:[#allocation3 + $0x30a] sm:$0xff] }
 0x863   :  { %6318 = vst [vmem:[#allocation9 - $0x2] sm:$0x10] %v6270_v1  ;;  %6334 = vst [vmem:[#allocation9 - $0x3] sm:$0x40] %v6270_v1  ;;  %5562 = vmatprep.mubr.f32.mxu1 %v11141_v50  ;;  %v11147_v19 = vld [vmem:[#allocation34_spill] sm:$0xff] }
 0x864   :  { %v6414_v14 = vmul.f32 0.25, %v6398_v54  ;;  %v5981_v21 = vmul.f32 %v10701_v44, %v5680_v32  ;;  %v6115_v4 = vmax.f32 %v6051_v43, 0.0  ;;  %v3894_v54 = vld [vmem:[#allocation3 + $0x322] sm:$0xff] }
 0x865   :  { %v5299_v51 = vpop.f32.mrb[78].mxu1 }
 0x866   :  { %6430 = vst [vmem:[#allocation9 + $0x4] sm:$0x1] %v6414_v14  ;;  %6446 = vst [vmem:[#allocation9 + $0x3] sm:$0x4] %v6414_v14  ;;  %v6052_v41 = vadd.f32 %v10709_v49, %v5981_v21  ;;  %v5685_v45 = vadd.f32 %v11142_v13, %v5299_v51  ;;  %v5301_v11 = vpop.f32.mrb[79].mxu1  ;;  %5563 = vmatmul.mubr.f32.gmra.mrb[184].mxu1 %v3767_v62  ;;  %v3897_v62 = vld [vmem:[#allocation3 + $0x34a] sm:$0xff] }
 0x867   :  { %6462 = vst [vmem:[#allocation9 + $0x2] sm:$0x10] %v6414_v14  ;;  %6478 = vst [vmem:[#allocation9 + $0x1] sm:$0x40] %v6414_v14  ;;  %5567 = vmatprep.mubr.f32.mxu1 %v10622_v37  ;;  %v11149_v11 = vld [vmem:[#allocation33_spill] sm:$0xff] }
 0x868   :  { %v6116_v31 = vmax.f32 %v6052_v41, 0.0  ;;  %v5982_v24 = vmul.f32 %v10701_v44, %v5685_v45 }
 0x869   :  { %v5304_v29 = vpop.f32.mrb[80].mxu1 }
 0x86a   :  { %v6176_v42 = vadd.f32 %v6116_v31, %v6114_v23  ;;  %v6053_v3 = vadd.f32 %v10709_v49, %v5982_v24  ;;  %v5690_v9 = vadd.f32 %v11143_v30, %v5304_v29  ;;  %v5306_v52 = vpop.f32.mrb[81].mxu1  ;;  %5568 = vmatmul.mubr.f32.gmra.mrb[186].mxu1 %v3768_v36  ;;  %v11150_v31 = vld [vmem:[#allocation60_spill] sm:$0xff] }
 0x86b   :  { %5572 = vmatprep.mubr.f32.mxu1 %v3833_v0  ;;  %v3898_v24 = vld [vmem:[#allocation3 + $0x352] sm:$0xff] }
 0x86c   :  { %v6223_v16 = vrot.slane %v6176_v42, 1  ;;  %v6117_v37 = vmax.f32 %v6053_v3, 0.0  ;;  %v5983_v61 = vmul.f32 %v10701_v44, %v5690_v9  ;;  %v11151_v30 = vld [vmem:[#allocation36_spill] sm:$0xff] }
 0x86d   :  { %v5309_v57 = vpop.f32.mrb[82].mxu1 }
 0x86e   :  { %v6255_v8 = vadd.f32 %v6223_v16, %v6176_v42  ;;  %v6177_v58 = vadd.f32 %v6117_v37, %v6115_v4  ;;  %v5695_v26 = vadd.f32 %v11144_v38, %v5309_v57  ;;  %v5311_v7 = vpop.f32.mrb[83].mxu1  ;;  %5573 = vmatmul.mubr.f32.gmra.mrb[188].mxu1 %v10670_v27  ;;  %v6054_v17 = vadd.f32 %v10709_v49, %v5983_v61 }
 0x86f   :  { %5577 = vmatprep.mubr.f32.mxu1 %v3834_v34 }
 0x870   :  { %v6271_v6 = vmul.f32 0.25, %v6255_v8  ;;  %v6367_v55 = vrot.slane %v6177_v58, 1  ;;  %v5984_v40 = vmul.f32 %v10701_v44, %v5695_v26  ;;  %v6118_v1 = vmax.f32 %v6054_v17, 0.0 }
 0x871   :  { %v5314_v18 = vpop.f32.mrb[84].mxu1 }
 0x872   :  { %6287 = vst [vmem:[#allocation9 + $0x8] sm:$0x1] %v6271_v6  ;;  %6303 = vst [vmem:[#allocation9 + $0x7] sm:$0x4] %v6271_v6  ;;  %v6399_v22 = vadd.f32 %v6367_v55, %v6177_v58  ;;  %v5700_v25 = vadd.f32 %v11145_v2, %v5314_v18  ;;  %v5316_v59 = vpop.f32.mrb[85].mxu1  ;;  %5578 = vmatmul.mubr.f32.gmra.mrb[190].mxu1 %v10670_v27  ;;  %v6055_v12 = vadd.f32 %v10709_v49, %v5984_v40  ;;  %v11152_v58 = vld [vmem:[#allocation35_spill] sm:$0xff] }
 0x873   :  { %6319 = vst [vmem:[#allocation9 + $0x6] sm:$0x10] %v6271_v6  ;;  %6335 = vst [vmem:[#allocation9 + $0x5] sm:$0x40] %v6271_v6  ;;  %6920 = vmatprep.mubr.f32.mxu1 %v3891_v53 }
 0x874   :  { %v6415_v46 = vmul.f32 0.25, %v6399_v22  ;;  %v5985_v15 = vmul.f32 %v10701_v44, %v5700_v25  ;;  %v6119_v28 = vmax.f32 %v6055_v12, 0.0  ;;  %v11153_v25 = vld [vmem:[#allocation38_spill] sm:$0xff] }
 0x875   :  { %v5319_v48 = vpop.f32.mrb[86].mxu1 }
 0x876   :  { %6431 = vst [vmem:[#allocation9 + $0xc] sm:$0x1] %v6415_v46  ;;  %6447 = vst [vmem:[#allocation9 + $0xb] sm:$0x4] %v6415_v46  ;;  %v6056_v60 = vadd.f32 %v10709_v49, %v5985_v15  ;;  %v5705_v47 = vadd.f32 %v11146_v56, %v5319_v48  ;;  %v5321_v27 = vpop.f32.mrb[87].mxu1  ;;  %6921 = vmatmul.mubr.f32.vlgmr.msra.gmra.mrb[192].mxu1 %v3892_v33 }
 0x877   :  { %6463 = vst [vmem:[#allocation9 + $0xa] sm:$0x10] %v6415_v46  ;;  %6479 = vst [vmem:[#allocation9 + $0x9] sm:$0x40] %v6415_v46  ;;  %6923 = vmatprep.mubr.f32.mxu1 %v3893_v20 }
 0x878   :  { %v6120_v39 = vmax.f32 %v6056_v60, 0.0  ;;  %v5986_v63 = vmul.f32 %v10701_v44, %v5705_v47  ;;  %v11154_v60 = vld [vmem:[#allocation37_spill] sm:$0xff] }
 0x879   :  { %v5324_v10 = vpop.f32.mrb[88].mxu1 }
 0x87a   :  { %v6178_v5 = vadd.f32 %v6120_v39, %v6118_v1  ;;  %v6057_v32 = vadd.f32 %v10709_v49, %v5986_v63  ;;  %v5710_v50 = vadd.f32 %v11147_v19, %v5324_v10  ;;  %v5326_v14 = vpop.f32.mrb[89].mxu1  ;;  %6924 = vmatmul.mubr.f32.gmra.mrb[194].mxu1 %v3894_v54  ;;  %v11155_v63 = vld [vmem:[#allocation40_spill] sm:$0xff] }
 0x87b   :  { %6926 = vmatprep.mubr.f32.mxu1 %v11148_v35 }
 0x87c   :  { %v6224_v21 = vrot.slane %v6178_v5, 1  ;;  %v6121_v51 = vmax.f32 %v6057_v32, 0.0  ;;  %v5987_v36 = vmul.f32 %v10701_v44, %v5710_v50 }
 0x87d   :  { %v5329_v41 = vpop.f32.mrb[90].mxu1 }
 0x87e   :  { %v6256_v13 = vadd.f32 %v6224_v21, %v6178_v5  ;;  %v6179_v45 = vadd.f32 %v6121_v51, %v6119_v28  ;;  %v5715_v23 = vadd.f32 %v11149_v11, %v5329_v41  ;;  %v5331_v43 = vpop.f32.mrb[91].mxu1  ;;  %6927 = vmatmul.mubr.f32.gmra.mrb[196].mxu1 %v11150_v31  ;;  %v6058_v16 = vadd.f32 %v10709_v49, %v5987_v36  ;;  %v11156_v28 = vld [vmem:[#allocation39_spill] sm:$0xff]  ;;  %v11157_v31 = vld [vmem:[#allocation42_spill] sm:$0xff] }
 0x87f   :  { %6929 = vmatprep.mubr.f32.mxu1 %v3897_v62 }
 0x880   :  { %v6272_v0 = vmul.f32 0.25, %v6256_v13  ;;  %v6368_v29 = vrot.slane %v6179_v45, 1  ;;  %v5988_v37 = vmul.f32 %v10701_v44, %v5715_v23  ;;  %v6122_v7 = vmax.f32 %v6058_v16, 0.0 }
 0x881   :  { %v5334_v42 = vpop.f32.mrb[92].mxu1 }
 0x882   :  { %6288 = vst [vmem:[#allocation9 + $0x10] sm:$0x1] %v6272_v0  ;;  %6304 = vst [vmem:[#allocation9 + $0xf] sm:$0x4] %v6272_v0  ;;  %v6400_v3 = vadd.f32 %v6368_v29, %v6179_v45  ;;  %v5720_v9 = vadd.f32 %v11151_v30, %v5334_v42  ;;  %v5336_v52 = vpop.f32.mrb[93].mxu1  ;;  %6930 = vmatmul.mubr.f32.gmra.mrb[198].mxu1 %v3898_v24  ;;  %v6059_v6 = vadd.f32 %v10709_v49, %v5988_v37 }
 0x883   :  { %6320 = vst [vmem:[#allocation9 + $0xe] sm:$0x10] %v6272_v0  ;;  %6336 = vst [vmem:[#allocation9 + $0xd] sm:$0x40] %v6272_v0  ;;  %v11158_v52 = vld [vmem:[#allocation41_spill] sm:$0xff] }
 0x884   :  { %v6416_v4 = vmul.f32 0.25, %v6400_v3  ;;  %v5989_v34 = vmul.f32 %v10701_v44, %v5720_v9  ;;  %v6123_v46 = vmax.f32 %v6059_v6, 0.0 }
 0x885   :  { %v5339_v57 = vpop.f32.mrb[94].mxu1 }
 0x886   :  { %6432 = vst [vmem:[#allocation9 + $0x14] sm:$0x1] %v6416_v4  ;;  %6448 = vst [vmem:[#allocation9 + $0x13] sm:$0x4] %v6416_v4  ;;  %v6060_v8 = vadd.f32 %v10709_v49, %v5989_v34  ;;  %v5725_v38 = vadd.f32 %v11152_v58, %v5339_v57  ;;  %v5341_v26 = vpop.f32.mrb[95].mxu1 }
 0x887   :  { %6464 = vst [vmem:[#allocation9 + $0x12] sm:$0x10] %v6416_v4  ;;  %6480 = vst [vmem:[#allocation9 + $0x11] sm:$0x40] %v6416_v4 }
 0x888   :  { %v6124_v55 = vmax.f32 %v6060_v8, 0.0  ;;  %v5990_v61 = vmul.f32 %v10701_v44, %v5725_v38  ;;  %v11159_v38 = vld [vmem:[#allocation44_spill] sm:$0xff] }
 0x889   :  { %v5344_v18 = vpop.f32.mrb[96].mxu1 }
 0x88a   :  { %v6180_v22 = vadd.f32 %v6124_v55, %v6122_v7  ;;  %v6061_v2 = vadd.f32 %v10709_v49, %v5990_v61  ;;  %v5730_v59 = vadd.f32 %v11153_v25, %v5344_v18  ;;  %v5346_v53 = vpop.f32.mrb[97].mxu1  ;;  %v11160_v25 = vld [vmem:[#allocation43_spill] sm:$0xff] }
 0x88c   :  { %v6225_v17 = vrot.slane %v6180_v22, 1  ;;  %v6125_v40 = vmax.f32 %v6061_v2, 0.0  ;;  %v5991_v1 = vmul.f32 %v10701_v44, %v5730_v59 }
 0x88d   :  { %v5349_v15 = vpop.f32.mrb[98].mxu1 }
 0x88e   :  { %v6257_v48 = vadd.f32 %v6225_v17, %v6180_v22  ;;  %v6181_v33 = vadd.f32 %v6125_v40, %v6123_v46  ;;  %v5735_v56 = vadd.f32 %v11154_v60, %v5349_v15  ;;  %v5351_v47 = vpop.f32.mrb[99].mxu1  ;;  %v6062_v32 = vadd.f32 %v10709_v49, %v5991_v1 }
 0x890   :  { %v6273_v27 = vmul.f32 0.25, %v6257_v48  ;;  %v6369_v20 = vrot.slane %v6181_v33, 1  ;;  %v5992_v19 = vmul.f32 %v10701_v44, %v5735_v56  ;;  %v6126_v62 = vmax.f32 %v6062_v32, 0.0  ;;  %v11161_v56 = vld [vmem:[#allocation46_spill] sm:$0xff] }
 0x891   :  { %v5354_v12 = vpop.f32.mrb[100].mxu1 }
 0x892   :  { %6289 = vst [vmem:[#allocation9 + $0x18] sm:$0x1] %v6273_v27  ;;  %6305 = vst [vmem:[#allocation9 + $0x17] sm:$0x4] %v6273_v27  ;;  %v6401_v39 = vadd.f32 %v6369_v20, %v6181_v33  ;;  %v5740_v10 = vadd.f32 %v11155_v63, %v5354_v12  ;;  %v5356_v54 = vpop.f32.mrb[101].mxu1  ;;  %v6063_v41 = vadd.f32 %v10709_v49, %v5992_v19 }
 0x893   :  { %6321 = vst [vmem:[#allocation9 + $0x16] sm:$0x10] %v6273_v27  ;;  %6337 = vst [vmem:[#allocation9 + $0x15] sm:$0x40] %v6273_v27  ;;  %v11162_v54 = vld [vmem:[#allocation45_spill] sm:$0xff] }
 0x894   :  { %v6417_v5 = vmul.f32 0.25, %v6401_v39  ;;  %v5993_v50 = vmul.f32 %v10701_v44, %v5740_v10  ;;  %v6127_v29 = vmax.f32 %v6063_v41, 0.0 }
 0x895   :  { %v5359_v14 = vpop.f32.mrb[102].mxu1 }
 0x896   :  { %6433 = vst [vmem:[#allocation9 + $0x1c] sm:$0x1] %v6417_v5  ;;  %6449 = vst [vmem:[#allocation9 + $0x1b] sm:$0x4] %v6417_v5  ;;  %v6064_v35 = vadd.f32 %v10709_v49, %v5993_v50  ;;  %v5745_v21 = vadd.f32 %v11156_v28, %v5359_v14  ;;  %v5361_v51 = vpop.f32.mrb[103].mxu1 }
 0x897   :  { %6465 = vst [vmem:[#allocation9 + $0x1a] sm:$0x10] %v6417_v5  ;;  %6481 = vst [vmem:[#allocation9 + $0x19] sm:$0x40] %v6417_v5 }
 0x898   :  { %v6128_v13 = vmax.f32 %v6064_v35, 0.0  ;;  %v5994_v45 = vmul.f32 %v10701_v44, %v5745_v21  ;;  %v11163_v21 = vld [vmem:[#allocation48_spill] sm:$0xff] }
 0x899   :  { %v5364_v11 = vpop.f32.mrb[104].mxu1 }
 0x89a   :  { %v6182_v23 = vadd.f32 %v6128_v13, %v6126_v62  ;;  %v6065_v43 = vadd.f32 %v10709_v49, %v5994_v45  ;;  %v5750_v24 = vadd.f32 %v11157_v31, %v5364_v11  ;;  %v5366_v0 = vpop.f32.mrb[105].mxu1  ;;  %v11164_v31 = vld [vmem:[#allocation47_spill] sm:$0xff] }
 0x89c   :  { %v6226_v36 = vrot.slane %v6182_v23, 1  ;;  %v6129_v42 = vmax.f32 %v6065_v43, 0.0  ;;  %v5995_v57 = vmul.f32 %v10701_v44, %v5750_v24 }
 0x89d   :  { %v5369_v3 = vpop.f32.mrb[106].mxu1 }
 0x89e   :  { %v6258_v30 = vadd.f32 %v6226_v36, %v6182_v23  ;;  %v6183_v9 = vadd.f32 %v6129_v42, %v6127_v29  ;;  %v5755_v4 = vadd.f32 %v11158_v52, %v5369_v3  ;;  %v5371_v16 = vpop.f32.mrb[107].mxu1  ;;  %v6066_v55 = vadd.f32 %v10709_v49, %v5995_v57 }
 0x8a0   :  { %v6274_v37 = vmul.f32 0.25, %v6258_v30  ;;  %v6370_v34 = vrot.slane %v6183_v9, 1  ;;  %v5996_v61 = vmul.f32 %v10701_v44, %v5755_v4  ;;  %v6130_v46 = vmax.f32 %v6066_v55, 0.0  ;;  %v11165_v4 = vld [vmem:[#allocation50_spill] sm:$0xff] }
 0x8a1   :  { %v5374_v8 = vpop.f32.mrb[108].mxu1 }
 0x8a2   :  { %6290 = vst [vmem:[#allocation9 + $0x20] sm:$0x1] %v6274_v37  ;;  %6306 = vst [vmem:[#allocation9 + $0x1f] sm:$0x4] %v6274_v37  ;;  %v6402_v58 = vadd.f32 %v6370_v34, %v6183_v9  ;;  %v5760_v26 = vadd.f32 %v11159_v38, %v5374_v8  ;;  %v5376_v7 = vpop.f32.mrb[109].mxu1  ;;  %v6067_v17 = vadd.f32 %v10709_v49, %v5996_v61 }
 0x8a3   :  { %6322 = vst [vmem:[#allocation9 + $0x1e] sm:$0x10] %v6274_v37  ;;  %6338 = vst [vmem:[#allocation9 + $0x1d] sm:$0x40] %v6274_v37  ;;  %v11166_v7 = vld [vmem:[#allocation49_spill] sm:$0xff] }
 0x8a4   :  { %v6418_v6 = vmul.f32 0.25, %v6402_v58  ;;  %v5997_v18 = vmul.f32 %v10701_v44, %v5760_v26  ;;  %v6131_v20 = vmax.f32 %v6067_v17, 0.0 }
 0x8a5   :  { %v5379_v22 = vpop.f32.mrb[110].mxu1 }
 0x8a6   :  { %6434 = vst [vmem:[#allocation9 + $0x24] sm:$0x1] %v6418_v6  ;;  %6450 = vst [vmem:[#allocation9 + $0x23] sm:$0x4] %v6418_v6  ;;  %v6068_v2 = vadd.f32 %v10709_v49, %v5997_v18  ;;  %v5765_v59 = vadd.f32 %v11160_v25, %v5379_v22  ;;  %v5381_v53 = vpop.f32.mrb[111].mxu1 }
 0x8a7   :  { %6466 = vst [vmem:[#allocation9 + $0x22] sm:$0x10] %v6418_v6  ;;  %6482 = vst [vmem:[#allocation9 + $0x21] sm:$0x40] %v6418_v6 }
 0x8a8   :  { %v6132_v40 = vmax.f32 %v6068_v2, 0.0  ;;  %v5998_v15 = vmul.f32 %v10701_v44, %v5765_v59  ;;  %v11167_v59 = vld [vmem:[#allocation52_spill] sm:$0xff] }
 0x8a9   :  { %v5384_v48 = vpop.f32.mrb[112].mxu1 }
 0x8aa   :  { %v6184_v33 = vadd.f32 %v6132_v40, %v6130_v46  ;;  %v6069_v60 = vadd.f32 %v10709_v49, %v5998_v15  ;;  %v5770_v47 = vadd.f32 %v11161_v56, %v5384_v48  ;;  %v5386_v27 = vpop.f32.mrb[113].mxu1  ;;  %v11168_v56 = vld [vmem:[#allocation51_spill] sm:$0xff] }
 0x8ac   :  { %v6227_v1 = vrot.slane %v6184_v33, 1  ;;  %v6133_v12 = vmax.f32 %v6069_v60, 0.0  ;;  %v5999_v14 = vmul.f32 %v10701_v44, %v5770_v47 }
 0x8ad   :  { %v5389_v39 = vpop.f32.mrb[114].mxu1 }
 0x8ae   :  { %v6259_v63 = vadd.f32 %v6227_v1, %v6184_v33  ;;  %v6185_v10 = vadd.f32 %v6133_v12, %v6131_v20  ;;  %v5775_v5 = vadd.f32 %v11162_v54, %v5389_v39  ;;  %v5391_v32 = vpop.f32.mrb[115].mxu1  ;;  %v6070_v13 = vadd.f32 %v10709_v49, %v5999_v14 }
 0x8b0   :  { %v6275_v19 = vmul.f32 0.25, %v6259_v63  ;;  %v6371_v50 = vrot.slane %v6185_v10, 1  ;;  %v6000_v45 = vmul.f32 %v10701_v44, %v5775_v5  ;;  %v6134_v29 = vmax.f32 %v6070_v13, 0.0  ;;  %v11169_v5 = vld [vmem:[#allocation55_spill] sm:$0xff] }
 0x8b1   :  { %v5394_v35 = vpop.f32.mrb[116].mxu1 }
 0x8b2   :  { %6291 = vst [vmem:[#allocation9 + $0x28] sm:$0x1] %v6275_v19  ;;  %6307 = vst [vmem:[#allocation9 + $0x27] sm:$0x4] %v6275_v19  ;;  %v6403_v28 = vadd.f32 %v6371_v50, %v6185_v10  ;;  %v5780_v51 = vadd.f32 %v11163_v21, %v5394_v35  ;;  %v5396_v62 = vpop.f32.mrb[117].mxu1  ;;  %v6071_v36 = vadd.f32 %v10709_v49, %v6000_v45 }
 0x8b3   :  { %6323 = vst [vmem:[#allocation9 + $0x26] sm:$0x10] %v6275_v19  ;;  %6339 = vst [vmem:[#allocation9 + $0x25] sm:$0x40] %v6275_v19  ;;  %v11170_v62 = vld [vmem:[#allocation54_spill] sm:$0xff] }
 0x8b4   :  { %v6419_v41 = vmul.f32 0.25, %v6403_v28  ;;  %v6001_v11 = vmul.f32 %v10701_v44, %v5780_v51  ;;  %v6135_v34 = vmax.f32 %v6071_v36, 0.0 }
 0x8b5   :  { %v5399_v23 = vpop.f32.mrb[118].mxu1 }
 0x8b6   :  { %6435 = vst [vmem:[#allocation9 + $0x2c] sm:$0x1] %v6419_v41  ;;  %6451 = vst [vmem:[#allocation9 + $0x2b] sm:$0x4] %v6419_v41  ;;  %v6072_v43 = vadd.f32 %v10709_v49, %v6001_v11  ;;  %v5785_v24 = vadd.f32 %v11164_v31, %v5399_v23  ;;  %v5401_v0 = vpop.f32.mrb[119].mxu1 }
 0x8b7   :  { %6467 = vst [vmem:[#allocation9 + $0x2a] sm:$0x10] %v6419_v41  ;;  %6483 = vst [vmem:[#allocation9 + $0x29] sm:$0x40] %v6419_v41 }
 0x8b8   :  { %v6136_v42 = vmax.f32 %v6072_v43, 0.0  ;;  %v6002_v3 = vmul.f32 %v10701_v44, %v5785_v24  ;;  %v11171_v24 = vld [vmem:[#allocation59_spill] sm:$0xff] }
 0x8b9   :  { %v5404_v30 = vpop.f32.mrb[120].mxu1 }
 0x8ba   :  { %v6186_v9 = vadd.f32 %v6136_v42, %v6134_v29  ;;  %v6073_v52 = vadd.f32 %v10709_v49, %v6002_v3  ;;  %v5790_v16 = vadd.f32 %v11165_v4, %v5404_v30  ;;  %v5406_v37 = vpop.f32.mrb[121].mxu1  ;;  %v11172_v4 = vld [vmem:[#allocation58_spill] sm:$0xff] }
 0x8bc   :  { %v6228_v57 = vrot.slane %v6186_v9, 1  ;;  %v6137_v8 = vmax.f32 %v6073_v52, 0.0  ;;  %v6003_v22 = vmul.f32 %v10701_v44, %v5790_v16 }
 0x8bd   :  { %v5409_v58 = vpop.f32.mrb[122].mxu1 }
 0x8be   :  { %v6260_v38 = vadd.f32 %v6228_v57, %v6186_v9  ;;  %v6187_v26 = vadd.f32 %v6137_v8, %v6135_v34  ;;  %v5795_v6 = vadd.f32 %v11166_v7, %v5409_v58  ;;  %v5411_v55 = vpop.f32.mrb[123].mxu1  ;;  %v6074_v40 = vadd.f32 %v10709_v49, %v6003_v22 }
 0x8c0   :  { %v6276_v61 = vmul.f32 0.25, %v6260_v38  ;;  %v6372_v18 = vrot.slane %v6187_v26, 1  ;;  %v6004_v15 = vmul.f32 %v10701_v44, %v5795_v6  ;;  %v6138_v20 = vmax.f32 %v6074_v40, 0.0  ;;  %v11173_v6 = vld [vmem:[#allocation63_spill] sm:$0xff] }
 0x8c1   :  { %v5414_v2 = vpop.f32.mrb[124].mxu1 }
 0x8c2   :  { %6292 = vst [vmem:[#allocation9 + $0x30] sm:$0x1] %v6276_v61  ;;  %6308 = vst [vmem:[#allocation9 + $0x2f] sm:$0x4] %v6276_v61  ;;  %v6404_v25 = vadd.f32 %v6372_v18, %v6187_v26  ;;  %v5800_v53 = vadd.f32 %v11167_v59, %v5414_v2  ;;  %v5416_v46 = vpop.f32.mrb[125].mxu1  ;;  %v6075_v1 = vadd.f32 %v10709_v49, %v6004_v15 }
 0x8c3   :  { %6324 = vst [vmem:[#allocation9 + $0x2e] sm:$0x10] %v6276_v61  ;;  %6340 = vst [vmem:[#allocation9 + $0x2d] sm:$0x40] %v6276_v61  ;;  %v11174_v46 = vld [vmem:[#allocation62_spill] sm:$0xff] }
 0x8c4   :  { %v6420_v17 = vmul.f32 0.25, %v6404_v25  ;;  %v6005_v48 = vmul.f32 %v10701_v44, %v5800_v53  ;;  %v6139_v50 = vmax.f32 %v6075_v1, 0.0 }
 0x8c5   :  { %v5419_v33 = vpop.f32.mrb[126].mxu1 }
 0x8c6   :  { %6436 = vst [vmem:[#allocation9 + $0x34] sm:$0x1] %v6420_v17  ;;  %6452 = vst [vmem:[#allocation9 + $0x33] sm:$0x4] %v6420_v17  ;;  %v6076_v60 = vadd.f32 %v10709_v49, %v6005_v48  ;;  %v5805_v47 = vadd.f32 %v11168_v56, %v5419_v33  ;;  %v5421_v27 = vpop.f32.mrb[127].mxu1 }
 0x8c7   :  { %6468 = vst [vmem:[#allocation9 + $0x32] sm:$0x10] %v6420_v17  ;;  %6484 = vst [vmem:[#allocation9 + $0x31] sm:$0x40] %v6420_v17 }
 0x8c8   :  { %v6140_v12 = vmax.f32 %v6076_v60, 0.0  ;;  %v6006_v39 = vmul.f32 %v10701_v44, %v5805_v47  ;;  %v11175_v47 = vld [vmem:[#allocation66_spill] sm:$0xff] }
 0x8c9   :  { %v5424_v63 = vpop.f32.mrb[128].mxu1 }
 0x8ca   :  { %v6188_v10 = vadd.f32 %v6140_v12, %v6138_v20  ;;  %v6077_v54 = vadd.f32 %v10709_v49, %v6006_v39  ;;  %v5810_v32 = vadd.f32 %v11169_v5, %v5424_v63  ;;  %v5426_v19 = vpop.f32.mrb[129].mxu1  ;;  %v11176_v5 = vld [vmem:[#allocation65_spill] sm:$0xff] }
 0x8cc   :  { %v6229_v14 = vrot.slane %v6188_v10, 1  ;;  %v6141_v35 = vmax.f32 %v6077_v54, 0.0  ;;  %v6007_v23 = vmul.f32 %v10701_v44, %v5810_v32 }
 0x8cd   :  { %v5429_v28 = vpop.f32.mrb[130].mxu1 }
 0x8ce   :  { %v6261_v21 = vadd.f32 %v6229_v14, %v6188_v10  ;;  %v6189_v51 = vadd.f32 %v6141_v35, %v6139_v50  ;;  %v5815_v41 = vadd.f32 %v11170_v62, %v5429_v28  ;;  %v5431_v13 = vpop.f32.mrb[131].mxu1  ;;  %v6078_v42 = vadd.f32 %v10709_v49, %v6007_v23 }
 0x8d0   :  { %v6277_v45 = vmul.f32 0.25, %v6261_v21  ;;  %v6373_v11 = vrot.slane %v6189_v51, 1  ;;  %v6008_v3 = vmul.f32 %v10701_v44, %v5815_v41  ;;  %v6142_v34 = vmax.f32 %v6078_v42, 0.0  ;;  %v11177_v41 = vld [vmem:[#allocation68_spill] sm:$0xff] }
 0x8d1   :  { %v5434_v43 = vpop.f32.mrb[132].mxu1 }
 0x8d2   :  { %6293 = vst [vmem:[#allocation9 + $0x38] sm:$0x1] %v6277_v45  ;;  %6309 = vst [vmem:[#allocation9 + $0x37] sm:$0x4] %v6277_v45  ;;  %v6405_v31 = vadd.f32 %v6373_v11, %v6189_v51  ;;  %v5820_v0 = vadd.f32 %v11171_v24, %v5434_v43  ;;  %v5436_v29 = vpop.f32.mrb[133].mxu1  ;;  %v6079_v57 = vadd.f32 %v10709_v49, %v6008_v3 }
 0x8d3   :  { %6325 = vst [vmem:[#allocation9 + $0x36] sm:$0x10] %v6277_v45  ;;  %6341 = vst [vmem:[#allocation9 + $0x35] sm:$0x40] %v6277_v45  ;;  %v11178_v29 = vld [vmem:[#allocation67_spill] sm:$0xff] }
 0x8d4   :  { %v6421_v36 = vmul.f32 0.25, %v6405_v31  ;;  %v6009_v30 = vmul.f32 %v10701_v44, %v5820_v0  ;;  %v6143_v18 = vmax.f32 %v6079_v57, 0.0 }
 0x8d5   :  { %v5439_v9 = vpop.f32.mrb[134].mxu1 }
 0x8d6   :  { %6437 = vst [vmem:[#allocation9 + $0x3c] sm:$0x1] %v6421_v36  ;;  %6453 = vst [vmem:[#allocation9 + $0x3b] sm:$0x4] %v6421_v36  ;;  %v6080_v52 = vadd.f32 %v10709_v49, %v6009_v30  ;;  %v5825_v16 = vadd.f32 %v11172_v4, %v5439_v9  ;;  %v5441_v37 = vpop.f32.mrb[135].mxu1 }
 0x8d7   :  { %6469 = vst [vmem:[#allocation9 + $0x3a] sm:$0x10] %v6421_v36  ;;  %6485 = vst [vmem:[#allocation9 + $0x39] sm:$0x40] %v6421_v36 }
 0x8d8   :  { %v6144_v8 = vmax.f32 %v6080_v52, 0.0  ;;  %v6010_v58 = vmul.f32 %v10701_v44, %v5825_v16  ;;  %v11179_v16 = vld [vmem:[#allocation72_spill] sm:$0xff] }
 0x8d9   :  { %v5444_v38 = vpop.f32.mrb[136].mxu1 }
 0x8da   :  { %v6190_v26 = vadd.f32 %v6144_v8, %v6142_v34  ;;  %v6081_v7 = vadd.f32 %v10709_v49, %v6010_v58  ;;  %v5830_v55 = vadd.f32 %v11173_v6, %v5444_v38  ;;  %v5446_v61 = vpop.f32.mrb[137].mxu1  ;;  %v11180_v6 = vld [vmem:[#allocation71_spill] sm:$0xff] }
 0x8dc   :  { %v6230_v22 = vrot.slane %v6190_v26, 1  ;;  %v6145_v2 = vmax.f32 %v6081_v7, 0.0  ;;  %v6011_v33 = vmul.f32 %v10701_v44, %v5830_v55 }
 0x8dd   :  { %v5449_v25 = vpop.f32.mrb[138].mxu1 }
 0x8de   :  { %v6262_v59 = vadd.f32 %v6230_v22, %v6190_v26  ;;  %v6191_v53 = vadd.f32 %v6145_v2, %v6143_v18  ;;  %v5835_v17 = vadd.f32 %v11174_v46, %v5449_v25  ;;  %v5451_v40 = vpop.f32.mrb[139].mxu1  ;;  %v6082_v12 = vadd.f32 %v10709_v49, %v6011_v33 }
 0x8e0   :  { %v6278_v15 = vmul.f32 0.25, %v6262_v59  ;;  %v6374_v48 = vrot.slane %v6191_v53, 1  ;;  %v6012_v39 = vmul.f32 %v10701_v44, %v5835_v17  ;;  %v6146_v50 = vmax.f32 %v6082_v12, 0.0  ;;  %v11181_v17 = vld [vmem:[#allocation76_spill] sm:$0xff] }
 0x8e1   :  { %v5454_v60 = vpop.f32.mrb[140].mxu1 }
 0x8e2   :  { %6294 = vst [vmem:[#allocation9 + $0x40] sm:$0x1] %v6278_v15  ;;  %6310 = vst [vmem:[#allocation9 + $0x3f] sm:$0x4] %v6278_v15  ;;  %v6406_v56 = vadd.f32 %v6374_v48, %v6191_v53  ;;  %v5840_v27 = vadd.f32 %v11175_v47, %v5454_v60  ;;  %v5456_v20 = vpop.f32.mrb[141].mxu1  ;;  %v6083_v14 = vadd.f32 %v10709_v49, %v6012_v39 }
 0x8e3   :  { %6326 = vst [vmem:[#allocation9 + $0x3e] sm:$0x10] %v6278_v15  ;;  %6342 = vst [vmem:[#allocation9 + $0x3d] sm:$0x40] %v6278_v15  ;;  %v11182_v20 = vld [vmem:[#allocation75_spill] sm:$0xff] }
 0x8e4   :  { %v6422_v1 = vmul.f32 0.25, %v6406_v56  ;;  %v6013_v63 = vmul.f32 %v10701_v44, %v5840_v27  ;;  %v6147_v11 = vmax.f32 %v6083_v14, 0.0 }
 0x8e5   :  { %v5459_v10 = vpop.f32.mrb[142].mxu1 }
 0x8e6   :  { %6438 = vst [vmem:[#allocation9 + $0x44] sm:$0x1] %v6422_v1  ;;  %6454 = vst [vmem:[#allocation9 + $0x43] sm:$0x4] %v6422_v1  ;;  %v6084_v54 = vadd.f32 %v10709_v49, %v6013_v63  ;;  %v5845_v32 = vadd.f32 %v11176_v5, %v5459_v10  ;;  %v5461_v19 = vpop.f32.mrb[143].mxu1 }
 0x8e7   :  { %6470 = vst [vmem:[#allocation9 + $0x42] sm:$0x10] %v6422_v1  ;;  %6486 = vst [vmem:[#allocation9 + $0x41] sm:$0x40] %v6422_v1 }
 0x8e8   :  { %v6148_v35 = vmax.f32 %v6084_v54, 0.0  ;;  %v6014_v28 = vmul.f32 %v10701_v44, %v5845_v32  ;;  %v11183_v32 = vld [vmem:[#allocation80_spill] sm:$0xff] }
 0x8e9   :  { %v5464_v21 = vpop.f32.mrb[144].mxu1 }
 0x8ea   :  { %v6192_v51 = vadd.f32 %v6148_v35, %v6146_v50  ;;  %v6085_v62 = vadd.f32 %v10709_v49, %v6014_v28  ;;  %v5850_v13 = vadd.f32 %v11177_v41, %v5464_v21  ;;  %v5466_v45 = vpop.f32.mrb[145].mxu1  ;;  %v11184_v41 = vld [vmem:[#allocation79_spill] sm:$0xff] }
 0x8ec   :  { %v6231_v23 = vrot.slane %v6192_v51, 1  ;;  %v6149_v43 = vmax.f32 %v6085_v62, 0.0  ;;  %v6015_v9 = vmul.f32 %v10701_v44, %v5850_v13 }
 0x8ed   :  { %v5469_v31 = vpop.f32.mrb[146].mxu1 }
 0x8ee   :  { %v6263_v24 = vadd.f32 %v6231_v23, %v6192_v51  ;;  %v6193_v0 = vadd.f32 %v6149_v43, %v6147_v11  ;;  %v5855_v36 = vadd.f32 %v11178_v29, %v5469_v31  ;;  %v5471_v42 = vpop.f32.mrb[147].mxu1  ;;  %v6086_v8 = vadd.f32 %v10709_v49, %v6015_v9 }
 0x8f0   :  { %v6279_v3 = vmul.f32 0.25, %v6263_v24  ;;  %v6375_v30 = vrot.slane %v6193_v0, 1  ;;  %v6016_v58 = vmul.f32 %v10701_v44, %v5855_v36  ;;  %v6150_v18 = vmax.f32 %v6086_v8, 0.0  ;;  %v11185_v36 = vld [vmem:[#allocation83_spill] sm:$0xff] }
 0x8f1   :  { %v5474_v52 = vpop.f32.mrb[148].mxu1 }
 0x8f2   :  { %6295 = vst [vmem:[#allocation9 + $0x48] sm:$0x1] %v6279_v3  ;;  %6311 = vst [vmem:[#allocation9 + $0x47] sm:$0x4] %v6279_v3  ;;  %v6407_v4 = vadd.f32 %v6375_v30, %v6193_v0  ;;  %v5860_v37 = vadd.f32 %v11179_v16, %v5474_v52  ;;  %v5476_v34 = vpop.f32.mrb[149].mxu1  ;;  %v6087_v22 = vadd.f32 %v10709_v49, %v6016_v58 }
 0x8f3   :  { %6327 = vst [vmem:[#allocation9 + $0x46] sm:$0x10] %v6279_v3  ;;  %6343 = vst [vmem:[#allocation9 + $0x45] sm:$0x40] %v6279_v3  ;;  %v11186_v34 = vld [vmem:[#allocation82_spill] sm:$0xff] }
 0x8f4   :  { %v6423_v57 = vmul.f32 0.25, %v6407_v4  ;;  %v6017_v38 = vmul.f32 %v10701_v44, %v5860_v37  ;;  %v6151_v48 = vmax.f32 %v6087_v22, 0.0  ;;  %v10874_v22 = vld [vmem:[%s10933_s6] ss:$0 sm:$0xff] }
 0x8f5   :  { %v5479_v26 = vpop.f32.mrb[150].mxu1 }
 0x8f6   :  { %6439 = vst [vmem:[#allocation9 + $0x4c] sm:$0x1] %v6423_v57  ;;  %6455 = vst [vmem:[#allocation9 + $0x4b] sm:$0x4] %v6423_v57  ;;  %v6088_v7 = vadd.f32 %v10709_v49, %v6017_v38  ;;  %v5865_v55 = vadd.f32 %v11180_v6, %v5479_v26  ;;  %v5481_v61 = vpop.f32.mrb[151].mxu1  ;;  %v11187_v6 = vld [vmem:[#allocation85_spill] sm:$0xff] }
 0x8f7   :  { %6471 = vst [vmem:[#allocation9 + $0x4a] sm:$0x10] %v6423_v57  ;;  %6487 = vst [vmem:[#allocation9 + $0x49] sm:$0x40] %v6423_v57 }
 0x8f8   :  { %v6152_v2 = vmax.f32 %v6088_v7, 0.0  ;;  %v6018_v25 = vmul.f32 %v10701_v44, %v5865_v55 }
 0x8f9   :  { %v5484_v59 = vpop.f32.mrb[152].mxu1 }
 0x8fa   :  { %v6194_v53 = vadd.f32 %v6152_v2, %v6150_v18  ;;  %v6089_v46 = vadd.f32 %v10709_v49, %v6018_v25  ;;  %v5870_v40 = vadd.f32 %v11181_v17, %v5484_v59  ;;  %v5486_v15 = vpop.f32.mrb[153].mxu1  ;;  %v11188_v17 = vld [vmem:[#allocation84_spill] sm:$0xff] }
 0x8fc   :  { %v6232_v33 = vrot.slane %v6194_v53, 1  ;;  %v6153_v60 = vmax.f32 %v6089_v46, 0.0  ;;  %v6019_v10 = vmul.f32 %v10701_v44, %v5870_v40 }
 0x8fd   :  { %v5489_v56 = vpop.f32.mrb[154].mxu1 }
 0x8fe   :  { %v6264_v47 = vadd.f32 %v6232_v33, %v6194_v53  ;;  %v6195_v27 = vadd.f32 %v6153_v60, %v6151_v48  ;;  %v5875_v1 = vadd.f32 %v11182_v20, %v5489_v56  ;;  %v5491_v12 = vpop.f32.mrb[155].mxu1  ;;  %v6090_v35 = vadd.f32 %v10709_v49, %v6019_v10 }
 0x900   :  { %v6280_v39 = vmul.f32 0.25, %v6264_v47  ;;  %v6376_v63 = vrot.slane %v6195_v27, 1  ;;  %v6020_v28 = vmul.f32 %v10701_v44, %v5875_v1  ;;  %v6154_v11 = vmax.f32 %v6090_v35, 0.0  ;;  %v11189_v1 = vld [vmem:[#allocation87_spill] sm:$0xff] }
 0x901   :  { %v5494_v54 = vpop.f32.mrb[156].mxu1 }
 0x902   :  { %6296 = vst [vmem:[#allocation9 + $0x50] sm:$0x1] %v6280_v39  ;;  %6312 = vst [vmem:[#allocation9 + $0x4f] sm:$0x4] %v6280_v39  ;;  %v6408_v5 = vadd.f32 %v6376_v63, %v6195_v27  ;;  %v5880_v19 = vadd.f32 %v11183_v32, %v5494_v54  ;;  %v5496_v50 = vpop.f32.mrb[157].mxu1  ;;  %v6091_v23 = vadd.f32 %v10709_v49, %v6020_v28 }
 0x903   :  { %6328 = vst [vmem:[#allocation9 + $0x4e] sm:$0x10] %v6280_v39  ;;  %6344 = vst [vmem:[#allocation9 + $0x4d] sm:$0x40] %v6280_v39  ;;  %v11190_v50 = vld [vmem:[#allocation86_spill] sm:$0xff] }
 0x904   :  { %v6424_v14 = vmul.f32 0.25, %v6408_v5  ;;  %v6021_v21 = vmul.f32 %v10701_v44, %v5880_v19  ;;  %v6155_v30 = vmax.f32 %v6091_v23, 0.0 }
 0x905   :  { %v5499_v51 = vpop.f32.mrb[158].mxu1 }
 0x906   :  { %6440 = vst [vmem:[#allocation9 + $0x54] sm:$0x1] %v6424_v14  ;;  %6456 = vst [vmem:[#allocation9 + $0x53] sm:$0x4] %v6424_v14  ;;  %v6092_v62 = vadd.f32 %v10709_v49, %v6021_v21  ;;  %v5885_v13 = vadd.f32 %v11184_v41, %v5499_v51  ;;  %v5501_v45 = vpop.f32.mrb[159].mxu1 }
 0x907   :  { %6472 = vst [vmem:[#allocation9 + $0x52] sm:$0x10] %v6424_v14  ;;  %6488 = vst [vmem:[#allocation9 + $0x51] sm:$0x40] %v6424_v14 }
 0x908   :  { %v6156_v43 = vmax.f32 %v6092_v62, 0.0  ;;  %v6022_v31 = vmul.f32 %v10701_v44, %v5885_v13  ;;  %v10867_v44 = vld [vmem:[%s10932_s5] ss:$0 sm:$0xff]  ;;  %s8257_s5 = smov [#allocation9]  }
 0x909   :  { %v5504_v24 = vpop.f32.mrb[160].mxu1  ;;  %v11191_v13 = vld [vmem:[#allocation89_spill] sm:$0xff]  ;;  %s6499_s6 = sshll.u32 %s8257_s5, 4  ;;  %s6500_s6 = int_to_ptr.vmem [resolvable:$true] %s6499_s6 }
 0x90a   :  { %v6196_v0 = vadd.f32 %v6156_v43, %v6154_v11  ;;  %v6093_v29 = vadd.f32 %v10709_v49, %v6022_v31  ;;  %v5890_v42 = vadd.f32 %v11185_v36, %v5504_v24  ;;  %v5506_v3 = vpop.f32.mrb[161].mxu1  ;;  %v11192_v36 = vld [vmem:[#allocation88_spill] sm:$0xff]  ;;  %s8223_s28 = scalar_lea.vmem %s6500_s6, 2048  ;;  %p8228_p3 = scmp.lt.s32.totalorder %s6500_s6, %s6500_s6 }
 0x90b   :  { %p8224_p2 = scmp.ne.s32.totalorder %s6500_s6, %s8223_s28  ;;  %p8229_p4 = scmp.lt.s32.totalorder %s8223_s28, %s8223_s28 }
 0x90c   :  { %v6233_v9 = vrot.slane %v6196_v0, 1  ;;  %v6157_v52 = vmax.f32 %v6093_v29, 0.0  ;;  %v6023_v49 = vmul.f32 %v10867_v44, %v5890_v42 }
 0x90d   :  { %v5509_v4 = vpop.f32.mrb[162].mxu1  ;;  %p8230_p5 = por %p8229_p4, %p8228_p3 }
 0x90e   :  { %v6265_v16 = vadd.f32 %v6233_v9, %v6196_v0  ;;  %v6197_v37 = vadd.f32 %v6157_v52, %v6155_v30  ;;  %v5895_v57 = vadd.f32 %v11186_v34, %v5509_v4  ;;  %v5511_v8 = vpop.f32.mrb[163].mxu1  ;;  %v6094_v2 = vadd.f32 %v10874_v22, %v6023_v49 }
 0x90f   :  { %p8231_p6 = pnand %p8230_p5, %p8224_p2 }
 0x910   :  { %v6281_v58 = vmul.f32 0.25, %v6265_v16  ;;  %v6377_v38 = vrot.slane %v6197_v37, 1  ;;  %v6024_v25 = vmul.f32 %v10867_v44, %v5895_v57  ;;  %v6158_v48 = vmax.f32 %v6094_v2, 0.0 }
 0x911   :  { %v5514_v26 = vpop.f32.mrb[164].mxu1 }
 0x912   :  { %6297 = vst [vmem:[#allocation9 + $0x58] sm:$0x1] %v6281_v58  ;;  %6313 = vst [vmem:[#allocation9 + $0x57] sm:$0x4] %v6281_v58  ;;  %v6409_v7 = vadd.f32 %v6377_v38, %v6197_v37  ;;  %v5900_v55 = vadd.f32 %v11187_v6, %v5514_v26  ;;  %v5516_v61 = vpop.f32.mrb[165].mxu1  ;;  %v6095_v33 = vadd.f32 %v10874_v22, %v6024_v25 }
 0x913   :  { %6329 = vst [vmem:[#allocation9 + $0x56] sm:$0x10] %v6281_v58  ;;  %6345 = vst [vmem:[#allocation9 + $0x55] sm:$0x40] %v6281_v58 }
 0x914   :  { %v6425_v18 = vmul.f32 0.25, %v6409_v7  ;;  %v6025_v59 = vmul.f32 %v10867_v44, %v5900_v55  ;;  %v6159_v63 = vmax.f32 %v6095_v33, 0.0 }
 0x915   :  { %v5519_v53 = vpop.f32.mrb[166].mxu1 }
 0x916   :  { %6441 = vst [vmem:[#allocation9 + $0x5c] sm:$0x1] %v6425_v18  ;;  %6457 = vst [vmem:[#allocation9 + $0x5b] sm:$0x4] %v6425_v18  ;;  %v6096_v46 = vadd.f32 %v10874_v22, %v6025_v59  ;;  %v5905_v40 = vadd.f32 %v11188_v17, %v5519_v53  ;;  %v5521_v15 = vpop.f32.mrb[167].mxu1 }
 0x917   :  { %6473 = vst [vmem:[#allocation9 + $0x5a] sm:$0x10] %v6425_v18  ;;  %6489 = vst [vmem:[#allocation9 + $0x59] sm:$0x40] %v6425_v18 }
 0x918   :  { %v6160_v60 = vmax.f32 %v6096_v46, 0.0  ;;  %v6026_v56 = vmul.f32 %v10867_v44, %v5905_v40 }
 0x919   :  { %v5524_v47 = vpop.f32.mrb[168].mxu1 }
 0x91a   :  { %v6198_v27 = vadd.f32 %v6160_v60, %v6158_v48  ;;  %v6097_v20 = vadd.f32 %v10874_v22, %v6026_v56  ;;  %v5910_v12 = vadd.f32 %v11189_v1, %v5524_v47  ;;  %v5526_v39 = vpop.f32.mrb[169].mxu1 }
 0x91c   :  { %v6234_v10 = vrot.slane %v6198_v27, 1  ;;  %v6161_v54 = vmax.f32 %v6097_v20, 0.0  ;;  %v6027_v51 = vmul.f32 %v10867_v44, %v5910_v12 }
 0x91d   :  { %v5529_v5 = vpop.f32.mrb[170].mxu1 }
 0x91e   :  { %v6266_v32 = vadd.f32 %v6234_v10, %v6198_v27  ;;  %v6199_v19 = vadd.f32 %v6161_v54, %v6159_v63  ;;  %v5915_v14 = vadd.f32 %v11190_v50, %v5529_v5  ;;  %v5531_v35 = vpop.f32.mrb[171].mxu1  ;;  %v6098_v43 = vadd.f32 %v10874_v22, %v6027_v51 }
 0x920   :  { %v6282_v28 = vmul.f32 0.25, %v6266_v32  ;;  %v6378_v21 = vrot.slane %v6199_v19, 1  ;;  %v6028_v31 = vmul.f32 %v10867_v44, %v5915_v14  ;;  %v6162_v30 = vmax.f32 %v6098_v43, 0.0 }
 0x921   :  { %v5534_v62 = vpop.f32.mrb[172].mxu1 }
 0x922   :  { %6298 = vst [vmem:[#allocation9 + $0x60] sm:$0x1] %v6282_v28  ;;  %6314 = vst [vmem:[#allocation9 + $0x5f] sm:$0x4] %v6282_v28  ;;  %v6410_v41 = vadd.f32 %v6378_v21, %v6199_v19  ;;  %v5920_v45 = vadd.f32 %v11191_v13, %v5534_v62  ;;  %v5536_v11 = vpop.f32.mrb[173].mxu1  ;;  %v6099_v9 = vadd.f32 %v10874_v22, %v6028_v31 }
 0x923   :  { %6330 = vst [vmem:[#allocation9 + $0x5e] sm:$0x10] %v6282_v28  ;;  %6346 = vst [vmem:[#allocation9 + $0x5d] sm:$0x40] %v6282_v28 }
 0x924   :  { %v6426_v23 = vmul.f32 0.25, %v6410_v41  ;;  %v6029_v24 = vmul.f32 %v10867_v44, %v5920_v45  ;;  %v6163_v8 = vmax.f32 %v6099_v9, 0.0 }
 0x925   :  { %v5539_v0 = vpop.f32.mrb[174].mxu1 }
 0x926   :  { %6442 = vst [vmem:[#allocation9 + $0x64] sm:$0x1] %v6426_v23  ;;  %6458 = vst [vmem:[#allocation9 + $0x63] sm:$0x4] %v6426_v23  ;;  %v6100_v29 = vadd.f32 %v10874_v22, %v6029_v24  ;;  %v5925_v42 = vadd.f32 %v11192_v36, %v5539_v0  ;;  %v5541_v3 = vpop.f32.mrb[175].mxu1 }
 0x927   :  { %6474 = vst [vmem:[#allocation9 + $0x62] sm:$0x10] %v6426_v23  ;;  %6490 = vst [vmem:[#allocation9 + $0x61] sm:$0x40] %v6426_v23 }
 0x928   :  { %v6164_v52 = vmax.f32 %v6100_v29, 0.0  ;;  %v6030_v4 = vmul.f32 %v10867_v44, %v5925_v42 }
 0x929   :  { %v5544_v16 = vpop.f32.mrb[176].mxu1 }
 0x92a   :  { %v6200_v37 = vadd.f32 %v6164_v52, %v6162_v30  ;;  %v6101_v34 = vadd.f32 %v10874_v22, %v6030_v4  ;;  %v5546_v57 = vpop.f32.mrb[177].mxu1 }
 0x92c   :  { %v6235_v58 = vrot.slane %v6200_v37, 1  ;;  %v6165_v38 = vmax.f32 %v6101_v34, 0.0 }
 0x92d   :  { %v5549_v49 = vpop.f32.mrb[178].mxu1 }
 0x92e   :  { %v6267_v26 = vadd.f32 %v6235_v58, %v6200_v37  ;;  %v6201_v7 = vadd.f32 %v6165_v38, %v6163_v8  ;;  %v5551_v6 = vpop.f32.mrb[179].mxu1 }
 0x930   :  { %v6283_v55 = vmul.f32 0.25, %v6267_v26  ;;  %v6379_v61 = vrot.slane %v6201_v7, 1 }
 0x931   :  { %v5554_v18 = vpop.f32.mrb[180].mxu1 }
 0x932   :  { %6299 = vst [vmem:[#allocation9 + $0x68] sm:$0x1] %v6283_v55  ;;  %6315 = vst [vmem:[#allocation9 + $0x67] sm:$0x4] %v6283_v55  ;;  %v6411_v2 = vadd.f32 %v6379_v61, %v6201_v7  ;;  %v5556_v25 = vpop.f32.mrb[181].mxu1 }
 0x933   :  { %6331 = vst [vmem:[#allocation9 + $0x66] sm:$0x10] %v6283_v55  ;;  %6347 = vst [vmem:[#allocation9 + $0x65] sm:$0x40] %v6283_v55 }
 0x934   :  { %v6427_v59 = vmul.f32 0.25, %v6411_v2 }
 0x935   :  { %v5559_v53 = vpop.f32.mrb[182].mxu1 }
 0x936   :  { %6443 = vst [vmem:[#allocation9 + $0x6c] sm:$0x1] %v6427_v59  ;;  %6459 = vst [vmem:[#allocation9 + $0x6b] sm:$0x4] %v6427_v59  ;;  %v5561_v46 = vpop.f32.mrb[183].mxu1 }
 0x937   :  { %6475 = vst [vmem:[#allocation9 + $0x6a] sm:$0x10] %v6427_v59  ;;  %6491 = vst [vmem:[#allocation9 + $0x69] sm:$0x40] %v6427_v59 }
 0x939   :  { %v5564_v17 = vpop.f32.mrb[184].mxu1 }
 0x93a   :  { %v5566_v40 = vpop.f32.mrb[185].mxu1 }
 0x93d   :  { %v5569_v15 = vpop.f32.mrb[186].mxu1 }
 0x93e   :  { %v5571_v48 = vpop.f32.mrb[187].mxu1 }
 0x941   :  { %v5574_v33 = vpop.f32.mrb[188].mxu1 }
 0x942   :  { %v5576_v60 = vpop.f32.mrb[189].mxu1 }
 0x945   :  { %v5579_v56 = vpop.f32.mrb[190].mxu1 }
 0x946   :  { %v5581_v47 = vpop.f32.mrb[191].mxu1 }
 0x949   :  { %v6922_v27 = vpop.f32.mrb[192].mxu1 }
 0x94a   :  { %v5935_v20 = vadd.f32 %v6922_v27, %v5549_v49  ;;  %v5929_v1 = vpop.f32.mrb[193].mxu1 }
 0x94b   :  { %v5930_v12 = vadd.f32 %v5929_v1, %v5544_v16 }
 0x94c   :  { %v6032_v39 = vmul.f32 %v10867_v44, %v5935_v20 }
 0x94d   :  { %v6031_v63 = vmul.f32 %v10867_v44, %v5930_v12  ;;  %v6925_v10 = vpop.f32.mrb[194].mxu1 }
 0x94e   :  { %v5945_v54 = vadd.f32 %v6925_v10, %v5559_v53  ;;  %v5939_v5 = vpop.f32.mrb[195].mxu1  ;;  %v6103_v19 = vadd.f32 %v10874_v22, %v6032_v39 }
 0x94f   :  { %v5940_v32 = vadd.f32 %v5939_v5, %v5554_v18  ;;  %v6102_v14 = vadd.f32 %v10874_v22, %v6031_v63 }
 0x950   :  { %v6034_v50 = vmul.f32 %v10867_v44, %v5945_v54  ;;  %v6167_v45 = vmax.f32 %v6103_v19, 0.0 }
 0x951   :  { %v6033_v35 = vmul.f32 %v10867_v44, %v5940_v32  ;;  %v6928_v28 = vpop.f32.mrb[196].mxu1  ;;  %v6166_v43 = vmax.f32 %v6102_v14, 0.0 }
 0x952   :  { %v6105_v21 = vadd.f32 %v10874_v22, %v6034_v50  ;;  %v5955_v51 = vadd.f32 %v6928_v28, %v5569_v15  ;;  %v5949_v62 = vpop.f32.mrb[197].mxu1 }
 0x953   :  { %v6104_v41 = vadd.f32 %v10874_v22, %v6033_v35  ;;  %v5950_v13 = vadd.f32 %v5949_v62, %v5564_v17 }
 0x954   :  { %v6169_v11 = vmax.f32 %v6105_v21, 0.0  ;;  %v6036_v23 = vmul.f32 %v10867_v44, %v5955_v51 }
 0x955   :  { %v6168_v31 = vmax.f32 %v6104_v41, 0.0  ;;  %v6035_v24 = vmul.f32 %v10867_v44, %v5950_v13  ;;  %v6931_v0 = vpop.f32.mrb[198].mxu1 }
 0x956   :  { %v6203_v29 = vadd.f32 %v6169_v11, %v6167_v45  ;;  %v5965_v36 = vadd.f32 %v6931_v0, %v5579_v56  ;;  %v5959_v42 = vpop.f32.mrb[199].mxu1  ;;  %v6107_v52 = vadd.f32 %v10874_v22, %v6036_v23 }
 0x957   :  { %v6202_v3 = vadd.f32 %v6168_v31, %v6166_v43  ;;  %v5960_v30 = vadd.f32 %v5959_v42, %v5574_v33  ;;  %v6106_v37 = vadd.f32 %v10874_v22, %v6035_v24 }
 0x958   :  { %v6380_v9 = vrot.slane %v6203_v29, 1  ;;  %v6038_v4 = vmul.f32 %v10867_v44, %v5965_v36  ;;  %v6171_v26 = vmax.f32 %v6107_v52, 0.0 }
 0x959   :  { %v6236_v16 = vrot.slane %v6202_v3, 1  ;;  %v6037_v34 = vmul.f32 %v10867_v44, %v5960_v30  ;;  %v6170_v55 = vmax.f32 %v6106_v37, 0.0 }
 0x95a   :  { %v6412_v57 = vadd.f32 %v6380_v9, %v6203_v29  ;;  %v6109_v8 = vadd.f32 %v10874_v22, %v6038_v4 }
 0x95b   :  { %v6268_v58 = vadd.f32 %v6236_v16, %v6202_v3  ;;  %v6108_v38 = vadd.f32 %v10874_v22, %v6037_v34 }
 0x95c   :  { %v6428_v49 = vmul.f32 0.25, %v6412_v57  ;;  %v6173_v7 = vmax.f32 %v6109_v8, 0.0 }
 0x95d   :  { %v6284_v6 = vmul.f32 0.25, %v6268_v58  ;;  %v6172_v61 = vmax.f32 %v6108_v38, 0.0 }
 0x95e   :  { %6444 = vst [vmem:[#allocation9 + $0x74] sm:$0x1] %v6428_v49  ;;  %6460 = vst [vmem:[#allocation9 + $0x73] sm:$0x4] %v6428_v49  ;;  %v6205_v18 = vadd.f32 %v6173_v7, %v6171_v26 }
 0x95f   :  { %6476 = vst [vmem:[#allocation9 + $0x72] sm:$0x10] %v6428_v49  ;;  %6492 = vst [vmem:[#allocation9 + $0x71] sm:$0x40] %v6428_v49  ;;  %v6204_v44 = vadd.f32 %v6172_v61, %v6170_v55 }
 0x960   :  { %6300 = vst [vmem:[#allocation9 + $0x70] sm:$0x1] %v6284_v6  ;;  %6316 = vst [vmem:[#allocation9 + $0x6f] sm:$0x4] %v6284_v6  ;;  %v6381_v2 = vrot.slane %v6205_v18, 1 }
 0x961   :  { %6332 = vst [vmem:[#allocation9 + $0x6e] sm:$0x10] %v6284_v6  ;;  %6348 = vst [vmem:[#allocation9 + $0x6d] sm:$0x40] %v6284_v6  ;;  %v6237_v25 = vrot.slane %v6204_v44, 1 }
 0x962   :  { %v6413_v59 = vadd.f32 %v6381_v2, %v6205_v18 }
 0x963   :  { %v6269_v22 = vadd.f32 %v6237_v25, %v6204_v44 }
 0x964   :  { %v6429_v53 = vmul.f32 0.25, %v6413_v59 }
 0x965   :  { %v6285_v46 = vmul.f32 0.25, %v6269_v22 }
 0x966   :  { %6445 = vst [vmem:[#allocation9 + $0x7c] sm:$0x1] %v6429_v53  ;;  %6461 = vst [vmem:[#allocation9 + $0x7b] sm:$0x4] %v6429_v53 }
 0x967   :  { %6477 = vst [vmem:[#allocation9 + $0x7a] sm:$0x10] %v6429_v53  ;;  %6493 = vst [vmem:[#allocation9 + $0x79] sm:$0x40] %v6429_v53 }
 0x968   :  { %6301 = vst [vmem:[#allocation9 + $0x78] sm:$0x1] %v6285_v46  ;;  %6317 = vst [vmem:[#allocation9 + $0x77] sm:$0x4] %v6285_v46 }
 0x969   :  { %6333 = vst [vmem:[#allocation9 + $0x76] sm:$0x10] %v6285_v46  ;;  %6349 = vst [vmem:[#allocation9 + $0x75] sm:$0x40] %v6285_v46 }
 0x96a   :  { %8234 = shalt.err (!%p8231_p6)
}
 0x96b   :  { %s8235_s8 = scalar_lea.hbm %s10934_s7, 2048 }
 0x96c   :  { %p8236_p7 = scmp.ne.s32.totalorder %s10934_s7, %s8235_s8  ;;  %p8239_p8 = scmp.lt.u32.totalorder %s8235_s8, %s10934_s7 }
 0x96e   :  { %p8241_p9 = pnand %p8239_p8, %p8236_p7 }
 0x970   :  { %8244 = shalt.err (!%p8241_p9)
}
 0x971   :  { %6505 = dma.vmem_to_hbm [thread:$0]  %s6500_s6, 2048, %s10934_s7, [#allocation6], %s8252_s11, %s8252_s11, %s8253_s12  }
 0x972   :  { %8249 = dma.done.wait [#allocation6], 2048  }
 0x973   :  { %8250 = vsyncadd [#allocation6], 4294965248 }
 0x974   :  { %6509 = vsyncpa [#allocation5], 1 }
 0x975   :  { %6510 = vsyncpa [#allocation8], 1 }
 0x976   :  { %6511 = vsyncpa [#allocation6], 1 }

</bundles_post_ra>
